<compile_context>
chip_gen: v7x
topology: tpu7x:2x2x1
jax: 0.10.0
libtpu: 0.0.40
codegen_flags: <defaults>
</compile_context>

<pallas_src>
import math
from functools import partial

import jax
import jax.numpy as jnp
from jax.experimental import pallas as pl
from jax.experimental.pallas import tpu as pltpu

# ----------------------------- small ViT config -----------------------------
IMG = 16            # spatial size
CHANS = 3           # RGB (what the pretrained ViT expects)
PATCH = 8           # patch size (real model: 14)
DIM = 64            # embed dim (real: 768)
DEPTH = 2           # blocks (real: 12)
HEADS = 4           # heads (real: 12)
HEAD_DIM = DIM // HEADS
MLP_DIM = 4 * DIM
P = (IMG // PATCH) ** 2               # number of patches per image
N = P + 1                             # + CLS token (real tokens)
N_PAD = ((N + 7) // 8) * 8            # tokens padded per image to a full sublane tile
PATCH_DIM = CHANS * PATCH * PATCH
LN_EPS = 1e-6                         # DINOv2 uses LayerNorm(eps=1e-6)
SCALE = HEAD_DIM ** -0.5
NEG_INF = -1e9

B_TILE = 16                           # images folded into the matmul M dim per grid step
M_TILE = B_TILE * N_PAD               # stacked token rows per grid step (=128)

# bf16 MXU inputs (f32 accumulation).  Flip to jnp.float32 for exact-f32 numerics.
MXU_DTYPE = jnp.bfloat16


def _layer_norm(x, w, b):
    mu = jnp.mean(x, axis=-1, keepdims=True)
    var = jnp.mean(jnp.square(x - mu), axis=-1, keepdims=True)
    return (x - mu) * jax.lax.rsqrt(var + LN_EPS) * w + b


def _mm(a, b):
    # MXU matmul: bf16 inputs (no-op cast if already bf16), f32 accumulation.
    return jnp.dot(a.astype(MXU_DTYPE), b.astype(MXU_DTYPE),
                   preferred_element_type=jnp.float32)


def _mm_t(a, b):
    # A @ B.T (contraction over the last dim of both), bf16 in / f32 out.
    return jax.lax.dot_general(
        a.astype(MXU_DTYPE), b.astype(MXU_DTYPE),
        dimension_numbers=(((1,), (1,)), ((), ())),
        preferred_element_type=jnp.float32)


def vit_encoder_kernel(
    patches_ref,                      # (M_TILE, PATCH_DIM) bf16, stacked padded tokens
    mask_ref,                         # (M_TILE, M_TILE) f32 block-diag + pad-key mask
    pe_w_ref,                         # (PATCH_DIM, DIM) bf16
    add_emb_ref,                      # (M_TILE, DIM) f32 cls/pos/conv-bias table
    n1w_ref, n1b_ref,                 # (DEPTH, 1, DIM) f32
    qkvw_ref, qkvb_ref,               # (DEPTH, DIM, 3*DIM) bf16, (DEPTH, 1, 3*DIM) f32
    projw_ref, projb_ref,             # (DEPTH, DIM, DIM) bf16, (DEPTH, 1, DIM) f32
    ls1_ref,                          # (DEPTH, 1, DIM) f32
    n2w_ref, n2b_ref,                 # (DEPTH, 1, DIM) f32
    fc1w_ref, fc1b_ref,               # (DEPTH, DIM, MLP_DIM) bf16, (DEPTH, 1, MLP_DIM) f32
    fc2w_ref, fc2b_ref,               # (DEPTH, MLP_DIM, DIM) bf16, (DEPTH, 1, DIM) f32
    ls2_ref,                          # (DEPTH, 1, DIM) f32
    nfw_ref, nfb_ref,                 # (1, DIM) f32 final norm
    out_ref,                          # (B_TILE, DIM) f32 CLS features for this tile
    qkv_scr,                          # VMEM (M_TILE, 3*DIM) bf16 scratch
):
    # ---- patch embedding on the whole batch tile at once (M = M_TILE rows) ----
    # CLS/pad rows of patches are zero, so adding the fused per-row table gives
    # exactly: [cls+pos0 | patch@W + b + pos_i | 0-pad] with no concat / scratch.
    x2 = _mm(patches_ref[...], pe_w_ref[...]) + add_emb_ref[...]   # (M_TILE, DIM) f32

    for l in range(DEPTH):
        # -------- attention branch: x = x + ls1 * proj(MHSA(LN1(x))) --------
        h2 = _layer_norm(x2, n1w_ref[l], n1b_ref[l])
        qkv2 = _mm(h2, qkvw_ref[l]) + qkvb_ref[l]                  # (M_TILE, 3*DIM) f32
        # Stage qkv in a bf16 VMEM scratch: bounds vreg live ranges across the
        # unrolled head loop and feeds the MXU directly in bf16.
        qkv_scr[...] = qkv2.astype(MXU_DTYPE)

        o_heads = []
        for hh in range(HEADS):
            q = qkv_scr[:, hh * HEAD_DIM:(hh + 1) * HEAD_DIM] * SCALE      # bf16, exact *0.25
            k = qkv_scr[:, DIM + hh * HEAD_DIM: DIM + (hh + 1) * HEAD_DIM]
            v = qkv_scr[:, 2 * DIM + hh * HEAD_DIM: 2 * DIM + (hh + 1) * HEAD_DIM]
            # One full-width (M_TILE, M_TILE) score matmul per head; the precomputed
            # block-diagonal mask keeps attention per-image and masks pad keys, so
            # softmax is lane-dense over all 128 lanes.
            s = _mm_t(q, k) + mask_ref[...]                                # (M_TILE, M_TILE) f32
            s = s - jnp.max(s, axis=-1, keepdims=True)
            p = jnp.exp(s)
            p = p * pl.reciprocal(jnp.sum(p, axis=-1, keepdims=True), approx=True)
            o_heads.append(_mm(p, v).astype(MXU_DTYPE))                    # (M_TILE, HEAD_DIM)

        # Single output projection on the concatenated heads (K=DIM, not 4x K=16).
        o_cat = jnp.concatenate(o_heads, axis=-1)                          # (M_TILE, DIM) bf16
        attn2 = _mm(o_cat, projw_ref[l]) + projb_ref[l]
        x2 = x2 + ls1_ref[l] * attn2                                       # LayerScale + residual

        # -------- MLP branch: x = x + ls2 * fc2(gelu(fc1(LN2(x)))) --------
        h2 = _layer_norm(x2, n2w_ref[l], n2b_ref[l])
        h2 = _mm(h2, fc1w_ref[l]) + fc1b_ref[l]
        # TODO(synk): PyTorch nn.GELU() is exact erf-GELU; tanh approximation used for
        # Mosaic-safe lowering (reference uses the same approximation).
        h2 = jax.nn.gelu(h2, approximate=True)
        h2 = _mm(h2, fc2w_ref[l]) + fc2b_ref[l]
        x2 = x2 + ls2_ref[l] * h2

    # ---- gather CLS rows (row b*N_PAD of each image) as a tiny one-hot matmul ----
    # Exact (multiplies by 1.0/0.0, f32); avoids a strided-sublane slice relayout.
    row_ids = jax.lax.broadcasted_iota(jnp.int32, (B_TILE, M_TILE), 0)
    col_ids = jax.lax.broadcasted_iota(jnp.int32, (B_TILE, M_TILE), 1)
    sel = (col_ids == row_ids * N_PAD).astype(jnp.float32)
    cls2 = jnp.dot(sel, x2, preferred_element_type=jnp.float32)            # (B_TILE, DIM)

    # DINOv2 forward returns x_norm_clstoken; lane-dense full-block store.
    out_ref[...] = _layer_norm(cls2, nfw_ref[...], nfb_ref[...])


def dino_vit_encoder(x, params):
    """x: (B, C, H, W) float32, NCHW like PyTorch.  Returns (B, DIM) CLS features."""
    B, C, H, W = x.shape
    assert B % B_TILE == 0, (B, B_TILE)
    gh, gw = H // PATCH, W // PATCH
    patches = x.reshape(B, C, gh, PATCH, gw, PATCH)
    patches = patches.transpose(0, 2, 4, 1, 3, 5).reshape(B, gh * gw, C * PATCH * PATCH)
    # Pad token rows per image: row 0 = CLS slot (zeros), rows 1..P = patch pixels,
    # rows P+1..N_PAD-1 = zeros (masked out of attention inside the kernel).
    # Pre-flatten to the stacked (B*N_PAD, PATCH_DIM) layout so the kernel needs no
    # reshape; store bf16 (halves the activation DMA).
    patches_pad = jnp.zeros((B, N_PAD, PATCH_DIM), jnp.float32)
    patches_pad = patches_pad.at[:, 1:P + 1, :].set(patches)
    patches_2d = patches_pad.reshape(B * N_PAD, PATCH_DIM).astype(MXU_DTYPE)

    # Fuse conv bias + CLS token + positional embedding into one additive table,
    # pre-tiled to the stacked (M_TILE, DIM) layout used inside the kernel.
    add_emb = jnp.zeros((N_PAD, DIM), jnp.float32)
    add_emb = add_emb.at[0].set(params["cls"][0] + params["pos"][0])
    add_emb = add_emb.at[1:P + 1].set(params["pe_b"][0] + params["pos"][1:])
    add_emb = jnp.tile(add_emb, (B_TILE, 1))                     # (M_TILE, DIM)

    # Precomputed block-diagonal (per-image) + pad-key additive attention mask.
    rows = jnp.arange(M_TILE)
    q_img = rows // N_PAD
    k_tok = rows % N_PAD
    allowed = (q_img[:, None] == q_img[None, :]) & (k_tok[None, :] < N)
    attn_mask = jnp.where(allowed, 0.0, NEG_INF).astype(jnp.float32)

    bf = lambda a: a.astype(MXU_DTYPE)    # matmul weights live in HBM/VMEM as bf16
    param_list = [
        attn_mask,
        bf(params["pe_w"]), add_emb,
        params["n1w"], params["n1b"],
        bf(params["qkvw"]), params["qkvb"],
        bf(params["projw"]), params["projb"], params["ls1"],
        params["n2w"], params["n2b"],
        bf(params["fc1w"]), params["fc1b"],
        bf(params["fc2w"]), params["fc2b"], params["ls2"],
        params["nfw"], params["nfb"],
    ]

    def const_spec(a):
        # Constant index_map => same block every grid step; Pallas keeps it resident
        # and elides re-DMA across grid steps.
        zeros = (0,) * a.ndim
        return pl.BlockSpec(a.shape, lambda b, _z=zeros: _z)

    in_specs = [pl.BlockSpec((M_TILE, PATCH_DIM), lambda b: (b, 0))]
    in_specs += [const_spec(a) for a in param_list]

    out = pl.pallas_call(
        vit_encoder_kernel,
        out_shape=jax.ShapeDtypeStruct((B, DIM), jnp.float32),
        grid_spec=pltpu.PrefetchScalarGridSpec(
            num_scalar_prefetch=0,
            grid=(B // B_TILE,),
            in_specs=in_specs,
            out_specs=pl.BlockSpec((B_TILE, DIM), lambda b: (b, 0)),
            scratch_shapes=[pltpu.VMEM((M_TILE, 3 * DIM), MXU_DTYPE)],
        ),
        compiler_params=pltpu.CompilerParams(
            # grid length is even -> both v7x TensorCores stay busy.
            dimension_semantics=("parallel",),
        ),
    )(patches_2d, *param_list)
    return out


# ------------------------- pure-JAX reference (check) -------------------------
def dino_vit_encoder_ref(x, params):
    B, C, H, W = x.shape
    gh, gw = H // PATCH, W // PATCH
    patches = x.reshape(B, C, gh, PATCH, gw, PATCH).transpose(0, 2, 4, 1, 3, 5)
    patches = patches.reshape(B, gh * gw, C * PATCH * PATCH)
    dot = partial(jnp.matmul, precision=jax.lax.Precision.HIGHEST)

    def ln(v, w, b):
        mu = v.mean(-1, keepdims=True)
        var = ((v - mu) ** 2).mean(-1, keepdims=True)
        return (v - mu) / jnp.sqrt(var + LN_EPS) * w + b

    tok = dot(patches, params["pe_w"]) + params["pe_b"]
    cls = jnp.broadcast_to(params["cls"], (B, 1, DIM))
    xt = jnp.concatenate([cls, tok], axis=1) + params["pos"]
    for l in range(DEPTH):
        h = ln(xt, params["n1w"][l], params["n1b"][l])
        qkv = dot(h, params["qkvw"][l]) + params["qkvb"][l]
        qkv = qkv.reshape(B, N, 3, HEADS, HEAD_DIM).transpose(2, 0, 3, 1, 4)
        q, k, v = qkv[0], qkv[1], qkv[2]                               # (B, H, N, hd)
        s = jnp.einsum("bhqd,bhkd->bhqk", q, k,
                       precision=jax.lax.Precision.HIGHEST) * SCALE
        p = jax.nn.softmax(s, axis=-1)
        o = jnp.einsum("bhqk,bhkd->bhqd", p, v,
                       precision=jax.lax.Precision.HIGHEST)
        o = o.transpose(0, 2, 1, 3).reshape(B, N, DIM)
        o = dot(o, params["projw"][l]) + params["projb"][l]
        xt = xt + params["ls1"][l] * o
        h = ln(xt, params["n2w"][l], params["n2b"][l])
        h = dot(h, params["fc1w"][l]) + params["fc1b"][l]
        h = jax.nn.gelu(h, approximate=True)
        h = dot(h, params["fc2w"][l]) + params["fc2b"][l]
        xt = xt + params["ls2"][l] * h
    xt = ln(xt, params["nfw"], params["nfb"])
    return xt[:, 0, :]


# ----------------------- deterministic synthetic params -----------------------
def init_params(key):
    keys = iter(jax.random.split(key, 16))
    std = 0.02

    def rnd(shape):
        return (std * jax.random.normal(next(keys), shape)).astype(jnp.float32)

    return dict(
        pe_w=rnd((PATCH_DIM, DIM)),
        pe_b=rnd((1, DIM)),
        cls=rnd((1, DIM)),
        pos=rnd((N, DIM)),
        n1w=jnp.ones((DEPTH, 1, DIM), jnp.float32),
        n1b=jnp.zeros((DEPTH, 1, DIM), jnp.float32),
        qkvw=rnd((DEPTH, DIM, 3 * DIM)),
        qkvb=rnd((DEPTH, 1, 3 * DIM)),
        projw=rnd((DEPTH, DIM, DIM)),
        projb=rnd((DEPTH, 1, DIM)),
        ls1=jnp.full((DEPTH, 1, DIM), 1.0, jnp.float32),   # real DINOv2 init ~1e-5
        n2w=jnp.ones((DEPTH, 1, DIM), jnp.float32),
        n2b=jnp.zeros((DEPTH, 1, DIM), jnp.float32),
        fc1w=rnd((DEPTH, DIM, MLP_DIM)),
        fc1b=rnd((DEPTH, 1, MLP_DIM)),
        fc2w=rnd((DEPTH, MLP_DIM, DIM)),
        fc2b=rnd((DEPTH, 1, DIM)),
        ls2=jnp.full((DEPTH, 1, DIM), 1.0, jnp.float32),
        nfw=jnp.ones((1, DIM), jnp.float32),
        nfb=jnp.zeros((1, DIM), jnp.float32),
    )


if __name__ == "__main__":
    key = jax.random.PRNGKey(0)
    kx, kp = jax.random.split(key)
    B = 2 * B_TILE                                   # two grid steps (even -> 2 TCs on v7x)
    x = jax.random.normal(kx, (B, CHANS, IMG, IMG), dtype=jnp.float32)
    params = init_params(kp)

    feat = dino_vit_encoder(x, params)
    jax.block_until_ready(feat)
    assert feat.shape == (B, DIM), feat.shape

    ref = dino_vit_encoder_ref(x, params)
    # Tolerance loosened vs the pure-f32 version: kernel matmuls use bf16 MXU inputs
    # (f32 accumulation) + approx-reciprocal softmax; reference is full f32.
    assert jnp.allclose(feat, ref, atol=5e-2, rtol=5e-2), float(
        jnp.max(jnp.abs(feat - ref))
    )
    print("KERNEL_OK")
</pallas_src>

<mosaic_0001>
module attributes {stable_mosaic.version = 11 : i64} {
  func.func @vit_encoder_kernel(%arg0: i32, %arg1: memref<128x192xbf16, #tpu.memory_space<vmem>>, %arg2: memref<128x128xf32, #tpu.memory_space<vmem>>, %arg3: memref<192x64xbf16, #tpu.memory_space<vmem>>, %arg4: memref<128x64xf32, #tpu.memory_space<vmem>>, %arg5: memref<2x1x64xf32, #tpu.memory_space<vmem>>, %arg6: memref<2x1x64xf32, #tpu.memory_space<vmem>>, %arg7: memref<2x64x192xbf16, #tpu.memory_space<vmem>>, %arg8: memref<2x1x192xf32, #tpu.memory_space<vmem>>, %arg9: memref<2x64x64xbf16, #tpu.memory_space<vmem>>, %arg10: memref<2x1x64xf32, #tpu.memory_space<vmem>>, %arg11: memref<2x1x64xf32, #tpu.memory_space<vmem>>, %arg12: memref<2x1x64xf32, #tpu.memory_space<vmem>>, %arg13: memref<2x1x64xf32, #tpu.memory_space<vmem>>, %arg14: memref<2x64x256xbf16, #tpu.memory_space<vmem>>, %arg15: memref<2x1x256xf32, #tpu.memory_space<vmem>>, %arg16: memref<2x256x64xbf16, #tpu.memory_space<vmem>>, %arg17: memref<2x1x64xf32, #tpu.memory_space<vmem>>, %arg18: memref<2x1x64xf32, #tpu.memory_space<vmem>>, %arg19: memref<1x64xf32, #tpu.memory_space<vmem>>, %arg20: memref<1x64xf32, #tpu.memory_space<vmem>>, %arg21: memref<16x64xf32, #tpu.memory_space<vmem>>, %arg22: memref<128x192xbf16, #tpu.memory_space<vmem>>) attributes {dimension_semantics = [#tpu.dimension_semantics<parallel>], iteration_bounds = array<i64: 2>, scalar_prefetch = 0 : i64, scratch_operands = 1 : i64, tpu.core_type = #tpu.core_type<tc>, window_params = [{transform_indices = @transform_0, window_bounds = array<i64: 128, 192>}, {pipeline_mode = #tpu.pipeline_mode<synchronous>, transform_indices = @transform_1, window_bounds = array<i64: 128, 128>}, {pipeline_mode = #tpu.pipeline_mode<synchronous>, transform_indices = @transform_2, window_bounds = array<i64: 192, 64>}, {pipeline_mode = #tpu.pipeline_mode<synchronous>, transform_indices = @transform_3, window_bounds = array<i64: 128, 64>}, {pipeline_mode = #tpu.pipeline_mode<synchronous>, transform_indices = @transform_4, window_bounds = array<i64: 2, 1, 64>}, {pipeline_mode = #tpu.pipeline_mode<synchronous>, transform_indices = @transform_5, window_bounds = array<i64: 2, 1, 64>}, {pipeline_mode = #tpu.pipeline_mode<synchronous>, transform_indices = @transform_6, window_bounds = array<i64: 2, 64, 192>}, {pipeline_mode = #tpu.pipeline_mode<synchronous>, transform_indices = @transform_7, window_bounds = array<i64: 2, 1, 192>}, {pipeline_mode = #tpu.pipeline_mode<synchronous>, transform_indices = @transform_8, window_bounds = array<i64: 2, 64, 64>}, {pipeline_mode = #tpu.pipeline_mode<synchronous>, transform_indices = @transform_9, window_bounds = array<i64: 2, 1, 64>}, {pipeline_mode = #tpu.pipeline_mode<synchronous>, transform_indices = @transform_10, window_bounds = array<i64: 2, 1, 64>}, {pipeline_mode = #tpu.pipeline_mode<synchronous>, transform_indices = @transform_11, window_bounds = array<i64: 2, 1, 64>}, {pipeline_mode = #tpu.pipeline_mode<synchronous>, transform_indices = @transform_12, window_bounds = array<i64: 2, 1, 64>}, {pipeline_mode = #tpu.pipeline_mode<synchronous>, transform_indices = @transform_13, window_bounds = array<i64: 2, 64, 256>}, {pipeline_mode = #tpu.pipeline_mode<synchronous>, transform_indices = @transform_14, window_bounds = array<i64: 2, 1, 256>}, {pipeline_mode = #tpu.pipeline_mode<synchronous>, transform_indices = @transform_15, window_bounds = array<i64: 2, 256, 64>}, {pipeline_mode = #tpu.pipeline_mode<synchronous>, transform_indices = @transform_16, window_bounds = array<i64: 2, 1, 64>}, {pipeline_mode = #tpu.pipeline_mode<synchronous>, transform_indices = @transform_17, window_bounds = array<i64: 2, 1, 64>}, {pipeline_mode = #tpu.pipeline_mode<synchronous>, transform_indices = @transform_18, window_bounds = array<i64: 1, 64>}, {pipeline_mode = #tpu.pipeline_mode<synchronous>, transform_indices = @transform_19, window_bounds = array<i64: 1, 64>}, {transform_indices = @transform_20, window_bounds = array<i64: 16, 64>}]} {
    %c0 = arith.constant 0 : index
    %c0_0 = arith.constant 0 : index
    %0 = vector.load %arg1[%c0, %c0_0] : memref<128x192xbf16, #tpu.memory_space<vmem>>, vector<128x192xbf16>
    %c0_1 = arith.constant 0 : index
    %c0_2 = arith.constant 0 : index
    %1 = vector.load %arg3[%c0_1, %c0_2] : memref<192x64xbf16, #tpu.memory_space<vmem>>, vector<192x64xbf16>
    %cst = arith.constant dense<0.000000e+00> : vector<128x64xf32>
    %2 = tpu.matmul %0, %1, %cst {dimension_numbers = #tpu.dot_dimension_numbers<[1], [0], [0], [1], [0, 0, 1, 1], [], []>} : vector<128x192xbf16>, vector<192x64xbf16>, vector<128x64xf32> -> vector<128x64xf32>
    %c0_3 = arith.constant 0 : index
    %c0_4 = arith.constant 0 : index
    %3 = vector.load %arg4[%c0_3, %c0_4] : memref<128x64xf32, #tpu.memory_space<vmem>>, vector<128x64xf32>
    %4 = arith.addf %2, %3 : vector<128x64xf32>
    %c0_5 = arith.constant 0 : index
    %c0_6 = arith.constant 0 : index
    %c0_7 = arith.constant 0 : index
    %5 = vector.load %arg5[%c0_5, %c0_6, %c0_7] : memref<2x1x64xf32, #tpu.memory_space<vmem>>, vector<1x1x64xf32>
    %6 = vector.shape_cast %5 : vector<1x1x64xf32> to vector<1x64xf32>
    %c0_8 = arith.constant 0 : index
    %c0_9 = arith.constant 0 : index
    %c0_10 = arith.constant 0 : index
    %7 = vector.load %arg6[%c0_8, %c0_9, %c0_10] : memref<2x1x64xf32, #tpu.memory_space<vmem>>, vector<1x1x64xf32>
    %8 = vector.shape_cast %7 : vector<1x1x64xf32> to vector<1x64xf32>
    %cst_11 = arith.constant dense<0.000000e+00> : vector<128xf32>
    %9 = vector.multi_reduction <add>, %4, %cst_11 [1] : vector<128x64xf32> to vector<128xf32>
    %10 = vector.shape_cast %9 : vector<128xf32> to vector<128x1xf32>
    %cst_12 = arith.constant 6.400000e+01 : f32
    %11 = vector.broadcast %cst_12 : f32 to vector<128x1xf32>
    %12 = arith.divf %10, %11 : vector<128x1xf32>
    %13 = vector.broadcast %12 : vector<128x1xf32> to vector<128x64xf32>
    %14 = arith.subf %4, %13 : vector<128x64xf32>
    %15 = arith.mulf %14, %14 : vector<128x64xf32>
    %cst_13 = arith.constant dense<0.000000e+00> : vector<128xf32>
    %16 = vector.multi_reduction <add>, %15, %cst_13 [1] : vector<128x64xf32> to vector<128xf32>
    %17 = vector.shape_cast %16 : vector<128xf32> to vector<128x1xf32>
    %cst_14 = arith.constant 6.400000e+01 : f32
    %18 = vector.broadcast %cst_14 : f32 to vector<128x1xf32>
    %19 = arith.divf %17, %18 : vector<128x1xf32>
    %20 = vector.broadcast %12 : vector<128x1xf32> to vector<128x64xf32>
    %21 = arith.subf %4, %20 : vector<128x64xf32>
    %cst_15 = arith.constant 9.99999997E-7 : f32
    %22 = vector.broadcast %cst_15 : f32 to vector<128x1xf32>
    %23 = arith.addf %19, %22 : vector<128x1xf32>
    %24 = math.rsqrt %23 : vector<128x1xf32>
    %25 = vector.broadcast %24 : vector<128x1xf32> to vector<128x64xf32>
    %26 = arith.mulf %21, %25 : vector<128x64xf32>
    %27 = vector.broadcast %6 : vector<1x64xf32> to vector<128x64xf32>
    %28 = arith.mulf %26, %27 : vector<128x64xf32>
    %29 = vector.broadcast %8 : vector<1x64xf32> to vector<128x64xf32>
    %30 = arith.addf %28, %29 : vector<128x64xf32>
    %c0_16 = arith.constant 0 : index
    %c0_17 = arith.constant 0 : index
    %c0_18 = arith.constant 0 : index
    %31 = vector.load %arg7[%c0_16, %c0_17, %c0_18] : memref<2x64x192xbf16, #tpu.memory_space<vmem>>, vector<1x64x192xbf16>
    %32 = vector.shape_cast %31 : vector<1x64x192xbf16> to vector<64x192xbf16>
    %33 = arith.truncf %30 : vector<128x64xf32> to vector<128x64xbf16>
    %cst_19 = arith.constant dense<0.000000e+00> : vector<128x192xf32>
    %34 = tpu.matmul %33, %32, %cst_19 {dimension_numbers = #tpu.dot_dimension_numbers<[1], [0], [0], [1], [0, 0, 1, 1], [], []>} : vector<128x64xbf16>, vector<64x192xbf16>, vector<128x192xf32> -> vector<128x192xf32>
    %c0_20 = arith.constant 0 : index
    %c0_21 = arith.constant 0 : index
    %c0_22 = arith.constant 0 : index
    %35 = vector.load %arg8[%c0_20, %c0_21, %c0_22] : memref<2x1x192xf32, #tpu.memory_space<vmem>>, vector<1x1x192xf32>
    %36 = vector.shape_cast %35 : vector<1x1x192xf32> to vector<1x192xf32>
    %37 = vector.broadcast %36 : vector<1x192xf32> to vector<128x192xf32>
    %38 = arith.addf %34, %37 : vector<128x192xf32>
    %39 = arith.truncf %38 : vector<128x192xf32> to vector<128x192xbf16>
    %c0_23 = arith.constant 0 : index
    %c0_24 = arith.constant 0 : index
    %40 = vector.load %arg22[%c0_23, %c0_24] : memref<128x192xbf16, #tpu.memory_space<vmem>>, vector<128x192xbf16>
    tpu.vector_store %arg22[%c0_23, %c0_24], %39 {strides = array<i32>} : memref<128x192xbf16, #tpu.memory_space<vmem>>, vector<128x192xbf16>,
    %c0_25 = arith.constant 0 : index
    %c0_26 = arith.constant 0 : index
    %41 = vector.load %arg22[%c0_25, %c0_26] : memref<128x192xbf16, #tpu.memory_space<vmem>>, vector<128x16xbf16>
    %cst_27 = arith.constant 2.500000e-01 : bf16
    %42 = vector.broadcast %cst_27 : bf16 to vector<128x16xbf16>
    %43 = arith.mulf %41, %42 : vector<128x16xbf16>
    %c0_28 = arith.constant 0 : index
    %c64 = arith.constant 64 : index
    %44 = vector.load %arg22[%c0_28, %c64] : memref<128x192xbf16, #tpu.memory_space<vmem>>, vector<128x16xbf16>
    %c0_29 = arith.constant 0 : index
    %c128 = arith.constant 128 : index
    %45 = vector.load %arg22[%c0_29, %c128] : memref<128x192xbf16, #tpu.memory_space<vmem>>, vector<128x16xbf16>
    %cst_30 = arith.constant dense<0.000000e+00> : vector<128x128xf32>
    %46 = tpu.matmul %43, %44, %cst_30 {dimension_numbers = #tpu.dot_dimension_numbers<[1], [1], [0], [0], [0, 0, 1, 0], [], []>} : vector<128x16xbf16>, vector<128x16xbf16>, vector<128x128xf32> -> vector<128x128xf32>
    %c0_31 = arith.constant 0 : index
    %c0_32 = arith.constant 0 : index
    %47 = vector.load %arg2[%c0_31, %c0_32] : memref<128x128xf32, #tpu.memory_space<vmem>>, vector<128x128xf32>
    %48 = arith.addf %46, %47 : vector<128x128xf32>
    %cst_33 = arith.constant dense<0xFF800000> : vector<128xf32>
    %49 = vector.multi_reduction <maximumf>, %48, %cst_33 [1] : vector<128x128xf32> to vector<128xf32>
    %50 = vector.shape_cast %49 : vector<128xf32> to vector<128x1xf32>
    %51 = vector.broadcast %50 : vector<128x1xf32> to vector<128x128xf32>
    %52 = arith.subf %48, %51 : vector<128x128xf32>
    %53 = math.exp %52 : vector<128x128xf32>
    %cst_34 = arith.constant dense<0.000000e+00> : vector<128xf32>
    %54 = vector.multi_reduction <add>, %53, %cst_34 [1] : vector<128x128xf32> to vector<128xf32>
    %55 = vector.shape_cast %54 : vector<128xf32> to vector<128x1xf32>
    %56 = tpu.reciprocal %55 {approx = true} : vector<128x1xf32> -> vector<128x1xf32>
    %57 = vector.broadcast %56 : vector<128x1xf32> to vector<128x128xf32>
    %58 = arith.mulf %53, %57 : vector<128x128xf32>
    %59 = arith.truncf %58 : vector<128x128xf32> to vector<128x128xbf16>
    %cst_35 = arith.constant dense<0.000000e+00> : vector<128x16xf32>
    %60 = tpu.matmul %59, %45, %cst_35 {dimension_numbers = #tpu.dot_dimension_numbers<[1], [0], [0], [1], [0, 0, 1, 1], [], []>} : vector<128x128xbf16>, vector<128x16xbf16>, vector<128x16xf32> -> vector<128x16xf32>
    %61 = arith.truncf %60 : vector<128x16xf32> to vector<128x16xbf16>
    %c0_36 = arith.constant 0 : index
    %c16 = arith.constant 16 : index
    %62 = vector.load %arg22[%c0_36, %c16] : memref<128x192xbf16, #tpu.memory_space<vmem>>, vector<128x16xbf16>
    %cst_37 = arith.constant 2.500000e-01 : bf16
    %63 = vector.broadcast %cst_37 : bf16 to vector<128x16xbf16>
    %64 = arith.mulf %62, %63 : vector<128x16xbf16>
    %c0_38 = arith.constant 0 : index
    %c80 = arith.constant 80 : index
    %65 = vector.load %arg22[%c0_38, %c80] : memref<128x192xbf16, #tpu.memory_space<vmem>>, vector<128x16xbf16>
    %c0_39 = arith.constant 0 : index
    %c144 = arith.constant 144 : index
    %66 = vector.load %arg22[%c0_39, %c144] : memref<128x192xbf16, #tpu.memory_space<vmem>>, vector<128x16xbf16>
    %cst_40 = arith.constant dense<0.000000e+00> : vector<128x128xf32>
    %67 = tpu.matmul %64, %65, %cst_40 {dimension_numbers = #tpu.dot_dimension_numbers<[1], [1], [0], [0], [0, 0, 1, 0], [], []>} : vector<128x16xbf16>, vector<128x16xbf16>, vector<128x128xf32> -> vector<128x128xf32>
    %c0_41 = arith.constant 0 : index
    %c0_42 = arith.constant 0 : index
    %68 = vector.load %arg2[%c0_41, %c0_42] : memref<128x128xf32, #tpu.memory_space<vmem>>, vector<128x128xf32>
    %69 = arith.addf %67, %68 : vector<128x128xf32>
    %cst_43 = arith.constant dense<0xFF800000> : vector<128xf32>
    %70 = vector.multi_reduction <maximumf>, %69, %cst_43 [1] : vector<128x128xf32> to vector<128xf32>
    %71 = vector.shape_cast %70 : vector<128xf32> to vector<128x1xf32>
    %72 = vector.broadcast %71 : vector<128x1xf32> to vector<128x128xf32>
    %73 = arith.subf %69, %72 : vector<128x128xf32>
    %74 = math.exp %73 : vector<128x128xf32>
    %cst_44 = arith.constant dense<0.000000e+00> : vector<128xf32>
    %75 = vector.multi_reduction <add>, %74, %cst_44 [1] : vector<128x128xf32> to vector<128xf32>
    %76 = vector.shape_cast %75 : vector<128xf32> to vector<128x1xf32>
    %77 = tpu.reciprocal %76 {approx = true} : vector<128x1xf32> -> vector<128x1xf32>
    %78 = vector.broadcast %77 : vector<128x1xf32> to vector<128x128xf32>
    %79 = arith.mulf %74, %78 : vector<128x128xf32>
    %80 = arith.truncf %79 : vector<128x128xf32> to vector<128x128xbf16>
    %cst_45 = arith.constant dense<0.000000e+00> : vector<128x16xf32>
    %81 = tpu.matmul %80, %66, %cst_45 {dimension_numbers = #tpu.dot_dimension_numbers<[1], [0], [0], [1], [0, 0, 1, 1], [], []>} : vector<128x128xbf16>, vector<128x16xbf16>, vector<128x16xf32> -> vector<128x16xf32>
    %82 = arith.truncf %81 : vector<128x16xf32> to vector<128x16xbf16>
    %c0_46 = arith.constant 0 : index
    %c32 = arith.constant 32 : index
    %83 = vector.load %arg22[%c0_46, %c32] : memref<128x192xbf16, #tpu.memory_space<vmem>>, vector<128x16xbf16>
    %cst_47 = arith.constant 2.500000e-01 : bf16
    %84 = vector.broadcast %cst_47 : bf16 to vector<128x16xbf16>
    %85 = arith.mulf %83, %84 : vector<128x16xbf16>
    %c0_48 = arith.constant 0 : index
    %c96 = arith.constant 96 : index
    %86 = vector.load %arg22[%c0_48, %c96] : memref<128x192xbf16, #tpu.memory_space<vmem>>, vector<128x16xbf16>
    %c0_49 = arith.constant 0 : index
    %c160 = arith.constant 160 : index
    %87 = vector.load %arg22[%c0_49, %c160] : memref<128x192xbf16, #tpu.memory_space<vmem>>, vector<128x16xbf16>
    %cst_50 = arith.constant dense<0.000000e+00> : vector<128x128xf32>
    %88 = tpu.matmul %85, %86, %cst_50 {dimension_numbers = #tpu.dot_dimension_numbers<[1], [1], [0], [0], [0, 0, 1, 0], [], []>} : vector<128x16xbf16>, vector<128x16xbf16>, vector<128x128xf32> -> vector<128x128xf32>
    %c0_51 = arith.constant 0 : index
    %c0_52 = arith.constant 0 : index
    %89 = vector.load %arg2[%c0_51, %c0_52] : memref<128x128xf32, #tpu.memory_space<vmem>>, vector<128x128xf32>
    %90 = arith.addf %88, %89 : vector<128x128xf32>
    %cst_53 = arith.constant dense<0xFF800000> : vector<128xf32>
    %91 = vector.multi_reduction <maximumf>, %90, %cst_53 [1] : vector<128x128xf32> to vector<128xf32>
    %92 = vector.shape_cast %91 : vector<128xf32> to vector<128x1xf32>
    %93 = vector.broadcast %92 : vector<128x1xf32> to vector<128x128xf32>
    %94 = arith.subf %90, %93 : vector<128x128xf32>
    %95 = math.exp %94 : vector<128x128xf32>
    %cst_54 = arith.constant dense<0.000000e+00> : vector<128xf32>
    %96 = vector.multi_reduction <add>, %95, %cst_54 [1] : vector<128x128xf32> to vector<128xf32>
    %97 = vector.shape_cast %96 : vector<128xf32> to vector<128x1xf32>
    %98 = tpu.reciprocal %97 {approx = true} : vector<128x1xf32> -> vector<128x1xf32>
    %99 = vector.broadcast %98 : vector<128x1xf32> to vector<128x128xf32>
    %100 = arith.mulf %95, %99 : vector<128x128xf32>
    %101 = arith.truncf %100 : vector<128x128xf32> to vector<128x128xbf16>
    %cst_55 = arith.constant dense<0.000000e+00> : vector<128x16xf32>
    %102 = tpu.matmul %101, %87, %cst_55 {dimension_numbers = #tpu.dot_dimension_numbers<[1], [0], [0], [1], [0, 0, 1, 1], [], []>} : vector<128x128xbf16>, vector<128x16xbf16>, vector<128x16xf32> -> vector<128x16xf32>
    %103 = arith.truncf %102 : vector<128x16xf32> to vector<128x16xbf16>
    %c0_56 = arith.constant 0 : index
    %c48 = arith.constant 48 : index
    %104 = vector.load %arg22[%c0_56, %c48] : memref<128x192xbf16, #tpu.memory_space<vmem>>, vector<128x16xbf16>
    %cst_57 = arith.constant 2.500000e-01 : bf16
    %105 = vector.broadcast %cst_57 : bf16 to vector<128x16xbf16>
    %106 = arith.mulf %104, %105 : vector<128x16xbf16>
    %c0_58 = arith.constant 0 : index
    %c112 = arith.constant 112 : index
    %107 = vector.load %arg22[%c0_58, %c112] : memref<128x192xbf16, #tpu.memory_space<vmem>>, vector<128x16xbf16>
    %c0_59 = arith.constant 0 : index
    %c176 = arith.constant 176 : index
    %108 = vector.load %arg22[%c0_59, %c176] : memref<128x192xbf16, #tpu.memory_space<vmem>>, vector<128x16xbf16>
    %cst_60 = arith.constant dense<0.000000e+00> : vector<128x128xf32>
    %109 = tpu.matmul %106, %107, %cst_60 {dimension_numbers = #tpu.dot_dimension_numbers<[1], [1], [0], [0], [0, 0, 1, 0], [], []>} : vector<128x16xbf16>, vector<128x16xbf16>, vector<128x128xf32> -> vector<128x128xf32>
    %c0_61 = arith.constant 0 : index
    %c0_62 = arith.constant 0 : index
    %110 = vector.load %arg2[%c0_61, %c0_62] : memref<128x128xf32, #tpu.memory_space<vmem>>, vector<128x128xf32>
    %111 = arith.addf %109, %110 : vector<128x128xf32>
    %cst_63 = arith.constant dense<0xFF800000> : vector<128xf32>
    %112 = vector.multi_reduction <maximumf>, %111, %cst_63 [1] : vector<128x128xf32> to vector<128xf32>
    %113 = vector.shape_cast %112 : vector<128xf32> to vector<128x1xf32>
    %114 = vector.broadcast %113 : vector<128x1xf32> to vector<128x128xf32>
    %115 = arith.subf %111, %114 : vector<128x128xf32>
    %116 = math.exp %115 : vector<128x128xf32>
    %cst_64 = arith.constant dense<0.000000e+00> : vector<128xf32>
    %117 = vector.multi_reduction <add>, %116, %cst_64 [1] : vector<128x128xf32> to vector<128xf32>
    %118 = vector.shape_cast %117 : vector<128xf32> to vector<128x1xf32>
    %119 = tpu.reciprocal %118 {approx = true} : vector<128x1xf32> -> vector<128x1xf32>
    %120 = vector.broadcast %119 : vector<128x1xf32> to vector<128x128xf32>
    %121 = arith.mulf %116, %120 : vector<128x128xf32>
    %122 = arith.truncf %121 : vector<128x128xf32> to vector<128x128xbf16>
    %cst_65 = arith.constant dense<0.000000e+00> : vector<128x16xf32>
    %123 = tpu.matmul %122, %108, %cst_65 {dimension_numbers = #tpu.dot_dimension_numbers<[1], [0], [0], [1], [0, 0, 1, 1], [], []>} : vector<128x128xbf16>, vector<128x16xbf16>, vector<128x16xf32> -> vector<128x16xf32>
    %124 = arith.truncf %123 : vector<128x16xf32> to vector<128x16xbf16>
    %125 = tpu.concatenate %61, %82, %103, %124 in 1 : vector<128x16xbf16>, vector<128x16xbf16>, vector<128x16xbf16>, vector<128x16xbf16> -> vector<128x64xbf16>
    %c0_66 = arith.constant 0 : index
    %c0_67 = arith.constant 0 : index
    %c0_68 = arith.constant 0 : index
    %126 = vector.load %arg9[%c0_66, %c0_67, %c0_68] : memref<2x64x64xbf16, #tpu.memory_space<vmem>>, vector<1x64x64xbf16>
    %127 = vector.shape_cast %126 : vector<1x64x64xbf16> to vector<64x64xbf16>
    %cst_69 = arith.constant dense<0.000000e+00> : vector<128x64xf32>
    %128 = tpu.matmul %125, %127, %cst_69 {dimension_numbers = #tpu.dot_dimension_numbers<[1], [0], [0], [1], [0, 0, 1, 1], [], []>} : vector<128x64xbf16>, vector<64x64xbf16>, vector<128x64xf32> -> vector<128x64xf32>
    %c0_70 = arith.constant 0 : index
    %c0_71 = arith.constant 0 : index
    %c0_72 = arith.constant 0 : index
    %129 = vector.load %arg10[%c0_70, %c0_71, %c0_72] : memref<2x1x64xf32, #tpu.memory_space<vmem>>, vector<1x1x64xf32>
    %130 = vector.shape_cast %129 : vector<1x1x64xf32> to vector<1x64xf32>
    %131 = vector.broadcast %130 : vector<1x64xf32> to vector<128x64xf32>
    %132 = arith.addf %128, %131 : vector<128x64xf32>
    %c0_73 = arith.constant 0 : index
    %c0_74 = arith.constant 0 : index
    %c0_75 = arith.constant 0 : index
    %133 = vector.load %arg11[%c0_73, %c0_74, %c0_75] : memref<2x1x64xf32, #tpu.memory_space<vmem>>, vector<1x1x64xf32>
    %134 = vector.shape_cast %133 : vector<1x1x64xf32> to vector<1x64xf32>
    %135 = vector.broadcast %134 : vector<1x64xf32> to vector<128x64xf32>
    %136 = arith.mulf %135, %132 : vector<128x64xf32>
    %137 = arith.addf %4, %136 : vector<128x64xf32>
    %c0_76 = arith.constant 0 : index
    %c0_77 = arith.constant 0 : index
    %c0_78 = arith.constant 0 : index
    %138 = vector.load %arg12[%c0_76, %c0_77, %c0_78] : memref<2x1x64xf32, #tpu.memory_space<vmem>>, vector<1x1x64xf32>
    %139 = vector.shape_cast %138 : vector<1x1x64xf32> to vector<1x64xf32>
    %c0_79 = arith.constant 0 : index
    %c0_80 = arith.constant 0 : index
    %c0_81 = arith.constant 0 : index
    %140 = vector.load %arg13[%c0_79, %c0_80, %c0_81] : memref<2x1x64xf32, #tpu.memory_space<vmem>>, vector<1x1x64xf32>
    %141 = vector.shape_cast %140 : vector<1x1x64xf32> to vector<1x64xf32>
    %cst_82 = arith.constant dense<0.000000e+00> : vector<128xf32>
    %142 = vector.multi_reduction <add>, %137, %cst_82 [1] : vector<128x64xf32> to vector<128xf32>
    %143 = vector.shape_cast %142 : vector<128xf32> to vector<128x1xf32>
    %cst_83 = arith.constant 6.400000e+01 : f32
    %144 = vector.broadcast %cst_83 : f32 to vector<128x1xf32>
    %145 = arith.divf %143, %144 : vector<128x1xf32>
    %146 = vector.broadcast %145 : vector<128x1xf32> to vector<128x64xf32>
    %147 = arith.subf %137, %146 : vector<128x64xf32>
    %148 = arith.mulf %147, %147 : vector<128x64xf32>
    %cst_84 = arith.constant dense<0.000000e+00> : vector<128xf32>
    %149 = vector.multi_reduction <add>, %148, %cst_84 [1] : vector<128x64xf32> to vector<128xf32>
    %150 = vector.shape_cast %149 : vector<128xf32> to vector<128x1xf32>
    %cst_85 = arith.constant 6.400000e+01 : f32
    %151 = vector.broadcast %cst_85 : f32 to vector<128x1xf32>
    %152 = arith.divf %150, %151 : vector<128x1xf32>
    %153 = vector.broadcast %145 : vector<128x1xf32> to vector<128x64xf32>
    %154 = arith.subf %137, %153 : vector<128x64xf32>
    %cst_86 = arith.constant 9.99999997E-7 : f32
    %155 = vector.broadcast %cst_86 : f32 to vector<128x1xf32>
    %156 = arith.addf %152, %155 : vector<128x1xf32>
    %157 = math.rsqrt %156 : vector<128x1xf32>
    %158 = vector.broadcast %157 : vector<128x1xf32> to vector<128x64xf32>
    %159 = arith.mulf %154, %158 : vector<128x64xf32>
    %160 = vector.broadcast %139 : vector<1x64xf32> to vector<128x64xf32>
    %161 = arith.mulf %159, %160 : vector<128x64xf32>
    %162 = vector.broadcast %141 : vector<1x64xf32> to vector<128x64xf32>
    %163 = arith.addf %161, %162 : vector<128x64xf32>
    %c0_87 = arith.constant 0 : index
    %c0_88 = arith.constant 0 : index
    %c0_89 = arith.constant 0 : index
    %164 = vector.load %arg14[%c0_87, %c0_88, %c0_89] : memref<2x64x256xbf16, #tpu.memory_space<vmem>>, vector<1x64x256xbf16>
    %165 = vector.shape_cast %164 : vector<1x64x256xbf16> to vector<64x256xbf16>
    %166 = arith.truncf %163 : vector<128x64xf32> to vector<128x64xbf16>
    %cst_90 = arith.constant dense<0.000000e+00> : vector<128x256xf32>
    %167 = tpu.matmul %166, %165, %cst_90 {dimension_numbers = #tpu.dot_dimension_numbers<[1], [0], [0], [1], [0, 0, 1, 1], [], []>} : vector<128x64xbf16>, vector<64x256xbf16>, vector<128x256xf32> -> vector<128x256xf32>
    %c0_91 = arith.constant 0 : index
    %c0_92 = arith.constant 0 : index
    %c0_93 = arith.constant 0 : index
    %168 = vector.load %arg15[%c0_91, %c0_92, %c0_93] : memref<2x1x256xf32, #tpu.memory_space<vmem>>, vector<1x1x256xf32>
    %169 = vector.shape_cast %168 : vector<1x1x256xf32> to vector<1x256xf32>
    %170 = vector.broadcast %169 : vector<1x256xf32> to vector<128x256xf32>
    %171 = arith.addf %167, %170 : vector<128x256xf32>
    %172 = arith.mulf %171, %171 : vector<128x256xf32>
    %173 = arith.mulf %171, %172 : vector<128x256xf32>
    %cst_94 = arith.constant 4.471500e-02 : f32
    %174 = vector.broadcast %cst_94 : f32 to vector<128x256xf32>
    %175 = arith.mulf %174, %173 : vector<128x256xf32>
    %176 = arith.addf %171, %175 : vector<128x256xf32>
    %cst_95 = arith.constant 0.797884583 : f32
    %177 = vector.broadcast %cst_95 : f32 to vector<128x256xf32>
    %178 = arith.mulf %177, %176 : vector<128x256xf32>
    %179 = math.tanh %178 : vector<128x256xf32>
    %cst_96 = arith.constant 1.000000e+00 : f32
    %180 = vector.broadcast %cst_96 : f32 to vector<128x256xf32>
    %181 = arith.addf %180, %179 : vector<128x256xf32>
    %cst_97 = arith.constant 5.000000e-01 : f32
    %182 = vector.broadcast %cst_97 : f32 to vector<128x256xf32>
    %183 = arith.mulf %182, %181 : vector<128x256xf32>
    %184 = arith.mulf %171, %183 : vector<128x256xf32>
    %c0_98 = arith.constant 0 : index
    %c0_99 = arith.constant 0 : index
    %c0_100 = arith.constant 0 : index
    %185 = vector.load %arg16[%c0_98, %c0_99, %c0_100] : memref<2x256x64xbf16, #tpu.memory_space<vmem>>, vector<1x256x64xbf16>
    %186 = vector.shape_cast %185 : vector<1x256x64xbf16> to vector<256x64xbf16>
    %187 = arith.truncf %184 : vector<128x256xf32> to vector<128x256xbf16>
    %cst_101 = arith.constant dense<0.000000e+00> : vector<128x64xf32>
    %188 = tpu.matmul %187, %186, %cst_101 {dimension_numbers = #tpu.dot_dimension_numbers<[1], [0], [0], [1], [0, 0, 1, 1], [], []>} : vector<128x256xbf16>, vector<256x64xbf16>, vector<128x64xf32> -> vector<128x64xf32>
    %c0_102 = arith.constant 0 : index
    %c0_103 = arith.constant 0 : index
    %c0_104 = arith.constant 0 : index
    %189 = vector.load %arg17[%c0_102, %c0_103, %c0_104] : memref<2x1x64xf32, #tpu.memory_space<vmem>>, vector<1x1x64xf32>
    %190 = vector.shape_cast %189 : vector<1x1x64xf32> to vector<1x64xf32>
    %191 = vector.broadcast %190 : vector<1x64xf32> to vector<128x64xf32>
    %192 = arith.addf %188, %191 : vector<128x64xf32>
    %c0_105 = arith.constant 0 : index
    %c0_106 = arith.constant 0 : index
    %c0_107 = arith.constant 0 : index
    %193 = vector.load %arg18[%c0_105, %c0_106, %c0_107] : memref<2x1x64xf32, #tpu.memory_space<vmem>>, vector<1x1x64xf32>
    %194 = vector.shape_cast %193 : vector<1x1x64xf32> to vector<1x64xf32>
    %195 = vector.broadcast %194 : vector<1x64xf32> to vector<128x64xf32>
    %196 = arith.mulf %195, %192 : vector<128x64xf32>
    %197 = arith.addf %137, %196 : vector<128x64xf32>
    %c1 = arith.constant 1 : index
    %c0_108 = arith.constant 0 : index
    %c0_109 = arith.constant 0 : index
    %198 = vector.load %arg5[%c1, %c0_108, %c0_109] : memref<2x1x64xf32, #tpu.memory_space<vmem>>, vector<1x1x64xf32>
    %199 = vector.shape_cast %198 : vector<1x1x64xf32> to vector<1x64xf32>
    %c1_110 = arith.constant 1 : index
    %c0_111 = arith.constant 0 : index
    %c0_112 = arith.constant 0 : index
    %200 = vector.load %arg6[%c1_110, %c0_111, %c0_112] : memref<2x1x64xf32, #tpu.memory_space<vmem>>, vector<1x1x64xf32>
    %201 = vector.shape_cast %200 : vector<1x1x64xf32> to vector<1x64xf32>
    %cst_113 = arith.constant dense<0.000000e+00> : vector<128xf32>
    %202 = vector.multi_reduction <add>, %197, %cst_113 [1] : vector<128x64xf32> to vector<128xf32>
    %203 = vector.shape_cast %202 : vector<128xf32> to vector<128x1xf32>
    %cst_114 = arith.constant 6.400000e+01 : f32
    %204 = vector.broadcast %cst_114 : f32 to vector<128x1xf32>
    %205 = arith.divf %203, %204 : vector<128x1xf32>
    %206 = vector.broadcast %205 : vector<128x1xf32> to vector<128x64xf32>
    %207 = arith.subf %197, %206 : vector<128x64xf32>
    %208 = arith.mulf %207, %207 : vector<128x64xf32>
    %cst_115 = arith.constant dense<0.000000e+00> : vector<128xf32>
    %209 = vector.multi_reduction <add>, %208, %cst_115 [1] : vector<128x64xf32> to vector<128xf32>
    %210 = vector.shape_cast %209 : vector<128xf32> to vector<128x1xf32>
    %cst_116 = arith.constant 6.400000e+01 : f32
    %211 = vector.broadcast %cst_116 : f32 to vector<128x1xf32>
    %212 = arith.divf %210, %211 : vector<128x1xf32>
    %213 = vector.broadcast %205 : vector<128x1xf32> to vector<128x64xf32>
    %214 = arith.subf %197, %213 : vector<128x64xf32>
    %cst_117 = arith.constant 9.99999997E-7 : f32
    %215 = vector.broadcast %cst_117 : f32 to vector<128x1xf32>
    %216 = arith.addf %212, %215 : vector<128x1xf32>
    %217 = math.rsqrt %216 : vector<128x1xf32>
    %218 = vector.broadcast %217 : vector<128x1xf32> to vector<128x64xf32>
    %219 = arith.mulf %214, %218 : vector<128x64xf32>
    %220 = vector.broadcast %199 : vector<1x64xf32> to vector<128x64xf32>
    %221 = arith.mulf %219, %220 : vector<128x64xf32>
    %222 = vector.broadcast %201 : vector<1x64xf32> to vector<128x64xf32>
    %223 = arith.addf %221, %222 : vector<128x64xf32>
    %c1_118 = arith.constant 1 : index
    %c0_119 = arith.constant 0 : index
    %c0_120 = arith.constant 0 : index
    %224 = vector.load %arg7[%c1_118, %c0_119, %c0_120] : memref<2x64x192xbf16, #tpu.memory_space<vmem>>, vector<1x64x192xbf16>
    %225 = vector.shape_cast %224 : vector<1x64x192xbf16> to vector<64x192xbf16>
    %226 = arith.truncf %223 : vector<128x64xf32> to vector<128x64xbf16>
    %cst_121 = arith.constant dense<0.000000e+00> : vector<128x192xf32>
    %227 = tpu.matmul %226, %225, %cst_121 {dimension_numbers = #tpu.dot_dimension_numbers<[1], [0], [0], [1], [0, 0, 1, 1], [], []>} : vector<128x64xbf16>, vector<64x192xbf16>, vector<128x192xf32> -> vector<128x192xf32>
    %c1_122 = arith.constant 1 : index
    %c0_123 = arith.constant 0 : index
    %c0_124 = arith.constant 0 : index
    %228 = vector.load %arg8[%c1_122, %c0_123, %c0_124] : memref<2x1x192xf32, #tpu.memory_space<vmem>>, vector<1x1x192xf32>
    %229 = vector.shape_cast %228 : vector<1x1x192xf32> to vector<1x192xf32>
    %230 = vector.broadcast %229 : vector<1x192xf32> to vector<128x192xf32>
    %231 = arith.addf %227, %230 : vector<128x192xf32>
    %232 = arith.truncf %231 : vector<128x192xf32> to vector<128x192xbf16>
    %c0_125 = arith.constant 0 : index
    %c0_126 = arith.constant 0 : index
    %233 = vector.load %arg22[%c0_125, %c0_126] : memref<128x192xbf16, #tpu.memory_space<vmem>>, vector<128x192xbf16>
    tpu.vector_store %arg22[%c0_125, %c0_126], %232 {strides = array<i32>} : memref<128x192xbf16, #tpu.memory_space<vmem>>, vector<128x192xbf16>,
    %c0_127 = arith.constant 0 : index
    %c0_128 = arith.constant 0 : index
    %234 = vector.load %arg22[%c0_127, %c0_128] : memref<128x192xbf16, #tpu.memory_space<vmem>>, vector<128x16xbf16>
    %cst_129 = arith.constant 2.500000e-01 : bf16
    %235 = vector.broadcast %cst_129 : bf16 to vector<128x16xbf16>
    %236 = arith.mulf %234, %235 : vector<128x16xbf16>
    %c0_130 = arith.constant 0 : index
    %c64_131 = arith.constant 64 : index
    %237 = vector.load %arg22[%c0_130, %c64_131] : memref<128x192xbf16, #tpu.memory_space<vmem>>, vector<128x16xbf16>
    %c0_132 = arith.constant 0 : index
    %c128_133 = arith.constant 128 : index
    %238 = vector.load %arg22[%c0_132, %c128_133] : memref<128x192xbf16, #tpu.memory_space<vmem>>, vector<128x16xbf16>
    %cst_134 = arith.constant dense<0.000000e+00> : vector<128x128xf32>
    %239 = tpu.matmul %236, %237, %cst_134 {dimension_numbers = #tpu.dot_dimension_numbers<[1], [1], [0], [0], [0, 0, 1, 0], [], []>} : vector<128x16xbf16>, vector<128x16xbf16>, vector<128x128xf32> -> vector<128x128xf32>
    %c0_135 = arith.constant 0 : index
    %c0_136 = arith.constant 0 : index
    %240 = vector.load %arg2[%c0_135, %c0_136] : memref<128x128xf32, #tpu.memory_space<vmem>>, vector<128x128xf32>
    %241 = arith.addf %239, %240 : vector<128x128xf32>
    %cst_137 = arith.constant dense<0xFF800000> : vector<128xf32>
    %242 = vector.multi_reduction <maximumf>, %241, %cst_137 [1] : vector<128x128xf32> to vector<128xf32>
    %243 = vector.shape_cast %242 : vector<128xf32> to vector<128x1xf32>
    %244 = vector.broadcast %243 : vector<128x1xf32> to vector<128x128xf32>
    %245 = arith.subf %241, %244 : vector<128x128xf32>
    %246 = math.exp %245 : vector<128x128xf32>
    %cst_138 = arith.constant dense<0.000000e+00> : vector<128xf32>
    %247 = vector.multi_reduction <add>, %246, %cst_138 [1] : vector<128x128xf32> to vector<128xf32>
    %248 = vector.shape_cast %247 : vector<128xf32> to vector<128x1xf32>
    %249 = tpu.reciprocal %248 {approx = true} : vector<128x1xf32> -> vector<128x1xf32>
    %250 = vector.broadcast %249 : vector<128x1xf32> to vector<128x128xf32>
    %251 = arith.mulf %246, %250 : vector<128x128xf32>
    %252 = arith.truncf %251 : vector<128x128xf32> to vector<128x128xbf16>
    %cst_139 = arith.constant dense<0.000000e+00> : vector<128x16xf32>
    %253 = tpu.matmul %252, %238, %cst_139 {dimension_numbers = #tpu.dot_dimension_numbers<[1], [0], [0], [1], [0, 0, 1, 1], [], []>} : vector<128x128xbf16>, vector<128x16xbf16>, vector<128x16xf32> -> vector<128x16xf32>
    %254 = arith.truncf %253 : vector<128x16xf32> to vector<128x16xbf16>
    %c0_140 = arith.constant 0 : index
    %c16_141 = arith.constant 16 : index
    %255 = vector.load %arg22[%c0_140, %c16_141] : memref<128x192xbf16, #tpu.memory_space<vmem>>, vector<128x16xbf16>
    %cst_142 = arith.constant 2.500000e-01 : bf16
    %256 = vector.broadcast %cst_142 : bf16 to vector<128x16xbf16>
    %257 = arith.mulf %255, %256 : vector<128x16xbf16>
    %c0_143 = arith.constant 0 : index
    %c80_144 = arith.constant 80 : index
    %258 = vector.load %arg22[%c0_143, %c80_144] : memref<128x192xbf16, #tpu.memory_space<vmem>>, vector<128x16xbf16>
    %c0_145 = arith.constant 0 : index
    %c144_146 = arith.constant 144 : index
    %259 = vector.load %arg22[%c0_145, %c144_146] : memref<128x192xbf16, #tpu.memory_space<vmem>>, vector<128x16xbf16>
    %cst_147 = arith.constant dense<0.000000e+00> : vector<128x128xf32>
    %260 = tpu.matmul %257, %258, %cst_147 {dimension_numbers = #tpu.dot_dimension_numbers<[1], [1], [0], [0], [0, 0, 1, 0], [], []>} : vector<128x16xbf16>, vector<128x16xbf16>, vector<128x128xf32> -> vector<128x128xf32>
    %c0_148 = arith.constant 0 : index
    %c0_149 = arith.constant 0 : index
    %261 = vector.load %arg2[%c0_148, %c0_149] : memref<128x128xf32, #tpu.memory_space<vmem>>, vector<128x128xf32>
    %262 = arith.addf %260, %261 : vector<128x128xf32>
    %cst_150 = arith.constant dense<0xFF800000> : vector<128xf32>
    %263 = vector.multi_reduction <maximumf>, %262, %cst_150 [1] : vector<128x128xf32> to vector<128xf32>
    %264 = vector.shape_cast %263 : vector<128xf32> to vector<128x1xf32>
    %265 = vector.broadcast %264 : vector<128x1xf32> to vector<128x128xf32>
    %266 = arith.subf %262, %265 : vector<128x128xf32>
    %267 = math.exp %266 : vector<128x128xf32>
    %cst_151 = arith.constant dense<0.000000e+00> : vector<128xf32>
    %268 = vector.multi_reduction <add>, %267, %cst_151 [1] : vector<128x128xf32> to vector<128xf32>
    %269 = vector.shape_cast %268 : vector<128xf32> to vector<128x1xf32>
    %270 = tpu.reciprocal %269 {approx = true} : vector<128x1xf32> -> vector<128x1xf32>
    %271 = vector.broadcast %270 : vector<128x1xf32> to vector<128x128xf32>
    %272 = arith.mulf %267, %271 : vector<128x128xf32>
    %273 = arith.truncf %272 : vector<128x128xf32> to vector<128x128xbf16>
    %cst_152 = arith.constant dense<0.000000e+00> : vector<128x16xf32>
    %274 = tpu.matmul %273, %259, %cst_152 {dimension_numbers = #tpu.dot_dimension_numbers<[1], [0], [0], [1], [0, 0, 1, 1], [], []>} : vector<128x128xbf16>, vector<128x16xbf16>, vector<128x16xf32> -> vector<128x16xf32>
    %275 = arith.truncf %274 : vector<128x16xf32> to vector<128x16xbf16>
    %c0_153 = arith.constant 0 : index
    %c32_154 = arith.constant 32 : index
    %276 = vector.load %arg22[%c0_153, %c32_154] : memref<128x192xbf16, #tpu.memory_space<vmem>>, vector<128x16xbf16>
    %cst_155 = arith.constant 2.500000e-01 : bf16
    %277 = vector.broadcast %cst_155 : bf16 to vector<128x16xbf16>
    %278 = arith.mulf %276, %277 : vector<128x16xbf16>
    %c0_156 = arith.constant 0 : index
    %c96_157 = arith.constant 96 : index
    %279 = vector.load %arg22[%c0_156, %c96_157] : memref<128x192xbf16, #tpu.memory_space<vmem>>, vector<128x16xbf16>
    %c0_158 = arith.constant 0 : index
    %c160_159 = arith.constant 160 : index
    %280 = vector.load %arg22[%c0_158, %c160_159] : memref<128x192xbf16, #tpu.memory_space<vmem>>, vector<128x16xbf16>
    %cst_160 = arith.constant dense<0.000000e+00> : vector<128x128xf32>
    %281 = tpu.matmul %278, %279, %cst_160 {dimension_numbers = #tpu.dot_dimension_numbers<[1], [1], [0], [0], [0, 0, 1, 0], [], []>} : vector<128x16xbf16>, vector<128x16xbf16>, vector<128x128xf32> -> vector<128x128xf32>
    %c0_161 = arith.constant 0 : index
    %c0_162 = arith.constant 0 : index
    %282 = vector.load %arg2[%c0_161, %c0_162] : memref<128x128xf32, #tpu.memory_space<vmem>>, vector<128x128xf32>
    %283 = arith.addf %281, %282 : vector<128x128xf32>
    %cst_163 = arith.constant dense<0xFF800000> : vector<128xf32>
    %284 = vector.multi_reduction <maximumf>, %283, %cst_163 [1] : vector<128x128xf32> to vector<128xf32>
    %285 = vector.shape_cast %284 : vector<128xf32> to vector<128x1xf32>
    %286 = vector.broadcast %285 : vector<128x1xf32> to vector<128x128xf32>
    %287 = arith.subf %283, %286 : vector<128x128xf32>
    %288 = math.exp %287 : vector<128x128xf32>
    %cst_164 = arith.constant dense<0.000000e+00> : vector<128xf32>
    %289 = vector.multi_reduction <add>, %288, %cst_164 [1] : vector<128x128xf32> to vector<128xf32>
    %290 = vector.shape_cast %289 : vector<128xf32> to vector<128x1xf32>
    %291 = tpu.reciprocal %290 {approx = true} : vector<128x1xf32> -> vector<128x1xf32>
    %292 = vector.broadcast %291 : vector<128x1xf32> to vector<128x128xf32>
    %293 = arith.mulf %288, %292 : vector<128x128xf32>
    %294 = arith.truncf %293 : vector<128x128xf32> to vector<128x128xbf16>
    %cst_165 = arith.constant dense<0.000000e+00> : vector<128x16xf32>
    %295 = tpu.matmul %294, %280, %cst_165 {dimension_numbers = #tpu.dot_dimension_numbers<[1], [0], [0], [1], [0, 0, 1, 1], [], []>} : vector<128x128xbf16>, vector<128x16xbf16>, vector<128x16xf32> -> vector<128x16xf32>
    %296 = arith.truncf %295 : vector<128x16xf32> to vector<128x16xbf16>
    %c0_166 = arith.constant 0 : index
    %c48_167 = arith.constant 48 : index
    %297 = vector.load %arg22[%c0_166, %c48_167] : memref<128x192xbf16, #tpu.memory_space<vmem>>, vector<128x16xbf16>
    %cst_168 = arith.constant 2.500000e-01 : bf16
    %298 = vector.broadcast %cst_168 : bf16 to vector<128x16xbf16>
    %299 = arith.mulf %297, %298 : vector<128x16xbf16>
    %c0_169 = arith.constant 0 : index
    %c112_170 = arith.constant 112 : index
    %300 = vector.load %arg22[%c0_169, %c112_170] : memref<128x192xbf16, #tpu.memory_space<vmem>>, vector<128x16xbf16>
    %c0_171 = arith.constant 0 : index
    %c176_172 = arith.constant 176 : index
    %301 = vector.load %arg22[%c0_171, %c176_172] : memref<128x192xbf16, #tpu.memory_space<vmem>>, vector<128x16xbf16>
    %cst_173 = arith.constant dense<0.000000e+00> : vector<128x128xf32>
    %302 = tpu.matmul %299, %300, %cst_173 {dimension_numbers = #tpu.dot_dimension_numbers<[1], [1], [0], [0], [0, 0, 1, 0], [], []>} : vector<128x16xbf16>, vector<128x16xbf16>, vector<128x128xf32> -> vector<128x128xf32>
    %c0_174 = arith.constant 0 : index
    %c0_175 = arith.constant 0 : index
    %303 = vector.load %arg2[%c0_174, %c0_175] : memref<128x128xf32, #tpu.memory_space<vmem>>, vector<128x128xf32>
    %304 = arith.addf %302, %303 : vector<128x128xf32>
    %cst_176 = arith.constant dense<0xFF800000> : vector<128xf32>
    %305 = vector.multi_reduction <maximumf>, %304, %cst_176 [1] : vector<128x128xf32> to vector<128xf32>
    %306 = vector.shape_cast %305 : vector<128xf32> to vector<128x1xf32>
    %307 = vector.broadcast %306 : vector<128x1xf32> to vector<128x128xf32>
    %308 = arith.subf %304, %307 : vector<128x128xf32>
    %309 = math.exp %308 : vector<128x128xf32>
    %cst_177 = arith.constant dense<0.000000e+00> : vector<128xf32>
    %310 = vector.multi_reduction <add>, %309, %cst_177 [1] : vector<128x128xf32> to vector<128xf32>
    %311 = vector.shape_cast %310 : vector<128xf32> to vector<128x1xf32>
    %312 = tpu.reciprocal %311 {approx = true} : vector<128x1xf32> -> vector<128x1xf32>
    %313 = vector.broadcast %312 : vector<128x1xf32> to vector<128x128xf32>
    %314 = arith.mulf %309, %313 : vector<128x128xf32>
    %315 = arith.truncf %314 : vector<128x128xf32> to vector<128x128xbf16>
    %cst_178 = arith.constant dense<0.000000e+00> : vector<128x16xf32>
    %316 = tpu.matmul %315, %301, %cst_178 {dimension_numbers = #tpu.dot_dimension_numbers<[1], [0], [0], [1], [0, 0, 1, 1], [], []>} : vector<128x128xbf16>, vector<128x16xbf16>, vector<128x16xf32> -> vector<128x16xf32>
    %317 = arith.truncf %316 : vector<128x16xf32> to vector<128x16xbf16>
    %318 = tpu.concatenate %254, %275, %296, %317 in 1 : vector<128x16xbf16>, vector<128x16xbf16>, vector<128x16xbf16>, vector<128x16xbf16> -> vector<128x64xbf16>
    %c1_179 = arith.constant 1 : index
    %c0_180 = arith.constant 0 : index
    %c0_181 = arith.constant 0 : index
    %319 = vector.load %arg9[%c1_179, %c0_180, %c0_181] : memref<2x64x64xbf16, #tpu.memory_space<vmem>>, vector<1x64x64xbf16>
    %320 = vector.shape_cast %319 : vector<1x64x64xbf16> to vector<64x64xbf16>
    %cst_182 = arith.constant dense<0.000000e+00> : vector<128x64xf32>
    %321 = tpu.matmul %318, %320, %cst_182 {dimension_numbers = #tpu.dot_dimension_numbers<[1], [0], [0], [1], [0, 0, 1, 1], [], []>} : vector<128x64xbf16>, vector<64x64xbf16>, vector<128x64xf32> -> vector<128x64xf32>
    %c1_183 = arith.constant 1 : index
    %c0_184 = arith.constant 0 : index
    %c0_185 = arith.constant 0 : index
    %322 = vector.load %arg10[%c1_183, %c0_184, %c0_185] : memref<2x1x64xf32, #tpu.memory_space<vmem>>, vector<1x1x64xf32>
    %323 = vector.shape_cast %322 : vector<1x1x64xf32> to vector<1x64xf32>
    %324 = vector.broadcast %323 : vector<1x64xf32> to vector<128x64xf32>
    %325 = arith.addf %321, %324 : vector<128x64xf32>
    %c1_186 = arith.constant 1 : index
    %c0_187 = arith.constant 0 : index
    %c0_188 = arith.constant 0 : index
    %326 = vector.load %arg11[%c1_186, %c0_187, %c0_188] : memref<2x1x64xf32, #tpu.memory_space<vmem>>, vector<1x1x64xf32>
    %327 = vector.shape_cast %326 : vector<1x1x64xf32> to vector<1x64xf32>
    %328 = vector.broadcast %327 : vector<1x64xf32> to vector<128x64xf32>
    %329 = arith.mulf %328, %325 : vector<128x64xf32>
    %330 = arith.addf %197, %329 : vector<128x64xf32>
    %c1_189 = arith.constant 1 : index
    %c0_190 = arith.constant 0 : index
    %c0_191 = arith.constant 0 : index
    %331 = vector.load %arg12[%c1_189, %c0_190, %c0_191] : memref<2x1x64xf32, #tpu.memory_space<vmem>>, vector<1x1x64xf32>
    %332 = vector.shape_cast %331 : vector<1x1x64xf32> to vector<1x64xf32>
    %c1_192 = arith.constant 1 : index
    %c0_193 = arith.constant 0 : index
    %c0_194 = arith.constant 0 : index
    %333 = vector.load %arg13[%c1_192, %c0_193, %c0_194] : memref<2x1x64xf32, #tpu.memory_space<vmem>>, vector<1x1x64xf32>
    %334 = vector.shape_cast %333 : vector<1x1x64xf32> to vector<1x64xf32>
    %cst_195 = arith.constant dense<0.000000e+00> : vector<128xf32>
    %335 = vector.multi_reduction <add>, %330, %cst_195 [1] : vector<128x64xf32> to vector<128xf32>
    %336 = vector.shape_cast %335 : vector<128xf32> to vector<128x1xf32>
    %cst_196 = arith.constant 6.400000e+01 : f32
    %337 = vector.broadcast %cst_196 : f32 to vector<128x1xf32>
    %338 = arith.divf %336, %337 : vector<128x1xf32>
    %339 = vector.broadcast %338 : vector<128x1xf32> to vector<128x64xf32>
    %340 = arith.subf %330, %339 : vector<128x64xf32>
    %341 = arith.mulf %340, %340 : vector<128x64xf32>
    %cst_197 = arith.constant dense<0.000000e+00> : vector<128xf32>
    %342 = vector.multi_reduction <add>, %341, %cst_197 [1] : vector<128x64xf32> to vector<128xf32>
    %343 = vector.shape_cast %342 : vector<128xf32> to vector<128x1xf32>
    %cst_198 = arith.constant 6.400000e+01 : f32
    %344 = vector.broadcast %cst_198 : f32 to vector<128x1xf32>
    %345 = arith.divf %343, %344 : vector<128x1xf32>
    %346 = vector.broadcast %338 : vector<128x1xf32> to vector<128x64xf32>
    %347 = arith.subf %330, %346 : vector<128x64xf32>
    %cst_199 = arith.constant 9.99999997E-7 : f32
    %348 = vector.broadcast %cst_199 : f32 to vector<128x1xf32>
    %349 = arith.addf %345, %348 : vector<128x1xf32>
    %350 = math.rsqrt %349 : vector<128x1xf32>
    %351 = vector.broadcast %350 : vector<128x1xf32> to vector<128x64xf32>
    %352 = arith.mulf %347, %351 : vector<128x64xf32>
    %353 = vector.broadcast %332 : vector<1x64xf32> to vector<128x64xf32>
    %354 = arith.mulf %352, %353 : vector<128x64xf32>
    %355 = vector.broadcast %334 : vector<1x64xf32> to vector<128x64xf32>
    %356 = arith.addf %354, %355 : vector<128x64xf32>
    %c1_200 = arith.constant 1 : index
    %c0_201 = arith.constant 0 : index
    %c0_202 = arith.constant 0 : index
    %357 = vector.load %arg14[%c1_200, %c0_201, %c0_202] : memref<2x64x256xbf16, #tpu.memory_space<vmem>>, vector<1x64x256xbf16>
    %358 = vector.shape_cast %357 : vector<1x64x256xbf16> to vector<64x256xbf16>
    %359 = arith.truncf %356 : vector<128x64xf32> to vector<128x64xbf16>
    %cst_203 = arith.constant dense<0.000000e+00> : vector<128x256xf32>
    %360 = tpu.matmul %359, %358, %cst_203 {dimension_numbers = #tpu.dot_dimension_numbers<[1], [0], [0], [1], [0, 0, 1, 1], [], []>} : vector<128x64xbf16>, vector<64x256xbf16>, vector<128x256xf32> -> vector<128x256xf32>
    %c1_204 = arith.constant 1 : index
    %c0_205 = arith.constant 0 : index
    %c0_206 = arith.constant 0 : index
    %361 = vector.load %arg15[%c1_204, %c0_205, %c0_206] : memref<2x1x256xf32, #tpu.memory_space<vmem>>, vector<1x1x256xf32>
    %362 = vector.shape_cast %361 : vector<1x1x256xf32> to vector<1x256xf32>
    %363 = vector.broadcast %362 : vector<1x256xf32> to vector<128x256xf32>
    %364 = arith.addf %360, %363 : vector<128x256xf32>
    %365 = arith.mulf %364, %364 : vector<128x256xf32>
    %366 = arith.mulf %364, %365 : vector<128x256xf32>
    %cst_207 = arith.constant 4.471500e-02 : f32
    %367 = vector.broadcast %cst_207 : f32 to vector<128x256xf32>
    %368 = arith.mulf %367, %366 : vector<128x256xf32>
    %369 = arith.addf %364, %368 : vector<128x256xf32>
    %cst_208 = arith.constant 0.797884583 : f32
    %370 = vector.broadcast %cst_208 : f32 to vector<128x256xf32>
    %371 = arith.mulf %370, %369 : vector<128x256xf32>
    %372 = math.tanh %371 : vector<128x256xf32>
    %cst_209 = arith.constant 1.000000e+00 : f32
    %373 = vector.broadcast %cst_209 : f32 to vector<128x256xf32>
    %374 = arith.addf %373, %372 : vector<128x256xf32>
    %cst_210 = arith.constant 5.000000e-01 : f32
    %375 = vector.broadcast %cst_210 : f32 to vector<128x256xf32>
    %376 = arith.mulf %375, %374 : vector<128x256xf32>
    %377 = arith.mulf %364, %376 : vector<128x256xf32>
    %c1_211 = arith.constant 1 : index
    %c0_212 = arith.constant 0 : index
    %c0_213 = arith.constant 0 : index
    %378 = vector.load %arg16[%c1_211, %c0_212, %c0_213] : memref<2x256x64xbf16, #tpu.memory_space<vmem>>, vector<1x256x64xbf16>
    %379 = vector.shape_cast %378 : vector<1x256x64xbf16> to vector<256x64xbf16>
    %380 = arith.truncf %377 : vector<128x256xf32> to vector<128x256xbf16>
    %cst_214 = arith.constant dense<0.000000e+00> : vector<128x64xf32>
    %381 = tpu.matmul %380, %379, %cst_214 {dimension_numbers = #tpu.dot_dimension_numbers<[1], [0], [0], [1], [0, 0, 1, 1], [], []>} : vector<128x256xbf16>, vector<256x64xbf16>, vector<128x64xf32> -> vector<128x64xf32>
    %c1_215 = arith.constant 1 : index
    %c0_216 = arith.constant 0 : index
    %c0_217 = arith.constant 0 : index
    %382 = vector.load %arg17[%c1_215, %c0_216, %c0_217] : memref<2x1x64xf32, #tpu.memory_space<vmem>>, vector<1x1x64xf32>
    %383 = vector.shape_cast %382 : vector<1x1x64xf32> to vector<1x64xf32>
    %384 = vector.broadcast %383 : vector<1x64xf32> to vector<128x64xf32>
    %385 = arith.addf %381, %384 : vector<128x64xf32>
    %c1_218 = arith.constant 1 : index
    %c0_219 = arith.constant 0 : index
    %c0_220 = arith.constant 0 : index
    %386 = vector.load %arg18[%c1_218, %c0_219, %c0_220] : memref<2x1x64xf32, #tpu.memory_space<vmem>>, vector<1x1x64xf32>
    %387 = vector.shape_cast %386 : vector<1x1x64xf32> to vector<1x64xf32>
    %388 = vector.broadcast %387 : vector<1x64xf32> to vector<128x64xf32>
    %389 = arith.mulf %388, %385 : vector<128x64xf32>
    %390 = arith.addf %330, %389 : vector<128x64xf32>
    %391 = tpu.iota {dimensions = array<i32: 0>} : vector<16x128xi32>
    %392 = tpu.iota {dimensions = array<i32: 1>} : vector<16x128xi32>
    %c8_i32 = arith.constant 8 : i32
    %393 = vector.broadcast %c8_i32 : i32 to vector<16x128xi32>
    %394 = arith.muli %391, %393 : vector<16x128xi32>
    %395 = arith.cmpi eq, %392, %394 : vector<16x128xi32>
    %396 = arith.extui %395 : vector<16x128xi1> to vector<16x128xi32>
    %397 = arith.sitofp %396 : vector<16x128xi32> to vector<16x128xf32>
    %cst_221 = arith.constant dense<0.000000e+00> : vector<16x64xf32>
    %398 = tpu.matmul %397, %390, %cst_221 {dimension_numbers = #tpu.dot_dimension_numbers<[1], [0], [0], [1], [0, 0, 1, 1], [], []>} : vector<16x128xf32>, vector<128x64xf32>, vector<16x64xf32> -> vector<16x64xf32>
    %c0_222 = arith.constant 0 : index
    %c0_223 = arith.constant 0 : index
    %399 = vector.load %arg19[%c0_222, %c0_223] : memref<1x64xf32, #tpu.memory_space<vmem>>, vector<1x64xf32>
    %c0_224 = arith.constant 0 : index
    %c0_225 = arith.constant 0 : index
    %400 = vector.load %arg20[%c0_224, %c0_225] : memref<1x64xf32, #tpu.memory_space<vmem>>, vector<1x64xf32>
    %cst_226 = arith.constant dense<0.000000e+00> : vector<16xf32>
    %401 = vector.multi_reduction <add>, %398, %cst_226 [1] : vector<16x64xf32> to vector<16xf32>
    %402 = vector.shape_cast %401 : vector<16xf32> to vector<16x1xf32>
    %cst_227 = arith.constant 6.400000e+01 : f32
    %403 = vector.broadcast %cst_227 : f32 to vector<16x1xf32>
    %404 = arith.divf %402, %403 : vector<16x1xf32>
    %405 = vector.broadcast %404 : vector<16x1xf32> to vector<16x64xf32>
    %406 = arith.subf %398, %405 : vector<16x64xf32>
    %407 = arith.mulf %406, %406 : vector<16x64xf32>
    %cst_228 = arith.constant dense<0.000000e+00> : vector<16xf32>
    %408 = vector.multi_reduction <add>, %407, %cst_228 [1] : vector<16x64xf32> to vector<16xf32>
    %409 = vector.shape_cast %408 : vector<16xf32> to vector<16x1xf32>
    %cst_229 = arith.constant 6.400000e+01 : f32
    %410 = vector.broadcast %cst_229 : f32 to vector<16x1xf32>
    %411 = arith.divf %409, %410 : vector<16x1xf32>
    %412 = vector.broadcast %404 : vector<16x1xf32> to vector<16x64xf32>
    %413 = arith.subf %398, %412 : vector<16x64xf32>
    %cst_230 = arith.constant 9.99999997E-7 : f32
    %414 = vector.broadcast %cst_230 : f32 to vector<16x1xf32>
    %415 = arith.addf %411, %414 : vector<16x1xf32>
    %416 = math.rsqrt %415 : vector<16x1xf32>
    %417 = vector.broadcast %416 : vector<16x1xf32> to vector<16x64xf32>
    %418 = arith.mulf %413, %417 : vector<16x64xf32>
    %419 = vector.broadcast %399 : vector<1x64xf32> to vector<16x64xf32>
    %420 = arith.mulf %418, %419 : vector<16x64xf32>
    %421 = vector.broadcast %400 : vector<1x64xf32> to vector<16x64xf32>
    %422 = arith.addf %420, %421 : vector<16x64xf32>
    %c0_231 = arith.constant 0 : index
    %c0_232 = arith.constant 0 : index
    %423 = vector.load %arg21[%c0_231, %c0_232] : memref<16x64xf32, #tpu.memory_space<vmem>>, vector<16x64xf32>
    tpu.vector_store %arg21[%c0_231, %c0_232], %422 {strides = array<i32>} : memref<16x64xf32, #tpu.memory_space<vmem>>, vector<16x64xf32>,
    return
  }
  func.func @transform_0(%arg0: i32) -> (i32, i32) {
    %c0_i32 = arith.constant 0 : i32
    %c0_i32_0 = arith.constant 0 : i32
    return %arg0, %c0_i32 : i32, i32
  }
  func.func @transform_1(%arg0: i32) -> (i32, i32) {
    %c0_i32 = arith.constant 0 : i32
    %c0_i32_0 = arith.constant 0 : i32
    %c0_i32_1 = arith.constant 0 : i32
    return %c0_i32, %c0_i32_0 : i32, i32
  }
  func.func @transform_2(%arg0: i32) -> (i32, i32) {
    %c0_i32 = arith.constant 0 : i32
    %c0_i32_0 = arith.constant 0 : i32
    %c0_i32_1 = arith.constant 0 : i32
    return %c0_i32, %c0_i32_0 : i32, i32
  }
  func.func @transform_3(%arg0: i32) -> (i32, i32) {
    %c0_i32 = arith.constant 0 : i32
    %c0_i32_0 = arith.constant 0 : i32
    %c0_i32_1 = arith.constant 0 : i32
    return %c0_i32, %c0_i32_0 : i32, i32
  }
  func.func @transform_4(%arg0: i32) -> (i32, i32, i32) {
    %c0_i32 = arith.constant 0 : i32
    %c0_i32_0 = arith.constant 0 : i32
    %c0_i32_1 = arith.constant 0 : i32
    %c0_i32_2 = arith.constant 0 : i32
    return %c0_i32, %c0_i32_0, %c0_i32_1 : i32, i32, i32
  }
  func.func @transform_5(%arg0: i32) -> (i32, i32, i32) {
    %c0_i32 = arith.constant 0 : i32
    %c0_i32_0 = arith.constant 0 : i32
    %c0_i32_1 = arith.constant 0 : i32
    %c0_i32_2 = arith.constant 0 : i32
    return %c0_i32, %c0_i32_0, %c0_i32_1 : i32, i32, i32
  }
  func.func @transform_6(%arg0: i32) -> (i32, i32, i32) {
    %c0_i32 = arith.constant 0 : i32
    %c0_i32_0 = arith.constant 0 : i32
    %c0_i32_1 = arith.constant 0 : i32
    %c0_i32_2 = arith.constant 0 : i32
    return %c0_i32, %c0_i32_0, %c0_i32_1 : i32, i32, i32
  }
  func.func @transform_7(%arg0: i32) -> (i32, i32, i32) {
    %c0_i32 = arith.constant 0 : i32
    %c0_i32_0 = arith.constant 0 : i32
    %c0_i32_1 = arith.constant 0 : i32
    %c0_i32_2 = arith.constant 0 : i32
    return %c0_i32, %c0_i32_0, %c0_i32_1 : i32, i32, i32
  }
  func.func @transform_8(%arg0: i32) -> (i32, i32, i32) {
    %c0_i32 = arith.constant 0 : i32
    %c0_i32_0 = arith.constant 0 : i32
    %c0_i32_1 = arith.constant 0 : i32
    %c0_i32_2 = arith.constant 0 : i32
    return %c0_i32, %c0_i32_0, %c0_i32_1 : i32, i32, i32
  }
  func.func @transform_9(%arg0: i32) -> (i32, i32, i32) {
    %c0_i32 = arith.constant 0 : i32
    %c0_i32_0 = arith.constant 0 : i32
    %c0_i32_1 = arith.constant 0 : i32
    %c0_i32_2 = arith.constant 0 : i32
    return %c0_i32, %c0_i32_0, %c0_i32_1 : i32, i32, i32
  }
  func.func @transform_10(%arg0: i32) -> (i32, i32, i32) {
    %c0_i32 = arith.constant 0 : i32
    %c0_i32_0 = arith.constant 0 : i32
    %c0_i32_1 = arith.constant 0 : i32
    %c0_i32_2 = arith.constant 0 : i32
    return %c0_i32, %c0_i32_0, %c0_i32_1 : i32, i32, i32
  }
  func.func @transform_11(%arg0: i32) -> (i32, i32, i32) {
    %c0_i32 = arith.constant 0 : i32
    %c0_i32_0 = arith.constant 0 : i32
    %c0_i32_1 = arith.constant 0 : i32
    %c0_i32_2 = arith.constant 0 : i32
    return %c0_i32, %c0_i32_0, %c0_i32_1 : i32, i32, i32
  }
  func.func @transform_12(%arg0: i32) -> (i32, i32, i32) {
    %c0_i32 = arith.constant 0 : i32
    %c0_i32_0 = arith.constant 0 : i32
    %c0_i32_1 = arith.constant 0 : i32
    %c0_i32_2 = arith.constant 0 : i32
    return %c0_i32, %c0_i32_0, %c0_i32_1 : i32, i32, i32
  }
  func.func @transform_13(%arg0: i32) -> (i32, i32, i32) {
    %c0_i32 = arith.constant 0 : i32
    %c0_i32_0 = arith.constant 0 : i32
    %c0_i32_1 = arith.constant 0 : i32
    %c0_i32_2 = arith.constant 0 : i32
    return %c0_i32, %c0_i32_0, %c0_i32_1 : i32, i32, i32
  }
  func.func @transform_14(%arg0: i32) -> (i32, i32, i32) {
    %c0_i32 = arith.constant 0 : i32
    %c0_i32_0 = arith.constant 0 : i32
    %c0_i32_1 = arith.constant 0 : i32
    %c0_i32_2 = arith.constant 0 : i32
    return %c0_i32, %c0_i32_0, %c0_i32_1 : i32, i32, i32
  }
  func.func @transform_15(%arg0: i32) -> (i32, i32, i32) {
    %c0_i32 = arith.constant 0 : i32
    %c0_i32_0 = arith.constant 0 : i32
    %c0_i32_1 = arith.constant 0 : i32
    %c0_i32_2 = arith.constant 0 : i32
    return %c0_i32, %c0_i32_0, %c0_i32_1 : i32, i32, i32
  }
  func.func @transform_16(%arg0: i32) -> (i32, i32, i32) {
    %c0_i32 = arith.constant 0 : i32
    %c0_i32_0 = arith.constant 0 : i32
    %c0_i32_1 = arith.constant 0 : i32
    %c0_i32_2 = arith.constant 0 : i32
    return %c0_i32, %c0_i32_0, %c0_i32_1 : i32, i32, i32
  }
  func.func @transform_17(%arg0: i32) -> (i32, i32, i32) {
    %c0_i32 = arith.constant 0 : i32
    %c0_i32_0 = arith.constant 0 : i32
    %c0_i32_1 = arith.constant 0 : i32
    %c0_i32_2 = arith.constant 0 : i32
    return %c0_i32, %c0_i32_0, %c0_i32_1 : i32, i32, i32
  }
  func.func @transform_18(%arg0: i32) -> (i32, i32) {
    %c0_i32 = arith.constant 0 : i32
    %c0_i32_0 = arith.constant 0 : i32
    %c0_i32_1 = arith.constant 0 : i32
    return %c0_i32, %c0_i32_0 : i32, i32
  }
  func.func @transform_19(%arg0: i32) -> (i32, i32) {
    %c0_i32 = arith.constant 0 : i32
    %c0_i32_0 = arith.constant 0 : i32
    %c0_i32_1 = arith.constant 0 : i32
    return %c0_i32, %c0_i32_0 : i32, i32
  }
  func.func @transform_20(%arg0: i32) -> (i32, i32) {
    %c0_i32 = arith.constant 0 : i32
    %c0_i32_0 = arith.constant 0 : i32
    return %arg0, %c0_i32 : i32, i32
  }
}

</mosaic_0001>

<bundles_post_ra>
// kernel: tpu_custom_call.1
= control target key start
LH: loop header
LB: loop body
LE: loop exit
PB: predicated region body
PF: predicated region fallthrough
CT: control target
= control target key end

     0   :  { %s16192_s0 = inlined_call_operand.vmem [shape: bf16[256,192], index: 0, kind: input, shape index: {}]   ;;  %s16193_s1 = inlined_call_operand.vmem [shape: f32[128,128], index: 1, kind: input, shape index: {}]   ;;  %s16194_s2 = inlined_call_operand.vmem [shape: bf16[192,64], index: 2, kind: input, shape index: {}]   ;;  %s16195_s3 = inlined_call_operand.vmem [shape: f32[128,64], index: 3, kind: input, shape index: {}]   ;;  %s16196_s4 = inlined_call_operand.vmem [shape: f32[2,1,64], index: 4, kind: input, shape index: {}]   ;;  %s16197_s5 = inlined_call_operand.vmem [shape: f32[2,1,64], index: 5, kind: input, shape index: {}]   ;;  %s16198_s6 = inlined_call_operand.vmem [shape: bf16[2,64,192], index: 6, kind: input, shape index: {}]   ;;  %s16199_s7 = inlined_call_operand.vmem [shape: f32[2,1,192], index: 7, kind: input, shape index: {}]   ;;  %s16200_s8 = inlined_call_operand.vmem [shape: bf16[2,64,64], index: 8, kind: input, shape index: {}]   ;;  %s16201_s9 = inlined_call_operand.vmem [shape: f32[2,1,64], index: 9, kind: input, shape index: {}]   ;;  %s16202_s10 = inlined_call_operand.vmem [shape: f32[2,1,64], index: 10, kind: input, shape index: {}]   ;;  %s16203_s11 = inlined_call_operand.vmem [shape: f32[2,1,64], index: 11, kind: input, shape index: {}]   ;;  %s16204_s12 = inlined_call_operand.vmem [shape: f32[2,1,64], index: 12, kind: input, shape index: {}]   ;;  %s16205_s13 = inlined_call_operand.vmem [shape: bf16[2,64,256], index: 13, kind: input, shape index: {}]   ;;  %s16206_s14 = inlined_call_operand.vmem [shape: f32[2,1,256], index: 14, kind: input, shape index: {}]   ;;  %s16207_s15 = inlined_call_operand.vmem [shape: bf16[2,256,64], index: 15, kind: input, shape index: {}]   ;;  %s16208_s16 = inlined_call_operand.vmem [shape: f32[2,1,64], index: 16, kind: input, shape index: {}]   ;;  %s16209_s17 = inlined_call_operand.vmem [shape: f32[2,1,64], index: 17, kind: input, shape index: {}]   ;;  %s16210_s18 = inlined_call_operand.vmem [shape: f32[1,64], index: 18, kind: input, shape index: {}]   ;;  %s16211_s19 = inlined_call_operand.vmem [shape: f32[1,64], index: 19, kind: input, shape index: {}]   ;;  %s16212_s20 = inlined_call_operand.hbm [shape: f32[32,64], index: 20, kind: output, shape index: {}]  }
   0x1   :  { %16391 = sst [smem:[#allocation70_spill]] %s16192_s0 }
   0x2   :  { %16392 = sst [smem:[#allocation71_spill]] %s16193_s1 }
   0x3   :  { %16393 = sst [smem:[#allocation72_spill]] %s16194_s2 }
   0x4   :  { %16394 = sst [smem:[#allocation73_spill]] %s16195_s3 }
   0x5   :  { %16395 = sst [smem:[#allocation74_spill]] %s16196_s4 }
   0x6   :  { %16396 = sst [smem:[#allocation75_spill]] %s16211_s19 }
   0x7   :  { %16397 = sst [smem:[#allocation76_spill]] %s16212_s20 }
   0x8   :  { %25 = vsyncpa [#allocation4], 0 }
   0x9   :  { %27 = vsyncpa [#allocation4 + $0x1], 0  ;;  %s11211_s1 = smov 0   ;;  %s11213_s22 = smov 0  }
   0xa   :  { %s11215_s23 = smov 0   ;;  %s11217_s24 = smov 0  }
   0xb LB: > { %16398 = sst [smem:[#allocation6_spill]] %s11080_s1  ;;  %s11232_s2 = sadd.s32 4294967295, %s11092_s24   ;;  %s11092_s24 = sphi %s11217_s24, %s16745_s24   ;;  %s11088_s23 = sphi %s11215_s23, %s16747_s23   ;;  %s11084_s22 = sphi %s11213_s22, %s16749_s22   ;;  %s11080_s1 = sphi %s11211_s1, %s16748_s1  }
   0xc   : > { %16399 = sst [smem:[#allocation7_spill]] %s11088_s23  ;;  %s8586_s25 = sadd.s32 4294967294, %s11092_s24  }
   0xd   : > { %16400 = sst [smem:[#allocation8_spill]] %s11092_s24  ;;  %s11236_s3 = sadd.s32 1, %s11092_s24  }
   0xe   : > { %16401 = sst [smem:[#allocation9_spill]] %s11236_s3  ;;  %s465_s26 = sadd.s32 1, %s11088_s23 }
   0xf   : > { %s462_s27 = ssub.s32 %s11092_s24, %s11236_s3  ;;  %p475_p0 = scmp.ne.s32.totalorder %s11088_s23, %s11084_s22 }
  0x10   : > { %p463_p1 = scmp.eq.s32.totalorder %s462_s27, 0  ;;  %p476_p2 = scmp.eq.s32.totalorder %s11232_s2, 1 }
  0x11   : > { %p481_p3 = scmp.ne.s32.totalorder %s11084_s22, %s11080_s1  ;;  %p482_p4 = scmp.eq.s32.totalorder %s8586_s25, 1 }
  0x12   : > { %s11247_s28 = scalar_select %p463_p1, %s11088_s23, %s465_s26  }
  0x13   : > { %p11249_p5 = por %p476_p2, %p475_p0  ;;  %p11253_p6 = por %p482_p4, %p481_p3 }
  0x14   : > { %16402 = sst [smem:[#allocation10_spill]] %s11247_s28  ;;  %p8589_p7 = scmp.ge.s32.totalorder %s11092_s24, 1 }
  0x15   : > { %s16403_s4 = scalar_select %p11249_p5, 1, 0 }
  0x16   : > { %s16405_s29 = scalar_select %p11253_p6, 1, 0 }
  0x17   : > { %16404 = sst [smem:[#allocation11_spill]] %s16403_s4  ;;  %p567_p8 = scmp.lt.s32.totalorder %s11092_s24, 3 }
  0x18   : > { %16406 = sst [smem:[#allocation12_spill]] %s16405_s29 }
  0x19   : > { %p568_p9 = pnand %p8589_p7, %p567_p8 }
  0x1b   : > { %571 = sbr.rel (%p568_p9) target bundleno = 8237 (0x202d), region = 100 }
  0x22   : > { %s16407_s21 = sld [smem:[#allocation72_spill]]  ;;  %v16229_v1 = vmov 0   ;;  %s8591_s25 = sshll.u32 %s11232_s2, 4  ;;  %vm836_vm0 = vcmask 523264   ;;  %vm1514_vm1 = vcmask 130048   ;;  %vm3403_vm2 = vcmask 261120  }
  0x23   : > { %861 = vmatprep.subr.bf16.mxu0 %v16229_v1  ;;  %1337 = vmatprep.mubr.bf16.mxu1 %v16229_v1  ;;  %p627_p10 = scmp.lt.s32.totalorder %s8591_s25, 31  ;;  %s16408_s27 = sld [smem:[#allocation70_spill]]  ;;  %vm3420_vm3 = vcmask 392192  }
  0x24   : > { %s16409_s28 = sld [smem:[#allocation73_spill]]  ;;  %s16426_s3 = sld [smem:[#allocation74_spill]] }
  0x25   : > { %s16751_s25 = smov (!%p627_p10, %s8591_s25), 31  ;;  %s16226_s30 = smov 48  }
  0x26   : > { %s8907_s0 = sshll.u32 %s16751_s25, 3  ;;  %s16222_s23 = smov 112  }
  0x27   : > { %s16302_s29 = smov 80   ;;  %s16577_s26 = smov 64  }
  0x28   : > { %v10076_v0 = vld [vmem:[%s16407_s21] sm:$0xff]   ;;  %v10077_v2 = vld [vmem:[%s16407_s21 + $0x8] sm:$0xff]   ;;  %v10078_v3 = vld [vmem:[%s16407_s21 + $0x10] sm:$0xff]   ;;  %s623_s19 = sand.u32 1, %s11084_s22   ;;  %s16739_s4 = sld [smem:[#allocation75_spill]] }
  0x29   : > { %862 = vmatpush1.bf16.msra.mxu0 %v10076_v0  ;;  %v10079_v4 = vld [vmem:[%s16407_s21 + $0x18] sm:$0xff]   ;;  %s11279_s1 = scalar_lea.vmem %s16408_s27, %s8907_s0  ;;  %v10080_v6 = vld [vmem:[%s16407_s21 + $0x20] sm:$0xff]   ;;  %v10081_v7 = vld [vmem:[%s16407_s21 + $0x28] sm:$0xff]   ;;  %s16224_s27 = smov 64  }
  0x2a   : > { %863 = vmatprep.subr.bf16.mxu0 %v16229_v1  ;;  %v10090_v5 = vld [vmem:[%s11279_s1 + $0x4] ss:$8 sps:$4 sm:$0xff]   ;;  %v10082_v8 = vld [vmem:[%s16407_s21 + $0x30] sm:$0xff]   ;;  %v10083_v9 = vld [vmem:[%s16407_s21 + $0x38] sm:$0xff]   ;;  %s16437_s0 = sld [smem:[#allocation71_spill]]  ;;  %s8590_s20 = sshll.u32 %s623_s19, 4 }
  0x2b   : > { %8622 = vmatprep.mubr.msk.bf16.mxu0 %vm836_vm0, %v10090_v5  ;;  %v10084_v10 = vld [vmem:[%s16407_s21 + $0x40] sm:$0xff]   ;;  %v10085_v11 = vld [vmem:[%s16407_s21 + $0x48] sm:$0xff]   ;;  %v10086_v12 = vld [vmem:[%s16407_s21 + $0x50] sm:$0xff]   ;;  %s11103_s24 = smov [#allocation3]  }
  0x2c   : > { %v10087_v13 = vld [vmem:[%s16407_s21 + $0x58] sm:$0xff]   ;;  %v10088_v14 = vld [vmem:[%s11279_s1] ss:$8 sps:$4 sm:$0xff]   ;;  %v10094_v17 = vld [vmem:[%s11279_s1 + $0x24] ss:$8 sps:$4 sm:$0xff]   ;;  %s16506_s21 = smov 32  }
  0x2d   : > { %864 = vmatpush1.bf16.msra.mxu0 %v10077_v2  ;;  %v10091_v15 = vld [vmem:[%s11279_s1 + $0x14] ss:$8 sps:$4 sm:$0xff]   ;;  %v10093_v16 = vld [vmem:[%s11279_s1 + $0x10] ss:$8 sps:$4 sm:$0xff]   ;;  %v10096_v18 = vld [vmem:[%s11279_s1 + $0x20] ss:$8 sps:$4 sm:$0xff]  }
  0x2e   : > { %865 = vmatprep.subr.bf16.mxu0 %v16229_v1  ;;  %v10097_v19 = vld [vmem:[%s11279_s1 + $0x34] ss:$8 sps:$4 sm:$0xff]   ;;  %v10099_v20 = vld [vmem:[%s11279_s1 + $0x30] ss:$8 sps:$4 sm:$0xff]   ;;  %v10100_v21 = vld [vmem:[%s11279_s1 + $0x44] ss:$8 sps:$4 sm:$0xff]  }
  0x2f   : > { %v10102_v22 = vld [vmem:[%s11279_s1 + $0x40] ss:$8 sps:$4 sm:$0xff]   ;;  %v10103_v23 = vld [vmem:[%s11279_s1 + $0x54] ss:$8 sps:$4 sm:$0xff]   ;;  %v10105_v24 = vld [vmem:[%s11279_s1 + $0x50] ss:$8 sps:$4 sm:$0xff]  }
  0x30   : > { %v10106_v25 = vld [vmem:[%s11279_s1 + $0x64] ss:$8 sps:$4 sm:$0xff]   ;;  %v10108_v26 = vld [vmem:[%s11279_s1 + $0x60] ss:$8 sps:$4 sm:$0xff]   ;;  %v10109_v27 = vld [vmem:[%s11279_s1 + $0x74] ss:$8 sps:$4 sm:$0xff]  }
  0x31   : > { %866 = vmatpush1.bf16.msra.mxu0 %v10078_v3  ;;  %v10111_v28 = vld [vmem:[%s11279_s1 + $0x70] ss:$8 sps:$4 sm:$0xff]   ;;  %v676_v29 = vld [vmem:[%s16409_s28] sm:$0xff]  ;;  %v677_v31 = vld [vmem:[%s16409_s28 + $0x8] sm:$0xff]  ;;  %s16304_s1 = smov 32  }
  0x32   : > { %867 = vmatprep.subr.bf16.mxu0 %v16229_v1  ;;  %v678_v38 = vld [vmem:[%s16409_s28 + $0x10] sm:$0xff]  ;;  %v679_v41 = vld [vmem:[%s16409_s28 + $0x18] sm:$0xff]  ;;  %v680_v48 = vld [vmem:[%s16409_s28 + $0x20] sm:$0xff] }
  0x33   : > { %v681_v51 = vld [vmem:[%s16409_s28 + $0x28] sm:$0xff]  ;;  %v682_v59 = vld [vmem:[%s16409_s28 + $0x30] sm:$0xff]  ;;  %v683_v61 = vld [vmem:[%s16409_s28 + $0x38] sm:$0xff] }
  0x35   : > { %868 = vmatpush1.bf16.msra.mxu0 %v10079_v4 }
  0x36   : > { %869 = vmatprep.subr.bf16.mxu0 %v16229_v1 }
  0x39   : > { %870 = vmatpush1.bf16.msra.mxu0 %v10080_v6  ;;  %v684_v6 = vld [vmem:[%s16409_s28 + $0x40] sm:$0xff] }
  0x3a   : > { %871 = vmatprep.subr.bf16.mxu0 %v16229_v1 }
  0x3d   : > { %872 = vmatpush1.bf16.msra.mxu0 %v10081_v7 }
  0x3e   : > { %873 = vmatprep.subr.bf16.mxu0 %v16229_v1 }
  0x41   : > { %874 = vmatpush1.bf16.msra.mxu0 %v10082_v8  ;;  %v685_v8 = vld [vmem:[%s16409_s28 + $0x48] sm:$0xff] }
  0x42   : > { %875 = vmatprep.subr.bf16.mxu0 %v16229_v1 }
  0x45   : > { %876 = vmatpush1.bf16.msra.mxu0 %v10083_v9 }
  0x46   : > { %877 = vmatprep.subr.bf16.mxu0 %v16229_v1 }
  0x49   : > { %878 = vmatpush1.bf16.msra.mxu0 %v10084_v10 }
  0x4a   : > { %879 = vmatprep.subr.bf16.mxu0 %v16229_v1 }
  0x4d   : > { %880 = vmatpush1.bf16.msra.mxu0 %v10085_v11 }
  0x4e   : > { %881 = vmatprep.subr.bf16.mxu0 %v16229_v1 }
  0x51   : > { %882 = vmatpush1.bf16.msra.mxu0 %v10086_v12 }
  0x52   : > { %883 = vmatprep.subr.bf16.mxu0 %v16229_v1 }
  0x55   : > { %884 = vmatpush1.bf16.msra.mxu0 %v10087_v13 }
  0x58   : > { %894 = vmatmul.mubr.bf16.vlgmr.msra.gmra.mrb[0].mxu0 %v10088_v14 }
  0x59   : > { %8623 = vmatprep.mubr.msk.bf16.mxu0 %vm836_vm0, %v10091_v15 }
  0x60   : > { %902 = vmatmul.mubr.bf16.gmra.mrb[4].mxu0 %v10093_v16  ;;  %v686_v16 = vld [vmem:[%s16409_s28 + $0x50] sm:$0xff] }
  0x61   : > { %8624 = vmatprep.mubr.msk.bf16.mxu0 %vm836_vm0, %v10094_v17 }
  0x68   : > { %910 = vmatmul.mubr.bf16.gmra.mrb[8].mxu0 %v10096_v18  ;;  %v687_v18 = vld [vmem:[%s16409_s28 + $0x58] sm:$0xff] }
  0x69   : > { %8625 = vmatprep.mubr.msk.bf16.mxu0 %vm836_vm0, %v10097_v19 }
  0x70   : > { %918 = vmatmul.mubr.bf16.gmra.mrb[12].mxu0 %v10099_v20 }
  0x71   : > { %8626 = vmatprep.mubr.msk.bf16.mxu0 %vm836_vm0, %v10100_v21 }
  0x78   : > { %926 = vmatmul.mubr.bf16.gmra.mrb[16].mxu0 %v10102_v22 }
  0x79   : > { %8627 = vmatprep.mubr.msk.bf16.mxu0 %vm836_vm0, %v10103_v23 }
  0x80   : > { %934 = vmatmul.mubr.bf16.gmra.mrb[20].mxu0 %v10105_v24 }
  0x81   : > { %8628 = vmatprep.mubr.msk.bf16.mxu0 %vm836_vm0, %v10106_v25 }
  0x88   : > { %942 = vmatmul.mubr.bf16.gmra.mrb[24].mxu0 %v10108_v26  ;;  %v688_v26 = vld [vmem:[%s16409_s28 + $0x60] sm:$0xff] }
  0x89   : > { %8629 = vmatprep.mubr.msk.bf16.mxu0 %vm836_vm0, %v10109_v27 }
  0x90   : > { %950 = vmatmul.mubr.bf16.gmra.mrb[28].mxu0 %v10111_v28  ;;  %v689_v28 = vld [vmem:[%s16409_s28 + $0x68] sm:$0xff] }
 0x12b   : > { %v895_v30 = vpop.f32.mrb[0].mxu0 }
 0x12c   : > { %v11344_v32 = vadd.f32 %v895_v30, %v676_v29  ;;  %v897_v33 = vpop.f32.mrb[1].mxu0 }
 0x12d   : > { %v898_v34 = vpop.f32.mrb[2].mxu0 }
 0x12e   : > { %16410 = vst [vmem:[#allocation13_spill] sm:$0xff] %v11344_v32  ;;  %v11346_v35 = vadd.f32 %v898_v34, %v677_v31  ;;  %v900_v36 = vpop.f32.mrb[3].mxu0  ;;  %v960_v37 = vsel %vm836_vm0, %v11344_v32, 0.0 }
 0x12f   : > { %961 = vadd.xlane.f32.xlu0 %v960_v37 }
 0x130   : > { %16411 = vst [vmem:[#allocation14_spill] sm:$0xff] %v11346_v35  ;;  %v963_v39 = vsel %vm836_vm0, %v11346_v35, 0.0 }
 0x133   : > { %v903_v40 = vpop.f32.mrb[4].mxu0  ;;  %964 = vadd.xlane.f32.xlu0 %v963_v39 }
 0x134   : > { %v11358_v42 = vadd.f32 %v903_v40, %v678_v38  ;;  %v905_v43 = vpop.f32.mrb[5].mxu0  ;;  %v690_v38 = vld [vmem:[%s16409_s28 + $0x70] sm:$0xff]  ;;  %v691_v40 = vld [vmem:[%s16409_s28 + $0x78] sm:$0xff] }
 0x135   : > { %v906_v44 = vpop.f32.mrb[6].mxu0 }
 0x136   : > { %16412 = vst [vmem:[#allocation15_spill] sm:$0xff] %v11358_v42  ;;  %v11360_v45 = vadd.f32 %v906_v44, %v679_v41  ;;  %v908_v46 = vpop.f32.mrb[7].mxu0  ;;  %v966_v47 = vsel %vm836_vm0, %v11358_v42, 0.0 }
 0x137   : > { %967 = vadd.xlane.f32.xlu1 %v966_v47 }
 0x138   : > { %16413 = vst [vmem:[#allocation16_spill] sm:$0xff] %v11360_v45  ;;  %v969_v49 = vsel %vm836_vm0, %v11360_v45, 0.0 }
 0x13b   : > { %v911_v50 = vpop.f32.mrb[8].mxu0  ;;  %970 = vadd.xlane.f32.xlu1 %v969_v49 }
 0x13c   : > { %v11372_v52 = vadd.f32 %v911_v50, %v680_v48  ;;  %v913_v53 = vpop.f32.mrb[9].mxu0 }
 0x13d   : > { %v914_v54 = vpop.f32.mrb[10].mxu0 }
 0x13e   : > { %16414 = vst [vmem:[#allocation17_spill] sm:$0xff] %v11372_v52  ;;  %v11374_v55 = vadd.f32 %v914_v54, %v681_v51  ;;  %v916_v56 = vpop.f32.mrb[11].mxu0  ;;  %v972_v57 = vsel %vm836_vm0, %v11372_v52, 0.0 }
 0x13f   : > { %973 = vadd.xlane.f32.xlu0 %v972_v57 }
 0x140   : > { %16415 = vst [vmem:[#allocation18_spill] sm:$0xff] %v11374_v55  ;;  %v975_v58 = vsel %vm836_vm0, %v11374_v55, 0.0 }
 0x141   : > { %976 = vadd.xlane.f32.xlu1 %v975_v58 }
 0x143   : > { %v919_v60 = vpop.f32.mrb[12].mxu0 }
 0x144   : > { %v11386_v62 = vadd.f32 %v919_v60, %v682_v59  ;;  %v921_v63 = vpop.f32.mrb[13].mxu0 }
 0x145   : > { %v922_v0 = vpop.f32.mrb[14].mxu0 }
 0x146   : > { %16416 = vst [vmem:[#allocation19_spill] sm:$0xff] %v11386_v62  ;;  %v11388_v2 = vadd.f32 %v922_v0, %v683_v61  ;;  %v924_v3 = vpop.f32.mrb[15].mxu0  ;;  %v978_v4 = vsel %vm836_vm0, %v11386_v62, 0.0 }
 0x147   : > { %979 = vadd.xlane.f32.xlu0 %v978_v4 }
 0x148   : > { %16417 = vst [vmem:[#allocation20_spill] sm:$0xff] %v11388_v2  ;;  %v981_v5 = vsel %vm836_vm0, %v11388_v2, 0.0 }
 0x149   : > { %982 = vadd.xlane.f32.xlu1 %v981_v5 }
 0x14b   : > { %v927_v7 = vpop.f32.mrb[16].mxu0 }
 0x14c   : > { %v11400_v9 = vadd.f32 %v927_v7, %v684_v6  ;;  %v929_v10 = vpop.f32.mrb[17].mxu0 }
 0x14d   : > { %v930_v11 = vpop.f32.mrb[18].mxu0 }
 0x14e   : > { %16418 = vst [vmem:[#allocation21_spill] sm:$0xff] %v11400_v9  ;;  %v11402_v12 = vadd.f32 %v930_v11, %v685_v8  ;;  %v932_v13 = vpop.f32.mrb[19].mxu0  ;;  %v984_v14 = vsel %vm836_vm0, %v11400_v9, 0.0 }
 0x14f   : > { %985 = vadd.xlane.f32.xlu0 %v984_v14 }
 0x150   : > { %16419 = vst [vmem:[#allocation22_spill] sm:$0xff] %v11402_v12  ;;  %v987_v15 = vsel %vm836_vm0, %v11402_v12, 0.0 }
 0x151   : > { %988 = vadd.xlane.f32.xlu1 %v987_v15 }
 0x153   : > { %v935_v17 = vpop.f32.mrb[20].mxu0 }
 0x154   : > { %v11414_v19 = vadd.f32 %v935_v17, %v686_v16  ;;  %v937_v20 = vpop.f32.mrb[21].mxu0 }
 0x155   : > { %v938_v21 = vpop.f32.mrb[22].mxu0 }
 0x156   : > { %16420 = vst [vmem:[#allocation23_spill] sm:$0xff] %v11414_v19  ;;  %v11416_v22 = vadd.f32 %v938_v21, %v687_v18  ;;  %v940_v23 = vpop.f32.mrb[23].mxu0  ;;  %v990_v24 = vsel %vm836_vm0, %v11414_v19, 0.0 }
 0x157   : > { %991 = vadd.xlane.f32.xlu0 %v990_v24 }
 0x158   : > { %16421 = vst [vmem:[#allocation24_spill] sm:$0xff] %v11416_v22  ;;  %v993_v25 = vsel %vm836_vm0, %v11416_v22, 0.0 }
 0x159   : > { %994 = vadd.xlane.f32.xlu1 %v993_v25 }
 0x15b   : > { %v943_v27 = vpop.f32.mrb[24].mxu0 }
 0x15c   : > { %v11428_v29 = vadd.f32 %v943_v27, %v688_v26  ;;  %v945_v30 = vpop.f32.mrb[25].mxu0 }
 0x15d   : > { %v946_v31 = vpop.f32.mrb[26].mxu0 }
 0x15e   : > { %16422 = vst [vmem:[#allocation25_spill] sm:$0xff] %v11428_v29  ;;  %v11430_v33 = vadd.f32 %v946_v31, %v689_v28  ;;  %v948_v34 = vpop.f32.mrb[27].mxu0  ;;  %v996_v36 = vsel %vm836_vm0, %v11428_v29, 0.0 }
 0x15f   : > { %997 = vadd.xlane.f32.xlu0 %v996_v36 }
 0x160   : > { %16423 = vst [vmem:[#allocation26_spill] sm:$0xff] %v11430_v33  ;;  %v999_v37 = vsel %vm836_vm0, %v11430_v33, 0.0 }
 0x161   : > { %1000 = vadd.xlane.f32.xlu1 %v999_v37 }
 0x163   : > { %v951_v39 = vpop.f32.mrb[28].mxu0 }
 0x164   : > { %v11442_v41 = vadd.f32 %v951_v39, %v690_v38  ;;  %v953_v43 = vpop.f32.mrb[29].mxu0  ;;  %v10112_v38 = vld [vmem:[%s16198_s6 + $0x4] ss:$8 sps:$4 sm:$0xff]  }
 0x165   : > { %v954_v44 = vpop.f32.mrb[30].mxu0  ;;  %1305 = vmatprep.subr.bf16.mxu1 %v10112_v38 }
 0x166   : > { %16424 = vst [vmem:[#allocation27_spill] sm:$0xff] %v11442_v41  ;;  %v11444_v46 = vadd.f32 %v954_v44, %v691_v40  ;;  %v956_v47 = vpop.f32.mrb[31].mxu0  ;;  %v1002_v48 = vsel %vm836_vm0, %v11442_v41, 0.0  ;;  %v10114_v40 = vld [vmem:[%s16198_s6] ss:$8 sps:$4 sm:$0xff]  }
 0x167   : > { %1003 = vadd.xlane.f32.xlu0 %v1002_v48  ;;  %1306 = vmatpush1.bf16.msra.mxu1 %v10114_v40 }
 0x168   : > { %16425 = vst [vmem:[#allocation28_spill] sm:$0xff] %v11444_v46  ;;  %v1005_v49 = vsel %vm836_vm0, %v11444_v46, 0.0 }
 0x169   : > { %1006 = vadd.xlane.f32.xlu1 %v1005_v49 }
 0x1bc   : > { %v962_v50 = vpop.xlane.xlu0 %961 }
 0x1bd   : > { %v1009_v51 = vmul.f32 0.015625, %v962_v50  ;;  %v10115_v50 = vld [vmem:[%s16198_s6 + $0x14] ss:$8 sps:$4 sm:$0xff]  }
 0x1be   : > { %1307 = vmatprep.subr.bf16.mxu1 %v10115_v50 }
 0x1bf   : > { %v11451_v53 = vsub.f32 %v11344_v32, %v1009_v51  ;;  %v10117_v51 = vld [vmem:[%s16198_s6 + $0x10] ss:$8 sps:$4 sm:$0xff]  }
 0x1c0   : > { %v965_v54 = vpop.xlane.xlu0 %964  ;;  %1308 = vmatpush1.bf16.msra.mxu1 %v10117_v51 }
 0x1c1   : > { %v1010_v56 = vmul.f32 0.015625, %v965_v54  ;;  %v1041_v57 = vmul.f32 %v11451_v53, %v11451_v53 }
 0x1c3   : > { %v11456_v58 = vsub.f32 %v11346_v35, %v1010_v56  ;;  %v1057_v59 = vsel %vm836_vm0, %v1041_v57, 0.0 }
 0x1c4   : > { %v968_v60 = vpop.xlane.xlu1 %967  ;;  %1058 = vadd.xlane.f32.xlu0 %v1057_v59 }
 0x1c5   : > { %v1011_v61 = vmul.f32 0.015625, %v968_v60  ;;  %v1042_v63 = vmul.f32 %v11456_v58, %v11456_v58  ;;  %v10118_v60 = vld [vmem:[%s16198_s6 + $0x24] ss:$8 sps:$4 sm:$0xff]  }
 0x1c6   : > { %1309 = vmatprep.subr.bf16.mxu1 %v10118_v60 }
 0x1c7   : > { %v11462_v0 = vsub.f32 %v11358_v42, %v1011_v61  ;;  %v1060_v3 = vsel %vm836_vm0, %v1042_v63, 0.0  ;;  %v10120_v63 = vld [vmem:[%s16198_s6 + $0x20] ss:$8 sps:$4 sm:$0xff]  }
 0x1c8   : > { %v971_v4 = vpop.xlane.xlu1 %970  ;;  %1061 = vadd.xlane.f32.xlu1 %v1060_v3  ;;  %1310 = vmatpush1.bf16.msra.mxu1 %v10120_v63 }
 0x1c9   : > { %v1012_v5 = vmul.f32 0.015625, %v971_v4  ;;  %v1043_v6 = vmul.f32 %v11462_v0, %v11462_v0 }
 0x1cb   : > { %v11468_v7 = vsub.f32 %v11360_v45, %v1012_v5  ;;  %v1063_v8 = vsel %vm836_vm0, %v1043_v6, 0.0 }
 0x1cc   : > { %1064 = vadd.xlane.f32.xlu0 %v1063_v8  ;;  %v974_v10 = vpop.xlane.xlu0 %973 }
 0x1cd   : > { %v1013_v11 = vmul.f32 0.015625, %v974_v10  ;;  %v1044_v13 = vmul.f32 %v11468_v7, %v11468_v7  ;;  %v10121_v10 = vld [vmem:[%s16198_s6 + $0x34] ss:$8 sps:$4 sm:$0xff]  }
 0x1ce   : > { %v977_v14 = vpop.xlane.xlu1 %976  ;;  %1311 = vmatprep.subr.bf16.mxu1 %v10121_v10 }
 0x1cf   : > { %v11474_v15 = vsub.f32 %v11372_v52, %v1013_v11  ;;  %v1014_v16 = vmul.f32 0.015625, %v977_v14  ;;  %v1066_v17 = vsel %vm836_vm0, %v1044_v13, 0.0  ;;  %v10123_v11 = vld [vmem:[%s16198_s6 + $0x30] ss:$8 sps:$4 sm:$0xff]  }
 0x1d0   : > { %1067 = vadd.xlane.f32.xlu1 %v1066_v17  ;;  %1312 = vmatpush1.bf16.msra.mxu1 %v10123_v11 }
 0x1d1   : > { %v11478_v18 = vsub.f32 %v11374_v55, %v1014_v16  ;;  %v1045_v20 = vmul.f32 %v11474_v15, %v11474_v15 }
 0x1d3   : > { %v1069_v21 = vsel %vm836_vm0, %v1045_v20, 0.0  ;;  %v1046_v23 = vmul.f32 %v11478_v18, %v11478_v18 }
 0x1d4   : > { %1070 = vadd.xlane.f32.xlu0 %v1069_v21  ;;  %v980_v24 = vpop.xlane.xlu0 %979 }
 0x1d5   : > { %v1015_v25 = vmul.f32 0.015625, %v980_v24  ;;  %v1072_v26 = vsel %vm836_vm0, %v1046_v23, 0.0 }
 0x1d6   : > { %v983_v27 = vpop.xlane.xlu1 %982  ;;  %1073 = vadd.xlane.f32.xlu1 %v1072_v26 }
 0x1d7   : > { %v11487_v28 = vsub.f32 %v11386_v62, %v1015_v25  ;;  %v1016_v30 = vmul.f32 0.015625, %v983_v27 }
 0x1d9   : > { %v11490_v31 = vsub.f32 %v11388_v2, %v1016_v30  ;;  %v1047_v34 = vmul.f32 %v11487_v28, %v11487_v28 }
 0x1db   : > { %v1075_v36 = vsel %vm836_vm0, %v1047_v34, 0.0  ;;  %v1048_v37 = vmul.f32 %v11490_v31, %v11490_v31 }
 0x1dc   : > { %1076 = vadd.xlane.f32.xlu0 %v1075_v36  ;;  %v986_v39 = vpop.xlane.xlu0 %985 }
 0x1dd   : > { %v1017_v43 = vmul.f32 0.015625, %v986_v39  ;;  %v1078_v44 = vsel %vm836_vm0, %v1048_v37, 0.0 }
 0x1de   : > { %v989_v47 = vpop.xlane.xlu1 %988  ;;  %1079 = vadd.xlane.f32.xlu1 %v1078_v44 }
 0x1df   : > { %v11505_v48 = vsub.f32 %v11400_v9, %v1017_v43  ;;  %v1018_v49 = vmul.f32 0.015625, %v989_v47 }
 0x1e1   : > { %v11514_v54 = vsub.f32 %v11402_v12, %v1018_v49  ;;  %v1049_v56 = vmul.f32 %v11505_v48, %v11505_v48 }
 0x1e3   : > { %v1081_v57 = vsel %vm836_vm0, %v1049_v56, 0.0  ;;  %v1050_v59 = vmul.f32 %v11514_v54, %v11514_v54 }
 0x1e4   : > { %1082 = vadd.xlane.f32.xlu0 %v1081_v57  ;;  %v992_v61 = vpop.xlane.xlu0 %991 }
 0x1e5   : > { %v1019_v3 = vmul.f32 0.015625, %v992_v61  ;;  %v1084_v4 = vsel %vm836_vm0, %v1050_v59, 0.0 }
 0x1e6   : > { %v995_v5 = vpop.xlane.xlu1 %994  ;;  %1085 = vadd.xlane.f32.xlu1 %v1084_v4 }
 0x1e7   : > { %v11529_v6 = vsub.f32 %v11414_v19, %v1019_v3  ;;  %v1020_v8 = vmul.f32 0.015625, %v995_v5 }
 0x1e9   : > { %v11538_v13 = vsub.f32 %v11416_v22, %v1020_v8  ;;  %v1051_v14 = vmul.f32 %v11529_v6, %v11529_v6 }
 0x1eb   : > { %v1087_v16 = vsel %vm836_vm0, %v1051_v14, 0.0  ;;  %v1052_v17 = vmul.f32 %v11538_v13, %v11538_v13 }
 0x1ec   : > { %1088 = vadd.xlane.f32.xlu0 %v1087_v16  ;;  %v998_v20 = vpop.xlane.xlu0 %997 }
 0x1ed   : > { %v1021_v21 = vmul.f32 0.015625, %v998_v20  ;;  %v1090_v23 = vsel %vm836_vm0, %v1052_v17, 0.0 }
 0x1ee   : > { %v1001_v24 = vpop.xlane.xlu1 %1000  ;;  %1091 = vadd.xlane.f32.xlu1 %v1090_v23  ;;  %v11574_v23 = vld [vmem:[%s16426_s3] ss:$0 sm:$0xff] }
 0x1ef   : > { %v11547_v25 = vsub.f32 %v11428_v29, %v1021_v21  ;;  %v1022_v26 = vmul.f32 0.015625, %v1001_v24 }
 0x1f1   : > { %v11550_v27 = vsub.f32 %v11430_v33, %v1022_v26  ;;  %v1053_v30 = vmul.f32 %v11547_v25, %v11547_v25  ;;  %v1487_v33 = vld [vmem:[%s16437_s0 + $0x68] sm:$0xff] }
 0x1f3   : > { %v1093_v34 = vsel %vm836_vm0, %v1053_v30, 0.0  ;;  %v1054_v36 = vmul.f32 %v11550_v27, %v11550_v27 }
 0x1f4   : > { %1094 = vadd.xlane.f32.xlu0 %v1093_v34  ;;  %v1004_v37 = vpop.xlane.xlu0 %1003 }
 0x1f5   : > { %v1023_v38 = vmul.f32 0.015625, %v1004_v37  ;;  %v1096_v39 = vsel %vm836_vm0, %v1054_v36, 0.0 }
 0x1f6   : > { %v1007_v40 = vpop.xlane.xlu1 %1006  ;;  %1097 = vadd.xlane.f32.xlu1 %v1096_v39 }
 0x1f7   : > { %v11559_v43 = vsub.f32 %v11442_v41, %v1023_v38  ;;  %v1024_v44 = vmul.f32 0.015625, %v1007_v40  ;;  %v1486_v41 = vld [vmem:[%s16437_s0 + $0x60] sm:$0xff] }
 0x1f9   : > { %v11562_v47 = vsub.f32 %v11444_v46, %v1024_v44  ;;  %v1055_v49 = vmul.f32 %v11559_v43, %v11559_v43 }
 0x1fb   : > { %v1099_v50 = vsel %vm836_vm0, %v1055_v49, 0.0  ;;  %v1056_v51 = vmul.f32 %v11562_v47, %v11562_v47 }
 0x1fc   : > { %1100 = vadd.xlane.f32.xlu0 %v1099_v50 }
 0x1fd   : > { %v1102_v56 = vsel %vm836_vm0, %v1056_v51, 0.0 }
 0x1fe   : > { %1103 = vadd.xlane.f32.xlu1 %v1102_v56 }
 0x251   : > { %v1059_v57 = vpop.xlane.xlu0 %1058 }
 0x252   : > { %v1105_v59 = vmul.f32 0.015625, %v1059_v57 }
 0x254   : > { %v1121_v60 = vadd.f32 1e-06, %v1105_v59 }
 0x255   : > { %v1062_v61 = vpop.xlane.xlu1 %1061 }
 0x256   : > { %10200 = vrsqrt.f32 %v1121_v60  ;;  %v1106_v63 = vmul.f32 0.015625, %v1062_v61 }
 0x258   : > { %v1122_v3 = vadd.f32 1e-06, %v1106_v63 }
 0x259   : > { %v1065_v4 = vpop.xlane.xlu0 %1064 }
 0x25a   : > { %10202 = vrsqrt.f32 %v1122_v3  ;;  %v1107_v5 = vmul.f32 0.015625, %v1065_v4 }
 0x25c   : > { %v1123_v8 = vadd.f32 1e-06, %v1107_v5 }
 0x25d   : > { %v1068_v10 = vpop.xlane.xlu1 %1067 }
 0x25e   : > { %10204 = vrsqrt.f32 %v1123_v8  ;;  %v1108_v11 = vmul.f32 0.015625, %v1068_v10 }
 0x260   : > { %v10201_v14 = vpop.eup %10200  ;;  %v1124_v16 = vadd.f32 1e-06, %v1108_v11 }
 0x261   : > { %v1071_v17 = vpop.xlane.xlu0 %1070  ;;  %v1153_v20 = vmul.f32 %v10201_v14, %v11451_v53  ;;  %v11581_v53 = vld [vmem:[%s16197_s5] ss:$0 sm:$0xff] }
 0x262   : > { %10206 = vrsqrt.f32 %v1124_v16  ;;  %v1109_v21 = vmul.f32 0.015625, %v1071_v17 }
 0x263   : > { %v1074_v24 = vpop.xlane.xlu1 %1073  ;;  %v1175_v37 = vmul.f32 %v11574_v23, %v1153_v20 }
 0x264   : > { %v10203_v26 = vpop.eup %10202  ;;  %v1125_v30 = vadd.f32 1e-06, %v1109_v21  ;;  %v1110_v34 = vmul.f32 0.015625, %v1074_v24 }
 0x265   : > { %v1154_v36 = vmul.f32 %v10203_v26, %v11456_v58  ;;  %v1197_v49 = vadd.f32 %v11581_v53, %v1175_v37 }
 0x266   : > { %10208 = vrsqrt.f32 %v1125_v30  ;;  %v1126_v38 = vadd.f32 1e-06, %v1110_v34 }
 0x267   : > { %v1176_v39 = vmul.f32 %v11574_v23, %v1154_v36 }
 0x268   : > { %v10205_v40 = vpop.eup %10204  ;;  %10210 = vrsqrt.f32 %v1126_v38 }
 0x269   : > { %v1077_v44 = vpop.xlane.xlu0 %1076  ;;  %v1198_v50 = vadd.f32 %v11581_v53, %v1176_v39  ;;  %v1155_v58 = vmul.f32 %v10205_v40, %v11462_v0 }
 0x26a   : > { %v1111_v51 = vmul.f32 0.015625, %v1077_v44 }
 0x26b   : > { %v1080_v56 = vpop.xlane.xlu1 %1079  ;;  %v1221_v57 = vpack.c.bf16 %v1198_v50, %v1197_v49  ;;  %v1177_v3 = vmul.f32 %v11574_v23, %v1155_v58 }
 0x26c   : > { %v10207_v59 = vpop.eup %10206  ;;  %v1127_v60 = vadd.f32 1e-06, %v1111_v51  ;;  %v1112_v61 = vmul.f32 0.015625, %v1080_v56 }
 0x26d   : > { %8640 = vmatmul.mubr.msk.bf16.vlgmr.msra.gmra.mrb[0].mxu1 %vm836_vm0, %v1221_v57  ;;  %v1156_v63 = vmul.f32 %v10207_v59, %v11468_v7  ;;  %v1199_v10 = vadd.f32 %v11581_v53, %v1177_v3 }
 0x26e   : > { %10212 = vrsqrt.f32 %v1127_v60  ;;  %v1128_v4 = vadd.f32 1e-06, %v1112_v61  ;;  %1347 = vmatprep.mubr.bf16.mxu1 %v16229_v1 }
 0x26f   : > { %v1178_v5 = vmul.f32 %v11574_v23, %v1156_v63 }
 0x270   : > { %v10209_v8 = vpop.eup %10208  ;;  %10214 = vrsqrt.f32 %v1128_v4 }
 0x271   : > { %v1083_v0 = vpop.xlane.xlu0 %1082  ;;  %v1200_v11 = vadd.f32 %v11581_v53, %v1178_v5  ;;  %v1157_v14 = vmul.f32 %v10209_v8, %v11474_v15 }
 0x272   : > { %v10211_v16 = vpop.eup %10210  ;;  %v1113_v17 = vmul.f32 0.015625, %v1083_v0 }
 0x273   : > { %v1086_v7 = vpop.xlane.xlu1 %1085  ;;  %v1222_v20 = vpack.c.bf16 %v1200_v11, %v1199_v10  ;;  %v1158_v21 = vmul.f32 %v10211_v16, %v11478_v18  ;;  %v1179_v30 = vmul.f32 %v11574_v23, %v1157_v14 }
 0x274   : > { %v1129_v24 = vadd.f32 1e-06, %v1113_v17  ;;  %v1114_v26 = vmul.f32 0.015625, %v1086_v7 }
 0x275   : > { %8641 = vmatmul.mubr.msk.bf16.gmra.mrb[4].mxu1 %vm836_vm0, %v1222_v20  ;;  %v1180_v34 = vmul.f32 %v11574_v23, %v1158_v21  ;;  %v1201_v39 = vadd.f32 %v11581_v53, %v1179_v30 }
 0x276   : > { %10216 = vrsqrt.f32 %v1129_v24  ;;  %v1130_v36 = vadd.f32 1e-06, %v1114_v26  ;;  %1357 = vmatprep.mubr.bf16.mxu1 %v16229_v1 }
 0x277   : > { %v1202_v15 = vadd.f32 %v11581_v53, %v1180_v34 }
 0x278   : > { %v10213_v37 = vpop.eup %10212  ;;  %10218 = vrsqrt.f32 %v1130_v36 }
 0x279   : > { %v1089_v38 = vpop.xlane.xlu0 %1088  ;;  %v1159_v18 = vmul.f32 %v10213_v37, %v11487_v28  ;;  %v1223_v50 = vpack.c.bf16 %v1202_v15, %v1201_v39 }
 0x27a   : > { %v10215_v40 = vpop.eup %10214  ;;  %v1115_v44 = vmul.f32 0.015625, %v1089_v38 }
 0x27b   : > { %v1092_v49 = vpop.xlane.xlu1 %1091  ;;  %v1160_v58 = vmul.f32 %v10215_v40, %v11490_v31  ;;  %v1181_v57 = vmul.f32 %v11574_v23, %v1159_v18 }
 0x27c   : > { %v1131_v51 = vadd.f32 1e-06, %v1115_v44  ;;  %v1116_v56 = vmul.f32 0.015625, %v1092_v49 }
 0x27d   : > { %8642 = vmatmul.mubr.msk.bf16.gmra.mrb[8].mxu1 %vm836_vm0, %v1223_v50  ;;  %v1182_v59 = vmul.f32 %v11574_v23, %v1160_v58  ;;  %v1203_v3 = vadd.f32 %v11581_v53, %v1181_v57 }
 0x27e   : > { %10220 = vrsqrt.f32 %v1131_v51  ;;  %v1132_v60 = vadd.f32 1e-06, %v1116_v56  ;;  %1367 = vmatprep.mubr.bf16.mxu1 %v16229_v1 }
 0x27f   : > { %v1204_v28 = vadd.f32 %v11581_v53, %v1182_v59 }
 0x280   : > { %v10217_v61 = vpop.eup %10216  ;;  %10222 = vrsqrt.f32 %v1132_v60 }
 0x281   : > { %v1095_v63 = vpop.xlane.xlu0 %1094  ;;  %v1161_v31 = vmul.f32 %v10217_v61, %v11505_v48  ;;  %v1224_v0 = vpack.c.bf16 %v1204_v28, %v1203_v3 }
 0x282   : > { %v10219_v4 = vpop.eup %10218  ;;  %v1117_v5 = vmul.f32 0.015625, %v1095_v63 }
 0x283   : > { %v1098_v8 = vpop.xlane.xlu1 %1097  ;;  %v1162_v10 = vmul.f32 %v10219_v4, %v11514_v54  ;;  %v1183_v16 = vmul.f32 %v11574_v23, %v1161_v31 }
 0x284   : > { %v1133_v11 = vadd.f32 1e-06, %v1117_v5  ;;  %v1118_v14 = vmul.f32 0.015625, %v1098_v8 }
 0x285   : > { %8643 = vmatmul.mubr.msk.bf16.gmra.mrb[12].mxu1 %vm836_vm0, %v1224_v0  ;;  %v1184_v17 = vmul.f32 %v11574_v23, %v1162_v10  ;;  %v1205_v24 = vadd.f32 %v11581_v53, %v1183_v16 }
 0x286   : > { %10224 = vrsqrt.f32 %v1133_v11  ;;  %v1134_v7 = vadd.f32 1e-06, %v1118_v14  ;;  %1377 = vmatprep.mubr.bf16.mxu1 %v16229_v1 }
 0x287   : > { %v1206_v48 = vadd.f32 %v11581_v53, %v1184_v17 }
 0x288   : > { %v10221_v20 = vpop.eup %10220  ;;  %10226 = vrsqrt.f32 %v1134_v7 }
 0x289   : > { %v1101_v21 = vpop.xlane.xlu0 %1100  ;;  %v1163_v54 = vmul.f32 %v10221_v20, %v11529_v6  ;;  %v1225_v36 = vpack.c.bf16 %v1206_v48, %v1205_v24 }
 0x28a   : > { %v10223_v26 = vpop.eup %10222  ;;  %v1119_v30 = vmul.f32 0.015625, %v1101_v21 }
 0x28b   : > { %v1104_v34 = vpop.xlane.xlu1 %1103  ;;  %v1164_v15 = vmul.f32 %v10223_v26, %v11538_v13  ;;  %v1185_v39 = vmul.f32 %v11574_v23, %v1163_v54 }
 0x28c   : > { %v1135_v37 = vadd.f32 1e-06, %v1119_v30  ;;  %v1120_v38 = vmul.f32 0.015625, %v1104_v34 }
 0x28d   : > { %8644 = vmatmul.mubr.msk.bf16.gmra.mrb[16].mxu1 %vm836_vm0, %v1225_v36  ;;  %v1186_v18 = vmul.f32 %v11574_v23, %v1164_v15  ;;  %v1207_v49 = vadd.f32 %v11581_v53, %v1185_v39 }
 0x28e   : > { %10228 = vrsqrt.f32 %v1135_v37  ;;  %v1136_v40 = vadd.f32 1e-06, %v1120_v38  ;;  %1387 = vmatprep.mubr.bf16.mxu1 %v16229_v1 }
 0x28f   : > { %v1208_v6 = vadd.f32 %v11581_v53, %v1186_v18 }
 0x290   : > { %v10225_v44 = vpop.eup %10224  ;;  %10230 = vrsqrt.f32 %v1136_v40 }
 0x291   : > { %v1165_v13 = vmul.f32 %v10225_v44, %v11547_v25  ;;  %v1226_v58 = vpack.c.bf16 %v1208_v6, %v1207_v49 }
 0x292   : > { %v10227_v50 = vpop.eup %10226 }
 0x293   : > { %v1166_v51 = vmul.f32 %v10227_v50, %v11550_v27  ;;  %v1187_v56 = vmul.f32 %v11574_v23, %v1165_v13 }
 0x295   : > { %8645 = vmatmul.mubr.msk.bf16.gmra.mrb[20].mxu1 %vm836_vm0, %v1226_v58  ;;  %v1188_v57 = vmul.f32 %v11574_v23, %v1166_v51  ;;  %v1209_v28 = vadd.f32 %v11581_v53, %v1187_v56 }
 0x296   : > { %1397 = vmatprep.mubr.bf16.mxu1 %v16229_v1 }
 0x297   : > { %v1210_v59 = vadd.f32 %v11581_v53, %v1188_v57 }
 0x298   : > { %v10229_v60 = vpop.eup %10228 }
 0x299   : > { %v1167_v61 = vmul.f32 %v10229_v60, %v11559_v43  ;;  %v1227_v63 = vpack.c.bf16 %v1210_v59, %v1209_v28  ;;  %v16228_v43 = vlaneseq }
 0x29a   : > { %v10231_v25 = vpop.eup %10230 }
 0x29b   : > { %v1168_v3 = vmul.f32 %v10231_v25, %v11562_v47  ;;  %v1189_v27 = vmul.f32 %v11574_v23, %v1167_v61  ;;  %v11644_v0 = vshrl.u32 %v16228_v43, 7 }
 0x29d   : > { %8646 = vmatmul.mubr.msk.bf16.gmra.mrb[24].mxu1 %vm836_vm0, %v1227_v63  ;;  %v1190_v31 = vmul.f32 %v11574_v23, %v1168_v3  ;;  %v1211_v5 = vadd.f32 %v11581_v53, %v1189_v27  ;;  %16427 = vst [vmem:[#allocation29_spill] sm:$0xff] %v11644_v0  ;;  %v11647_v47 = vsub.s32 0, %v11644_v0  ;;  %v1229_v23 = vld [vmem:[%s16199_s7] sm:$0x3]  ;;  %v11653_v10 = vsub.s32 1, %v11644_v0 }
 0x29e   : > { %1407 = vmatprep.mubr.bf16.mxu1 %v16229_v1  ;;  %v1489_v1 = vld [vmem:[%s16437_s0 + $0x78] sm:$0xff] }
 0x29f   : > { %v1212_v4 = vadd.f32 %v11581_v53, %v1190_v31  ;;  %16428 = vst [vmem:[#allocation30_spill] sm:$0xff] %v11647_v47  ;;  %16429 = vst [vmem:[#allocation31_spill] sm:$0xff] %v11653_v10  ;;  %v11656_v11 = vrot.slane %v1229_v23, %v11647_v47  ;;  %v11659_v14 = vrot.slane %v1229_v23, %v11653_v10  ;;  %v11995_v10 = vld [vmem:[%s16437_s0 + $0x70] sm:$0xff] }
 0x2a1   : > { %v1228_v8 = vpack.c.bf16 %v1212_v4, %v1211_v5 }
 0x2a5   : > { %8647 = vmatmul.mubr.msk.bf16.gmra.mrb[28].mxu1 %vm836_vm0, %v1228_v8 }
 0x340   : > { %v1339_v53 = vpop.f32.mrb[0].mxu1 }
 0x341   : > { %v1341_v16 = vpop.f32.mrb[1].mxu1  ;;  %v1340_v7 = vadd.f32 %v1339_v53, %v11656_v11 }
 0x342   : > { %v1343_v17 = vpop.f32.mrb[2].mxu1  ;;  %v1342_v21 = vadd.f32 %v1341_v16, %v11659_v14 }
 0x343   : > { %v1344_v48 = vadd.f32 %v1343_v17, %v11656_v11  ;;  %v1345_v20 = vpop.f32.mrb[3].mxu1 }
 0x344   : > { %v1346_v24 = vadd.f32 %v1345_v20, %v11659_v14 }
 0x345   : > { %v11665_v54 = vpack.c.bf16 %v1344_v48, %v1340_v7 }
 0x346   : > { %v1419_v26 = vpack.c.bf16 %v1346_v24, %v1342_v21 }
 0x347   : > { %16430 = vst [vmem:[#allocation32_spill] sm:$0xff] %v11665_v54  ;;  %1498 = vrot.lane.b32.xlu0 %v11665_v54, %s16224_s27  ;;  %v11670_v30 = vmul.bf16 1048592000, %v11665_v54 }
 0x348   : > { %1435 = vst.msk [vmem:[#allocation2 + $0x8] sm:$0xff] %vm836_vm0, %v1419_v26  ;;  %v1349_v34 = vpop.f32.mrb[4].mxu1 }
 0x349   : > { %v1351_v36 = vpop.f32.mrb[5].mxu1  ;;  %9351 = vmatprep.mubr.msk.bf16.mxu1 %vm1514_vm1, %v11670_v30  ;;  %v1350_v37 = vadd.f32 %v1349_v34, %v11656_v11 }
 0x34a   : > { %v1353_v15 = vpop.f32.mrb[6].mxu1  ;;  %v1352_v18 = vadd.f32 %v1351_v36, %v11659_v14 }
 0x34b   : > { %v1354_v38 = vadd.f32 %v1353_v15, %v11656_v11  ;;  %v1355_v39 = vpop.f32.mrb[7].mxu1 }
 0x34c   : > { %v1356_v40 = vadd.f32 %v1355_v39, %v11659_v14 }
 0x34d   : > { %v11679_v6 = vpack.c.bf16 %v1354_v38, %v1350_v37 }
 0x34e   : > { %v1421_v44 = vpack.c.bf16 %v1356_v40, %v1352_v18 }
 0x34f   : > { %16431 = vst [vmem:[#allocation33_spill] sm:$0xff] %v11679_v6  ;;  %v11681_v49 = vld [vmem:[#allocation2 + $0x8] sm:$0xff]  ;;  %1500 = vrot.lane.b32.xlu1 %v11679_v6, %s16224_s27 }
 0x350   : > { %1437 = vst.msk [vmem:[#allocation2 + $0x18] sm:$0xff] %vm836_vm0, %v1421_v44  ;;  %v1359_v13 = vpop.f32.mrb[8].mxu1  ;;  %9367 = vmatprep.subr.bf16.mxu0 %v11681_v49 }
 0x351   : > { %v1361_v50 = vpop.f32.mrb[9].mxu1  ;;  %9368 = vmatpush3.bf16.msra.mxu0 %v11681_v49  ;;  %v1360_v51 = vadd.f32 %v1359_v13, %v11656_v11 }
 0x352   : > { %v1363_v58 = vpop.f32.mrb[10].mxu1  ;;  %v1362_v59 = vadd.f32 %v1361_v50, %v11659_v14 }
 0x353   : > { %v1364_v56 = vadd.f32 %v1363_v58, %v11656_v11  ;;  %v1365_v57 = vpop.f32.mrb[11].mxu1 }
 0x354   : > { %v1366_v60 = vadd.f32 %v1365_v57, %v11659_v14 }
 0x355   : > { %v11692_v28 = vpack.c.bf16 %v1364_v56, %v1360_v51 }
 0x356   : > { %v1423_v61 = vpack.c.bf16 %v1366_v60, %v1362_v59 }
 0x357   : > { %16432 = vst [vmem:[#allocation34_spill] sm:$0xff] %v11692_v28  ;;  %v11694_v25 = vld [vmem:[#allocation2 + $0x18] sm:$0xff]  ;;  %1502 = vrot.lane.b32.xlu1 %v11692_v28, %s16224_s27 }
 0x358   : > { %1439 = vst.msk [vmem:[#allocation2 + $0x28] sm:$0xff] %vm836_vm0, %v1423_v61  ;;  %v1369_v63 = vpop.f32.mrb[12].mxu1  ;;  %9369 = vmatprep.subr.bf16.mxu0 %v11694_v25 }
 0x359   : > { %v1371_v3 = vpop.f32.mrb[13].mxu1  ;;  %9370 = vmatpush3.bf16.msra.mxu0 %v11694_v25  ;;  %v1370_v31 = vadd.f32 %v1369_v63, %v11656_v11 }
 0x35a   : > { %v1373_v27 = vpop.f32.mrb[14].mxu1  ;;  %v1372_v8 = vadd.f32 %v1371_v3, %v11659_v14 }
 0x35b   : > { %v1374_v4 = vadd.f32 %v1373_v27, %v11656_v11  ;;  %v1375_v5 = vpop.f32.mrb[15].mxu1 }
 0x35c   : > { %v1376_v23 = vadd.f32 %v1375_v5, %v11659_v14 }
 0x35d   : > { %v11705_v53 = vpack.c.bf16 %v1374_v4, %v1370_v31 }
 0x35e   : > { %v1425_v16 = vpack.c.bf16 %v1376_v23, %v1372_v8 }
 0x35f   : > { %16433 = vst [vmem:[#allocation35_spill] sm:$0xff] %v11705_v53  ;;  %v11707_v17 = vld [vmem:[#allocation2 + $0x28] sm:$0xff]  ;;  %1504 = vrot.lane.b32.xlu1 %v11705_v53, %s16224_s27 }
 0x360   : > { %1441 = vst.msk [vmem:[#allocation2 + $0x38] sm:$0xff] %vm836_vm0, %v1425_v16  ;;  %v1379_v7 = vpop.f32.mrb[16].mxu1  ;;  %9371 = vmatprep.subr.bf16.mxu0 %v11707_v17 }
 0x361   : > { %v1381_v48 = vpop.f32.mrb[17].mxu1  ;;  %9372 = vmatpush3.bf16.msra.mxu0 %v11707_v17  ;;  %v1380_v21 = vadd.f32 %v1379_v7, %v11656_v11 }
 0x362   : > { %v1383_v20 = vpop.f32.mrb[18].mxu1  ;;  %v1382_v34 = vadd.f32 %v1381_v48, %v11659_v14 }
 0x363   : > { %v1384_v24 = vadd.f32 %v1383_v20, %v11656_v11  ;;  %v1385_v26 = vpop.f32.mrb[19].mxu1 }
 0x364   : > { %v1386_v36 = vadd.f32 %v1385_v26, %v11659_v14 }
 0x365   : > { %v11718_v15 = vpack.c.bf16 %v1384_v24, %v1380_v21 }
 0x366   : > { %v1427_v37 = vpack.c.bf16 %v1386_v36, %v1382_v34 }
 0x367   : > { %16434 = vst [vmem:[#allocation36_spill] sm:$0xff] %v11718_v15  ;;  %v11720_v38 = vld [vmem:[#allocation2 + $0x38] sm:$0xff]  ;;  %1506 = vrot.lane.b32.xlu0 %v11718_v15, %s16224_s27 }
 0x368   : > { %1443 = vst.msk [vmem:[#allocation2 + $0x48] sm:$0xff] %vm836_vm0, %v1427_v37  ;;  %v1389_v39 = vpop.f32.mrb[20].mxu1  ;;  %9373 = vmatprep.subr.bf16.mxu0 %v11720_v38 }
 0x369   : > { %v1391_v18 = vpop.f32.mrb[21].mxu1  ;;  %9374 = vmatpush3.bf16.msra.mxu0 %v11720_v38  ;;  %v1390_v44 = vadd.f32 %v1389_v39, %v11656_v11 }
 0x36a   : > { %v1393_v40 = vpop.f32.mrb[22].mxu1  ;;  %v1392_v58 = vadd.f32 %v1391_v18, %v11659_v14 }
 0x36b   : > { %v1394_v13 = vadd.f32 %v1393_v40, %v11656_v11  ;;  %v1395_v50 = vpop.f32.mrb[23].mxu1  ;;  %v11782_v40 = vmul.bf16 1048592000, %v11718_v15 }
 0x36c   : > { %v1396_v51 = vadd.f32 %v1395_v50, %v11659_v14  ;;  %v11795_v50 = vmul.bf16 1048592000, %v11705_v53 }
 0x36d   : > { %v11731_v56 = vpack.c.bf16 %v1394_v13, %v1390_v44  ;;  %v11785_v44 = vmul.bf16 1048592000, %v11679_v6 }
 0x36e   : > { %v1429_v57 = vpack.c.bf16 %v1396_v51, %v1392_v58 }
 0x36f   : > { %16435 = vst [vmem:[#allocation37_spill] sm:$0xff] %v11731_v56  ;;  %v11733_v59 = vld [vmem:[#allocation2 + $0x48] sm:$0xff]  ;;  %1508 = vrot.lane.b32.xlu1 %v11731_v56, %s16224_s27  ;;  %v11802_v58 = vmul.bf16 1048592000, %v11731_v56 }
 0x370   : > { %1445 = vst.msk [vmem:[#allocation2 + $0x58] sm:$0xff] %vm836_vm0, %v1429_v57  ;;  %v1399_v60 = vpop.f32.mrb[24].mxu1  ;;  %9375 = vmatprep.subr.bf16.mxu0 %v11733_v59 }
 0x371   : > { %v1401_v61 = vpop.f32.mrb[25].mxu1  ;;  %9376 = vmatpush3.bf16.msra.mxu0 %v11733_v59  ;;  %v1400_v3 = vadd.f32 %v1399_v60, %v11656_v11 }
 0x372   : > { %v1403_v63 = vpop.f32.mrb[26].mxu1  ;;  %v1402_v4 = vadd.f32 %v1401_v61, %v11659_v14 }
 0x373   : > { %v1404_v27 = vadd.f32 %v1403_v63, %v11656_v11  ;;  %v1405_v31 = vpop.f32.mrb[27].mxu1 }
 0x374   : > { %v1406_v5 = vadd.f32 %v1405_v31, %v11659_v14 }
 0x375   : > { %v11744_v8 = vpack.c.bf16 %v1404_v27, %v1400_v3 }
 0x376   : > { %v1431_v23 = vpack.c.bf16 %v1406_v5, %v1402_v4 }
 0x377   : > { %v1471_v16 = vld [vmem:[#allocation2 + $0x58] sm:$0xff]  ;;  %1510 = vrot.lane.b32.xlu0 %v11744_v8, %s16224_s27  ;;  %v11792_v13 = vmul.bf16 1048592000, %v11744_v8 }
 0x378   : > { %1447 = vst.msk [vmem:[#allocation2 + $0x68] sm:$0xff] %vm836_vm0, %v1431_v23  ;;  %v1409_v7 = vpop.f32.mrb[28].mxu1  ;;  %9377 = vmatprep.subr.bf16.mxu0 %v1471_v16 }
 0x379   : > { %v1411_v48 = vpop.f32.mrb[29].mxu1  ;;  %9378 = vmatpush3.bf16.msra.mxu0 %v1471_v16  ;;  %v1410_v21 = vadd.f32 %v1409_v7, %v11656_v11 }
 0x37a   : > { %v1413_v20 = vpop.f32.mrb[30].mxu1  ;;  %v1412_v34 = vadd.f32 %v1411_v48, %v11659_v14 }
 0x37b   : > { %v1414_v24 = vadd.f32 %v1413_v20, %v11656_v11  ;;  %v1415_v26 = vpop.f32.mrb[31].mxu1  ;;  %1941 = vrot.lane.b32.xlu0 %v11665_v54, %s16226_s30 }
 0x37c   : > { %v1416_v36 = vadd.f32 %v1415_v26, %v11659_v14  ;;  %v11775_v14 = vmul.bf16 1048592000, %v11692_v28 }
 0x37d   : > { %v11755_v37 = vpack.c.bf16 %v1414_v24, %v1410_v21 }
 0x37e   : > { %v1433_v39 = vpack.c.bf16 %v1416_v36, %v1412_v34 }
 0x37f   : > { %v1472_v18 = vld [vmem:[#allocation2 + $0x68] sm:$0xff]  ;;  %1945 = vrot.lane.b32.xlu0 %v11692_v28, %s16226_s30  ;;  %1512 = vrot.lane.b32.xlu1 %v11755_v37, %s16224_s27  ;;  %v11809_v51 = vmul.bf16 1048592000, %v11755_v37  ;;  %s16266_s27 = smov 96  }
 0x380   : > { %1449 = vst.msk [vmem:[#allocation2 + $0x78] sm:$0xff] %vm836_vm0, %v1433_v39  ;;  %9379 = vmatprep.subr.bf16.mxu0 %v1472_v18 }
 0x381   : > { %9380 = vmatpush3.bf16.msra.mxu0 %v1472_v18  ;;  %16436 = vst [vmem:[#allocation38_spill] sm:$0xff] %v11809_v51 }
 0x383   : > { %1949 = vrot.lane.b32.xlu0 %v11718_v15, %s16226_s30  ;;  %1943 = vrot.lane.b32.xlu1 %v11679_v6, %s16226_s30 }
 0x387   : > { %v1473_v11 = vld [vmem:[#allocation2 + $0x78] sm:$0xff]  ;;  %1953 = vrot.lane.b32.xlu0 %v11744_v8, %s16226_s30  ;;  %1947 = vrot.lane.b32.xlu1 %v11705_v53, %s16226_s30 }
 0x388   : > { %9381 = vmatprep.subr.bf16.mxu0 %v1473_v11 }
 0x389   : > { %9382 = vmatpush3.bf16.msra.mxu0 %v1473_v11 }
 0x38b   : > { %1925 = vrot.lane.b32.xlu0 %v11670_v30, %s16222_s23  ;;  %1951 = vrot.lane.b32.xlu1 %v11731_v56, %s16226_s30 }
 0x38f   : > { %1929 = vrot.lane.b32.xlu0 %v11775_v14, %s16222_s23  ;;  %1955 = vrot.lane.b32.xlu1 %v11755_v37, %s16226_s30  ;;  %s16306_s30 = smov 16  }
 0x393   : > { %1933 = vrot.lane.b32.xlu0 %v11782_v40, %s16222_s23  ;;  %1927 = vrot.lane.b32.xlu1 %v11785_v44, %s16222_s23 }
 0x397   : > { %1937 = vrot.lane.b32.xlu0 %v11792_v13, %s16222_s23  ;;  %1931 = vrot.lane.b32.xlu1 %v11795_v50, %s16222_s23 }
 0x39b   : > { %2262 = vrot.lane.b32.xlu0 %v11681_v49, %s16222_s23  ;;  %1935 = vrot.lane.b32.xlu1 %v11802_v58, %s16222_s23 }
 0x39f   : > { %2266 = vrot.lane.b32.xlu0 %v11707_v17, %s16222_s23  ;;  %1939 = vrot.lane.b32.xlu1 %v11809_v51, %s16222_s23 }
 0x3a3   : > { %2270 = vrot.lane.b32.xlu0 %v11733_v59, %s16222_s23  ;;  %2264 = vrot.lane.b32.xlu1 %v11694_v25, %s16222_s23 }
 0x3a7   : > { %2272 = vrot.lane.b32.xlu0 %v1471_v16, %s16222_s23  ;;  %2268 = vrot.lane.b32.xlu1 %v11720_v38, %s16222_s23 }
 0x3ab   : > { %2274 = vrot.lane.b32.xlu0 %v1472_v18, %s16222_s23  ;;  %2276 = vrot.lane.b32.xlu1 %v1473_v11, %s16222_s23  ;;  %s16626_s23 = smov 80  }
 0x3af   : > { %2407 = vrot.lane.b32.xlu0 %v11665_v54, %s16304_s1  ;;  %2409 = vrot.lane.b32.xlu1 %v11679_v6, %s16304_s1 }
 0x3b9   : > { %v1499_v49 = vpop.permute.xlu0 %1498 }
 0x3ba   : > { %9962 = vmatprep.subr.msk.bf16.mxu1 %vm1514_vm1, %v1499_v49  ;;  %v1540_v25 = vsel %vm1514_vm1, %v1499_v49, 0 }
 0x3bb   : > { %9336 = vmatpush3.bf16.xpose.msra.mxu1 %v1540_v25 }
 0x3c1   : > { %v1501_v17 = vpop.permute.xlu1 %1500 }
 0x3c2   : > { %9963 = vmatprep.subr.msk.bf16.mxu1 %vm1514_vm1, %v1501_v17  ;;  %v1543_v38 = vsel %vm1514_vm1, %v1501_v17, 0 }
 0x3c3   : > { %9338 = vmatpush3.bf16.xpose.msra.mxu1 %v1543_v38 }
 0x3c9   : > { %v1503_v57 = vpop.permute.xlu1 %1502 }
 0x3ca   : > { %9964 = vmatprep.subr.msk.bf16.mxu1 %vm1514_vm1, %v1503_v57  ;;  %v1546_v59 = vsel %vm1514_vm1, %v1503_v57, 0 }
 0x3cb   : > { %9340 = vmatpush3.bf16.xpose.msra.mxu1 %v1546_v59 }
 0x3d1   : > { %v1505_v60 = vpop.permute.xlu1 %1504 }
 0x3d2   : > { %9965 = vmatprep.subr.msk.bf16.mxu1 %vm1514_vm1, %v1505_v60  ;;  %v1549_v61 = vsel %vm1514_vm1, %v1505_v60, 0 }
 0x3d3   : > { %9342 = vmatpush3.bf16.xpose.msra.mxu1 %v1549_v61 }
 0x3d9   : > { %v1507_v63 = vpop.permute.xlu0 %1506 }
 0x3da   : > { %9966 = vmatprep.subr.msk.bf16.mxu1 %vm1514_vm1, %v1507_v63  ;;  %v1552_v3 = vsel %vm1514_vm1, %v1507_v63, 0 }
 0x3db   : > { %9344 = vmatpush3.bf16.xpose.msra.mxu1 %v1552_v3 }
 0x3e1   : > { %v1509_v27 = vpop.permute.xlu1 %1508 }
 0x3e2   : > { %9967 = vmatprep.subr.msk.bf16.mxu1 %vm1514_vm1, %v1509_v27  ;;  %v1555_v31 = vsel %vm1514_vm1, %v1509_v27, 0 }
 0x3e3   : > { %9346 = vmatpush3.bf16.xpose.msra.mxu1 %v1555_v31 }
 0x3e9   : > { %v1511_v4 = vpop.permute.xlu0 %1510 }
 0x3ea   : > { %9968 = vmatprep.subr.msk.bf16.mxu1 %vm1514_vm1, %v1511_v4  ;;  %v1558_v5 = vsel %vm1514_vm1, %v1511_v4, 0 }
 0x3eb   : > { %9348 = vmatpush3.bf16.xpose.msra.mxu1 %v1558_v5 }
 0x3ed   : > { %v1942_v23 = vpop.permute.xlu0 %1941 }
 0x3ee   : > { %v1982_v24 = vsel %vm1514_vm1, %v1942_v23, 0 }
 0x3f1   : > { %v1513_v16 = vpop.permute.xlu1 %1512  ;;  %v1946_v7 = vpop.permute.xlu0 %1945 }
 0x3f2   : > { %9969 = vmatprep.subr.msk.bf16.mxu1 %vm1514_vm1, %v1513_v16  ;;  %v1561_v48 = vsel %vm1514_vm1, %v1513_v16, 0  ;;  %v1988_v49 = vsel %vm1514_vm1, %v1946_v7, 0 }
 0x3f3   : > { %9350 = vmatpush3.bf16.xpose.msra.mxu1 %v1561_v48 }
 0x3f4   : > { %9970 = vmatprep.subr.msk.bf16.mxu1 %vm1514_vm1, %v1942_v23  ;;  %v11888_v23 = vld [vmem:[%s16437_s0 + $0x10] sm:$0xff] }
 0x3f5   : > { %v1950_v20 = vpop.permute.xlu0 %1949  ;;  %v1944_v26 = vpop.permute.xlu1 %1943 }
 0x3f6   : > { %v1985_v39 = vsel %vm1514_vm1, %v1944_v26, 0  ;;  %v1994_v57 = vsel %vm1514_vm1, %v1950_v20, 0 }
 0x3f9   : > { %v1954_v21 = vpop.permute.xlu0 %1953  ;;  %v1948_v25 = vpop.permute.xlu1 %1947 }
 0x3fa   : > { %9352 = vmatmul.mubr.msk.bf16.vlgmr.msra.gmra.mrb[32].mxu1 %vm1514_vm1, %v11785_v44  ;;  %v1991_v38 = vsel %vm1514_vm1, %v1948_v25, 0  ;;  %v2000_v61 = vsel %vm1514_vm1, %v1954_v21, 0 }
 0x3fb   : > { %9355 = vmatprep.mubr.msk.bf16.mxu1 %vm1514_vm1, %v11775_v14  ;;  %9400 = vmatpush3.bf16.xpose.msra.mxu1 %v1982_v24 }
 0x3fc   : > { %9971 = vmatprep.subr.msk.bf16.mxu1 %vm1514_vm1, %v1944_v26 }
 0x3fd   : > { %v1926_v34 = vpop.permute.xlu0 %1925  ;;  %v1952_v59 = vpop.permute.xlu1 %1951 }
 0x3fe   : > { %v1997_v60 = vsel %vm1514_vm1, %v1952_v59, 0 }
 0x401   : > { %v1930_v36 = vpop.permute.xlu0 %1929  ;;  %v1956_v63 = vpop.permute.xlu1 %1955 }
 0x402   : > { %9356 = vmatmul.mubr.msk.bf16.gmra.mrb[36].mxu1 %vm1514_vm1, %v11795_v50  ;;  %v2003_v3 = vsel %vm1514_vm1, %v1956_v63, 0 }
 0x403   : > { %9359 = vmatprep.mubr.msk.bf16.mxu1 %vm1514_vm1, %v11782_v40  ;;  %9402 = vmatpush3.bf16.xpose.msra.mxu1 %v1985_v39  ;;  %v11913_v39 = vld [vmem:[%s16437_s0 + $0x18] sm:$0xff] }
 0x404   : > { %9972 = vmatprep.subr.msk.bf16.mxu1 %vm1514_vm1, %v1946_v7 }
 0x405   : > { %v1934_v18 = vpop.permute.xlu0 %1933  ;;  %v1928_v27 = vpop.permute.xlu1 %1927 }
 0x409   : > { %v1938_v11 = vpop.permute.xlu0 %1937  ;;  %v1932_v31 = vpop.permute.xlu1 %1931 }
 0x40a   : > { %9360 = vmatmul.mubr.msk.bf16.gmra.mrb[40].mxu1 %vm1514_vm1, %v11802_v58 }
 0x40b   : > { %9363 = vmatprep.mubr.msk.bf16.mxu1 %vm1514_vm1, %v11792_v13  ;;  %9404 = vmatpush3.bf16.xpose.msra.mxu1 %v1988_v49 }
 0x40c   : > { %9973 = vmatprep.subr.msk.bf16.mxu1 %vm1514_vm1, %v1948_v25 }
 0x40d   : > { %v11863_v17 = vpop.permute.xlu0 %2262  ;;  %v1936_v4 = vpop.permute.xlu1 %1935 }
 0x40e   : > { %9431 = vmatprep.subr.bf16.mxu0 %v11863_v17 }
 0x411   : > { %v1940_v5 = vpop.permute.xlu1 %1939 }
 0x412   : > { %9364 = vmatmul.mubr.msk.bf16.gmra.mrb[44].mxu1 %vm1514_vm1, %v11809_v51 }
 0x413   : > { %9406 = vmatpush3.bf16.xpose.msra.mxu1 %v1991_v38  ;;  %9415 = vmatprep.mubr.msk.bf16.mxu1 %vm1514_vm1, %v1926_v34  ;;  %v11928_v38 = vld [vmem:[%s16437_s0 + $0x30] sm:$0xff] }
 0x414   : > { %9974 = vmatprep.subr.msk.bf16.mxu1 %vm1514_vm1, %v1950_v20  ;;  %v11896_v20 = vld [vmem:[%s16437_s0 + $0x8] sm:$0xff] }
 0x41b   : > { %9408 = vmatpush3.bf16.xpose.msra.mxu1 %v1994_v57 }
 0x41c   : > { %9975 = vmatprep.subr.msk.bf16.mxu1 %vm1514_vm1, %v1952_v59 }
 0x423   : > { %9410 = vmatpush3.bf16.xpose.msra.mxu1 %v1997_v60 }
 0x424   : > { %9976 = vmatprep.subr.msk.bf16.mxu1 %vm1514_vm1, %v1954_v21  ;;  %v11901_v21 = vld [vmem:[%s16437_s0] sm:$0xff] }
 0x42b   : > { %9412 = vmatpush3.bf16.xpose.msra.mxu1 %v2000_v61  ;;  %v11937_v61 = vld [vmem:[%s16437_s0 + $0x28] sm:$0xff] }
 0x42c   : > { %9977 = vmatprep.subr.msk.bf16.mxu1 %vm1514_vm1, %v1956_v63 }
 0x433   : > { %9414 = vmatpush3.bf16.xpose.msra.mxu1 %v2003_v3  ;;  %v11946_v3 = vld [vmem:[%s16437_s0 + $0x20] sm:$0xff] }
 0x43a   : > { %9416 = vmatmul.mubr.msk.bf16.vlgmr.msra.gmra.mrb[48].mxu1 %vm1514_vm1, %v1928_v27 }
 0x43b   : > { %9419 = vmatprep.mubr.msk.bf16.mxu1 %vm1514_vm1, %v1930_v36 }
 0x442   : > { %9420 = vmatmul.mubr.msk.bf16.gmra.mrb[52].mxu1 %vm1514_vm1, %v1932_v31 }
 0x443   : > { %9423 = vmatprep.mubr.msk.bf16.mxu1 %vm1514_vm1, %v1934_v18 }
 0x44a   : > { %9424 = vmatmul.mubr.msk.bf16.gmra.mrb[56].mxu1 %vm1514_vm1, %v1936_v4  ;;  %v11955_v4 = vld [vmem:[%s16437_s0 + $0x58] sm:$0xff] }
 0x44b   : > { %9427 = vmatprep.mubr.msk.bf16.mxu1 %vm1514_vm1, %v1938_v11  ;;  %v11920_v11 = vld [vmem:[%s16437_s0 + $0x38] sm:$0xff] }
 0x452   : > { %9428 = vmatmul.mubr.msk.bf16.gmra.mrb[60].mxu1 %vm1514_vm1, %v1940_v5 }
 0x4cd   : > { %v9353_v16 = vpop.f32.mrb[32].mxu1 }
 0x4ce   : > { %v11891_v7 = vadd.f32 %v9353_v16, %v11888_v23  ;;  %v1597_v48 = vpop.f32.mrb[33].mxu1 }
 0x4cf   : > { %v9354_v24 = vpop.f32.mrb[34].mxu1  ;;  %v11908_v36 = vadd.f32 %v1597_v48, %v11901_v21  ;;  %v11964_v48 = vld [vmem:[%s16437_s0 + $0x50] sm:$0xff] }
 0x4d0   : > { %1664 = vmax.xlane.f32.xlu0 %v11891_v7  ;;  %v1600_v26 = vpop.f32.mrb[35].mxu1  ;;  %v11923_v49 = vadd.f32 %v9354_v24, %v11913_v39 }
 0x4d1   : > { %v11905_v34 = vadd.f32 %v1600_v26, %v11896_v20 }
 0x4d3   : > { %1662 = vmax.xlane.f32.xlu1 %v11905_v34 }
 0x4d4   : > { %1660 = vmax.xlane.f32.xlu0 %v11908_v36 }
 0x4d5   : > { %v9357_v18 = vpop.f32.mrb[36].mxu1 }
 0x4d6   : > { %v1613_v25 = vpop.f32.mrb[37].mxu1  ;;  %v11940_v63 = vadd.f32 %v9357_v18, %v11928_v38 }
 0x4d7   : > { %v9358_v57 = vpop.f32.mrb[38].mxu1  ;;  %v11958_v5 = vadd.f32 %v1613_v25, %v11946_v3  ;;  %v1483_v25 = vld [vmem:[%s16437_s0 + $0x48] sm:$0xff] }
 0x4d8   : > { %v11931_v59 = vadd.f32 %v9358_v57, %v11920_v11  ;;  %v1616_v60 = vpop.f32.mrb[39].mxu1  ;;  %1666 = vmax.xlane.f32.xlu0 %v11923_v49 }
 0x4d9   : > { %v11949_v27 = vadd.f32 %v1616_v60, %v11937_v61  ;;  %v11980_v60 = vld [vmem:[%s16437_s0 + $0x40] sm:$0xff] }
 0x4da   : > { %1674 = vmax.xlane.f32.xlu1 %v11931_v59 }
 0x4dc   : > { %1672 = vmax.xlane.f32.xlu0 %v11940_v63 }
 0x4dd   : > { %v9361_v31 = vpop.f32.mrb[40].mxu1 }
 0x4de   : > { %v1629_v16 = vpop.f32.mrb[41].mxu1  ;;  %1670 = vmax.xlane.f32.xlu1 %v11949_v27  ;;  %v11974_v57 = vadd.f32 %v9361_v31, %v11964_v48 }
 0x4df   : > { %v9362_v24 = vpop.f32.mrb[42].mxu1  ;;  %v11989_v0 = vadd.f32 %v1629_v16, %v11980_v60 }
 0x4e0   : > { %v11967_v26 = vadd.f32 %v9362_v24, %v11955_v4  ;;  %v1632_v18 = vpop.f32.mrb[43].mxu1  ;;  %1668 = vmax.xlane.f32.xlu0 %v11958_v5 }
 0x4e1   : > { %v11982_v43 = vadd.f32 %v1632_v18, %v1483_v25 }
 0x4e2   : > { %1682 = vmax.xlane.f32.xlu1 %v11967_v26 }
 0x4e4   : > { %1680 = vmax.xlane.f32.xlu0 %v11974_v57 }
 0x4e5   : > { %v9365_v24 = vpop.f32.mrb[44].mxu1 }
 0x4e6   : > { %v1645_v31 = vpop.f32.mrb[45].mxu1  ;;  %1678 = vmax.xlane.f32.xlu1 %v11982_v43  ;;  %v12004_v16 = vadd.f32 %v9365_v24, %v11995_v10 }
 0x4e7   : > { %v9366_v18 = vpop.f32.mrb[46].mxu1 }
 0x4e8   : > { %v11997_v47 = vadd.f32 %v9366_v18, %v1489_v1  ;;  %v1648_v46 = vpop.f32.mrb[47].mxu1  ;;  %1676 = vmax.xlane.f32.xlu0 %v11989_v0  ;;  %v12013_v18 = vadd.f32 %v1645_v31, %v1486_v41 }
 0x4e9   : > { %v12010_v29 = vadd.f32 %v1648_v46, %v1487_v33 }
 0x4ea   : > { %1690 = vmax.xlane.f32.xlu1 %v11997_v47 }
 0x4ec   : > { %1688 = vmax.xlane.f32.xlu0 %v12004_v16 }
 0x4ee   : > { %1686 = vmax.xlane.f32.xlu1 %v12010_v29 }
 0x4f0   : > { %1684 = vmax.xlane.f32.xlu0 %v12013_v18 }
 0x4ff   : > { %2413 = vrot.lane.b32.xlu1 %v11705_v53, %s16304_s1 }
 0x50d   : > { %v9417_v24 = vpop.f32.mrb[48].mxu1 }
 0x50e   : > { %v12020_v22 = vadd.f32 %v9417_v24, %v11888_v23  ;;  %v2039_v12 = vpop.f32.mrb[49].mxu1 }
 0x50f   : > { %v9418_v19 = vpop.f32.mrb[50].mxu1  ;;  %v12024_v9 = vadd.f32 %v2039_v12, %v11901_v21 }
 0x510   : > { %2106 = vmax.xlane.f32.xlu0 %v12020_v22  ;;  %v2042_v46 = vpop.f32.mrb[51].mxu1  ;;  %v12028_v23 = vadd.f32 %v9418_v19, %v11913_v39 }
 0x511   : > { %v12032_v24 = vadd.f32 %v2042_v46, %v11896_v20 }
 0x514   : > { %2102 = vmax.xlane.f32.xlu0 %v12024_v9 }
 0x515   : > { %v9421_v31 = vpop.f32.mrb[52].mxu1 }
 0x516   : > { %v2055_v2 = vpop.f32.mrb[53].mxu1 }
 0x517   : > { %v9422_v55 = vpop.f32.mrb[54].mxu1 }
 0x518   : > { %v2058_v62 = vpop.f32.mrb[55].mxu1  ;;  %v12036_v6 = vadd.f32 %v9422_v55, %v11920_v11 }
 0x519   : > { %v12042_v19 = vadd.f32 %v2058_v62, %v11937_v61  ;;  %v12058_v62 = vpop.permute.xlu0 %2266 }
 0x51d   : > { %v9425_v52 = vpop.f32.mrb[56].mxu1  ;;  %v12060_v61 = vpop.permute.xlu0 %2270 }
 0x51e   : > { %v2071_v45 = vpop.f32.mrb[57].mxu1 }
 0x51f   : > { %v9426_v35 = vpop.f32.mrb[58].mxu1 }
 0x520   : > { %v2074_v42 = vpop.f32.mrb[59].mxu1  ;;  %v12046_v20 = vadd.f32 %v9426_v35, %v11955_v4  ;;  %v12063_v35 = vadd.f32 %v9421_v31, %v11928_v38  ;;  %v12083_v4 = vadd.f32 %v2071_v45, %v11980_v60 }
 0x521   : > { %v12049_v39 = vadd.f32 %v2074_v42, %v1483_v25  ;;  %v12067_v42 = vadd.f32 %v2055_v2, %v11946_v3 }
 0x523   : > { %2108 = vmax.xlane.f32.xlu1 %v12028_v23 }
 0x525   : > { %v9429_v12 = vpop.f32.mrb[60].mxu1 }
 0x526   : > { %v2087_v21 = vpop.f32.mrb[61].mxu1  ;;  %v12087_v2 = vadd.f32 %v9429_v12, %v11995_v10 }
 0x527   : > { %2104 = vmax.xlane.f32.xlu1 %v12032_v24  ;;  %v9430_v32 = vpop.f32.mrb[62].mxu1 }
 0x528   : > { %v2090_v53 = vpop.f32.mrb[63].mxu1  ;;  %v12052_v55 = vadd.f32 %v9430_v32, %v1489_v1  ;;  %v12069_v1 = vpop.permute.xlu1 %2264 }
 0x529   : > { %v12055_v11 = vadd.f32 %v2090_v53, %v1487_v33  ;;  %v12071_v32 = vpop.permute.xlu0 %2272  ;;  %v12075_v33 = vadd.f32 %v9425_v52, %v11964_v48  ;;  %v12094_v52 = vadd.f32 %v2087_v21, %v1486_v41 }
 0x52a   : > { %2411 = vrot.lane.b32.xlu0 %v11692_v28, %s16304_s1 }
 0x52b   : > { %2116 = vmax.xlane.f32.xlu1 %v12036_v6 }
 0x52c   : > { %v12078_v53 = vpop.permute.xlu1 %2268 }
 0x52d   : > { %v12080_v38 = vpop.permute.xlu0 %2274 }
 0x52e   : > { %16438 = vst [vmem:[#allocation39_spill] sm:$0xff] %v12080_v38 }
 0x52f   : > { %2112 = vmax.xlane.f32.xlu1 %v12042_v19 }
 0x530   : > { %v12089_v3 = vpop.permute.xlu1 %2276 }
 0x531   : > { %16439 = vst [vmem:[#allocation40_spill] sm:$0xff] %v12089_v3  ;;  %v12091_v25 = vpop.permute.xlu0 %2407 }
 0x532   : > { %16440 = vst [vmem:[#allocation41_spill] sm:$0xff] %v12091_v25 }
 0x533   : > { %2124 = vmax.xlane.f32.xlu1 %v12046_v20 }
 0x534   : > { %v12097_v46 = vpop.permute.xlu1 %2409 }
 0x535   : > { %16441 = vst [vmem:[#allocation42_spill] sm:$0xff] %v12097_v46 }
 0x537   : > { %2120 = vmax.xlane.f32.xlu1 %v12049_v39 }
 0x53b   : > { %2132 = vmax.xlane.f32.xlu1 %v12052_v55 }
 0x53f   : > { %2128 = vmax.xlane.f32.xlu1 %v12055_v11 }
 0x549   : > { %2114 = vmax.xlane.f32.xlu0 %v12063_v35 }
 0x54d   : > { %2110 = vmax.xlane.f32.xlu0 %v12067_v42 }
 0x551   : > { %2122 = vmax.xlane.f32.xlu0 %v12075_v33 }
 0x555   : > { %2118 = vmax.xlane.f32.xlu0 %v12083_v4 }
 0x559   : > { %2130 = vmax.xlane.f32.xlu0 %v12087_v2 }
 0x55d   : > { %2126 = vmax.xlane.f32.xlu0 %v12094_v52  ;;  %v1665_v48 = vpop.xlane.xlu0 %1664 }
 0x55e   : > { %v1694_v45 = vsub.f32 %v11891_v7, %v1665_v48 }
 0x560   : > { %v1712_v60 = vmul.f32 1.442695, %v1694_v45  ;;  %v1663_v10 = vpop.xlane.xlu1 %1662 }
 0x561   : > { %v1661_v31 = vpop.xlane.xlu0 %1660  ;;  %v1693_v54 = vsub.f32 %v11905_v34, %v1663_v10 }
 0x562   : > { %10232 = vpow2.f32 %v1712_v60  ;;  %v1692_v12 = vsub.f32 %v11908_v36, %v1661_v31 }
 0x563   : > { %v1710_v51 = vmul.f32 1.442695, %v1693_v54 }
 0x564   : > { %v1708_v28 = vmul.f32 1.442695, %v1692_v12 }
 0x565   : > { %v1667_v25 = vpop.xlane.xlu0 %1666 }
 0x566   : > { %10234 = vpow2.f32 %v1708_v28  ;;  %v1695_v41 = vsub.f32 %v11923_v49, %v1667_v25 }
 0x567   : > { %v1675_v21 = vpop.xlane.xlu1 %1674 }
 0x568   : > { %v1714_v3 = vmul.f32 1.442695, %v1695_v41  ;;  %v1699_v46 = vsub.f32 %v11931_v59, %v1675_v21 }
 0x569   : > { %v1673_v38 = vpop.xlane.xlu0 %1672 }
 0x56a   : > { %10236 = vpow2.f32 %v1714_v3  ;;  %v1698_v7 = vsub.f32 %v11940_v63, %v1673_v38  ;;  %v1722_v60 = vmul.f32 1.442695, %v1699_v46 }
 0x56b   : > { %v1671_v48 = vpop.xlane.xlu1 %1670  ;;  %10238 = vpow2.f32 %v1710_v51 }
 0x56c   : > { %v12105_v45 = vpop.eup %10232  ;;  %v1720_v36 = vmul.f32 1.442695, %v1698_v7  ;;  %v1697_v34 = vsub.f32 %v11949_v27, %v1671_v48 }
 0x56d   : > { %1744 = vadd.xlane.f32.xlu0 %v12105_v45  ;;  %v1669_v28 = vpop.xlane.xlu0 %1668 }
 0x56e   : > { %10240 = vpow2.f32 %v1720_v36  ;;  %v1696_v54 = vsub.f32 %v11958_v5, %v1669_v28  ;;  %v1718_v63 = vmul.f32 1.442695, %v1697_v34 }
 0x56f   : > { %v1683_v49 = vpop.xlane.xlu1 %1682  ;;  %10242 = vpow2.f32 %v1722_v60 }
 0x570   : > { %v12110_v59 = vpop.eup %10234  ;;  %v1716_v3 = vmul.f32 1.442695, %v1696_v54  ;;  %v1703_v38 = vsub.f32 %v11967_v26, %v1683_v49 }
 0x571   : > { %1740 = vadd.xlane.f32.xlu0 %v12110_v59  ;;  %v1681_v51 = vpop.xlane.xlu0 %1680 }
 0x572   : > { %10244 = vpow2.f32 %v1716_v3  ;;  %v1702_v27 = vsub.f32 %v11974_v57, %v1681_v51  ;;  %v1730_v5 = vmul.f32 1.442695, %v1703_v38 }
 0x573   : > { %v1679_v25 = vpop.xlane.xlu1 %1678  ;;  %10246 = vpow2.f32 %v1718_v63 }
 0x574   : > { %v12115_v46 = vpop.eup %10236  ;;  %v1728_v31 = vmul.f32 1.442695, %v1702_v27  ;;  %v1701_v12 = vsub.f32 %v11982_v43, %v1679_v25 }
 0x575   : > { %1746 = vadd.xlane.f32.xlu1 %v12115_v46  ;;  %v1677_v10 = vpop.xlane.xlu0 %1676  ;;  %v12120_v41 = vpop.eup %10238 }
 0x576   : > { %10248 = vpow2.f32 %v1728_v31  ;;  %v1700_v26 = vsub.f32 %v11989_v0, %v1677_v10  ;;  %v1726_v36 = vmul.f32 1.442695, %v1701_v12 }
 0x577   : > { %10250 = vpow2.f32 %v1730_v5  ;;  %v1691_v57 = vpop.xlane.xlu1 %1690 }
 0x578   : > { %v12122_v21 = vpop.eup %10240  ;;  %v1724_v7 = vmul.f32 1.442695, %v1700_v26  ;;  %v1707_v54 = vsub.f32 %v11997_v47, %v1691_v57 }
 0x579   : > { %1742 = vadd.xlane.f32.xlu1 %v12120_v41  ;;  %1752 = vadd.xlane.f32.xlu0 %v12122_v21  ;;  %v1689_v48 = vpop.xlane.xlu0 %1688  ;;  %v12127_v34 = vpop.eup %10242 }
 0x57a   : > { %10252 = vpow2.f32 %v1724_v7  ;;  %v1706_v60 = vsub.f32 %v12004_v16, %v1689_v48  ;;  %v1738_v51 = vmul.f32 1.442695, %v1707_v54 }
 0x57b   : > { %10254 = vpow2.f32 %v1726_v36  ;;  %v1687_v63 = vpop.xlane.xlu1 %1686 }
 0x57c   : > { %v12129_v43 = vpop.eup %10244  ;;  %v1736_v0 = vmul.f32 1.442695, %v1706_v60  ;;  %v1705_v27 = vsub.f32 %v12010_v29, %v1687_v63 }
 0x57d   : > { %1754 = vadd.xlane.f32.xlu1 %v12127_v34  ;;  %1748 = vadd.xlane.f32.xlu0 %v12129_v43  ;;  %v1685_v28 = vpop.xlane.xlu0 %1684  ;;  %v12135_v3 = vpop.eup %10246 }
 0x57e   : > { %v1704_v49 = vsub.f32 %v12013_v18, %v1685_v28  ;;  %10256 = vpow2.f32 %v1736_v0  ;;  %v1734_v18 = vmul.f32 1.442695, %v1705_v27 }
 0x57f   : > { %v12167_v28 = vpop.permute.xlu1 %2413 }
 0x580   : > { %v12137_v38 = vpop.eup %10248  ;;  %v1732_v16 = vmul.f32 1.442695, %v1704_v49  ;;  %16442 = vst [vmem:[#allocation43_spill] sm:$0xff] %v12167_v28 }
 0x581   : > { %1750 = vadd.xlane.f32.xlu1 %v12135_v3  ;;  %1760 = vadd.xlane.f32.xlu0 %v12137_v38  ;;  %v12142_v25 = vpop.eup %10250 }
 0x582   : > { %10258 = vpow2.f32 %v1732_v16 }
 0x583   : > { %10260 = vpow2.f32 %v1738_v51 }
 0x584   : > { %v12144_v47 = vpop.eup %10252  ;;  %10262 = vpow2.f32 %v1734_v18 }
 0x585   : > { %1762 = vadd.xlane.f32.xlu1 %v12142_v25  ;;  %1756 = vadd.xlane.f32.xlu0 %v12144_v47  ;;  %v12148_v31 = vpop.eup %10254 }
 0x588   : > { %v12151_v5 = vpop.eup %10256 }
 0x589   : > { %1758 = vadd.xlane.f32.xlu1 %v12148_v31 }
 0x58c   : > { %v12153_v10 = vpop.eup %10258 }
 0x58d   : > { %1768 = vadd.xlane.f32.xlu1 %v12151_v5  ;;  %1764 = vadd.xlane.f32.xlu0 %v12153_v10  ;;  %v12157_v29 = vpop.eup %10260 }
 0x58e   : > { %v12160_v12 = vpop.eup %10262 }
 0x591   : > { %1770 = vadd.xlane.f32.xlu1 %v12157_v29 }
 0x595   : > { %1766 = vadd.xlane.f32.xlu1 %v12160_v12 }
 0x59d   : > { %v2107_v26 = vpop.xlane.xlu0 %2106 }
 0x59e   : > { %v2136_v7 = vsub.f32 %v12020_v22, %v2107_v26 }
 0x5a0   : > { %v2154_v57 = vmul.f32 1.442695, %v2136_v7 }
 0x5a1   : > { %v2103_v48 = vpop.xlane.xlu0 %2102 }
 0x5a2   : > { %10264 = vpow2.f32 %v2154_v57  ;;  %v2134_v36 = vsub.f32 %v12024_v9, %v2103_v48 }
 0x5a4   : > { %v2150_v60 = vmul.f32 1.442695, %v2134_v36 }
 0x5a5   : > { %v12183_v26 = vpop.permute.xlu0 %2411 }
 0x5a6   : > { %10266 = vpow2.f32 %v2150_v60 }
 0x5ac   : > { %v12165_v0 = vpop.eup %10264 }
 0x5ad   : > { %2186 = vadd.xlane.f32.xlu1 %v12165_v0 }
 0x5b0   : > { %v12170_v54 = vpop.eup %10266  ;;  %v2109_v49 = vpop.xlane.xlu1 %2108 }
 0x5b1   : > { %v2137_v63 = vsub.f32 %v12028_v23, %v2109_v49  ;;  %2182 = vadd.xlane.f32.xlu0 %v12170_v54 }
 0x5b3   : > { %v2156_v22 = vmul.f32 1.442695, %v2137_v63 }
 0x5b4   : > { %v2105_v16 = vpop.xlane.xlu1 %2104 }
 0x5b5   : > { %10268 = vpow2.f32 %v2156_v22  ;;  %v2135_v9 = vsub.f32 %v12032_v24, %v2105_v16 }
 0x5b7   : > { %v2152_v51 = vmul.f32 1.442695, %v2135_v9 }
 0x5b8   : > { %v2117_v23 = vpop.xlane.xlu1 %2116 }
 0x5b9   : > { %10270 = vpow2.f32 %v2152_v51  ;;  %v2141_v60 = vsub.f32 %v12036_v6, %v2117_v23 }
 0x5bb   : > { %v2164_v9 = vmul.f32 1.442695, %v2141_v60 }
 0x5bc   : > { %v2113_v24 = vpop.xlane.xlu1 %2112 }
 0x5bd   : > { %v2139_v28 = vsub.f32 %v12042_v19, %v2113_v24 }
 0x5bf   : > { %v12175_v27 = vpop.eup %10268 }
 0x5c0   : > { %2188 = vadd.xlane.f32.xlu1 %v12175_v27  ;;  %v2125_v63 = vpop.xlane.xlu1 %2124 }
 0x5c3   : > { %v12178_v18 = vpop.eup %10270 }
 0x5c4   : > { %2184 = vadd.xlane.f32.xlu1 %v12178_v18  ;;  %v2121_v51 = vpop.xlane.xlu1 %2120 }
 0x5c7   : > { %2415 = vrot.lane.b32.xlu0 %v11718_v15, %s16304_s1 }
 0x5c8   : > { %v2133_v23 = vpop.xlane.xlu1 %2132 }
 0x5c9   : > { %v2149_v60 = vsub.f32 %v12052_v55, %v2133_v23 }
 0x5d5   : > { %2417 = vrot.lane.b32.xlu1 %v11731_v56, %s16304_s1 }
 0x5d6   : > { %v2115_v7 = vpop.xlane.xlu0 %2114 }
 0x5d7   : > { %v2140_v57 = vsub.f32 %v12063_v35, %v2115_v7 }
 0x5d9   : > { %v2162_v48 = vmul.f32 1.442695, %v2140_v57  ;;  %v2160_v57 = vmul.f32 1.442695, %v2139_v28  ;;  %v2180_v28 = vmul.f32 1.442695, %v2149_v60 }
 0x5da   : > { %v2111_v36 = vpop.xlane.xlu0 %2110 }
 0x5db   : > { %10272 = vpow2.f32 %v2162_v48  ;;  %v2138_v49 = vsub.f32 %v12067_v42, %v2111_v36 }
 0x5dd   : > { %v2158_v22 = vmul.f32 1.442695, %v2138_v49 }
 0x5de   : > { %v2123_v16 = vpop.xlane.xlu0 %2122 }
 0x5df   : > { %10274 = vpow2.f32 %v2158_v22  ;;  %v2144_v48 = vsub.f32 %v12075_v33, %v2123_v16  ;;  %v2145_v33 = vsub.f32 %v12046_v20, %v2125_v63 }
 0x5e0   : > { %10276 = vpow2.f32 %v2164_v9 }
 0x5e1   : > { %v2172_v9 = vmul.f32 1.442695, %v2145_v33 }
 0x5e2   : > { %v2119_v15 = vpop.xlane.xlu0 %2118 }
 0x5e3   : > { %v2142_v22 = vsub.f32 %v12083_v4, %v2119_v15 }
 0x5e5   : > { %v12190_v56 = vpop.eup %10272  ;;  %v2166_v16 = vmul.f32 1.442695, %v2142_v22 }
 0x5e6   : > { %2194 = vadd.xlane.f32.xlu0 %v12190_v56  ;;  %v2131_v35 = vpop.xlane.xlu0 %2130 }
 0x5e7   : > { %v2148_v6 = vsub.f32 %v12087_v2, %v2131_v35  ;;  %v2170_v2 = vmul.f32 1.442695, %v2144_v48  ;;  %v2129_v35 = vpop.xlane.xlu1 %2128 }
 0x5e8   : > { %v2147_v4 = vsub.f32 %v12055_v11, %v2129_v35 }
 0x5e9   : > { %v12195_v7 = vpop.eup %10274  ;;  %v2178_v42 = vmul.f32 1.442695, %v2148_v6 }
 0x5ea   : > { %2190 = vadd.xlane.f32.xlu0 %v12195_v7  ;;  %v2127_v36 = vpop.xlane.xlu0 %2126  ;;  %v12201_v24 = vpop.eup %10276 }
 0x5eb   : > { %10278 = vpow2.f32 %v2178_v42  ;;  %v2146_v19 = vsub.f32 %v12094_v52, %v2127_v36  ;;  %v2143_v52 = vsub.f32 %v12049_v39, %v2121_v51  ;;  %v2176_v51 = vmul.f32 1.442695, %v2147_v4 }
 0x5ec   : > { %10280 = vpow2.f32 %v2160_v57 }
 0x5ed   : > { %v2174_v49 = vmul.f32 1.442695, %v2146_v19  ;;  %v2168_v20 = vmul.f32 1.442695, %v2143_v52 }
 0x5ee   : > { %2196 = vadd.xlane.f32.xlu0 %v12201_v24 }
 0x5ef   : > { %10282 = vpow2.f32 %v2174_v49 }
 0x5f0   : > { %10284 = vpow2.f32 %v2170_v2 }
 0x5f1   : > { %10286 = vpow2.f32 %v2180_v28 }
 0x5f2   : > { %10288 = vpow2.f32 %v2166_v16 }
 0x5f3   : > { %10290 = vpow2.f32 %v2172_v9 }
 0x5f4   : > { %10292 = vpow2.f32 %v2168_v20 }
 0x5f5   : > { %v12206_v55 = vpop.eup %10278  ;;  %10294 = vpow2.f32 %v2176_v51 }
 0x5f6   : > { %2210 = vadd.xlane.f32.xlu0 %v12206_v55  ;;  %v12210_v6 = vpop.eup %10280 }
 0x5f9   : > { %v12212_v15 = vpop.eup %10282  ;;  %2192 = vadd.xlane.f32.xlu1 %v12210_v6 }
 0x5fa   : > { %2206 = vadd.xlane.f32.xlu0 %v12212_v15  ;;  %v12217_v63 = vpop.eup %10284  ;;  %v1745_v23 = vpop.xlane.xlu0 %1744 }
 0x5fb   : > { %v12219_v39 = vpop.eup %10286 }
 0x5fc   : > { %v12223_v42 = vpop.eup %10288 }
 0x5fd   : > { %2202 = vadd.xlane.f32.xlu1 %v12217_v63  ;;  %v12226_v48 = vpop.eup %10290 }
 0x5fe   : > { %2212 = vadd.xlane.f32.xlu0 %v12219_v39  ;;  %v1741_v57 = vpop.xlane.xlu0 %1740  ;;  %v12229_v19 = vpop.eup %10292 }
 0x5ff   : > { %v12232_v22 = vpop.eup %10294 }
 0x601   : > { %2198 = vadd.xlane.f32.xlu1 %v12223_v42 }
 0x602   : > { %v1747_v11 = vpop.xlane.xlu1 %1746 }
 0x603   : > { %10296 = vrcp.f32 %v1747_v11 }
 0x604   : > { %10298 = vrcp.f32 %v1741_v57 }
 0x605   : > { %2204 = vadd.xlane.f32.xlu1 %v12226_v48  ;;  %10300 = vrcp.f32 %v1745_v23 }
 0x606   : > { %v1743_v36 = vpop.xlane.xlu1 %1742  ;;  %v1753_v60 = vpop.xlane.xlu0 %1752 }
 0x607   : > { %10302 = vrcp.f32 %v1743_v36 }
 0x609   : > { %2200 = vadd.xlane.f32.xlu1 %v12229_v19 }
 0x60a   : > { %v1755_v49 = vpop.xlane.xlu1 %1754  ;;  %v1749_v2 = vpop.xlane.xlu0 %1748 }
 0x60b   : > { %10304 = vrcp.f32 %v1755_v49 }
 0x60c   : > { %10306 = vrcp.f32 %v1749_v2 }
 0x60d   : > { %2208 = vadd.xlane.f32.xlu1 %v12232_v22  ;;  %v10297_v28 = vpop.eup %10296  ;;  %10308 = vrcp.f32 %v1753_v60 }
 0x60e   : > { %v1751_v33 = vpop.xlane.xlu1 %1750  ;;  %v1761_v16 = vpop.xlane.xlu0 %1760  ;;  %v1791_v20 = vmul.f32 %v10297_v28, %v12115_v46 }
 0x60f   : > { %v10299_v9 = vpop.eup %10298  ;;  %10310 = vrcp.f32 %v1751_v33 }
 0x610   : > { %v10301_v52 = vpop.eup %10300  ;;  %v1788_v51 = vmul.f32 %v10299_v9, %v12110_v59 }
 0x611   : > { %v10303_v35 = vpop.eup %10302  ;;  %v1790_v11 = vmul.f32 %v10301_v52, %v12105_v45 }
 0x612   : > { %v1763_v4 = vpop.xlane.xlu1 %1762  ;;  %v1757_v23 = vpop.xlane.xlu0 %1756  ;;  %v1789_v57 = vmul.f32 %v10303_v35, %v12120_v41 }
 0x613   : > { %10312 = vrcp.f32 %v1763_v4  ;;  %v1805_v60 = vpack.c.bf16 %v1791_v20, %v1790_v11  ;;  %v12280_v11 = vld [vmem:[#allocation2 + $0x28] sm:$0xff] }
 0x614   : > { %2419 = vrot.lane.b32.xlu0 %v11744_v8, %s16304_s1  ;;  %v1804_v36 = vpack.c.bf16 %v1789_v57, %v1788_v51  ;;  %10314 = vrcp.f32 %v1757_v23 }
 0x615   : > { %v10305_v49 = vpop.eup %10304  ;;  %10316 = vrcp.f32 %v1761_v16 }
 0x616   : > { %v1759_v2 = vpop.xlane.xlu1 %1758  ;;  %9383 = vmatprep.mubr.bf16.mxu0 %v1804_v36  ;;  %v10307_v46 = vpop.eup %10306  ;;  %v1795_v59 = vmul.f32 %v10305_v49, %v12127_v34  ;;  %v16443_v36 = vld [vmem:[#allocation39_spill] sm:$0xff]  ;;  %v16444_v49 = vld [vmem:[#allocation38_spill] sm:$0xff] }
 0x617   : > { %10318 = vrcp.f32 %v1759_v2  ;;  %9384 = vmatmul.mubr.bf16.vlgmr.msra.gmra.mrb[32].mxu0 %v1805_v60  ;;  %v10309_v28 = vpop.eup %10308  ;;  %v1792_v33 = vmul.f32 %v10307_v46, %v12129_v43 }
 0x618   : > { %9432 = vmatpush3.bf16.msra.mxu0 %v11863_v17  ;;  %2391 = vrot.lane.b32.xlu0 %v11670_v30, %s16266_s27  ;;  %v1794_v9 = vmul.f32 %v10309_v28, %v12122_v21 }
 0x619   : > { %v10311_v45 = vpop.eup %10310  ;;  %9433 = vmatprep.subr.bf16.mxu0 %v12069_v1 }
 0x61a   : > { %v1769_v41 = vpop.xlane.xlu1 %1768  ;;  %v1793_v16 = vmul.f32 %v10311_v45, %v12135_v3  ;;  %v1807_v52 = vpack.c.bf16 %v1795_v59, %v1794_v9  ;;  %v1765_v20 = vpop.xlane.xlu0 %1764  ;;  %v16445_v59 = vld [vmem:[#allocation40_spill] sm:$0xff] }
 0x61b   : > { %v10979_v9 = vld [vmem:[#allocation2 + $0x78] sm:$0xff] }
 0x61c   : > { %9434 = vmatpush3.bf16.msra.mxu0 %v12069_v1  ;;  %2395 = vrot.lane.b32.xlu0 %v11775_v14, %s16266_s27  ;;  %v1806_v17 = vpack.c.bf16 %v1793_v16, %v1792_v33  ;;  %v12294_v33 = vld [vmem:[#allocation2 + $0x18] sm:$0xff] }
 0x61d   : > { %9435 = vmatprep.subr.bf16.mxu0 %v12058_v62  ;;  %v10313_v35 = vpop.eup %10312  ;;  %v10978_v16 = vld [vmem:[#allocation2 + $0x58] sm:$0xff] }
 0x61e   : > { %v1771_v4 = vpop.xlane.xlu1 %1770  ;;  %2421 = vrot.lane.b32.xlu1 %v11755_v37, %s16304_s1  ;;  %9387 = vmatprep.mubr.bf16.mxu0 %v1806_v17  ;;  %v10315_v34 = vpop.eup %10314  ;;  %v1799_v21 = vmul.f32 %v10313_v35, %v12142_v25  ;;  %v16448_v17 = vld [vmem:[#allocation33_spill] sm:$0xff] }
 0x61f   : > { %9388 = vmatmul.mubr.bf16.gmra.mrb[36].mxu0 %v1807_v52  ;;  %v10317_v43 = vpop.eup %10316  ;;  %10320 = vrcp.f32 %v1771_v4  ;;  %v1796_v23 = vmul.f32 %v10315_v34, %v12144_v47  ;;  %v12272_v47 = vld [vmem:[#allocation2 + $0x8] sm:$0xff] }
 0x620   : > { %9436 = vmatpush3.bf16.msra.mxu0 %v12058_v62  ;;  %2399 = vrot.lane.b32.xlu0 %v11782_v40, %s16266_s27  ;;  %10322 = vrcp.f32 %v1765_v20  ;;  %v1798_v62 = vmul.f32 %v10317_v43, %v12137_v38 }
 0x621   : > { %v10319_v1 = vpop.eup %10318  ;;  %9437 = vmatprep.subr.bf16.mxu0 %v12078_v53  ;;  %10324 = vrcp.f32 %v1769_v41 }
 0x622   : > { %v1767_v3 = vpop.xlane.xlu1 %1766  ;;  %2393 = vrot.lane.b32.xlu1 %v11785_v44, %s16266_s27  ;;  %v1797_v51 = vmul.f32 %v10319_v1, %v12148_v31  ;;  %v1809_v25 = vpack.c.bf16 %v1799_v21, %v1798_v62 }
 0x623   : > { %10326 = vrcp.f32 %v1767_v3 }
 0x624   : > { %9438 = vmatpush3.bf16.msra.mxu0 %v12078_v53  ;;  %2403 = vrot.lane.b32.xlu0 %v11792_v13, %s16266_s27  ;;  %v1808_v57 = vpack.c.bf16 %v1797_v51, %v1796_v23 }
 0x625   : > { %9439 = vmatprep.subr.bf16.mxu0 %v12060_v61 }
 0x626   : > { %2397 = vrot.lane.b32.xlu1 %v11795_v50, %s16266_s27  ;;  %9391 = vmatprep.mubr.bf16.mxu0 %v1808_v57 }
 0x627   : > { %9392 = vmatmul.mubr.bf16.gmra.mrb[40].mxu0 %v1809_v25 }
 0x628   : > { %9440 = vmatpush3.bf16.msra.mxu0 %v12060_v61  ;;  %2720 = vrot.lane.b32.xlu0 %v12272_v47, %s16266_s27 }
 0x629   : > { %9441 = vmatprep.subr.bf16.mxu0 %v12071_v32  ;;  %v10321_v53 = vpop.eup %10320 }
 0x62a   : > { %2401 = vrot.lane.b32.xlu1 %v11802_v58, %s16266_s27  ;;  %v10323_v38 = vpop.eup %10322  ;;  %v1803_v60 = vmul.f32 %v10321_v53, %v12157_v29  ;;  %v12302_v29 = vld [vmem:[#allocation2 + $0x38] sm:$0xff] }
 0x62b   : > { %v10325_v31 = vpop.eup %10324  ;;  %v1800_v2 = vmul.f32 %v10323_v38, %v12153_v10  ;;  %v10976_v10 = vld [vmem:[#allocation2 + $0x68] sm:$0xff] }
 0x62c   : > { %9442 = vmatpush3.bf16.msra.mxu0 %v12071_v32  ;;  %2724 = vrot.lane.b32.xlu0 %v12280_v11, %s16266_s27  ;;  %v1802_v28 = vmul.f32 %v10325_v31, %v12151_v5  ;;  %v10974_v32 = vld [vmem:[#allocation2 + $0x48] sm:$0xff]  ;;  %v16446_v5 = vld [vmem:[#allocation41_spill] sm:$0xff]  ;;  %v16450_v31 = vld [vmem:[#allocation43_spill] sm:$0xff] }
 0x62d   : > { %v10327_v61 = vpop.eup %10326  ;;  %9443 = vmatprep.subr.bf16.mxu0 %v16443_v36  ;;  %v2448_v53 = vsel %vm1514_vm1, %v16446_v5, 0  ;;  %v16449_v38 = vld [vmem:[#allocation42_spill] sm:$0xff] }
 0x62e   : > { %2405 = vrot.lane.b32.xlu1 %v16444_v49, %s16266_s27  ;;  %v1801_v46 = vmul.f32 %v10327_v61, %v12160_v12  ;;  %v1811_v41 = vpack.c.bf16 %v1803_v60, %v1802_v28  ;;  %v16447_v12 = vld [vmem:[#allocation32_spill] sm:$0xff] }
 0x630   : > { %9444 = vmatpush3.bf16.msra.mxu0 %v16443_v36  ;;  %2728 = vrot.lane.b32.xlu0 %v10974_v32, %s16266_s27  ;;  %v1810_v45 = vpack.c.bf16 %v1801_v46, %v1800_v2  ;;  %v2457_v36 = vsel %vm1514_vm1, %v16450_v31, 0 }
 0x631   : > { %9445 = vmatprep.subr.bf16.mxu0 %v16445_v59 }
 0x632   : > { %2722 = vrot.lane.b32.xlu1 %v12294_v33, %s16266_s27  ;;  %9395 = vmatprep.mubr.bf16.mxu0 %v1810_v45 }
 0x633   : > { %9396 = vmatmul.mubr.bf16.gmra.mrb[44].mxu0 %v1811_v41 }
 0x634   : > { %9446 = vmatpush3.bf16.msra.mxu0 %v16445_v59  ;;  %2732 = vrot.lane.b32.xlu0 %v10976_v10, %s16266_s27 }
 0x635   : > { %9978 = vmatprep.subr.msk.bf16.mxu0 %vm1514_vm1, %v16446_v5 }
 0x636   : > { %2726 = vrot.lane.b32.xlu1 %v12302_v29, %s16266_s27 }
 0x638   : > { %2865 = vrot.lane.b32.xlu0 %v16447_v12, %s16306_s30 }
 0x63a   : > { %2730 = vrot.lane.b32.xlu1 %v10978_v16, %s16266_s27  ;;  %v2187_v52 = vpop.xlane.xlu1 %2186 }
 0x63e   : > { %2734 = vrot.lane.b32.xlu1 %v10979_v9, %s16266_s27  ;;  %v2183_v35 = vpop.xlane.xlu0 %2182  ;;  %s16498_s27 = smov 48  }
 0x642   : > { %2867 = vrot.lane.b32.xlu1 %v16448_v17, %s16306_s30 }
 0x64d   : > { %v2189_v20 = vpop.xlane.xlu1 %2188 }
 0x64e   : > { %10328 = vrcp.f32 %v2189_v20 }
 0x64f   : > { %10330 = vrcp.f32 %v2183_v35 }
 0x650   : > { %10332 = vrcp.f32 %v2187_v52 }
 0x651   : > { %v2185_v4 = vpop.xlane.xlu1 %2184 }
 0x652   : > { %10334 = vrcp.f32 %v2185_v4 }
 0x655   : > { %v2418_v2 = vpop.permute.xlu1 %2417 }
 0x656   : > { %v2463_v59 = vsel %vm1514_vm1, %v2418_v2, 0 }
 0x658   : > { %v10329_v34 = vpop.eup %10328 }
 0x659   : > { %v10331_v43 = vpop.eup %10330  ;;  %v2233_v3 = vmul.f32 %v10329_v34, %v12175_v27  ;;  %v2451_v27 = vsel %vm1514_vm1, %v16449_v38, 0 }
 0x65a   : > { %v10333_v1 = vpop.eup %10332  ;;  %v2230_v23 = vmul.f32 %v10331_v43, %v12170_v54  ;;  %v2416_v54 = vpop.permute.xlu0 %2415 }
 0x65b   : > { %v2232_v62 = vmul.f32 %v10333_v1, %v12165_v0  ;;  %v2454_v0 = vsel %vm1514_vm1, %v12183_v26, 0  ;;  %v2460_v46 = vsel %vm1514_vm1, %v2416_v54, 0 }
 0x65c   : > { %v10335_v21 = vpop.eup %10334 }
 0x65d   : > { %v2231_v51 = vmul.f32 %v10335_v21, %v12178_v18  ;;  %v2247_v25 = vpack.c.bf16 %v2233_v3, %v2232_v62 }
 0x65f   : > { %v2246_v57 = vpack.c.bf16 %v2231_v51, %v2230_v23 }
 0x661   : > { %9447 = vmatprep.mubr.bf16.mxu0 %v2246_v57 }
 0x662   : > { %9448 = vmatmul.mubr.bf16.vlgmr.msra.gmra.mrb[48].mxu0 %v2247_v25 }
 0x663   : > { %9464 = vmatpush3.bf16.xpose.msra.mxu0 %v2448_v53 }
 0x664   : > { %9979 = vmatprep.subr.msk.bf16.mxu0 %vm1514_vm1, %v16449_v38 }
 0x66b   : > { %9466 = vmatpush3.bf16.xpose.msra.mxu0 %v2451_v27 }
 0x66c   : > { %9980 = vmatprep.subr.msk.bf16.mxu0 %vm1514_vm1, %v12183_v26 }
 0x673   : > { %9468 = vmatpush3.bf16.xpose.msra.mxu0 %v2454_v0  ;;  %v2195_v18 = vpop.xlane.xlu0 %2194 }
 0x674   : > { %9981 = vmatprep.subr.msk.bf16.mxu0 %vm1514_vm1, %v16450_v31 }
 0x677   : > { %v2191_v61 = vpop.xlane.xlu0 %2190 }
 0x67b   : > { %9470 = vmatpush3.bf16.xpose.msra.mxu0 %v2457_v36  ;;  %v2197_v60 = vpop.xlane.xlu0 %2196 }
 0x67c   : > { %9982 = vmatprep.subr.msk.bf16.mxu0 %vm1514_vm1, %v2416_v54  ;;  %10336 = vrcp.f32 %v2197_v60 }
 0x67d   : > { %10338 = vrcp.f32 %v2191_v61 }
 0x67e   : > { %10340 = vrcp.f32 %v2195_v18 }
 0x683   : > { %9472 = vmatpush3.bf16.xpose.msra.mxu0 %v2460_v46  ;;  %v2211_v28 = vpop.xlane.xlu0 %2210 }
 0x684   : > { %9983 = vmatprep.subr.msk.bf16.mxu0 %vm1514_vm1, %v2418_v2 }
 0x686   : > { %v2193_v26 = vpop.xlane.xlu1 %2192  ;;  %v10337_v10 = vpop.eup %10336 }
 0x687   : > { %10342 = vrcp.f32 %v2193_v26  ;;  %v2207_v32 = vpop.xlane.xlu0 %2206  ;;  %v10339_v12 = vpop.eup %10338  ;;  %v2237_v35 = vmul.f32 %v10337_v10, %v12201_v24 }
 0x688   : > { %v10341_v9 = vpop.eup %10340  ;;  %v2234_v4 = vmul.f32 %v10339_v12, %v12195_v7 }
 0x689   : > { %v2236_v1 = vmul.f32 %v10341_v9, %v12190_v56 }
 0x68a   : > { %v2203_v45 = vpop.xlane.xlu1 %2202 }
 0x68b   : > { %9474 = vmatpush3.bf16.xpose.msra.mxu0 %v2463_v59  ;;  %v2213_v41 = vpop.xlane.xlu0 %2212  ;;  %v2249_v3 = vpack.c.bf16 %v2237_v35, %v2236_v1 }
 0x68e   : > { %v2199_v5 = vpop.xlane.xlu1 %2198 }
 0x68f   : > { %v2420_v16 = vpop.permute.xlu0 %2419 }
 0x690   : > { %9984 = vmatprep.subr.msk.bf16.mxu0 %vm1514_vm1, %v2420_v16  ;;  %v2466_v17 = vsel %vm1514_vm1, %v2420_v16, 0 }
 0x691   : > { %v10343_v52 = vpop.eup %10342 }
 0x692   : > { %v2205_v20 = vpop.xlane.xlu1 %2204  ;;  %v2235_v34 = vmul.f32 %v10343_v52, %v12210_v6 }
 0x693   : > { %9476 = vmatpush3.bf16.xpose.msra.mxu0 %v2466_v17  ;;  %v2392_v43 = vpop.permute.xlu0 %2391  ;;  %10344 = vrcp.f32 %v2205_v20 }
 0x694   : > { %v2248_v21 = vpack.c.bf16 %v2235_v34, %v2234_v4  ;;  %10346 = vrcp.f32 %v2199_v5  ;;  %v12478_v34 = vld [vmem:[%s16437_s0] sm:$0xff] }
 0x695   : > { %10348 = vrcp.f32 %v2203_v45 }
 0x696   : > { %v2201_v23 = vpop.xlane.xlu1 %2200  ;;  %9451 = vmatprep.mubr.bf16.mxu0 %v2248_v21 }
 0x697   : > { %10350 = vrcp.f32 %v2201_v23  ;;  %9452 = vmatmul.mubr.bf16.gmra.mrb[52].mxu0 %v2249_v3  ;;  %v2396_v51 = vpop.permute.xlu0 %2395 }
 0x698   : > { %10352 = vrcp.f32 %v2207_v32 }
 0x69a   : > { %v2209_v24 = vpop.xlane.xlu1 %2208 }
 0x69b   : > { %10354 = vrcp.f32 %v2209_v24  ;;  %v2400_v7 = vpop.permute.xlu0 %2399 }
 0x69c   : > { %10356 = vrcp.f32 %v2213_v41 }
 0x69d   : > { %v10345_v6 = vpop.eup %10344  ;;  %10358 = vrcp.f32 %v2211_v28 }
 0x69e   : > { %v2422_v62 = vpop.permute.xlu1 %2421  ;;  %v10347_v57 = vpop.eup %10346  ;;  %v2241_v27 = vmul.f32 %v10345_v6, %v12226_v48 }
 0x69f   : > { %9985 = vmatprep.subr.msk.bf16.mxu0 %vm1514_vm1, %v2422_v62  ;;  %v2404_v56 = vpop.permute.xlu0 %2403  ;;  %v2469_v25 = vsel %vm1514_vm1, %v2422_v62, 0  ;;  %v10349_v53 = vpop.eup %10348  ;;  %v2238_v0 = vmul.f32 %v10347_v57, %v12223_v42 }
 0x6a0   : > { %9478 = vmatpush3.bf16.xpose.msra.mxu0 %v2469_v25  ;;  %v2240_v36 = vmul.f32 %v10349_v53, %v12217_v63 }
 0x6a1   : > { %v10351_v38 = vpop.eup %10350 }
 0x6a2   : > { %v2394_v54 = vpop.permute.xlu1 %2393  ;;  %v2239_v18 = vmul.f32 %v10351_v38, %v12229_v19  ;;  %v10353_v31 = vpop.eup %10352  ;;  %v2251_v46 = vpack.c.bf16 %v2241_v27, %v2240_v36  ;;  %v12461_v27 = vld [vmem:[%s16437_s0 + $0x10] sm:$0xff]  ;;  %v12514_v36 = vld [vmem:[%s16437_s0 + $0x28] sm:$0xff] }
 0x6a3   : > { %v2721_v61 = vpop.permute.xlu0 %2720  ;;  %v2242_v32 = vmul.f32 %v10353_v31, %v12212_v15 }
 0x6a4   : > { %9495 = vmatprep.subr.bf16.mxu1 %v2721_v61  ;;  %v2250_v60 = vpack.c.bf16 %v2239_v18, %v2238_v0 }
 0x6a5   : > { %v10355_v2 = vpop.eup %10354  ;;  %9496 = vmatpush3.bf16.msra.mxu1 %v2721_v61 }
 0x6a6   : > { %v10357_v28 = vpop.eup %10356  ;;  %v2398_v26 = vpop.permute.xlu1 %2397  ;;  %9455 = vmatprep.mubr.bf16.mxu0 %v2250_v60  ;;  %v2243_v48 = vmul.f32 %v10355_v2, %v12232_v22  ;;  %v12505_v2 = vld [vmem:[%s16437_s0 + $0x30] sm:$0xff] }
 0x6a7   : > { %9456 = vmatmul.mubr.bf16.gmra.mrb[56].mxu0 %v2251_v46  ;;  %v10359_v42 = vpop.eup %10358  ;;  %v2245_v19 = vmul.f32 %v10357_v28, %v12219_v39  ;;  %v2725_v12 = vpop.permute.xlu0 %2724 }
 0x6a8   : > { %v2252_v45 = vpack.c.bf16 %v2243_v48, %v2242_v32  ;;  %v2244_v63 = vmul.f32 %v10359_v42, %v12206_v55 }
 0x6aa   : > { %v2402_v59 = vpop.permute.xlu1 %2401  ;;  %9459 = vmatprep.mubr.bf16.mxu0 %v2252_v45  ;;  %v2253_v41 = vpack.c.bf16 %v2245_v19, %v2244_v63 }
 0x6ab   : > { %v2729_v39 = vpop.permute.xlu0 %2728 }
 0x6ae   : > { %v2406_v10 = vpop.permute.xlu1 %2405 }
 0x6af   : > { %9460 = vmatmul.mubr.bf16.gmra.mrb[60].mxu0 %v2253_v41  ;;  %v2733_v22 = vpop.permute.xlu0 %2732 }
 0x6b0   : > { %9479 = vmatprep.mubr.msk.bf16.mxu0 %vm1514_vm1, %v2392_v43 }
 0x6b2   : > { %v2723_v5 = vpop.permute.xlu1 %2722 }
 0x6b3   : > { %9497 = vmatprep.subr.bf16.mxu1 %v2723_v5  ;;  %v12357_v9 = vpop.permute.xlu0 %2865 }
 0x6b4   : > { %9498 = vmatpush3.bf16.msra.mxu1 %v2723_v5 }
 0x6b5   : > { %9499 = vmatprep.subr.bf16.mxu1 %v2725_v12 }
 0x6b6   : > { %v2727_v15 = vpop.permute.xlu1 %2726 }
 0x6b7   : > { %9480 = vmatmul.mubr.msk.bf16.vlgmr.msra.gmra.mrb[64].mxu0 %vm1514_vm1, %v2394_v54 }
 0x6b8   : > { %9483 = vmatprep.mubr.msk.bf16.mxu0 %vm1514_vm1, %v2396_v51  ;;  %9500 = vmatpush3.bf16.msra.mxu1 %v2725_v12  ;;  %v12470_v51 = vld [vmem:[%s16437_s0 + $0x8] sm:$0xff] }
 0x6b9   : > { %9501 = vmatprep.subr.bf16.mxu1 %v2727_v15 }
 0x6ba   : > { %v2731_v55 = vpop.permute.xlu1 %2730 }
 0x6bc   : > { %9502 = vmatpush3.bf16.msra.mxu1 %v2727_v15 }
 0x6bd   : > { %9503 = vmatprep.subr.bf16.mxu1 %v2729_v39 }
 0x6be   : > { %v2735_v16 = vpop.permute.xlu1 %2734 }
 0x6bf   : > { %9484 = vmatmul.mubr.msk.bf16.gmra.mrb[68].mxu0 %vm1514_vm1, %v2398_v26 }
 0x6c0   : > { %9487 = vmatprep.mubr.msk.bf16.mxu0 %vm1514_vm1, %v2400_v7  ;;  %9504 = vmatpush3.bf16.msra.mxu1 %v2729_v39  ;;  %v12488_v39 = vld [vmem:[%s16437_s0 + $0x18] sm:$0xff] }
 0x6c1   : > { %9505 = vmatprep.subr.bf16.mxu1 %v2731_v55 }
 0x6c4   : > { %9506 = vmatpush3.bf16.msra.mxu1 %v2731_v55 }
 0x6c5   : > { %9507 = vmatprep.subr.bf16.mxu1 %v2733_v22 }
 0x6c7   : > { %9488 = vmatmul.mubr.msk.bf16.gmra.mrb[72].mxu0 %vm1514_vm1, %v2402_v59 }
 0x6c8   : > { %9491 = vmatprep.mubr.msk.bf16.mxu0 %vm1514_vm1, %v2404_v56  ;;  %9508 = vmatpush3.bf16.msra.mxu1 %v2733_v22 }
 0x6c9   : > { %9509 = vmatprep.subr.bf16.mxu1 %v2735_v16 }
 0x6cc   : > { %9510 = vmatpush3.bf16.msra.mxu1 %v2735_v16 }
 0x6cd   : > { %9986 = vmatprep.subr.msk.bf16.mxu1 %vm1514_vm1, %v12357_v9 }
 0x6cf   : > { %9492 = vmatmul.mubr.msk.bf16.gmra.mrb[76].mxu0 %vm1514_vm1, %v2406_v10 }
 0x6ea   : > { %v12362_v17 = vpop.f32.mrb[32].mxu0 }
 0x6eb   : > { %16451 = vst [vmem:[#allocation39_spill] sm:$0xff] %v12362_v17  ;;  %v12364_v52 = vpop.f32.mrb[33].mxu0 }
 0x6ec   : > { %16452 = vst [vmem:[#allocation38_spill] sm:$0xff] %v12364_v52  ;;  %v12366_v35 = vpop.f32.mrb[34].mxu0 }
 0x6ed   : > { %16453 = vst [vmem:[#allocation40_spill] sm:$0xff] %v12366_v35  ;;  %v12370_v4 = vpop.f32.mrb[35].mxu0 }
 0x6ee   : > { %16454 = vst [vmem:[#allocation41_spill] sm:$0xff] %v12370_v4  ;;  %v16483_v4 = vld [vmem:[#allocation35_spill] sm:$0xff] }
 0x6f2   : > { %v12374_v43 = vpop.f32.mrb[36].mxu0 }
 0x6f3   : > { %16455 = vst [vmem:[#allocation32_spill] sm:$0xff] %v12374_v43  ;;  %v12376_v1 = vpop.f32.mrb[37].mxu0 }
 0x6f4   : > { %16456 = vst [vmem:[#allocation33_spill] sm:$0xff] %v12376_v1  ;;  %v12378_v21 = vpop.f32.mrb[38].mxu0 }
 0x6f5   : > { %16457 = vst [vmem:[#allocation42_spill] sm:$0xff] %v12378_v21  ;;  %v12382_v23 = vpop.f32.mrb[39].mxu0  ;;  %v12559_v21 = vld [vmem:[%s16437_s0 + $0x40] sm:$0xff] }
 0x6f6   : > { %16458 = vst [vmem:[#allocation43_spill] sm:$0xff] %v12382_v23 }
 0x6fa   : > { %v12386_v24 = vpop.f32.mrb[40].mxu0 }
 0x6fb   : > { %16459 = vst [vmem:[#allocation44_spill] sm:$0xff] %v12386_v24  ;;  %v12388_v7 = vpop.f32.mrb[41].mxu0 }
 0x6fc   : > { %16460 = vst [vmem:[#allocation45_spill] sm:$0xff] %v12388_v7  ;;  %v12390_v6 = vpop.f32.mrb[42].mxu0 }
 0x6fd   : > { %16461 = vst [vmem:[#allocation46_spill] sm:$0xff] %v12390_v6  ;;  %v12394_v57 = vpop.f32.mrb[43].mxu0 }
 0x6fe   : > { %16462 = vst [vmem:[#allocation47_spill] sm:$0xff] %v12394_v57  ;;  %v12550_v57 = vld [vmem:[%s16437_s0 + $0x48] sm:$0xff] }
 0x706   : > { %v12398_v25 = vpop.f32.mrb[44].mxu0 }
 0x707   : > { %16463 = vst [vmem:[#allocation48_spill] sm:$0xff] %v12398_v25  ;;  %v12400_v53 = vpop.f32.mrb[45].mxu0 }
 0x708   : > { %16464 = vst [vmem:[#allocation49_spill] sm:$0xff] %v12400_v53  ;;  %v12402_v38 = vpop.f32.mrb[46].mxu0 }
 0x709   : > { %16465 = vst [vmem:[#allocation50_spill] sm:$0xff] %v12402_v38  ;;  %v12406_v54 = vpop.f32.mrb[47].mxu0  ;;  %v12523_v38 = vld [vmem:[%s16437_s0 + $0x20] sm:$0xff] }
 0x70a   : > { %16466 = vst [vmem:[#allocation51_spill] sm:$0xff] %v12406_v54 }
 0x735   : > { %v12410_v18 = vpop.f32.mrb[48].mxu0 }
 0x736   : > { %16467 = vst [vmem:[#allocation52_spill] sm:$0xff] %v12410_v18  ;;  %v12412_v31 = vpop.f32.mrb[49].mxu0 }
 0x737   : > { %16468 = vst [vmem:[#allocation53_spill] sm:$0xff] %v12412_v31  ;;  %v12414_v61 = vpop.f32.mrb[50].mxu0 }
 0x738   : > { %16469 = vst [vmem:[#allocation54_spill] sm:$0xff] %v12414_v61  ;;  %v12418_v60 = vpop.f32.mrb[51].mxu0 }
 0x739   : > { %16470 = vst [vmem:[#allocation55_spill] sm:$0xff] %v12418_v60 }
 0x76a   : > { %v12422_v46 = vpop.f32.mrb[52].mxu0 }
 0x76b   : > { %16471 = vst [vmem:[#allocation56_spill] sm:$0xff] %v12422_v46  ;;  %v12424_v28 = vpop.f32.mrb[53].mxu0 }
 0x76c   : > { %16472 = vst [vmem:[#allocation57_spill] sm:$0xff] %v12424_v28  ;;  %v12426_v26 = vpop.f32.mrb[54].mxu0 }
 0x76d   : > { %16473 = vst [vmem:[#allocation58_spill] sm:$0xff] %v12426_v26  ;;  %v12430_v48 = vpop.f32.mrb[55].mxu0 }
 0x76e   : > { %16474 = vst [vmem:[#allocation59_spill] sm:$0xff] %v12430_v48 }
 0x77a   : > { %v12434_v45 = vpop.f32.mrb[56].mxu0 }
 0x77b   : > { %16475 = vst [vmem:[#allocation60_spill] sm:$0xff] %v12434_v45  ;;  %v12436_v19 = vpop.f32.mrb[57].mxu0 }
 0x77c   : > { %16476 = vst [vmem:[#allocation61_spill] sm:$0xff] %v12436_v19  ;;  %v12438_v59 = vpop.f32.mrb[58].mxu0 }
 0x77d   : > { %16477 = vst [vmem:[#allocation62_spill] sm:$0xff] %v12438_v59  ;;  %v12442_v41 = vpop.f32.mrb[59].mxu0 }
 0x77e   : > { %16478 = vst [vmem:[#allocation63_spill] sm:$0xff] %v12442_v41 }
 0x782   : > { %v12446_v5 = vpop.f32.mrb[60].mxu0 }
 0x783   : > { %16479 = vst [vmem:[#allocation64_spill] sm:$0xff] %v12446_v5  ;;  %v12448_v12 = vpop.f32.mrb[61].mxu0 }
 0x784   : > { %16480 = vst [vmem:[#allocation65_spill] sm:$0xff] %v12448_v12  ;;  %v12450_v15 = vpop.f32.mrb[62].mxu0  ;;  %v16484_v12 = vld [vmem:[#allocation34_spill] sm:$0xff] }
 0x785   : > { %16481 = vst [vmem:[#allocation66_spill] sm:$0xff] %v12450_v15  ;;  %v12454_v55 = vpop.f32.mrb[63].mxu0 }
 0x786   : > { %16482 = vst [vmem:[#allocation67_spill] sm:$0xff] %v12454_v55 }
 0x78a   : > { %v9481_v16 = vpop.f32.mrb[64].mxu0 }
 0x78b   : > { %v12464_v0 = vadd.f32 %v12461_v27, %v9481_v16  ;;  %v2505_v62 = vpop.f32.mrb[65].mxu0 }
 0x78c   : > { %v9482_v56 = vpop.f32.mrb[66].mxu0  ;;  %v12481_v16 = vadd.f32 %v12478_v34, %v2505_v62  ;;  %v12496_v62 = vld [vmem:[%s16437_s0 + $0x38] sm:$0xff] }
 0x78d   : > { %2572 = vmax.xlane.f32.xlu0 %v12464_v0  ;;  %v2508_v3 = vpop.f32.mrb[67].mxu0 }
 0x78e   : > { %v12473_v20 = vadd.f32 %v12470_v51, %v2508_v3  ;;  %v12491_v3 = vadd.f32 %v12488_v39, %v9482_v56 }
 0x790   : > { %2570 = vmax.xlane.f32.xlu1 %v12473_v20 }
 0x791   : > { %2568 = vmax.xlane.f32.xlu0 %v12481_v16 }
 0x792   : > { %v9485_v22 = vpop.f32.mrb[68].mxu0 }
 0x793   : > { %v2521_v10 = vpop.f32.mrb[69].mxu0  ;;  %v12508_v56 = vadd.f32 %v12505_v2, %v9485_v22 }
 0x794   : > { %v9486_v63 = vpop.f32.mrb[70].mxu0  ;;  %v12526_v22 = vadd.f32 %v12523_v38, %v2521_v10  ;;  %v12541_v10 = vld [vmem:[%s16437_s0 + $0x50] sm:$0xff] }
 0x795   : > { %v12499_v42 = vadd.f32 %v12496_v62, %v9486_v63  ;;  %2574 = vmax.xlane.f32.xlu0 %v12491_v3  ;;  %v2524_v32 = vpop.f32.mrb[71].mxu0 }
 0x796   : > { %v12517_v63 = vadd.f32 %v12514_v36, %v2524_v32  ;;  %v12532_v32 = vld [vmem:[%s16437_s0 + $0x58] sm:$0xff] }
 0x797   : > { %2582 = vmax.xlane.f32.xlu1 %v12499_v42 }
 0x799   : > { %2580 = vmax.xlane.f32.xlu0 %v12508_v56 }
 0x79a   : > { %v9489_v25 = vpop.f32.mrb[72].mxu0 }
 0x79b   : > { %2578 = vmax.xlane.f32.xlu1 %v12517_v63  ;;  %v2537_v53 = vpop.f32.mrb[73].mxu0  ;;  %v12544_v7 = vadd.f32 %v12541_v10, %v9489_v25 }
 0x79c   : > { %v9490_v54 = vpop.f32.mrb[74].mxu0  ;;  %v12562_v25 = vadd.f32 %v12559_v21, %v2537_v53  ;;  %v12578_v53 = vld [vmem:[%s16437_s0 + $0x60] sm:$0xff] }
 0x79d   : > { %v12535_v24 = vadd.f32 %v12532_v32, %v9490_v54  ;;  %2576 = vmax.xlane.f32.xlu0 %v12526_v22  ;;  %v2540_v6 = vpop.f32.mrb[75].mxu0 }
 0x79e   : > { %v12553_v54 = vadd.f32 %v12550_v57, %v2540_v6  ;;  %v12569_v6 = vld [vmem:[%s16437_s0 + $0x70] sm:$0xff] }
 0x79f   : > { %2590 = vmax.xlane.f32.xlu1 %v12535_v24 }
 0x7a1   : > { %2588 = vmax.xlane.f32.xlu0 %v12544_v7 }
 0x7a2   : > { %v9493_v43 = vpop.f32.mrb[76].mxu0 }
 0x7a3   : > { %2586 = vmax.xlane.f32.xlu1 %v12553_v54  ;;  %v2553_v1 = vpop.f32.mrb[77].mxu0  ;;  %v12572_v35 = vadd.f32 %v12569_v6, %v9493_v43  ;;  %v12591_v43 = vld [vmem:[%s16437_s0 + $0x78] sm:$0xff] }
 0x7a4   : > { %v9494_v23 = vpop.f32.mrb[78].mxu0  ;;  %v12581_v52 = vadd.f32 %v12578_v53, %v2553_v1  ;;  %16485 = vst [vmem:[#allocation35_spill] sm:$0xff] %v12591_v43  ;;  %v12600_v1 = vld [vmem:[%s16437_s0 + $0x68] sm:$0xff] }
 0x7a5   : > { %2584 = vmax.xlane.f32.xlu0 %v12562_v25  ;;  %v2556_v17 = vpop.f32.mrb[79].mxu0  ;;  %v12594_v55 = vadd.f32 %v12591_v43, %v9494_v23  ;;  %16486 = vst [vmem:[#allocation34_spill] sm:$0xff] %v12600_v1 }
 0x7a9   : > { %2596 = vmax.xlane.f32.xlu0 %v12572_v35 }
 0x7ad   : > { %2592 = vmax.xlane.f32.xlu0 %v12581_v52 }
 0x7b4   : > { %2871 = vrot.lane.b32.xlu1 %v16483_v4, %s16306_s30  ;;  %v12603_v4 = vadd.f32 %v12600_v1, %v2556_v17 }
 0x7c3   : > { %2869 = vrot.lane.b32.xlu0 %v16484_v12, %s16306_s30  ;;  %v12606_v12 = vpop.permute.xlu1 %2867 }
 0x7d8   : > { %2598 = vmax.xlane.f32.xlu1 %v12594_v55 }
 0x7dc   : > { %2594 = vmax.xlane.f32.xlu1 %v12603_v4 }
 0x81a   : > { %v2573_v5 = vpop.xlane.xlu0 %2572 }
 0x81b   : > { %v2602_v15 = vsub.f32 %v12464_v0, %v2573_v5 }
 0x81d   : > { %v2620_v19 = vmul.f32 1.442695, %v2602_v15  ;;  %v2571_v23 = vpop.xlane.xlu1 %2570 }
 0x81e   : > { %v2601_v41 = vsub.f32 %v12473_v20, %v2571_v23  ;;  %v2569_v45 = vpop.xlane.xlu0 %2568 }
 0x81f   : > { %10360 = vpow2.f32 %v2620_v19  ;;  %v2600_v59 = vsub.f32 %v12481_v16, %v2569_v45 }
 0x820   : > { %v2618_v28 = vmul.f32 1.442695, %v2601_v41 }
 0x821   : > { %v2616_v48 = vmul.f32 1.442695, %v2600_v59 }
 0x822   : > { %10362 = vpow2.f32 %v2618_v28  ;;  %v2575_v17 = vpop.xlane.xlu0 %2574 }
 0x823   : > { %10364 = vpow2.f32 %v2616_v48  ;;  %v2603_v46 = vsub.f32 %v12491_v3, %v2575_v17 }
 0x824   : > { %v2583_v19 = vpop.xlane.xlu1 %2582 }
 0x825   : > { %v2622_v26 = vmul.f32 1.442695, %v2603_v46  ;;  %v16487_v46 = vld [vmem:[#allocation36_spill] sm:$0xff]  ;;  %v2607_v18 = vsub.f32 %v12499_v42, %v2583_v19 }
 0x826   : > { %v2581_v28 = vpop.xlane.xlu0 %2580 }
 0x827   : > { %10366 = vpow2.f32 %v2622_v26  ;;  %v16488_v26 = vld [vmem:[#allocation37_spill] sm:$0xff]  ;;  %v2606_v41 = vsub.f32 %v12508_v56, %v2581_v28  ;;  %v2630_v1 = vmul.f32 1.442695, %v2607_v18 }
 0x828   : > { %v2579_v5 = vpop.xlane.xlu1 %2578 }
 0x829   : > { %v12612_v31 = vpop.eup %10360  ;;  %v2628_v16 = vmul.f32 1.442695, %v2606_v41  ;;  %v2605_v23 = vsub.f32 %v12517_v63, %v2579_v5 }
 0x82a   : > { %2652 = vadd.xlane.f32.xlu1 %v12612_v31  ;;  %v2577_v48 = vpop.xlane.xlu0 %2576 }
 0x82b   : > { %v2604_v3 = vsub.f32 %v12526_v22, %v2577_v48  ;;  %10368 = vpow2.f32 %v2628_v16  ;;  %v2626_v61 = vmul.f32 1.442695, %v2605_v23 }
 0x82c   : > { %v12615_v0 = vpop.eup %10362  ;;  %v2591_v17 = vpop.xlane.xlu1 %2590 }
 0x82d   : > { %v12617_v20 = vpop.eup %10364  ;;  %2650 = vadd.xlane.f32.xlu0 %v12615_v0  ;;  %v2611_v42 = vsub.f32 %v12535_v24, %v2591_v17 }
 0x82e   : > { %2648 = vadd.xlane.f32.xlu1 %v12617_v20  ;;  %v2589_v59 = vpop.xlane.xlu0 %2588 }
 0x82f   : > { %v2638_v18 = vmul.f32 1.442695, %v2611_v42 }
 0x830   : > { %v2587_v43 = vpop.xlane.xlu1 %2586 }
 0x831   : > { %v12621_v45 = vpop.eup %10366 }
 0x832   : > { %2654 = vadd.xlane.f32.xlu1 %v12621_v45  ;;  %v2585_v15 = vpop.xlane.xlu0 %2584 }
 0x833   : > { %v2608_v22 = vsub.f32 %v12562_v25, %v2585_v15 }
 0x835   : > { %v2632_v19 = vmul.f32 1.442695, %v2608_v22  ;;  %v12637_v5 = vpop.eup %10368  ;;  %v2906_v22 = vsel %vm1514_vm1, %v12357_v9, 0 }
 0x836   : > { %v2597_v60 = vpop.xlane.xlu0 %2596 }
 0x837   : > { %v2614_v56 = vsub.f32 %v12572_v35, %v2597_v60 }
 0x839   : > { %v2644_v63 = vmul.f32 1.442695, %v2614_v56 }
 0x83a   : > { %v2593_v48 = vpop.xlane.xlu0 %2592 }
 0x83b   : > { %v2612_v41 = vsub.f32 %v12581_v52, %v2593_v48 }
 0x83d   : > { %v2640_v35 = vmul.f32 1.442695, %v2612_v41 }
 0x843   : > { %2873 = vrot.lane.b32.xlu0 %v16487_v46, %s16306_s30  ;;  %2875 = vrot.lane.b32.xlu1 %v16488_v26, %s16306_s30  ;;  %v2624_v46 = vmul.f32 1.442695, %v2604_v3  ;;  %v2610_v26 = vsub.f32 %v12544_v7, %v2589_v59  ;;  %v12639_v7 = vpop.permute.xlu1 %2871 }
 0x845   : > { %10370 = vpow2.f32 %v2624_v46  ;;  %v2636_v28 = vmul.f32 1.442695, %v2610_v26 }
 0x846   : > { %10372 = vpow2.f32 %v2626_v61  ;;  %v2609_v61 = vsub.f32 %v12553_v54, %v2587_v43 }
 0x847   : > { %10374 = vpow2.f32 %v2630_v1 }
 0x848   : > { %10376 = vpow2.f32 %v2636_v28  ;;  %v2634_v1 = vmul.f32 1.442695, %v2609_v61 }
 0x849   : > { %10378 = vpow2.f32 %v2644_v63 }
 0x84a   : > { %10380 = vpow2.f32 %v2632_v19 }
 0x84b   : > { %10382 = vpow2.f32 %v2640_v35 }
 0x84c   : > { %10384 = vpow2.f32 %v2638_v18 }
 0x84f   : > { %v12643_v60 = vpop.eup %10370 }
 0x850   : > { %v12645_v52 = vpop.eup %10372 }
 0x851   : > { %v12650_v15 = vpop.eup %10374 }
 0x852   : > { %v12652_v54 = vpop.eup %10376 }
 0x853   : > { %v12657_v3 = vpop.eup %10378 }
 0x854   : > { %v12659_v23 = vpop.eup %10380 }
 0x855   : > { %v12663_v17 = vpop.eup %10382 }
 0x856   : > { %v12665_v46 = vpop.eup %10384 }
 0x862   : > { %2660 = vadd.xlane.f32.xlu0 %v12637_v5 }
 0x865   : > { %v2599_v25 = vpop.xlane.xlu1 %2598 }
 0x866   : > { %v2615_v24 = vsub.f32 %v12594_v55, %v2599_v25  ;;  %2656 = vadd.xlane.f32.xlu0 %v12643_v60 }
 0x867   : > { %2658 = vadd.xlane.f32.xlu1 %v12645_v52 }
 0x868   : > { %v2646_v59 = vmul.f32 1.442695, %v2615_v24 }
 0x869   : > { %v2595_v16 = vpop.xlane.xlu1 %2594 }
 0x86a   : > { %10386 = vpow2.f32 %v2646_v59  ;;  %v2613_v43 = vsub.f32 %v12603_v4, %v2595_v16  ;;  %2662 = vadd.xlane.f32.xlu0 %v12650_v15 }
 0x86b   : > { %2668 = vadd.xlane.f32.xlu1 %v12652_v54  ;;  %10388 = vpow2.f32 %v2634_v1 }
 0x86c   : > { %v2642_v55 = vmul.f32 1.442695, %v2613_v43 }
 0x86e   : > { %2676 = vadd.xlane.f32.xlu0 %v12657_v3  ;;  %10390 = vpow2.f32 %v2642_v55 }
 0x86f   : > { %2664 = vadd.xlane.f32.xlu1 %v12659_v23 }
 0x872   : > { %2672 = vadd.xlane.f32.xlu0 %v12663_v17 }
 0x873   : > { %2670 = vadd.xlane.f32.xlu1 %v12665_v46 }
 0x874   : > { %v12669_v4 = vpop.eup %10386 }
 0x875   : > { %v12671_v26 = vpop.eup %10388 }
 0x876   : > { %2678 = vadd.xlane.f32.xlu0 %v12669_v4 }
 0x877   : > { %2666 = vadd.xlane.f32.xlu1 %v12671_v26 }
 0x878   : > { %v12675_v56 = vpop.eup %10390 }
 0x87b   : > { %2674 = vadd.xlane.f32.xlu1 %v12675_v56 }
 0x88c   : > { %2879 = vrot.lane.b32.xlu1 %v11755_v37, %s16306_s30  ;;  %2877 = vrot.lane.b32.xlu0 %v11744_v8, %s16306_s30 }
 0x890   : > { %2851 = vrot.lane.b32.xlu1 %v11785_v44, %s16302_s29  ;;  %2849 = vrot.lane.b32.xlu0 %v11670_v30, %s16302_s29  ;;  %v2870_v30 = vpop.permute.xlu0 %2869 }
 0x894   : > { %2855 = vrot.lane.b32.xlu1 %v11795_v50, %s16302_s29  ;;  %2853 = vrot.lane.b32.xlu0 %v11775_v14, %s16302_s29 }
 0x898   : > { %2859 = vrot.lane.b32.xlu1 %v11802_v58, %s16302_s29  ;;  %2857 = vrot.lane.b32.xlu0 %v11782_v40, %s16302_s29 }
 0x89c   : > { %2863 = vrot.lane.b32.xlu1 %v16444_v49, %s16302_s29  ;;  %2861 = vrot.lane.b32.xlu0 %v11792_v13, %s16302_s29 }
 0x8a0   : > { %3180 = vrot.lane.b32.xlu1 %v12294_v33, %s16302_s29  ;;  %3178 = vrot.lane.b32.xlu0 %v12272_v47, %s16302_s29 }
 0x8a4   : > { %3182 = vrot.lane.b32.xlu0 %v12280_v11, %s16302_s29 }
 0x8a8   : > { %3184 = vrot.lane.b32.xlu0 %v12302_v29, %s16302_s29 }
 0x8b7   : > { %v2653_v8 = vpop.xlane.xlu1 %2652 }
 0x8ba   : > { %v2651_v37 = vpop.xlane.xlu0 %2650 }
 0x8bb   : > { %10392 = vrcp.f32 %v2651_v37  ;;  %v2649_v14 = vpop.xlane.xlu1 %2648 }
 0x8bc   : > { %10394 = vrcp.f32 %v2649_v14 }
 0x8bd   : > { %10396 = vrcp.f32 %v2653_v8 }
 0x8be   : > { %v2874_v9 = vpop.permute.xlu0 %2873 }
 0x8bf   : > { %v2655_v40 = vpop.xlane.xlu1 %2654 }
 0x8c0   : > { %10398 = vrcp.f32 %v2655_v40 }
 0x8c5   : > { %v10393_v44 = vpop.eup %10392 }
 0x8c6   : > { %v10395_v13 = vpop.eup %10394  ;;  %v2697_v50 = vmul.f32 %v10393_v44, %v12615_v0  ;;  %v2909_v0 = vsel %vm1514_vm1, %v12606_v12, 0 }
 0x8c7   : > { %v2696_v58 = vmul.f32 %v10395_v13, %v12617_v20  ;;  %v10397_v47 = vpop.eup %10396  ;;  %v2915_v20 = vsel %vm1514_vm1, %v12639_v7, 0 }
 0x8c8   : > { %v2698_v33 = vmul.f32 %v10397_v47, %v12612_v31  ;;  %v2912_v31 = vsel %vm1514_vm1, %v2870_v30, 0 }
 0x8c9   : > { %v2712_v11 = vpack.c.bf16 %v2697_v50, %v2696_v58 }
 0x8ca   : > { %v10399_v49 = vpop.eup %10398 }
 0x8cb   : > { %v2699_v29 = vmul.f32 %v10399_v49, %v12621_v45  ;;  %9511 = vmatprep.mubr.bf16.mxu1 %v2712_v11  ;;  %v2918_v45 = vsel %vm1514_vm1, %v2874_v9, 0 }
 0x8cd   : > { %v2713_v28 = vpack.c.bf16 %v2699_v29, %v2698_v33 }
 0x8cf   : > { %9512 = vmatmul.mubr.bf16.vlgmr.msra.gmra.mrb[64].mxu1 %v2713_v28 }
 0x8d0   : > { %9528 = vmatpush3.bf16.xpose.msra.mxu1 %v2906_v22 }
 0x8d1   : > { %9987 = vmatprep.subr.msk.bf16.mxu1 %vm1514_vm1, %v12606_v12  ;;  %v2876_v12 = vpop.permute.xlu1 %2875 }
 0x8d2   : > { %v2921_v42 = vsel %vm1514_vm1, %v2876_v12, 0 }
 0x8d8   : > { %9530 = vmatpush3.bf16.xpose.msra.mxu1 %v2909_v0 }
 0x8d9   : > { %9988 = vmatprep.subr.msk.bf16.mxu1 %vm1514_vm1, %v2870_v30 }
 0x8e0   : > { %9532 = vmatpush3.bf16.xpose.msra.mxu1 %v2912_v31 }
 0x8e1   : > { %9989 = vmatprep.subr.msk.bf16.mxu1 %vm1514_vm1, %v12639_v7 }
 0x8e8   : > { %9534 = vmatpush3.bf16.xpose.msra.mxu1 %v2915_v20 }
 0x8e9   : > { %9990 = vmatprep.subr.msk.bf16.mxu1 %vm1514_vm1, %v2874_v9 }
 0x8ef   : > { %v2661_v48 = vpop.xlane.xlu0 %2660 }
 0x8f0   : > { %9536 = vmatpush3.bf16.xpose.msra.mxu1 %v2918_v45 }
 0x8f1   : > { %9991 = vmatprep.subr.msk.bf16.mxu1 %vm1514_vm1, %v2876_v12 }
 0x8f3   : > { %v2657_v63 = vpop.xlane.xlu0 %2656 }
 0x8f4   : > { %10400 = vrcp.f32 %v2657_v63  ;;  %v2659_v41 = vpop.xlane.xlu1 %2658 }
 0x8f5   : > { %10402 = vrcp.f32 %v2659_v41 }
 0x8f6   : > { %10404 = vrcp.f32 %v2661_v48 }
 0x8f7   : > { %v2663_v19 = vpop.xlane.xlu0 %2662 }
 0x8f8   : > { %9538 = vmatpush3.bf16.xpose.msra.mxu1 %v2921_v42  ;;  %10406 = vrcp.f32 %v2663_v19  ;;  %v2669_v7 = vpop.xlane.xlu1 %2668 }
 0x8fb   : > { %v2677_v35 = vpop.xlane.xlu0 %2676 }
 0x8fc   : > { %v2665_v18 = vpop.xlane.xlu1 %2664 }
 0x8fe   : > { %v10401_v61 = vpop.eup %10400 }
 0x8ff   : > { %v10403_v25 = vpop.eup %10402  ;;  %v2673_v24 = vpop.xlane.xlu0 %2672  ;;  %v2700_v1 = vmul.f32 %v10401_v61, %v12643_v60 }
 0x900   : > { %v10405_v59 = vpop.eup %10404  ;;  %v2671_v16 = vpop.xlane.xlu1 %2670  ;;  %v2701_v43 = vmul.f32 %v10403_v25, %v12645_v52 }
 0x901   : > { %10408 = vrcp.f32 %v2671_v16  ;;  %v2702_v37 = vmul.f32 %v10405_v59, %v12637_v5 }
 0x902   : > { %v10407_v55 = vpop.eup %10406  ;;  %v2714_v30 = vpack.c.bf16 %v2701_v43, %v2700_v1  ;;  %10410 = vrcp.f32 %v2665_v18 }
 0x903   : > { %v2679_v8 = vpop.xlane.xlu0 %2678  ;;  %v2703_v14 = vmul.f32 %v10407_v55, %v12650_v15  ;;  %10412 = vrcp.f32 %v2669_v7 }
 0x904   : > { %v2667_v40 = vpop.xlane.xlu1 %2666  ;;  %9515 = vmatprep.mubr.bf16.mxu1 %v2714_v30 }
 0x905   : > { %10414 = vrcp.f32 %v2667_v40  ;;  %v2715_v44 = vpack.c.bf16 %v2703_v14, %v2702_v37 }
 0x906   : > { %10416 = vrcp.f32 %v2673_v24 }
 0x907   : > { %9516 = vmatmul.mubr.bf16.gmra.mrb[68].mxu1 %v2715_v44  ;;  %v2878_v60 = vpop.permute.xlu0 %2877 }
 0x908   : > { %v2675_v13 = vpop.xlane.xlu1 %2674  ;;  %9992 = vmatprep.subr.msk.bf16.mxu1 %vm1514_vm1, %v2878_v60  ;;  %v2924_v52 = vsel %vm1514_vm1, %v2878_v60, 0 }
 0x909   : > { %10418 = vrcp.f32 %v2675_v13  ;;  %9540 = vmatpush3.bf16.xpose.msra.mxu1 %v2924_v52 }
 0x90a   : > { %10420 = vrcp.f32 %v2679_v8 }
 0x90b   : > { %v2850_v50 = vpop.permute.xlu0 %2849  ;;  %v10409_v5 = vpop.eup %10408  ;;  %10422 = vrcp.f32 %v2677_v35 }
 0x90c   : > { %v2880_v15 = vpop.permute.xlu1 %2879  ;;  %v10411_v58 = vpop.eup %10410  ;;  %v2707_v33 = vmul.f32 %v10409_v5, %v12665_v46 }
 0x90d   : > { %9993 = vmatprep.subr.msk.bf16.mxu1 %vm1514_vm1, %v2880_v15  ;;  %v10413_v47 = vpop.eup %10412  ;;  %v2927_v28 = vsel %vm1514_vm1, %v2880_v15, 0  ;;  %v2704_v22 = vmul.f32 %v10411_v58, %v12659_v23 }
 0x90e   : > { %v2706_v20 = vmul.f32 %v10413_v47, %v12652_v54 }
 0x90f   : > { %v10415_v11 = vpop.eup %10414  ;;  %v2854_v49 = vpop.permute.xlu0 %2853 }
 0x910   : > { %v2852_v29 = vpop.permute.xlu1 %2851  ;;  %v2705_v0 = vmul.f32 %v10415_v11, %v12671_v26  ;;  %v10417_v31 = vpop.eup %10416  ;;  %v2717_v12 = vpack.c.bf16 %v2707_v33, %v2706_v20 }
 0x911   : > { %9542 = vmatpush3.bf16.xpose.msra.mxu1 %v2927_v28  ;;  %v2708_v46 = vmul.f32 %v10417_v31, %v12663_v17 }
 0x912   : > { %v2716_v9 = vpack.c.bf16 %v2705_v0, %v2704_v22 }
 0x913   : > { %v10419_v45 = vpop.eup %10418  ;;  %v2858_v48 = vpop.permute.xlu0 %2857 }
 0x914   : > { %v10421_v63 = vpop.eup %10420  ;;  %v2856_v41 = vpop.permute.xlu1 %2855  ;;  %9519 = vmatprep.mubr.bf16.mxu1 %v2716_v9  ;;  %v2709_v42 = vmul.f32 %v10419_v45, %v12675_v56 }
 0x915   : > { %9520 = vmatmul.mubr.bf16.gmra.mrb[72].mxu1 %v2717_v12  ;;  %v10423_v19 = vpop.eup %10422  ;;  %v2711_v26 = vmul.f32 %v10421_v63, %v12669_v4 }
 0x916   : > { %v2718_v23 = vpack.c.bf16 %v2709_v42, %v2708_v46  ;;  %v2710_v54 = vmul.f32 %v10423_v19, %v12657_v3  ;;  %v16489_v3 = vmov 0  }
 0x917   : > { %v2862_v7 = vpop.permute.xlu0 %2861 }
 0x918   : > { %v2860_v35 = vpop.permute.xlu1 %2859  ;;  %9523 = vmatprep.mubr.bf16.mxu1 %v2718_v23  ;;  %v2719_v61 = vpack.c.bf16 %v2711_v26, %v2710_v54 }
 0x91b   : > { %v3179_v18 = vpop.permute.xlu0 %3178 }
 0x91c   : > { %v2864_v25 = vpop.permute.xlu1 %2863  ;;  %9559 = vmatprep.subr.bf16.mxu0 %v3179_v18 }
 0x91d   : > { %9524 = vmatmul.mubr.bf16.gmra.mrb[76].mxu1 %v2719_v61  ;;  %9560 = vmatpush3.bf16.msra.mxu0 %v3179_v18  ;;  %v10996_v18 = vld [vmem:[#allocation2 + $0x58] sm:$0xff]  ;;  %v16490_v61 = vld [vmem:[#allocation35_spill] sm:$0xff] }
 0x91e   : > { %9543 = vmatprep.mubr.msk.bf16.mxu1 %vm1514_vm1, %v2850_v50 }
 0x91f   : > { %v3183_v17 = vpop.permute.xlu0 %3182 }
 0x920   : > { %v3181_v56 = vpop.permute.xlu1 %3180 }
 0x921   : > { %9561 = vmatprep.subr.bf16.mxu0 %v3181_v56 }
 0x922   : > { %9562 = vmatpush3.bf16.msra.mxu0 %v3181_v56 }
 0x923   : > { %9563 = vmatprep.subr.bf16.mxu0 %v3183_v17  ;;  %v3185_v4 = vpop.permute.xlu0 %3184 }
 0x925   : > { %9544 = vmatmul.mubr.msk.bf16.vlgmr.msra.gmra.mrb[80].mxu1 %vm1514_vm1, %v2852_v29 }
 0x926   : > { %9547 = vmatprep.mubr.msk.bf16.mxu1 %vm1514_vm1, %v2854_v49  ;;  %9564 = vmatpush3.bf16.msra.mxu0 %v3183_v17 }
 0x927   : > { %9565 = vmatprep.subr.bf16.mxu0 %v3185_v4 }
 0x92a   : > { %9566 = vmatpush3.bf16.msra.mxu0 %v3185_v4 }
 0x92d   : > { %9548 = vmatmul.mubr.msk.bf16.gmra.mrb[84].mxu1 %vm1514_vm1, %v2856_v41 }
 0x92e   : > { %9551 = vmatprep.mubr.msk.bf16.mxu1 %vm1514_vm1, %v2858_v48 }
 0x935   : > { %9552 = vmatmul.mubr.msk.bf16.gmra.mrb[88].mxu1 %vm1514_vm1, %v2860_v35 }
 0x936   : > { %9555 = vmatprep.mubr.msk.bf16.mxu1 %vm1514_vm1, %v2862_v7 }
 0x93d   : > { %9556 = vmatmul.mubr.msk.bf16.gmra.mrb[92].mxu1 %vm1514_vm1, %v2864_v25 }
 0x93e   : > { %4006 = vmatprep.mubr.bf16.mxu1 %v16489_v3 }
 0x9a2   : > { %v12751_v24 = vpop.f32.mrb[64].mxu1 }
 0x9a3   : > { %v12753_v1 = vpop.f32.mrb[65].mxu1 }
 0x9a4   : > { %v12755_v59 = vpop.f32.mrb[66].mxu1 }
 0x9a5   : > { %v2842_v16 = vpack.c.bf16 %v12755_v59, %v12751_v24  ;;  %v12759_v43 = vpop.f32.mrb[67].mxu1 }
 0x9a6   : > { %v2841_v55 = vpack.c.bf16 %v12759_v43, %v12753_v1 }
 0x9da   : > { %v12763_v30 = vpop.f32.mrb[68].mxu1 }
 0x9db   : > { %v12765_v8 = vpop.f32.mrb[69].mxu1 }
 0x9dc   : > { %v12767_v37 = vpop.f32.mrb[70].mxu1 }
 0x9dd   : > { %v2844_v14 = vpack.c.bf16 %v12767_v37, %v12763_v30  ;;  %v12771_v40 = vpop.f32.mrb[71].mxu1 }
 0x9de   : > { %v2843_v44 = vpack.c.bf16 %v12771_v40, %v12765_v8 }
 0x9e8   : > { %v12775_v60 = vpop.f32.mrb[72].mxu1 }
 0x9e9   : > { %v12777_v13 = vpop.f32.mrb[73].mxu1 }
 0x9ea   : > { %v12779_v52 = vpop.f32.mrb[74].mxu1 }
 0x9eb   : > { %v2846_v50 = vpack.c.bf16 %v12779_v52, %v12775_v60  ;;  %v12783_v5 = vpop.f32.mrb[75].mxu1  ;;  %v16514_v60 = vld [vmem:[#allocation64_spill] sm:$0xff] }
 0x9ec   : > { %v2845_v15 = vpack.c.bf16 %v12783_v5, %v12777_v13  ;;  %v16516_v13 = vld [vmem:[#allocation67_spill] sm:$0xff]  ;;  %v16517_v5 = vld [vmem:[#allocation65_spill] sm:$0xff] }
 0x9f0   : > { %v12787_v58 = vpop.f32.mrb[76].mxu1 }
 0x9f1   : > { %v12789_v47 = vpop.f32.mrb[77].mxu1 }
 0x9f2   : > { %v12791_v11 = vpop.f32.mrb[78].mxu1 }
 0x9f3   : > { %v2848_v49 = vpack.c.bf16 %v12791_v11, %v12787_v58  ;;  %v12795_v33 = vpop.f32.mrb[79].mxu1  ;;  %v16522_v11 = vld [vmem:[#allocation40_spill] sm:$0xff] }
 0x9f4   : > { %v2847_v29 = vpack.c.bf16 %v12795_v33, %v12789_v47 }
 0x9f8   : > { %v9545_v28 = vpop.f32.mrb[80].mxu1 }
 0x9f9   : > { %v2972_v22 = vadd.f32 %v12461_v27, %v9545_v28  ;;  %v2963_v0 = vpop.f32.mrb[81].mxu1 }
 0x9fa   : > { %v9546_v31 = vpop.f32.mrb[82].mxu1  ;;  %v2964_v45 = vadd.f32 %v12478_v34, %v2963_v0 }
 0x9fb   : > { %3030 = vmax.xlane.f32.xlu0 %v2972_v22  ;;  %v2966_v20 = vpop.f32.mrb[83].mxu1  ;;  %v2975_v12 = vadd.f32 %v12488_v39, %v9546_v31 }
 0x9fc   : > { %v2967_v9 = vadd.f32 %v12470_v51, %v2966_v20 }
 0x9fe   : > { %3028 = vmax.xlane.f32.xlu1 %v2967_v9 }
 0x9ff   : > { %3026 = vmax.xlane.f32.xlu0 %v2964_v45 }
 0xa00   : > { %v9549_v48 = vpop.f32.mrb[84].mxu1 }
 0xa01   : > { %v2979_v63 = vpop.f32.mrb[85].mxu1  ;;  %v2988_v27 = vadd.f32 %v12505_v2, %v9549_v48 }
 0xa02   : > { %v9550_v41 = vpop.f32.mrb[86].mxu1  ;;  %v2980_v34 = vadd.f32 %v12523_v38, %v2979_v63 }
 0xa03   : > { %v2991_v46 = vadd.f32 %v12496_v62, %v9550_v41  ;;  %3032 = vmax.xlane.f32.xlu0 %v2975_v12  ;;  %v2982_v42 = vpop.f32.mrb[87].mxu1 }
 0xa04   : > { %v12806_v19 = vadd.f32 %v12514_v36, %v2982_v42 }
 0xa05   : > { %3040 = vmax.xlane.f32.xlu1 %v2991_v46 }
 0xa07   : > { %3038 = vmax.xlane.f32.xlu0 %v2988_v27 }
 0xa08   : > { %v9553_v51 = vpop.f32.mrb[88].mxu1 }
 0xa09   : > { %3036 = vmax.xlane.f32.xlu1 %v12806_v19  ;;  %v2995_v23 = vpop.f32.mrb[89].mxu1  ;;  %v12814_v26 = vadd.f32 %v12541_v10, %v9553_v51 }
 0xa0a   : > { %v9554_v39 = vpop.f32.mrb[90].mxu1  ;;  %v12822_v2 = vadd.f32 %v12559_v21, %v2995_v23  ;;  %v10997_v21 = vld [vmem:[#allocation2 + $0x48] sm:$0xff] }
 0xa0b   : > { %v12811_v7 = vadd.f32 %v12532_v32, %v9554_v39  ;;  %3034 = vmax.xlane.f32.xlu0 %v2980_v34  ;;  %v2998_v62 = vpop.f32.mrb[91].mxu1 }
 0xa0c   : > { %v12818_v36 = vadd.f32 %v12550_v57, %v2998_v62 }
 0xa0d   : > { %3048 = vmax.xlane.f32.xlu1 %v12811_v7 }
 0xa0f   : > { %3046 = vmax.xlane.f32.xlu0 %v12814_v26 }
 0xa10   : > { %v9557_v38 = vpop.f32.mrb[92].mxu1 }
 0xa11   : > { %3044 = vmax.xlane.f32.xlu1 %v12818_v36  ;;  %v3011_v32 = vpop.f32.mrb[93].mxu1  ;;  %v12827_v10 = vadd.f32 %v12569_v6, %v9557_v38  ;;  %v16491_v6 = vld [vmem:[#allocation34_spill] sm:$0xff] }
 0xa12   : > { %v9558_v35 = vpop.f32.mrb[94].mxu1  ;;  %v12831_v57 = vadd.f32 %v12578_v53, %v3011_v32 }
 0xa13   : > { %3042 = vmax.xlane.f32.xlu0 %v12822_v2  ;;  %v3014_v54 = vpop.f32.mrb[95].mxu1  ;;  %v12837_v25 = vadd.f32 %v16490_v61, %v9558_v35 }
 0xa14   : > { %v12841_v17 = vadd.f32 %v16491_v6, %v3014_v54 }
 0xa17   : > { %3054 = vmax.xlane.f32.xlu0 %v12827_v10 }
 0xa1b   : > { %3050 = vmax.xlane.f32.xlu0 %v12831_v57 }
 0xa22   : > { %3188 = vrot.lane.b32.xlu1 %v10996_v18, %s16302_s29 }
 0xa31   : > { %3186 = vrot.lane.b32.xlu0 %v10997_v21, %s16302_s29 }
 0xa46   : > { %3056 = vmax.xlane.f32.xlu1 %v12837_v25 }
 0xa4a   : > { %3052 = vmax.xlane.f32.xlu1 %v12841_v17 }
 0xa88   : > { %v3031_v53 = vpop.xlane.xlu0 %3030 }
 0xa89   : > { %v3060_v56 = vsub.f32 %v2972_v22, %v3031_v53 }
 0xa8b   : > { %v3078_v4 = vmul.f32 1.442695, %v3060_v56  ;;  %v3029_v0 = vpop.xlane.xlu1 %3028 }
 0xa8c   : > { %v3027_v28 = vpop.xlane.xlu0 %3026  ;;  %v3059_v48 = vsub.f32 %v2967_v9, %v3029_v0 }
 0xa8d   : > { %10424 = vpow2.f32 %v3078_v4  ;;  %v3058_v31 = vsub.f32 %v2964_v45, %v3027_v28 }
 0xa8e   : > { %v3076_v23 = vmul.f32 1.442695, %v3059_v48 }
 0xa8f   : > { %v3074_v20 = vmul.f32 1.442695, %v3058_v31 }
 0xa90   : > { %v3033_v63 = vpop.xlane.xlu0 %3032 }
 0xa91   : > { %10426 = vpow2.f32 %v3074_v20  ;;  %v3061_v41 = vsub.f32 %v2975_v12, %v3033_v63 }
 0xa92   : > { %v3041_v42 = vpop.xlane.xlu1 %3040 }
 0xa93   : > { %v3080_v51 = vmul.f32 1.442695, %v3061_v41  ;;  %v3065_v39 = vsub.f32 %v2991_v46, %v3041_v42  ;;  %v10998_v41 = vld [vmem:[#allocation2 + $0x78] sm:$0xff]  ;;  %v10999_v42 = vld [vmem:[#allocation2 + $0x68] sm:$0xff] }
 0xa94   : > { %v3039_v62 = vpop.xlane.xlu0 %3038 }
 0xa95   : > { %10428 = vpow2.f32 %v3080_v51  ;;  %v3064_v38 = vsub.f32 %v2988_v27, %v3039_v62  ;;  %v3088_v54 = vmul.f32 1.442695, %v3065_v39 }
 0xa96   : > { %v3037_v32 = vpop.xlane.xlu1 %3036  ;;  %10430 = vpow2.f32 %v3076_v23 }
 0xa97   : > { %v12844_v35 = vpop.eup %10424  ;;  %v3086_v22 = vmul.f32 1.442695, %v3064_v38  ;;  %v3063_v9 = vsub.f32 %v12806_v19, %v3037_v32 }
 0xa98   : > { %3110 = vadd.xlane.f32.xlu1 %v12844_v35  ;;  %v3035_v45 = vpop.xlane.xlu0 %3034 }
 0xa99   : > { %10432 = vpow2.f32 %v3086_v22  ;;  %v3062_v12 = vsub.f32 %v2980_v34, %v3035_v45  ;;  %v3084_v27 = vmul.f32 1.442695, %v3063_v9 }
 0xa9a   : > { %10434 = vpow2.f32 %v3088_v54  ;;  %v3049_v56 = vpop.xlane.xlu1 %3048 }
 0xa9b   : > { %v12848_v18 = vpop.eup %10426  ;;  %v3082_v21 = vmul.f32 1.442695, %v3062_v12  ;;  %v3069_v23 = vsub.f32 %v12811_v7, %v3049_v56 }
 0xa9c   : > { %3106 = vadd.xlane.f32.xlu1 %v12848_v18  ;;  %v3047_v46 = vpop.xlane.xlu0 %3046 }
 0xa9d   : > { %10436 = vpow2.f32 %v3082_v21  ;;  %v3096_v38 = vmul.f32 1.442695, %v3069_v23  ;;  %v3068_v32 = vsub.f32 %v12814_v26, %v3047_v46 }
 0xa9e   : > { %10438 = vpow2.f32 %v3084_v27  ;;  %v3045_v0 = vpop.xlane.xlu1 %3044 }
 0xa9f   : > { %v12851_v61 = vpop.eup %10428  ;;  %v3067_v39 = vsub.f32 %v12818_v36, %v3045_v0  ;;  %v3094_v45 = vmul.f32 1.442695, %v3068_v32 }
 0xaa0   : > { %3112 = vadd.xlane.f32.xlu1 %v12851_v61  ;;  %v3043_v6 = vpop.xlane.xlu0 %3042  ;;  %v12854_v53 = vpop.eup %10430 }
 0xaa1   : > { %v3066_v51 = vsub.f32 %v12822_v2, %v3043_v6  ;;  %v3092_v22 = vmul.f32 1.442695, %v3067_v39 }
 0xaa2   : > { %v3189_v63 = vpop.permute.xlu1 %3188 }
 0xaa3   : > { %v12856_v19 = vpop.eup %10432  ;;  %v3090_v62 = vmul.f32 1.442695, %v3066_v51 }
 0xaa4   : > { %3108 = vadd.xlane.f32.xlu1 %v12854_v53  ;;  %3118 = vadd.xlane.f32.xlu0 %v12856_v19  ;;  %v3055_v34 = vpop.xlane.xlu0 %3054  ;;  %v12860_v4 = vpop.eup %10434 }
 0xaa5   : > { %10440 = vpow2.f32 %v3090_v62  ;;  %v3072_v7 = vsub.f32 %v12827_v10, %v3055_v34 }
 0xaa6   : > { %10442 = vpow2.f32 %v3096_v38 }
 0xaa7   : > { %v12862_v28 = vpop.eup %10436  ;;  %10444 = vpow2.f32 %v3092_v22  ;;  %v3102_v46 = vmul.f32 1.442695, %v3072_v7 }
 0xaa8   : > { %3120 = vadd.xlane.f32.xlu0 %v12860_v4  ;;  %3114 = vadd.xlane.f32.xlu1 %v12862_v28  ;;  %v3051_v31 = vpop.xlane.xlu0 %3050  ;;  %v12866_v20 = vpop.eup %10438  ;;  %10446 = vpow2.f32 %v3094_v45 }
 0xaa9   : > { %v3070_v9 = vsub.f32 %v12831_v57, %v3051_v31  ;;  %v16492_v31 = vld [vmem:[#allocation54_spill] sm:$0xff] }
 0xaab   : > { %v3098_v36 = vmul.f32 1.442695, %v3070_v9 }
 0xaac   : > { %3116 = vadd.xlane.f32.xlu0 %v12866_v20  ;;  %v3187_v48 = vpop.permute.xlu0 %3186 }
 0xaad   : > { %9567 = vmatprep.subr.bf16.mxu0 %v3187_v48 }
 0xaae   : > { %9568 = vmatpush3.bf16.msra.mxu0 %v3187_v48  ;;  %v16493_v48 = vld [vmem:[#allocation52_spill] sm:$0xff] }
 0xaaf   : > { %9569 = vmatprep.subr.bf16.mxu0 %v3189_v63  ;;  %v12879_v6 = vpop.eup %10440 }
 0xab0   : > { %v12882_v56 = vpop.eup %10442 }
 0xab1   : > { %v12884_v57 = vpop.eup %10444 }
 0xab2   : > { %9570 = vmatpush3.bf16.msra.mxu0 %v3189_v63  ;;  %v12888_v10 = vpop.eup %10446  ;;  %v16494_v63 = vpack.c.bf16 %v16492_v31, %v16493_v48 }
 0xab9   : > { %3192 = vrot.lane.b32.xlu1 %v10998_v41, %s16302_s29  ;;  %v16495_v41 = vld [vmem:[#allocation55_spill] sm:$0xff] }
 0xac2   : > { %3190 = vrot.lane.b32.xlu0 %v10999_v42, %s16302_s29  ;;  %v16496_v42 = vld [vmem:[#allocation53_spill] sm:$0xff]  ;;  %s16587_s29 = smov 96  }
 0xac3   : > { %v16497_v51 = vpack.c.bf16 %v16495_v41, %v16496_v42 }
 0xad3   : > { %v3057_v54 = vpop.xlane.xlu1 %3056 }
 0xad4   : > { %v3073_v21 = vsub.f32 %v12837_v25, %v3057_v54 }
 0xad6   : > { %v3104_v26 = vmul.f32 1.442695, %v3073_v21 }
 0xad7   : > { %v3053_v12 = vpop.xlane.xlu1 %3052 }
 0xad8   : > { %v3071_v2 = vsub.f32 %v12841_v17, %v3053_v12 }
 0xada   : > { %v3100_v27 = vmul.f32 1.442695, %v3071_v2 }
 0xadc   : > { %10448 = vpow2.f32 %v3100_v27 }
 0xadd   : > { %3122 = vadd.xlane.f32.xlu1 %v12879_v6  ;;  %10450 = vpow2.f32 %v3098_v36 }
 0xade   : > { %10452 = vpow2.f32 %v3104_v26 }
 0xadf   : > { %10454 = vpow2.f32 %v3102_v46 }
 0xae1   : > { %3124 = vadd.xlane.f32.xlu0 %v12884_v57  ;;  %3128 = vadd.xlane.f32.xlu1 %v12882_v56 }
 0xae5   : > { %3126 = vadd.xlane.f32.xlu0 %v12888_v10 }
 0xae6   : > { %v12891_v25 = vpop.eup %10448 }
 0xae7   : > { %3132 = vadd.xlane.f32.xlu1 %v12891_v25  ;;  %v12894_v17 = vpop.eup %10450 }
 0xae8   : > { %v12897_v34 = vpop.eup %10452 }
 0xae9   : > { %3130 = vadd.xlane.f32.xlu0 %v12894_v17  ;;  %v12900_v0 = vpop.eup %10454 }
 0xaeb   : > { %3136 = vadd.xlane.f32.xlu1 %v12897_v34 }
 0xaed   : > { %3134 = vadd.xlane.f32.xlu0 %v12900_v0 }
 0xafc   : > { %3317 = vrot.lane.b32.xlu1 %v16494_v63, %s16306_s30 }
 0xb00   : > { %3339 = vrot.lane.b32.xlu1 %v2841_v55, %s16304_s1 }
 0xb03   : > { %3315 = vrot.lane.b32.xlu0 %v16497_v51, %s16306_s30  ;;  %s16579_s30 = smov 112  }
 0xb04   : > { %3341 = vrot.lane.b32.xlu1 %v2842_v16, %s16304_s1  ;;  %s16499_s1 = smov 16  }
 0xb25   : > { %v3111_v23 = vpop.xlane.xlu1 %3110 }
 0xb29   : > { %v3107_v39 = vpop.xlane.xlu1 %3106 }
 0xb2a   : > { %10456 = vrcp.f32 %v3107_v39 }
 0xb2d   : > { %v3113_v62 = vpop.xlane.xlu1 %3112 }
 0xb31   : > { %v3109_v38 = vpop.xlane.xlu1 %3108  ;;  %v3119_v32 = vpop.xlane.xlu0 %3118 }
 0xb32   : > { %10458 = vrcp.f32 %v3109_v38 }
 0xb33   : > { %10460 = vrcp.f32 %v3113_v62 }
 0xb34   : > { %10462 = vrcp.f32 %v3111_v23  ;;  %v10457_v22 = vpop.eup %10456 }
 0xb35   : > { %v3115_v1 = vpop.xlane.xlu1 %3114  ;;  %v3121_v43 = vpop.xlane.xlu0 %3120  ;;  %v3154_v59 = vmul.f32 %v10457_v22, %v12848_v18 }
 0xb36   : > { %10464 = vrcp.f32 %v3115_v1 }
 0xb39   : > { %v3117_v55 = vpop.xlane.xlu0 %3116  ;;  %v3193_v12 = vpop.permute.xlu1 %3192 }
 0xb3a   : > { %10466 = vrcp.f32 %v3117_v55 }
 0xb3b   : > { %10468 = vrcp.f32 %v3121_v43 }
 0xb3c   : > { %v10459_v54 = vpop.eup %10458  ;;  %10470 = vrcp.f32 %v3119_v32 }
 0xb3d   : > { %v10461_v45 = vpop.eup %10460  ;;  %v3191_v24 = vpop.permute.xlu0 %3190  ;;  %v3155_v16 = vmul.f32 %v10459_v54, %v12854_v53 }
 0xb3e   : > { %9571 = vmatprep.subr.bf16.mxu0 %v3191_v24  ;;  %v10463_v9 = vpop.eup %10462  ;;  %v3157_v2 = vmul.f32 %v10461_v45, %v12851_v61 }
 0xb3f   : > { %9572 = vmatpush3.bf16.msra.mxu0 %v3191_v24  ;;  %v3170_v21 = vpack.c.bf16 %v3155_v16, %v3154_v59  ;;  %v3156_v36 = vmul.f32 %v10463_v9, %v12844_v35 }
 0xb40   : > { %9573 = vmatprep.subr.bf16.mxu0 %v3193_v12  ;;  %v10465_v7 = vpop.eup %10464 }
 0xb41   : > { %9575 = vmatprep.mubr.bf16.mxu0 %v3170_v21  ;;  %v3171_v26 = vpack.c.bf16 %v3157_v2, %v3156_v36  ;;  %v3158_v18 = vmul.f32 %v10465_v7, %v12862_v28 }
 0xb43   : > { %9574 = vmatpush3.bf16.msra.mxu0 %v3193_v12 }
 0xb44   : > { %v10467_v27 = vpop.eup %10466 }
 0xb45   : > { %v10469_v46 = vpop.eup %10468  ;;  %v3159_v53 = vmul.f32 %v10467_v27, %v12866_v20 }
 0xb46   : > { %9576 = vmatmul.mubr.bf16.vlgmr.msra.gmra.mrb[80].mxu0 %v3171_v26  ;;  %v10471_v31 = vpop.eup %10470  ;;  %v3161_v63 = vmul.f32 %v10469_v46, %v12860_v4 }
 0xb47   : > { %v3172_v48 = vpack.c.bf16 %v3159_v53, %v3158_v18  ;;  %v3160_v61 = vmul.f32 %v10471_v31, %v12856_v19  ;;  %v16500_v53 = vld [vmem:[#allocation58_spill] sm:$0xff]  ;;  %v16501_v31 = vld [vmem:[#allocation56_spill] sm:$0xff] }
 0xb49   : > { %9579 = vmatprep.mubr.bf16.mxu0 %v3172_v48  ;;  %v3173_v41 = vpack.c.bf16 %v3161_v63, %v3160_v61  ;;  %v16502_v48 = vpack.c.bf16 %v16500_v53, %v16501_v31  ;;  %v16503_v61 = vld [vmem:[#allocation59_spill] sm:$0xff]  ;;  %v16529_v53 = vld [vmem:[#allocation32_spill] sm:$0xff] }
 0xb4e   : > { %9580 = vmatmul.mubr.bf16.gmra.mrb[84].mxu0 %v3173_v41  ;;  %v16504_v41 = vld [vmem:[#allocation57_spill] sm:$0xff] }
 0xb6a   : > { %v3123_v42 = vpop.xlane.xlu1 %3122 }
 0xb6b   : > { %10472 = vrcp.f32 %v3123_v42  ;;  %v16505_v42 = vpack.c.bf16 %v16503_v61, %v16504_v41 }
 0xb6e   : > { %v3129_v35 = vpop.xlane.xlu1 %3128  ;;  %v3125_v51 = vpop.xlane.xlu0 %3124 }
 0xb6f   : > { %10474 = vrcp.f32 %v3125_v51 }
 0xb70   : > { %10476 = vrcp.f32 %v3129_v35 }
 0xb72   : > { %v3127_v23 = vpop.xlane.xlu0 %3126 }
 0xb73   : > { %10478 = vrcp.f32 %v3127_v23 }
 0xb74   : > { %v3133_v28 = vpop.xlane.xlu1 %3132 }
 0xb75   : > { %10480 = vrcp.f32 %v3133_v28  ;;  %v10473_v39 = vpop.eup %10472 }
 0xb76   : > { %v3131_v20 = vpop.xlane.xlu0 %3130  ;;  %v3162_v32 = vmul.f32 %v10473_v39, %v12879_v6  ;;  %v16508_v39 = vld [vmem:[#allocation60_spill] sm:$0xff] }
 0xb77   : > { %10482 = vrcp.f32 %v3131_v20  ;;  %v16507_v20 = vld [vmem:[#allocation62_spill] sm:$0xff] }
 0xb78   : > { %v3137_v62 = vpop.xlane.xlu1 %3136 }
 0xb79   : > { %10484 = vrcp.f32 %v3137_v62  ;;  %v10475_v4 = vpop.eup %10474  ;;  %v16509_v62 = vpack.c.bf16 %v16507_v20, %v16508_v39  ;;  %v16531_v39 = vld [vmem:[#allocation47_spill] sm:$0xff] }
 0xb7a   : > { %v3135_v38 = vpop.xlane.xlu0 %3134  ;;  %v10477_v19 = vpop.eup %10476  ;;  %v3163_v1 = vmul.f32 %v10475_v4, %v12884_v57  ;;  %v16510_v4 = vld [vmem:[#allocation63_spill] sm:$0xff] }
 0xb7b   : > { %10486 = vrcp.f32 %v3135_v38  ;;  %v3165_v54 = vmul.f32 %v10477_v19, %v12882_v56  ;;  %v10124_v56 = vld [vmem:[%s16200_s8] sm:$0xff]  }
 0xb7c   : > { %v3174_v55 = vpack.c.bf16 %v3163_v1, %v3162_v32  ;;  %9591 = vmatprep.subr.bf16.mxu0 %v10124_v56  ;;  %v16511_v38 = vld [vmem:[#allocation61_spill] sm:$0xff]  ;;  %v16513_v1 = vld [vmem:[#allocation66_spill] sm:$0xff] }
 0xb7d   : > { %v10479_v43 = vpop.eup %10478  ;;  %9592 = vmatpush3.bf16.msra.mxu0 %v10124_v56  ;;  %v16512_v19 = vpack.c.bf16 %v16510_v4, %v16511_v38  ;;  %v16515_v52 = vpack.c.bf16 %v16513_v1, %v16514_v60 }
 0xb7e   : > { %v3164_v22 = vmul.f32 %v10479_v43, %v12888_v10  ;;  %9583 = vmatprep.mubr.bf16.mxu0 %v3174_v55 }
 0xb7f   : > { %v10481_v45 = vpop.eup %10480 }
 0xb80   : > { %v3175_v24 = vpack.c.bf16 %v3165_v54, %v3164_v22  ;;  %v3167_v9 = vmul.f32 %v10481_v45, %v12891_v25  ;;  %v10126_v25 = vld [vmem:[%s16200_s8 + $0x10] sm:$0xff]   ;;  %v3318_v45 = vpop.permute.xlu1 %3317 }
 0xb81   : > { %v10483_v59 = vpop.eup %10482 }
 0xb82   : > { %9584 = vmatmul.mubr.bf16.gmra.mrb[88].mxu0 %v3175_v24  ;;  %v3166_v16 = vmul.f32 %v10483_v59, %v12894_v17  ;;  %v10125_v17 = vld [vmem:[%s16200_s8 + $0x8] sm:$0xff]   ;;  %v3316_v59 = vpop.permute.xlu0 %3315 }
 0xb83   : > { %v10485_v12 = vpop.eup %10484  ;;  %9593 = vmatprep.subr.bf16.mxu0 %v10125_v17 }
 0xb84   : > { %v3176_v21 = vpack.c.bf16 %v3167_v9, %v3166_v16  ;;  %v3169_v2 = vmul.f32 %v10485_v12, %v12897_v34  ;;  %9594 = vmatpush3.bf16.msra.mxu0 %v10125_v17  ;;  %v10127_v34 = vld [vmem:[%s16200_s8 + $0x18] sm:$0xff]   ;;  %v3340_v24 = vpop.permute.xlu1 %3339  ;;  %v16519_v9 = vld [vmem:[#allocation41_spill] sm:$0xff]  ;;  %v16520_v12 = vld [vmem:[#allocation38_spill] sm:$0xff] }
 0xb85   : > { %v10487_v6 = vpop.eup %10486  ;;  %9595 = vmatprep.subr.bf16.mxu0 %v10126_v25 }
 0xb86   : > { %9587 = vmatprep.mubr.bf16.mxu0 %v3176_v21  ;;  %v3168_v57 = vmul.f32 %v10487_v6, %v12900_v0  ;;  %v16521_v21 = vpack.c.bf16 %v16519_v9, %v16520_v12 }
 0xb88   : > { %v3177_v10 = vpack.c.bf16 %v3169_v2, %v3168_v57  ;;  %9596 = vmatpush3.bf16.msra.mxu0 %v10126_v25  ;;  %v3342_v16 = vpop.permute.xlu1 %3341  ;;  %v3381_v6 = vsel %vm1514_vm1, %v16521_v21, %v3316_v59 }
 0xb89   : > { %9597 = vmatprep.subr.bf16.mxu0 %v10127_v34 }
 0xb8a   : > { %9588 = vmatmul.mubr.bf16.gmra.mrb[92].mxu0 %v3177_v10 }
 0xb8c   : > { %9598 = vmatpush3.bf16.msra.mxu0 %v10127_v34 }
 0xc19   : > { %v9577_v0 = vpop.f32.mrb[80].mxu0 }
 0xc1a   : > { %v3236_v7 = vpop.f32.mrb[81].mxu0 }
 0xc1b   : > { %v9578_v36 = vpop.f32.mrb[82].mxu0 }
 0xc1c   : > { %v3300_v27 = vpack.c.bf16 %v9578_v36, %v9577_v0  ;;  %v3239_v26 = vpop.f32.mrb[83].mxu0  ;;  %v16526_v36 = vld [vmem:[#allocation33_spill] sm:$0xff] }
 0xc1d   : > { %v3299_v46 = vpack.c.bf16 %v3239_v26, %v3236_v7  ;;  %v16525_v7 = vld [vmem:[#allocation43_spill] sm:$0xff] }
 0xc1e   : > { %3365 = vrot.lane.b32.xlu1 %v3300_v27, %s16498_s27  ;;  %v16527_v27 = vpack.c.bf16 %v16525_v7, %v16526_v36 }
 0xc1f   : > { %3363 = vrot.lane.b32.xlu0 %v3299_v46, %s16498_s27 }
 0xc21   : > { %v9581_v18 = vpop.f32.mrb[84].mxu0 }
 0xc22   : > { %3321 = vrot.lane.b32.xlu1 %v16502_v48, %s16499_s1  ;;  %v3252_v63 = vpop.f32.mrb[85].mxu0 }
 0xc23   : > { %3319 = vrot.lane.b32.xlu0 %v16505_v42, %s16499_s1  ;;  %v9582_v35 = vpop.f32.mrb[86].mxu0 }
 0xc24   : > { %v3302_v51 = vpack.c.bf16 %v9582_v35, %v9581_v18  ;;  %v3255_v23 = vpop.f32.mrb[87].mxu0  ;;  %v16528_v18 = vld [vmem:[#allocation42_spill] sm:$0xff] }
 0xc25   : > { %v3301_v28 = vpack.c.bf16 %v3255_v23, %v3252_v63  ;;  %v16530_v31 = vpack.c.bf16 %v16528_v18, %v16529_v53  ;;  %v16545_v18 = vld [vmem:[#allocation14_spill] sm:$0xff] }
 0xc26   : > { %3345 = vrot.lane.b32.xlu1 %v2844_v14, %s16506_s21 }
 0xc27   : > { %3343 = vrot.lane.b32.xlu0 %v2843_v44, %s16506_s21 }
 0xc2a   : > { %3369 = vrot.lane.b32.xlu1 %v3302_v51, %s16498_s27 }
 0xc2b   : > { %3367 = vrot.lane.b32.xlu0 %v3301_v28, %s16498_s27 }
 0xc2e   : > { %3325 = vrot.lane.b32.xlu1 %v16509_v62, %s16499_s1  ;;  %v16532_v62 = vld [vmem:[#allocation45_spill] sm:$0xff] }
 0xc2f   : > { %3323 = vrot.lane.b32.xlu0 %v16512_v19, %s16499_s1  ;;  %v16533_v4 = vpack.c.bf16 %v16531_v39, %v16532_v62 }
 0xc32   : > { %3349 = vrot.lane.b32.xlu1 %v2846_v50, %s16506_s21 }
 0xc33   : > { %3347 = vrot.lane.b32.xlu0 %v2845_v15, %s16506_s21  ;;  %v16518_v15 = vpack.c.bf16 %v16516_v13, %v16517_v5 }
 0xc55   : > { %v9585_v30 = vpop.f32.mrb[88].mxu0 }
 0xc56   : > { %v3268_v8 = vpop.f32.mrb[89].mxu0 }
 0xc57   : > { %v9586_v37 = vpop.f32.mrb[90].mxu0 }
 0xc58   : > { %v3304_v14 = vpack.c.bf16 %v9586_v37, %v9585_v30  ;;  %v3271_v40 = vpop.f32.mrb[91].mxu0  ;;  %v16534_v30 = vld [vmem:[#allocation46_spill] sm:$0xff] }
 0xc59   : > { %v3303_v44 = vpack.c.bf16 %v3271_v40, %v3268_v8  ;;  %v16535_v8 = vld [vmem:[#allocation44_spill] sm:$0xff] }
 0xc5a   : > { %3373 = vrot.lane.b32.xlu1 %v3304_v14, %s16498_s27  ;;  %v16536_v37 = vpack.c.bf16 %v16534_v30, %v16535_v8  ;;  %v16547_v30 = vld [vmem:[#allocation17_spill] sm:$0xff] }
 0xc5b   : > { %3371 = vrot.lane.b32.xlu0 %v3303_v44, %s16498_s27 }
 0xc5d   : > { %v9589_v32 = vpop.f32.mrb[92].mxu0 }
 0xc5e   : > { %3329 = vrot.lane.b32.xlu1 %v16515_v52, %s16499_s1  ;;  %v3284_v50 = vpop.f32.mrb[93].mxu0 }
 0xc5f   : > { %3327 = vrot.lane.b32.xlu0 %v16518_v15, %s16499_s1  ;;  %v9590_v43 = vpop.f32.mrb[94].mxu0  ;;  %v16537_v15 = vld [vmem:[#allocation51_spill] sm:$0xff] }
 0xc60   : > { %v3306_v55 = vpack.c.bf16 %v9590_v43, %v9589_v32  ;;  %v3287_v22 = vpop.f32.mrb[95].mxu0  ;;  %v16538_v43 = vld [vmem:[#allocation49_spill] sm:$0xff] }
 0xc61   : > { %v3305_v54 = vpack.c.bf16 %v3287_v22, %v3284_v50 }
 0xc62   : > { %3353 = vrot.lane.b32.xlu1 %v2848_v49, %s16506_s21  ;;  %v16523_v49 = vld [vmem:[#allocation39_spill] sm:$0xff] }
 0xc63   : > { %3351 = vrot.lane.b32.xlu0 %v2847_v29, %s16506_s21  ;;  %v16524_v47 = vpack.c.bf16 %v16522_v11, %v16523_v49  ;;  %v3405_v29 = vsel %vm3403_vm2, %v3381_v6, %v3340_v24  ;;  %v16541_v24 = vld [vmem:[#allocation48_spill] sm:$0xff]  ;;  %v13062_v11 = vld [vmem:[%s16201_s9] ss:$0 sm:$0xff] }
 0xc65   : > { %v3384_v33 = vsel %vm1514_vm1, %v16524_v47, %v3318_v45  ;;  %v16540_v45 = vld [vmem:[#allocation50_spill] sm:$0xff] }
 0xc66   : > { %3377 = vrot.lane.b32.xlu1 %v3306_v55, %s16498_s27  ;;  %v3407_v2 = vsel %vm3403_vm2, %v3384_v33, %v3342_v16  ;;  %v16539_v55 = vpack.c.bf16 %v16537_v15, %v16538_v43  ;;  %v16542_v59 = vpack.c.bf16 %v16540_v45, %v16541_v24  ;;  %v13068_v33 = vld [vmem:[%s16202_s10] ss:$0 sm:$0xff] }
 0xc67   : > { %3375 = vrot.lane.b32.xlu0 %v3305_v54, %s16498_s27 }
 0xc90   : > { %v3366_v58 = vpop.permute.xlu1 %3365 }
 0xc91   : > { %v3364_v57 = vpop.permute.xlu0 %3363  ;;  %v3424_v56 = vsel %vm3420_vm3, %v3407_v2, %v3366_v58 }
 0xc92   : > { %v3422_v10 = vsel %vm3420_vm3, %v3405_v29, %v3364_v57 }
 0xc93   : > { %9599 = vmatprep.mubr.msk.bf16.mxu0 %vm836_vm0, %v3422_v10 }
 0xc94   : > { %v3322_v17 = vpop.permute.xlu1 %3321  ;;  %9600 = vmatmul.mubr.msk.bf16.vlgmr.msra.gmra.mrb[96].mxu0 %vm836_vm0, %v3424_v56 }
 0xc95   : > { %v3320_v25 = vpop.permute.xlu0 %3319  ;;  %v3390_v48 = vsel %vm1514_vm1, %v16530_v31, %v3322_v17 }
 0xc96   : > { %v3387_v26 = vsel %vm1514_vm1, %v16527_v27, %v3320_v25  ;;  %v16544_v27 = vld [vmem:[#allocation15_spill] sm:$0xff] }
 0xc98   : > { %v3346_v34 = vpop.permute.xlu1 %3345 }
 0xc99   : > { %v3344_v0 = vpop.permute.xlu0 %3343  ;;  %v3411_v41 = vsel %vm3403_vm2, %v3390_v48, %v3346_v34 }
 0xc9a   : > { %v3409_v63 = vsel %vm3403_vm2, %v3387_v26, %v3344_v0  ;;  %v16543_v0 = vld [vmem:[#allocation13_spill] sm:$0xff] }
 0xc9c   : > { %v3370_v46 = vpop.permute.xlu1 %3369 }
 0xc9d   : > { %v3368_v61 = vpop.permute.xlu0 %3367  ;;  %v3428_v35 = vsel %vm3420_vm3, %v3411_v41, %v3370_v46 }
 0xc9e   : > { %v3426_v42 = vsel %vm3420_vm3, %v3409_v63, %v3368_v61  ;;  %v16546_v63 = vld [vmem:[#allocation16_spill] sm:$0xff] }
 0xc9f   : > { %9603 = vmatprep.mubr.msk.bf16.mxu0 %vm836_vm0, %v3426_v42 }
 0xca0   : > { %9604 = vmatmul.mubr.msk.bf16.gmra.mrb[100].mxu0 %vm836_vm0, %v3428_v35  ;;  %v3326_v51 = vpop.permute.xlu1 %3325 }
 0xca1   : > { %v3324_v23 = vpop.permute.xlu0 %3323  ;;  %v3396_v14 = vsel %vm1514_vm1, %v16536_v37, %v3326_v51 }
 0xca2   : > { %v3393_v38 = vsel %vm1514_vm1, %v16533_v4, %v3324_v23 }
 0xca4   : > { %v3350_v28 = vpop.permute.xlu1 %3349 }
 0xca5   : > { %v3348_v20 = vpop.permute.xlu0 %3347  ;;  %v3415_v32 = vsel %vm3403_vm2, %v3396_v14, %v3350_v28 }
 0xca6   : > { %v3413_v40 = vsel %vm3403_vm2, %v3393_v38, %v3348_v20 }
 0xccc   : > { %v3374_v19 = vpop.permute.xlu1 %3373 }
 0xccd   : > { %v3372_v44 = vpop.permute.xlu0 %3371  ;;  %v3432_v60 = vsel %vm3420_vm3, %v3415_v32, %v3374_v19  ;;  %v16549_v32 = vld [vmem:[#allocation18_spill] sm:$0xff] }
 0xcce   : > { %v3430_v1 = vsel %vm3420_vm3, %v3413_v40, %v3372_v44  ;;  %v16548_v40 = vld [vmem:[#allocation19_spill] sm:$0xff] }
 0xccf   : > { %9607 = vmatprep.mubr.msk.bf16.mxu0 %vm836_vm0, %v3430_v1 }
 0xcd0   : > { %v3330_v52 = vpop.permute.xlu1 %3329  ;;  %9608 = vmatmul.mubr.msk.bf16.gmra.mrb[104].mxu0 %vm836_vm0, %v3432_v60 }
 0xcd1   : > { %v3328_v50 = vpop.permute.xlu0 %3327  ;;  %v3402_v16 = vsel %vm1514_vm1, %v16542_v59, %v3330_v52  ;;  %v16550_v52 = vld [vmem:[#allocation20_spill] sm:$0xff] }
 0xcd2   : > { %v3399_v22 = vsel %vm1514_vm1, %v16539_v55, %v3328_v50 }
 0xcd4   : > { %v3354_v13 = vpop.permute.xlu1 %3353 }
 0xcd5   : > { %v3352_v5 = vpop.permute.xlu0 %3351  ;;  %v3419_v21 = vsel %vm3403_vm2, %v3402_v16, %v3354_v13 }
 0xcd6   : > { %v3417_v9 = vsel %vm3403_vm2, %v3399_v22, %v3352_v5 }
 0xcd8   : > { %v3378_v54 = vpop.permute.xlu1 %3377 }
 0xcd9   : > { %v3376_v12 = vpop.permute.xlu0 %3375  ;;  %v3436_v58 = vsel %vm3420_vm3, %v3419_v21, %v3378_v54  ;;  %v16551_v21 = vld [vmem:[#allocation21_spill] sm:$0xff] }
 0xcda   : > { %v3434_v6 = vsel %vm3420_vm3, %v3417_v9, %v3376_v12 }
 0xcdb   : > { %9611 = vmatprep.mubr.msk.bf16.mxu0 %vm836_vm0, %v3434_v6 }
 0xcdc   : > { %9612 = vmatmul.mubr.msk.bf16.gmra.mrb[108].mxu0 %vm836_vm0, %v3436_v58 }
 0xd67   : > { %v9601_v49 = vpop.f32.mrb[96].mxu0 }
 0xd68   : > { %v3535_v47 = vadd.f32 %v9601_v49, %v13062_v11  ;;  %v3526_v29 = vpop.f32.mrb[97].mxu0 }
 0xd69   : > { %v3527_v57 = vadd.f32 %v13062_v11, %v3526_v29  ;;  %v9602_v2 = vpop.f32.mrb[98].mxu0 }
 0xd6a   : > { %v3529_v10 = vpop.f32.mrb[99].mxu0  ;;  %v3598_v56 = vmul.f32 %v13068_v33, %v3535_v47  ;;  %v3538_v25 = vadd.f32 %v9602_v2, %v13062_v11  ;;  %v16552_v47 = vld [vmem:[#allocation23_spill] sm:$0xff] }
 0xd6b   : > { %v3596_v17 = vmul.f32 %v13068_v33, %v3527_v57  ;;  %v3530_v34 = vadd.f32 %v13062_v11, %v3529_v10  ;;  %v16553_v57 = vld [vmem:[#allocation22_spill] sm:$0xff] }
 0xd6c   : > { %v13080_v26 = vadd.f32 %v3598_v56, %v16544_v27  ;;  %v3599_v46 = vmul.f32 %v13068_v33, %v3538_v25  ;;  %v16554_v56 = vld [vmem:[#allocation24_spill] sm:$0xff] }
 0xd6d   : > { %v13076_v7 = vadd.f32 %v3596_v17, %v16543_v0  ;;  %v3597_v36 = vmul.f32 %v13068_v33, %v3530_v34 }
 0xd6e   : > { %v13091_v61 = vadd.f32 %v3599_v46, %v16546_v63  ;;  %v3636_v42 = vsel %vm836_vm0, %v13080_v26, 0.0 }
 0xd6f   : > { %v13084_v53 = vadd.f32 %v3597_v36, %v16545_v18  ;;  %v3630_v31 = vsel %vm836_vm0, %v13076_v7, 0.0 }
 0xd70   : > { %3631 = vadd.xlane.f32.xlu0 %v3630_v31  ;;  %v3639_v19 = vsel %vm836_vm0, %v13091_v61, 0.0 }
 0xd71   : > { %v3633_v48 = vsel %vm836_vm0, %v13084_v53, 0.0 }
 0xd72   : > { %3634 = vadd.xlane.f32.xlu1 %v3633_v48 }
 0xd73   : > { %v9605_v41 = vpop.f32.mrb[100].mxu0 }
 0xd74   : > { %v3551_v35 = vadd.f32 %v9605_v41, %v13062_v11  ;;  %3637 = vadd.xlane.f32.xlu0 %v3636_v42  ;;  %v3542_v51 = vpop.f32.mrb[101].mxu0 }
 0xd75   : > { %v3543_v23 = vadd.f32 %v13062_v11, %v3542_v51  ;;  %v9606_v28 = vpop.f32.mrb[102].mxu0  ;;  %v16555_v51 = vld [vmem:[#allocation25_spill] sm:$0xff] }
 0xd76   : > { %v3554_v20 = vadd.f32 %v9606_v28, %v13062_v11  ;;  %v3545_v39 = vpop.f32.mrb[103].mxu0  ;;  %v3602_v62 = vmul.f32 %v13068_v33, %v3551_v35 }
 0xd77   : > { %v3600_v4 = vmul.f32 %v13068_v33, %v3543_v23  ;;  %v3546_v38 = vadd.f32 %v13062_v11, %v3545_v39  ;;  %v16556_v39 = vld [vmem:[#allocation27_spill] sm:$0xff] }
 0xd78   : > { %3640 = vadd.xlane.f32.xlu0 %v3639_v19  ;;  %v3603_v37 = vmul.f32 %v13068_v33, %v3554_v20  ;;  %v13109_v44 = vadd.f32 %v3602_v62, %v16548_v40 }
 0xd79   : > { %v13104_v8 = vadd.f32 %v3600_v4, %v16547_v30  ;;  %v3601_v14 = vmul.f32 %v13068_v33, %v3546_v38  ;;  %v16557_v4 = vld [vmem:[#allocation26_spill] sm:$0xff]  ;;  %v16558_v30 = vld [vmem:[#allocation28_spill] sm:$0xff] }
 0xd7a   : > { %v13117_v50 = vadd.f32 %v3603_v37, %v16550_v52  ;;  %v3648_v5 = vsel %vm836_vm0, %v13109_v44, 0.0 }
 0xd7b   : > { %v13112_v1 = vadd.f32 %v3601_v14, %v16549_v32  ;;  %v3642_v60 = vsel %vm836_vm0, %v13104_v8, 0.0 }
 0xd7c   : > { %3643 = vadd.xlane.f32.xlu0 %v3642_v60  ;;  %v3651_v15 = vsel %vm836_vm0, %v13117_v50, 0.0 }
 0xd7d   : > { %v3645_v13 = vsel %vm836_vm0, %v13112_v1, 0.0 }
 0xd7e   : > { %3646 = vadd.xlane.f32.xlu1 %v3645_v13 }
 0xd80   : > { %3649 = vadd.xlane.f32.xlu0 %v3648_v5 }
 0xd82   : > { %3652 = vadd.xlane.f32.xlu1 %v3651_v15 }
 0xda3   : > { %v9609_v43 = vpop.f32.mrb[104].mxu0 }
 0xda4   : > { %v3567_v55 = vadd.f32 %v9609_v43, %v13062_v11  ;;  %v3558_v22 = vpop.f32.mrb[105].mxu0 }
 0xda5   : > { %v3559_v54 = vadd.f32 %v13062_v11, %v3558_v22  ;;  %v9610_v45 = vpop.f32.mrb[106].mxu0 }
 0xda6   : > { %v3570_v24 = vadd.f32 %v9610_v45, %v13062_v11  ;;  %v3561_v59 = vpop.f32.mrb[107].mxu0  ;;  %v3606_v16 = vmul.f32 %v13068_v33, %v3567_v55 }
 0xda7   : > { %v3604_v9 = vmul.f32 %v13068_v33, %v3559_v54  ;;  %v3562_v12 = vadd.f32 %v13062_v11, %v3561_v59 }
 0xda8   : > { %v3607_v58 = vmul.f32 %v13068_v33, %v3570_v24  ;;  %v13137_v29 = vadd.f32 %v3606_v16, %v16552_v47 }
 0xda9   : > { %v13132_v6 = vadd.f32 %v3604_v9, %v16551_v21  ;;  %v3605_v49 = vmul.f32 %v13068_v33, %v3562_v12 }
 0xdaa   : > { %v13145_v17 = vadd.f32 %v3607_v58, %v16554_v56  ;;  %v3660_v0 = vsel %vm836_vm0, %v13137_v29, 0.0 }
 0xdab   : > { %v13140_v2 = vadd.f32 %v3605_v49, %v16553_v57  ;;  %v3654_v10 = vsel %vm836_vm0, %v13132_v6, 0.0 }
 0xdac   : > { %3655 = vadd.xlane.f32.xlu0 %v3654_v10  ;;  %v3663_v31 = vsel %vm836_vm0, %v13145_v17, 0.0 }
 0xdad   : > { %v3657_v25 = vsel %vm836_vm0, %v13140_v2, 0.0 }
 0xdae   : > { %3658 = vadd.xlane.f32.xlu1 %v3657_v25 }
 0xdaf   : > { %v9613_v34 = vpop.f32.mrb[108].mxu0 }
 0xdb0   : > { %v3583_v36 = vadd.f32 %v9613_v34, %v13062_v11  ;;  %3661 = vadd.xlane.f32.xlu0 %v3660_v0  ;;  %v3574_v27 = vpop.f32.mrb[109].mxu0 }
 0xdb1   : > { %v3575_v46 = vadd.f32 %v13062_v11, %v3574_v27  ;;  %v9614_v18 = vpop.f32.mrb[110].mxu0 }
 0xdb2   : > { %v3586_v48 = vadd.f32 %v9614_v18, %v13062_v11  ;;  %3664 = vadd.xlane.f32.xlu1 %v3663_v31  ;;  %v3577_v63 = vpop.f32.mrb[111].mxu0  ;;  %v3610_v41 = vmul.f32 %v13068_v33, %v3583_v36 }
 0xdb3   : > { %v3608_v42 = vmul.f32 %v13068_v33, %v3575_v46  ;;  %v3578_v35 = vadd.f32 %v13062_v11, %v3577_v63 }
 0xdb4   : > { %v3611_v28 = vmul.f32 %v13068_v33, %v3586_v48  ;;  %v13165_v62 = vadd.f32 %v3610_v41, %v16556_v39  ;;  %v10130_v39 = vld [vmem:[%s16205_s13 + $0x4] ss:$8 sps:$4 sm:$0xff]  }
 0xdb5   : > { %v13160_v23 = vadd.f32 %v3608_v42, %v16555_v51  ;;  %v3609_v20 = vmul.f32 %v13068_v33, %v3578_v35  ;;  %3974 = vmatprep.subr.bf16.mxu1 %v10130_v39 }
 0xdb6   : > { %v13173_v37 = vadd.f32 %v3611_v28, %v16558_v30  ;;  %v3672_v33 = vsel %vm836_vm0, %v13165_v62, 0.0  ;;  %v10131_v30 = vld [vmem:[%s16205_s13 + $0x10] ss:$8 sps:$4 sm:$0xff]  }
 0xdb7   : > { %v13168_v38 = vadd.f32 %v3609_v20, %v16557_v4  ;;  %v3666_v19 = vsel %vm836_vm0, %v13160_v23, 0.0  ;;  %v10128_v4 = vld [vmem:[%s16205_s13] ss:$8 sps:$4 sm:$0xff]  }
 0xdb8   : > { %3667 = vadd.xlane.f32.xlu0 %v3666_v19  ;;  %v3675_v14 = vsel %vm836_vm0, %v13173_v37, 0.0  ;;  %3975 = vmatpush1.bf16.msra.mxu1 %v10128_v4  ;;  %v10133_v19 = vld [vmem:[%s16205_s13 + $0x14] ss:$8 sps:$4 sm:$0xff]  }
 0xdb9   : > { %v3669_v11 = vsel %vm836_vm0, %v13168_v38, 0.0  ;;  %3976 = vmatprep.subr.bf16.mxu1 %v10133_v19 }
 0xdba   : > { %3670 = vadd.xlane.f32.xlu1 %v3669_v11  ;;  %v10136_v11 = vld [vmem:[%s16205_s13 + $0x24] ss:$8 sps:$4 sm:$0xff]  }
 0xdbc   : > { %3673 = vadd.xlane.f32.xlu0 %v3672_v33  ;;  %3977 = vmatpush1.bf16.msra.mxu1 %v10131_v30  ;;  %v10134_v33 = vld [vmem:[%s16205_s13 + $0x20] ss:$8 sps:$4 sm:$0xff]  }
 0xdbd   : > { %3978 = vmatprep.subr.bf16.mxu1 %v10136_v11 }
 0xdbe   : > { %3676 = vadd.xlane.f32.xlu1 %v3675_v14  ;;  %v10139_v14 = vld [vmem:[%s16205_s13 + $0x34] ss:$8 sps:$4 sm:$0xff]  }
 0xdc0   : > { %3979 = vmatpush1.bf16.msra.mxu1 %v10134_v33 }
 0xdc1   : > { %3980 = vmatprep.subr.bf16.mxu1 %v10139_v14 }
 0xdfd   : > { %v3632_v40 = vpop.xlane.xlu0 %3631 }
 0xdfe   : > { %v3678_v32 = vmul.f32 0.015625, %v3632_v40  ;;  %v10137_v40 = vld [vmem:[%s16205_s13 + $0x30] ss:$8 sps:$4 sm:$0xff]  }
 0xdff   : > { %v3635_v60 = vpop.xlane.xlu1 %3634  ;;  %3981 = vmatpush1.bf16.msra.mxu1 %v10137_v40 }
 0xe00   : > { %v13182_v52 = vsub.f32 %v13076_v7, %v3678_v32  ;;  %v3679_v13 = vmul.f32 0.015625, %v3635_v60 }
 0xe01   : > { %v3638_v5 = vpop.xlane.xlu0 %3637 }
 0xe02   : > { %v13185_v15 = vsub.f32 %v13084_v53, %v3679_v13  ;;  %v3680_v43 = vmul.f32 0.015625, %v3638_v5  ;;  %v3710_v55 = vmul.f32 %v13182_v52, %v13182_v52 }
 0xe04   : > { %v13190_v22 = vsub.f32 %v13080_v26, %v3680_v43  ;;  %v3726_v54 = vsel %vm836_vm0, %v3710_v55, 0.0  ;;  %v3711_v45 = vmul.f32 %v13185_v15, %v13185_v15 }
 0xe05   : > { %3727 = vadd.xlane.f32.xlu0 %v3726_v54  ;;  %v3641_v24 = vpop.xlane.xlu0 %3640 }
 0xe06   : > { %v3681_v59 = vmul.f32 0.015625, %v3641_v24  ;;  %v3729_v16 = vsel %vm836_vm0, %v3711_v45, 0.0  ;;  %v3712_v9 = vmul.f32 %v13190_v22, %v13190_v22 }
 0xe07   : > { %3730 = vadd.xlane.f32.xlu1 %v3729_v16 }
 0xe08   : > { %v13199_v12 = vsub.f32 %v13091_v61, %v3681_v59  ;;  %v3732_v21 = vsel %vm836_vm0, %v3712_v9, 0.0 }
 0xe09   : > { %3733 = vadd.xlane.f32.xlu0 %v3732_v21  ;;  %v3644_v58 = vpop.xlane.xlu0 %3643 }
 0xe0a   : > { %v3682_v49 = vmul.f32 0.015625, %v3644_v58  ;;  %v3713_v47 = vmul.f32 %v13199_v12, %v13199_v12 }
 0xe0b   : > { %v3647_v57 = vpop.xlane.xlu1 %3646 }
 0xe0c   : > { %v13205_v10 = vsub.f32 %v13104_v8, %v3682_v49  ;;  %v3683_v56 = vmul.f32 0.015625, %v3647_v57  ;;  %v3735_v25 = vsel %vm836_vm0, %v3713_v47, 0.0 }
 0xe0d   : > { %3736 = vadd.xlane.f32.xlu1 %v3735_v25  ;;  %v3650_v34 = vpop.xlane.xlu0 %3649 }
 0xe0e   : > { %v13209_v0 = vsub.f32 %v13112_v1, %v3683_v56  ;;  %v3684_v36 = vmul.f32 0.015625, %v3650_v34  ;;  %v3714_v27 = vmul.f32 %v13205_v10, %v13205_v10 }
 0xe0f   : > { %v3653_v46 = vpop.xlane.xlu1 %3652 }
 0xe10   : > { %v13214_v18 = vsub.f32 %v13109_v44, %v3684_v36  ;;  %v3685_v31 = vmul.f32 0.015625, %v3653_v46  ;;  %v3738_v48 = vsel %vm836_vm0, %v3714_v27, 0.0  ;;  %v3715_v63 = vmul.f32 %v13209_v0, %v13209_v0 }
 0xe11   : > { %3739 = vadd.xlane.f32.xlu0 %v3738_v48 }
 0xe12   : > { %v13220_v41 = vsub.f32 %v13117_v50, %v3685_v31  ;;  %v3741_v42 = vsel %vm836_vm0, %v3715_v63, 0.0  ;;  %v3716_v35 = vmul.f32 %v13214_v18, %v13214_v18 }
 0xe13   : > { %3742 = vadd.xlane.f32.xlu1 %v3741_v42 }
 0xe14   : > { %v3744_v51 = vsel %vm836_vm0, %v3716_v35, 0.0  ;;  %v3717_v28 = vmul.f32 %v13220_v41, %v13220_v41 }
 0xe15   : > { %3745 = vadd.xlane.f32.xlu0 %v3744_v51 }
 0xe16   : > { %v3747_v20 = vsel %vm836_vm0, %v3717_v28, 0.0 }
 0xe17   : > { %3748 = vadd.xlane.f32.xlu1 %v3747_v20 }
 0xe39   : > { %v3656_v32 = vpop.xlane.xlu0 %3655 }
 0xe3a   : > { %v3686_v60 = vmul.f32 0.015625, %v3656_v32 }
 0xe3b   : > { %v3659_v13 = vpop.xlane.xlu1 %3658 }
 0xe3c   : > { %v13254_v5 = vsub.f32 %v13132_v6, %v3686_v60  ;;  %v3687_v43 = vmul.f32 0.015625, %v3659_v13 }
 0xe3d   : > { %v3662_v55 = vpop.xlane.xlu0 %3661 }
 0xe3e   : > { %v13257_v54 = vsub.f32 %v13140_v2, %v3687_v43  ;;  %v3688_v45 = vmul.f32 0.015625, %v3662_v55  ;;  %v3718_v24 = vmul.f32 %v13254_v5, %v13254_v5 }
 0xe3f   : > { %v3665_v59 = vpop.xlane.xlu1 %3664 }
 0xe40   : > { %v13262_v16 = vsub.f32 %v13137_v29, %v3688_v45  ;;  %v3689_v9 = vmul.f32 0.015625, %v3665_v59  ;;  %v3750_v21 = vsel %vm836_vm0, %v3718_v24, 0.0  ;;  %v3719_v58 = vmul.f32 %v13257_v54, %v13257_v54 }
 0xe41   : > { %3751 = vadd.xlane.f32.xlu0 %v3750_v21 }
 0xe42   : > { %v13268_v49 = vsub.f32 %v13145_v17, %v3689_v9  ;;  %v3753_v47 = vsel %vm836_vm0, %v3719_v58, 0.0  ;;  %v3720_v57 = vmul.f32 %v13262_v16, %v13262_v16 }
 0xe43   : > { %3754 = vadd.xlane.f32.xlu1 %v3753_v47 }
 0xe44   : > { %v3756_v56 = vsel %vm836_vm0, %v3720_v57, 0.0  ;;  %v3721_v25 = vmul.f32 %v13268_v49, %v13268_v49 }
 0xe45   : > { %3757 = vadd.xlane.f32.xlu0 %v3756_v56  ;;  %v3668_v34 = vpop.xlane.xlu0 %3667 }
 0xe46   : > { %v3690_v36 = vmul.f32 0.015625, %v3668_v34  ;;  %v3759_v27 = vsel %vm836_vm0, %v3721_v25, 0.0 }
 0xe47   : > { %v3671_v46 = vpop.xlane.xlu1 %3670  ;;  %3760 = vadd.xlane.f32.xlu1 %v3759_v27  ;;  %v13304_v27 = vld [vmem:[%s16203_s11] ss:$0 sm:$0xff] }
 0xe48   : > { %v13278_v31 = vsub.f32 %v13160_v23, %v3690_v36  ;;  %v3691_v48 = vmul.f32 0.015625, %v3671_v46 }
 0xe49   : > { %v3674_v63 = vpop.xlane.xlu0 %3673 }
 0xe4a   : > { %v13281_v42 = vsub.f32 %v13168_v38, %v3691_v48  ;;  %v3692_v35 = vmul.f32 0.015625, %v3674_v63  ;;  %v3722_v51 = vmul.f32 %v13278_v31, %v13278_v31 }
 0xe4b   : > { %v3677_v28 = vpop.xlane.xlu1 %3676 }
 0xe4c   : > { %v13286_v20 = vsub.f32 %v13165_v62, %v3692_v35  ;;  %v3693_v39 = vmul.f32 0.015625, %v3677_v28  ;;  %v3762_v4 = vsel %vm836_vm0, %v3722_v51, 0.0  ;;  %v3723_v19 = vmul.f32 %v13281_v42, %v13281_v42 }
 0xe4d   : > { %3763 = vadd.xlane.f32.xlu0 %v3762_v4 }
 0xe4e   : > { %v13292_v30 = vsub.f32 %v13173_v37, %v3693_v39  ;;  %v3765_v11 = vsel %vm836_vm0, %v3723_v19, 0.0  ;;  %v3724_v33 = vmul.f32 %v13286_v20, %v13286_v20 }
 0xe4f   : > { %3766 = vadd.xlane.f32.xlu1 %v3765_v11 }
 0xe50   : > { %v3768_v14 = vsel %vm836_vm0, %v3724_v33, 0.0  ;;  %v3725_v40 = vmul.f32 %v13292_v30, %v13292_v30 }
 0xe51   : > { %3769 = vadd.xlane.f32.xlu0 %v3768_v14  ;;  %v13312_v14 = vld [vmem:[%s16204_s12] ss:$0 sm:$0xff] }
 0xe52   : > { %v3771_v32 = vsel %vm836_vm0, %v3725_v40, 0.0 }
 0xe53   : > { %3772 = vadd.xlane.f32.xlu1 %v3771_v32 }
 0xe92   : > { %v3728_v60 = vpop.xlane.xlu0 %3727 }
 0xe93   : > { %v3774_v13 = vmul.f32 0.015625, %v3728_v60 }
 0xe94   : > { %v3731_v43 = vpop.xlane.xlu1 %3730 }
 0xe95   : > { %v3790_v55 = vadd.f32 1e-06, %v3774_v13  ;;  %v3775_v45 = vmul.f32 0.015625, %v3731_v43 }
 0xe96   : > { %v3734_v24 = vpop.xlane.xlu0 %3733 }
 0xe97   : > { %10488 = vrsqrt.f32 %v3790_v55  ;;  %v3791_v59 = vadd.f32 1e-06, %v3775_v45  ;;  %v3776_v9 = vmul.f32 0.015625, %v3734_v24 }
 0xe99   : > { %10490 = vrsqrt.f32 %v3791_v59  ;;  %v3792_v21 = vadd.f32 1e-06, %v3776_v9 }
 0xe9a   : > { %v3737_v58 = vpop.xlane.xlu1 %3736 }
 0xe9b   : > { %10492 = vrsqrt.f32 %v3792_v21  ;;  %v3777_v47 = vmul.f32 0.015625, %v3737_v58 }
 0xe9d   : > { %v3793_v57 = vadd.f32 1e-06, %v3777_v47 }
 0xe9e   : > { %v3740_v56 = vpop.xlane.xlu0 %3739 }
 0xe9f   : > { %10494 = vrsqrt.f32 %v3793_v57  ;;  %v3778_v25 = vmul.f32 0.015625, %v3740_v56 }
 0xea0   : > { %v3743_v34 = vpop.xlane.xlu1 %3742 }
 0xea1   : > { %v10489_v36 = vpop.eup %10488  ;;  %v3794_v46 = vadd.f32 1e-06, %v3778_v25  ;;  %v3779_v48 = vmul.f32 0.015625, %v3743_v34 }
 0xea2   : > { %v3822_v63 = vmul.f32 %v10489_v36, %v13182_v52  ;;  %v3746_v35 = vpop.xlane.xlu0 %3745 }
 0xea3   : > { %v10491_v51 = vpop.eup %10490  ;;  %10496 = vrsqrt.f32 %v3794_v46  ;;  %v3795_v28 = vadd.f32 1e-06, %v3779_v48  ;;  %v3780_v39 = vmul.f32 0.015625, %v3746_v35 }
 0xea4   : > { %v3844_v4 = vmul.f32 %v13304_v27, %v3822_v63  ;;  %v3823_v19 = vmul.f32 %v10491_v51, %v13185_v15  ;;  %v3749_v11 = vpop.xlane.xlu1 %3748 }
 0xea5   : > { %v10493_v33 = vpop.eup %10492  ;;  %10498 = vrsqrt.f32 %v3795_v28  ;;  %v3781_v40 = vmul.f32 0.015625, %v3749_v11  ;;  %v3796_v32 = vadd.f32 1e-06, %v3780_v39 }
 0xea6   : > { %v3845_v52 = vmul.f32 %v13304_v27, %v3823_v19  ;;  %v3866_v13 = vadd.f32 %v13312_v14, %v3844_v4  ;;  %v3824_v55 = vmul.f32 %v10493_v33, %v13190_v22 }
 0xea7   : > { %v3797_v60 = vadd.f32 1e-06, %v3781_v40 }
 0xea8   : > { %v3867_v43 = vadd.f32 %v13312_v14, %v3845_v52  ;;  %v3846_v59 = vmul.f32 %v13304_v27, %v3824_v55 }
 0xea9   : > { %v10495_v15 = vpop.eup %10494  ;;  %10500 = vrsqrt.f32 %v3797_v60 }
 0xeaa   : > { %v3890_v45 = vpack.c.bf16 %v3867_v43, %v3866_v13  ;;  %v3825_v24 = vmul.f32 %v10495_v15, %v13199_v12  ;;  %10502 = vrsqrt.f32 %v3796_v32  ;;  %v3868_v22 = vadd.f32 %v13312_v14, %v3846_v59 }
 0xeac   : > { %8704 = vmatmul.mubr.msk.bf16.vlgmr.msra.gmra.mrb[96].mxu1 %vm836_vm0, %v3890_v45  ;;  %v3847_v9 = vmul.f32 %v13304_v27, %v3825_v24 }
 0xead   : > { %v10497_v21 = vpop.eup %10496  ;;  %4016 = vmatprep.mubr.bf16.mxu1 %v16489_v3 }
 0xeae   : > { %v3869_v58 = vadd.f32 %v13312_v14, %v3847_v9  ;;  %v3826_v57 = vmul.f32 %v10497_v21, %v13205_v10 }
 0xeaf   : > { %v10499_v47 = vpop.eup %10498 }
 0xeb0   : > { %v3827_v56 = vmul.f32 %v10499_v47, %v13209_v0  ;;  %v3891_v12 = vpack.c.bf16 %v3869_v58, %v3868_v22  ;;  %v3848_v36 = vmul.f32 %v13304_v27, %v3826_v57 }
 0xeb2   : > { %v3849_v25 = vmul.f32 %v13304_v27, %v3827_v56  ;;  %v3870_v35 = vadd.f32 %v13312_v14, %v3848_v36 }
 0xeb3   : > { %v10501_v34 = vpop.eup %10500 }
 0xeb4   : > { %8705 = vmatmul.mubr.msk.bf16.gmra.mrb[100].mxu1 %vm836_vm0, %v3891_v12  ;;  %v10503_v46 = vpop.eup %10502  ;;  %v3871_v48 = vadd.f32 %v13312_v14, %v3849_v25  ;;  %v3829_v63 = vmul.f32 %v10501_v34, %v13220_v41 }
 0xeb5   : > { %4026 = vmatprep.mubr.bf16.mxu1 %v16489_v3  ;;  %v3828_v10 = vmul.f32 %v10503_v46, %v13214_v18 }
 0xeb6   : > { %v3892_v0 = vpack.c.bf16 %v3871_v48, %v3870_v35  ;;  %v3851_v51 = vmul.f32 %v13304_v27, %v3829_v63 }
 0xeb7   : > { %v3850_v28 = vmul.f32 %v13304_v27, %v3828_v10 }
 0xeb8   : > { %v3873_v39 = vadd.f32 %v13312_v14, %v3851_v51 }
 0xeb9   : > { %v3872_v4 = vadd.f32 %v13312_v14, %v3850_v28 }
 0xebb   : > { %v3893_v19 = vpack.c.bf16 %v3873_v39, %v3872_v4 }
 0xebc   : > { %8706 = vmatmul.mubr.msk.bf16.gmra.mrb[104].mxu1 %vm836_vm0, %v3892_v0 }
 0xebd   : > { %4036 = vmatprep.mubr.bf16.mxu1 %v16489_v3 }
 0xec4   : > { %8707 = vmatmul.mubr.msk.bf16.gmra.mrb[108].mxu1 %vm836_vm0, %v3893_v19 }
 0xec5   : > { %4046 = vmatprep.mubr.bf16.mxu1 %v16489_v3 }
 0xece   : > { %v3752_v41 = vpop.xlane.xlu0 %3751 }
 0xecf   : > { %v3782_v18 = vmul.f32 0.015625, %v3752_v41 }
 0xed0   : > { %v3755_v11 = vpop.xlane.xlu1 %3754 }
 0xed1   : > { %v3798_v33 = vadd.f32 1e-06, %v3782_v18  ;;  %v3783_v40 = vmul.f32 0.015625, %v3755_v11 }
 0xed2   : > { %v3758_v52 = vpop.xlane.xlu0 %3757 }
 0xed3   : > { %10504 = vrsqrt.f32 %v3798_v33  ;;  %v3799_v32 = vadd.f32 1e-06, %v3783_v40  ;;  %v3784_v60 = vmul.f32 0.015625, %v3758_v52 }
 0xed4   : > { %v3761_v13 = vpop.xlane.xlu1 %3760 }
 0xed5   : > { %10506 = vrsqrt.f32 %v3799_v32  ;;  %v3800_v43 = vadd.f32 1e-06, %v3784_v60  ;;  %v3785_v55 = vmul.f32 0.015625, %v3761_v13 }
 0xed7   : > { %10508 = vrsqrt.f32 %v3800_v43  ;;  %v3801_v15 = vadd.f32 1e-06, %v3785_v55 }
 0xed9   : > { %10510 = vrsqrt.f32 %v3801_v15 }
 0xeda   : > { %v3764_v45 = vpop.xlane.xlu0 %3763 }
 0xedb   : > { %v3786_v24 = vmul.f32 0.015625, %v3764_v45 }
 0xedc   : > { %v3767_v59 = vpop.xlane.xlu1 %3766 }
 0xedd   : > { %v10505_v9 = vpop.eup %10504  ;;  %v3802_v21 = vadd.f32 1e-06, %v3786_v24  ;;  %v3787_v58 = vmul.f32 0.015625, %v3767_v59 }
 0xede   : > { %v3770_v47 = vpop.xlane.xlu0 %3769  ;;  %v3830_v22 = vmul.f32 %v10505_v9, %v13254_v5 }
 0xedf   : > { %v10507_v57 = vpop.eup %10506  ;;  %10512 = vrsqrt.f32 %v3802_v21  ;;  %v3803_v56 = vadd.f32 1e-06, %v3787_v58  ;;  %v3788_v12 = vmul.f32 0.015625, %v3770_v47  ;;  %v10144_v58 = vld [vmem:[%s16207_s15 + $0x50] sm:$0xff]  }
 0xee0   : > { %v3773_v25 = vpop.xlane.xlu1 %3772  ;;  %v3831_v34 = vmul.f32 %v10507_v57, %v13257_v54  ;;  %v3852_v36 = vmul.f32 %v13304_v27, %v3830_v22  ;;  %v10145_v47 = vld [vmem:[%s16207_s15 + $0x10] sm:$0xff]   ;;  %v10146_v22 = vld [vmem:[%s16207_s15 + $0x58] sm:$0xff]  }
 0xee1   : > { %v10509_v46 = vpop.eup %10508  ;;  %10514 = vrsqrt.f32 %v3803_v56  ;;  %v3789_v48 = vmul.f32 0.015625, %v3773_v25  ;;  %v3804_v10 = vadd.f32 1e-06, %v3788_v12  ;;  %v10147_v57 = vld [vmem:[%s16207_s15 + $0x18] sm:$0xff]   ;;  %v10148_v56 = vld [vmem:[%s16207_s15 + $0x60] sm:$0xff]   ;;  %v10150_v25 = vld [vmem:[%s16207_s15 + $0x68] sm:$0xff]  }
 0xee2   : > { %v3853_v63 = vmul.f32 %v13304_v27, %v3831_v34  ;;  %v3874_v51 = vadd.f32 %v13312_v14, %v3852_v36  ;;  %v3832_v28 = vmul.f32 %v10509_v46, %v13262_v16  ;;  %v10149_v12 = vld [vmem:[%s16207_s15 + $0x20] sm:$0xff]   ;;  %v10151_v34 = vld [vmem:[%s16207_s15 + $0x28] sm:$0xff]   ;;  %v10152_v36 = vld [vmem:[%s16207_s15 + $0x70] sm:$0xff]  }
 0xee3   : > { %v10511_v35 = vpop.eup %10510  ;;  %v3805_v0 = vadd.f32 1e-06, %v3789_v48  ;;  %v10153_v46 = vld [vmem:[%s16207_s15 + $0x30] sm:$0xff]   ;;  %v10154_v48 = vld [vmem:[%s16207_s15 + $0x78] sm:$0xff]  }
 0xee4   : > { %v3875_v5 = vadd.f32 %v13312_v14, %v3853_v63  ;;  %v3833_v39 = vmul.f32 %v10511_v35, %v13268_v49  ;;  %v3854_v19 = vmul.f32 %v13304_v27, %v3832_v28  ;;  %v10155_v63 = vld [vmem:[%s16207_s15 + $0x38] sm:$0xff]   ;;  %v3898_v35 = vld [vmem:[%s16206_s14] sm:$0x3] }
 0xee5   : > { %10516 = vrsqrt.f32 %v3805_v0 }
 0xee6   : > { %v3894_v54 = vpack.c.bf16 %v3875_v5, %v3874_v51  ;;  %v3855_v4 = vmul.f32 %v13304_v27, %v3833_v39  ;;  %10518 = vrsqrt.f32 %v3804_v10  ;;  %v3876_v33 = vadd.f32 %v13312_v14, %v3854_v19  ;;  %v16559_v10 = vld [vmem:[#allocation30_spill] sm:$0xff]  ;;  %v16560_v51 = vld [vmem:[#allocation31_spill] sm:$0xff] }
 0xee7   : > { %v13427_v0 = vrot.slane %v3898_v35, %v16559_v10  ;;  %v13430_v5 = vrot.slane %v3898_v35, %v16560_v51 }
 0xee8   : > { %8708 = vmatmul.mubr.msk.bf16.gmra.mrb[112].mxu1 %vm836_vm0, %v3894_v54  ;;  %v3877_v18 = vadd.f32 %v13312_v14, %v3855_v4 }
 0xee9   : > { %v10513_v41 = vpop.eup %10512  ;;  %4056 = vmatprep.mubr.bf16.mxu1 %v16489_v3 }
 0xeea   : > { %v3834_v16 = vmul.f32 %v10513_v41, %v13278_v31  ;;  %v3895_v40 = vpack.c.bf16 %v3877_v18, %v3876_v33 }
 0xeeb   : > { %v10515_v11 = vpop.eup %10514 }
 0xeec   : > { %v3835_v49 = vmul.f32 %v10515_v11, %v13281_v42  ;;  %v3856_v60 = vmul.f32 %v13304_v27, %v3834_v16 }
 0xeee   : > { %v3857_v52 = vmul.f32 %v13304_v27, %v3835_v49  ;;  %v3878_v15 = vadd.f32 %v13312_v14, %v3856_v60 }
 0xeef   : > { %v10517_v32 = vpop.eup %10516 }
 0xef0   : > { %8709 = vmatmul.mubr.msk.bf16.gmra.mrb[116].mxu1 %vm836_vm0, %v3895_v40  ;;  %v10519_v13 = vpop.eup %10518  ;;  %v3879_v43 = vadd.f32 %v13312_v14, %v3857_v52  ;;  %v3837_v55 = vmul.f32 %v10517_v32, %v13292_v30  ;;  %v10141_v30 = vld [vmem:[%s16207_s15] sm:$0xff]  }
 0xef1   : > { %4066 = vmatprep.mubr.bf16.mxu1 %v16489_v3  ;;  %v3836_v31 = vmul.f32 %v10519_v13, %v13286_v20  ;;  %v10140_v20 = vld [vmem:[%s16207_s15 + $0x40] sm:$0xff]  }
 0xef2   : > { %v3896_v42 = vpack.c.bf16 %v3879_v43, %v3878_v15  ;;  %v3859_v45 = vmul.f32 %v13304_v27, %v3837_v55  ;;  %9049 = vmatprep.subr.bf16.mxu0 %v10140_v20 }
 0xef3   : > { %v3858_v24 = vmul.f32 %v13304_v27, %v3836_v31  ;;  %9050 = vmatpush3.bf16.msra.mxu0 %v10141_v30  ;;  %v10142_v27 = vld [vmem:[%s16207_s15 + $0x48] sm:$0xff]  }
 0xef4   : > { %v3881_v59 = vadd.f32 %v13312_v14, %v3859_v45  ;;  %9051 = vmatprep.subr.bf16.mxu0 %v10142_v27 }
 0xef5   : > { %v3880_v9 = vadd.f32 %v13312_v14, %v3858_v24  ;;  %v10143_v14 = vld [vmem:[%s16207_s15 + $0x8] sm:$0xff]  }
 0xef7   : > { %v3897_v21 = vpack.c.bf16 %v3881_v59, %v3880_v9  ;;  %9052 = vmatpush3.bf16.msra.mxu0 %v10143_v14 }
 0xef8   : > { %8710 = vmatmul.mubr.msk.bf16.gmra.mrb[120].mxu1 %vm836_vm0, %v3896_v42  ;;  %9053 = vmatprep.subr.bf16.mxu0 %v10144_v58 }
 0xef9   : > { %4076 = vmatprep.mubr.bf16.mxu1 %v16489_v3 }
 0xefb   : > { %9054 = vmatpush3.bf16.msra.mxu0 %v10145_v47 }
 0xefc   : > { %9055 = vmatprep.subr.bf16.mxu0 %v10146_v22 }
 0xeff   : > { %9056 = vmatpush3.bf16.msra.mxu0 %v10147_v57 }
 0xf00   : > { %8711 = vmatmul.mubr.msk.bf16.gmra.mrb[124].mxu1 %vm836_vm0, %v3897_v21  ;;  %9057 = vmatprep.subr.bf16.mxu0 %v10148_v56 }
 0xf01   : > { %5044 = vmatprep.mubr.bf16.mxu1 %v16489_v3 }
 0xf03   : > { %9058 = vmatpush3.bf16.msra.mxu0 %v10149_v12 }
 0xf04   : > { %9059 = vmatprep.subr.bf16.mxu0 %v10150_v25 }
 0xf07   : > { %9060 = vmatpush3.bf16.msra.mxu0 %v10151_v34 }
 0xf08   : > { %9061 = vmatprep.subr.bf16.mxu0 %v10152_v36 }
 0xf0b   : > { %9062 = vmatpush3.bf16.msra.mxu0 %v10153_v46 }
 0xf0c   : > { %9063 = vmatprep.subr.bf16.mxu0 %v10154_v48 }
 0xf0f   : > { %9064 = vmatpush3.bf16.msra.mxu0 %v10155_v63 }
 0xf7f   : > { %v4008_v28 = vpop.f32.mrb[96].mxu1 }
 0xf80   : > { %v13433_v39 = vadd.f32 %v4008_v28, %v13427_v0  ;;  %v4010_v54 = vpop.f32.mrb[97].mxu1 }
 0xf81   : > { %v13436_v4 = vadd.f32 %v4010_v54, %v13430_v5  ;;  %v4012_v19 = vpop.f32.mrb[98].mxu1 }
 0xf82   : > { %v4087_v41 = vmul.f32 %v13433_v39, %v13433_v39  ;;  %v13441_v18 = vadd.f32 %v4012_v19, %v13427_v0  ;;  %v4014_v11 = vpop.f32.mrb[99].mxu1 }
 0xf83   : > { %v4088_v33 = vmul.f32 %v13436_v4, %v13436_v4  ;;  %v13446_v16 = vadd.f32 %v4014_v11, %v13430_v5 }
 0xf84   : > { %v4119_v49 = vmul.f32 %v4087_v41, %v13433_v39  ;;  %v4089_v40 = vmul.f32 %v13441_v18, %v13441_v18 }
 0xf85   : > { %v4120_v52 = vmul.f32 %v4088_v33, %v13436_v4  ;;  %v4090_v32 = vmul.f32 %v13446_v16, %v13446_v16 }
 0xf86   : > { %v4151_v60 = vmul.f32 0.044715, %v4119_v49  ;;  %v4121_v13 = vmul.f32 %v4089_v40, %v13441_v18 }
 0xf87   : > { %v4152_v43 = vmul.f32 0.044715, %v4120_v52  ;;  %v4122_v55 = vmul.f32 %v4090_v32, %v13446_v16  ;;  %v4018_v15 = vpop.f32.mrb[100].mxu1 }
 0xf88   : > { %v4183_v31 = vadd.f32 %v4151_v60, %v13433_v39  ;;  %v4153_v42 = vmul.f32 0.044715, %v4121_v13  ;;  %v13458_v45 = vadd.f32 %v4018_v15, %v13427_v0  ;;  %v4020_v24 = vpop.f32.mrb[101].mxu1 }
 0xf89   : > { %v4184_v59 = vadd.f32 %v4152_v43, %v13436_v4  ;;  %v4154_v9 = vmul.f32 0.044715, %v4122_v55  ;;  %v13462_v21 = vadd.f32 %v4020_v24, %v13430_v5  ;;  %v4022_v20 = vpop.f32.mrb[102].mxu1 }
 0xf8a   : > { %v4215_v30 = vmul.f32 0.7978846, %v4183_v31  ;;  %v4185_v27 = vadd.f32 %v4153_v42, %v13441_v18  ;;  %v4091_v14 = vmul.f32 %v13458_v45, %v13458_v45  ;;  %v13468_v58 = vadd.f32 %v4022_v20, %v13427_v0  ;;  %v4024_v47 = vpop.f32.mrb[103].mxu1 }
 0xf8b   : > { %v4216_v22 = vmul.f32 0.7978846, %v4184_v59  ;;  %v4186_v57 = vadd.f32 %v4154_v9, %v13446_v16  ;;  %v4092_v56 = vmul.f32 %v13462_v21, %v13462_v21  ;;  %v13474_v12 = vadd.f32 %v4024_v47, %v13430_v5 }
 0xf8c   : > { %10520 = vtanh.f32 %v4215_v30  ;;  %v4217_v25 = vmul.f32 0.7978846, %v4185_v27  ;;  %v4123_v34 = vmul.f32 %v4091_v14, %v13458_v45  ;;  %v4093_v36 = vmul.f32 %v13468_v58, %v13468_v58 }
 0xf8d   : > { %10522 = vtanh.f32 %v4216_v22  ;;  %v4218_v46 = vmul.f32 0.7978846, %v4186_v57  ;;  %v4124_v48 = vmul.f32 %v4092_v56, %v13462_v21  ;;  %v4094_v63 = vmul.f32 %v13474_v12, %v13474_v12 }
 0xf8e   : > { %10524 = vtanh.f32 %v4217_v25  ;;  %v4155_v35 = vmul.f32 0.044715, %v4123_v34  ;;  %v4125_v28 = vmul.f32 %v4093_v36, %v13468_v58 }
 0xf8f   : > { %v4156_v54 = vmul.f32 0.044715, %v4124_v48  ;;  %v4126_v19 = vmul.f32 %v4094_v63, %v13474_v12  ;;  %v4028_v41 = vpop.f32.mrb[104].mxu1  ;;  %10526 = vtanh.f32 %v4218_v46 }
 0xf90   : > { %v4187_v11 = vadd.f32 %v4155_v35, %v13458_v45  ;;  %v4157_v33 = vmul.f32 0.044715, %v4125_v28  ;;  %v13486_v49 = vadd.f32 %v4028_v41, %v13427_v0  ;;  %v4030_v40 = vpop.f32.mrb[105].mxu1 }
 0xf91   : > { %v4188_v52 = vadd.f32 %v4156_v54, %v13462_v21  ;;  %v4158_v32 = vmul.f32 0.044715, %v4126_v19  ;;  %v13490_v60 = vadd.f32 %v4030_v40, %v13430_v5  ;;  %v4032_v13 = vpop.f32.mrb[106].mxu1 }
 0xf92   : > { %v4219_v43 = vmul.f32 0.7978846, %v4187_v11  ;;  %v4189_v55 = vadd.f32 %v4157_v33, %v13468_v58  ;;  %v4095_v15 = vmul.f32 %v13486_v49, %v13486_v49  ;;  %v13496_v31 = vadd.f32 %v4032_v13, %v13427_v0  ;;  %v4034_v42 = vpop.f32.mrb[107].mxu1 }
 0xf93   : > { %v4220_v24 = vmul.f32 0.7978846, %v4188_v52  ;;  %v4190_v59 = vadd.f32 %v4158_v32, %v13474_v12  ;;  %v4096_v9 = vmul.f32 %v13490_v60, %v13490_v60  ;;  %v13502_v20 = vadd.f32 %v4034_v42, %v13430_v5 }
 0xf94   : > { %10528 = vtanh.f32 %v4219_v43  ;;  %v4221_v30 = vmul.f32 0.7978846, %v4189_v55  ;;  %v4127_v27 = vmul.f32 %v4095_v15, %v13486_v49  ;;  %v4097_v14 = vmul.f32 %v13496_v31, %v13496_v31 }
 0xf95   : > { %10530 = vtanh.f32 %v4220_v24  ;;  %v4222_v47 = vmul.f32 0.7978846, %v4190_v59  ;;  %v4128_v22 = vmul.f32 %v4096_v9, %v13490_v60  ;;  %v4098_v57 = vmul.f32 %v13502_v20, %v13502_v20 }
 0xf96   : > { %v10521_v56 = vpop.eup %10520  ;;  %10532 = vtanh.f32 %v4221_v30  ;;  %v4159_v25 = vmul.f32 0.044715, %v4127_v27  ;;  %v4129_v34 = vmul.f32 %v4097_v14, %v13496_v31 }
 0xf97   : > { %v10523_v36 = vpop.eup %10522  ;;  %v4279_v46 = vadd.f32 1.0, %v10521_v56  ;;  %10534 = vtanh.f32 %v4222_v47  ;;  %v4160_v48 = vmul.f32 0.044715, %v4128_v22  ;;  %v4130_v63 = vmul.f32 %v4098_v57, %v13502_v20  ;;  %v4038_v35 = vpop.f32.mrb[108].mxu1 }
 0xf98   : > { %v10525_v28 = vpop.eup %10524  ;;  %v4191_v54 = vadd.f32 %v4159_v25, %v13486_v49  ;;  %v4161_v19 = vmul.f32 0.044715, %v4129_v34  ;;  %v13514_v41 = vadd.f32 %v4038_v35, %v13427_v0  ;;  %v4040_v11 = vpop.f32.mrb[109].mxu1  ;;  %v4280_v33 = vadd.f32 1.0, %v10523_v36 }
 0xf99   : > { %v4311_v40 = vmul.f32 0.5, %v4279_v46  ;;  %v4281_v52 = vadd.f32 1.0, %v10525_v28  ;;  %v4192_v32 = vadd.f32 %v4160_v48, %v13490_v60  ;;  %v4162_v13 = vmul.f32 0.044715, %v4130_v63  ;;  %v4042_v43 = vpop.f32.mrb[110].mxu1  ;;  %v10527_v9 = vpop.eup %10526 }
 0xf9a   : > { %v4223_v55 = vmul.f32 0.7978846, %v4191_v54  ;;  %v4193_v15 = vadd.f32 %v4161_v19, %v13496_v31  ;;  %v4099_v42 = vmul.f32 %v13514_v41, %v13514_v41  ;;  %v13521_v24 = vadd.f32 %v4040_v11, %v13430_v5  ;;  %v4044_v59 = vpop.f32.mrb[111].mxu1 }
 0xf9b   : > { %v4343_v30 = vmul.f32 %v4311_v40, %v13433_v39  ;;  %v4313_v27 = vmul.f32 0.5, %v4281_v52  ;;  %v4224_v14 = vmul.f32 0.7978846, %v4192_v32  ;;  %v4194_v47 = vadd.f32 %v4162_v13, %v13502_v20 }
 0xf9c   : > { %10536 = vtanh.f32 %v4223_v55  ;;  %v4225_v22 = vmul.f32 0.7978846, %v4193_v15  ;;  %v4131_v57 = vmul.f32 %v4099_v42, %v13514_v41  ;;  %v4100_v56 = vmul.f32 %v13521_v24, %v13521_v24 }
 0xf9d   : > { %v4345_v25 = vmul.f32 %v4313_v27, %v13441_v18  ;;  %10538 = vtanh.f32 %v4224_v14  ;;  %v4226_v34 = vmul.f32 0.7978846, %v4194_v47  ;;  %v13530_v36 = vadd.f32 %v4042_v43, %v13427_v0 }
 0xf9e   : > { %v10529_v46 = vpop.eup %10528  ;;  %10540 = vtanh.f32 %v4225_v22  ;;  %v4163_v39 = vmul.f32 0.044715, %v4131_v57  ;;  %v4132_v48 = vmul.f32 %v4100_v56, %v13521_v24  ;;  %v13534_v63 = vadd.f32 %v4044_v59, %v13430_v5 }
 0xf9f   : > { %v10531_v35 = vpop.eup %10530  ;;  %v4407_v28 = vpack.c.bf16 %v4345_v25, %v4343_v30  ;;  %10542 = vtanh.f32 %v4226_v34  ;;  %v4101_v54 = vmul.f32 %v13530_v36, %v13530_v36  ;;  %v4282_v18 = vadd.f32 1.0, %v10527_v9 }
 0xfa0   : > { %v10533_v19 = vpop.eup %10532  ;;  %v4195_v11 = vadd.f32 %v4163_v39, %v13514_v41  ;;  %v4164_v40 = vmul.f32 0.044715, %v4132_v48  ;;  %v4102_v52 = vmul.f32 %v13534_v63, %v13534_v63  ;;  %v4312_v32 = vmul.f32 0.5, %v4280_v33 }
 0xfa1   : > { %v10535_v13 = vpop.eup %10534  ;;  %v4133_v43 = vmul.f32 %v4101_v54, %v13530_v36  ;;  %v4314_v55 = vmul.f32 0.5, %v4282_v18  ;;  %v4284_v15 = vadd.f32 1.0, %v10531_v35  ;;  %v4283_v42 = vadd.f32 1.0, %v10529_v46 }
 0xfa2   : > { %v4227_v59 = vmul.f32 0.7978846, %v4195_v11  ;;  %v4196_v30 = vadd.f32 %v4164_v40, %v13521_v24  ;;  %v4134_v27 = vmul.f32 %v4102_v52, %v13534_v63  ;;  %v4344_v9 = vmul.f32 %v4312_v32, %v13436_v4 }
 0xfa3   : > { %v4165_v14 = vmul.f32 0.044715, %v4133_v43  ;;  %v4346_v47 = vmul.f32 %v4314_v55, %v13446_v16  ;;  %v4286_v22 = vadd.f32 1.0, %v10535_v13  ;;  %v4316_v57 = vmul.f32 0.5, %v4284_v15 }
 0xfa4   : > { %10544 = vtanh.f32 %v4227_v59  ;;  %v4228_v33 = vmul.f32 0.7978846, %v4196_v30  ;;  %v4166_v56 = vmul.f32 0.044715, %v4134_v27  ;;  %v4285_v25 = vadd.f32 1.0, %v10533_v19 }
 0xfa5   : > { %v4197_v34 = vadd.f32 %v4165_v14, %v13530_v36  ;;  %v4408_v39 = vpack.c.bf16 %v4346_v47, %v4344_v9  ;;  %v4318_v46 = vmul.f32 0.5, %v4286_v22  ;;  %v4315_v54 = vmul.f32 0.5, %v4283_v42 }
 0xfa6   : > { %v10537_v48 = vpop.eup %10536  ;;  %10546 = vtanh.f32 %v4228_v33  ;;  %v4198_v35 = vadd.f32 %v4166_v56, %v13534_v63  ;;  %v4317_v18 = vmul.f32 0.5, %v4285_v25  ;;  %v4348_v16 = vmul.f32 %v4316_v57, %v13462_v21 }
 0xfa7   : > { %v10539_v4 = vpop.eup %10538  ;;  %v4229_v11 = vmul.f32 0.7978846, %v4197_v34  ;;  %4558 = vmatprep.mubr.bf16.mxu0 %v4408_v39  ;;  %v4350_v40 = vmul.f32 %v4318_v46, %v13474_v12  ;;  %v4287_v52 = vadd.f32 1.0, %v10537_v48  ;;  %v4347_v13 = vmul.f32 %v4315_v54, %v13458_v45 }
 0xfa8   : > { %v10541_v32 = vpop.eup %10540  ;;  %v4230_v19 = vmul.f32 0.7978846, %v4198_v35  ;;  %4559 = vmatmul.mubr.bf16.vlgmr.msra.gmra.mrb[112].mxu0 %v4407_v28  ;;  %v4349_v43 = vmul.f32 %v4317_v18, %v13468_v58  ;;  %v4288_v55 = vadd.f32 1.0, %v10539_v4 }
 0xfa9   : > { %v10543_v15 = vpop.eup %10542  ;;  %10548 = vtanh.f32 %v4229_v11  ;;  %v4410_v42 = vpack.c.bf16 %v4350_v40, %v4348_v16  ;;  %v4289_v59 = vadd.f32 1.0, %v10541_v32  ;;  %v4319_v30 = vmul.f32 0.5, %v4287_v52 }
 0xfaa   : > { %10550 = vtanh.f32 %v4230_v19  ;;  %v4409_v27 = vpack.c.bf16 %v4349_v43, %v4347_v13  ;;  %v4290_v9 = vadd.f32 1.0, %v10543_v15  ;;  %v4320_v21 = vmul.f32 0.5, %v4288_v55 }
 0xfab   : > { %4566 = vmatprep.mubr.bf16.mxu0 %v4410_v42  ;;  %v4321_v12 = vmul.f32 0.5, %v4289_v59  ;;  %v4351_v47 = vmul.f32 %v4319_v30, %v13486_v49 }
 0xfac   : > { %v4322_v14 = vmul.f32 0.5, %v4290_v9  ;;  %v4352_v58 = vmul.f32 %v4320_v21, %v13490_v60 }
 0xfad   : > { %v4353_v28 = vmul.f32 %v4321_v12, %v13496_v31 }
 0xfae   : > { %v10545_v45 = vpop.eup %10544  ;;  %v4354_v22 = vmul.f32 %v4322_v14, %v13502_v20 }
 0xfaf   : > { %v4411_v57 = vpack.c.bf16 %v4353_v28, %v4351_v47  ;;  %v4291_v25 = vadd.f32 1.0, %v10545_v45 }
 0xfb0   : > { %v10547_v33 = vpop.eup %10546  ;;  %4567 = vmatmul.mubr.bf16.gmra.mrb[116].mxu0 %v4409_v27  ;;  %v4412_v56 = vpack.c.bf16 %v4354_v22, %v4352_v58 }
 0xfb1   : > { %v4292_v34 = vadd.f32 1.0, %v10547_v33  ;;  %v4323_v35 = vmul.f32 0.5, %v4291_v25 }
 0xfb2   : > { %4574 = vmatprep.mubr.bf16.mxu0 %v4412_v56 }
 0xfb3   : > { %v10549_v39 = vpop.eup %10548  ;;  %v4324_v49 = vmul.f32 0.5, %v4292_v34  ;;  %v4355_v60 = vmul.f32 %v4323_v35, %v13514_v41 }
 0xfb4   : > { %v10551_v46 = vpop.eup %10550  ;;  %v4293_v48 = vadd.f32 1.0, %v10549_v39 }
 0xfb5   : > { %v4294_v54 = vadd.f32 1.0, %v10551_v46  ;;  %v4356_v4 = vmul.f32 %v4324_v49, %v13521_v24 }
 0xfb6   : > { %v4325_v18 = vmul.f32 0.5, %v4293_v48 }
 0xfb7   : > { %v4326_v31 = vmul.f32 0.5, %v4294_v54 }
 0xfb8   : > { %4575 = vmatmul.mubr.bf16.gmra.mrb[120].mxu0 %v4411_v57  ;;  %v4357_v20 = vmul.f32 %v4325_v18, %v13530_v36 }
 0xfb9   : > { %v4358_v11 = vmul.f32 %v4326_v31, %v13534_v63 }
 0xfba   : > { %v4413_v16 = vpack.c.bf16 %v4357_v20, %v4355_v60 }
 0xfbb   : > { %v4414_v40 = vpack.c.bf16 %v4358_v11, %v4356_v4  ;;  %v4048_v52 = vpop.f32.mrb[112].mxu1 }
 0xfbc   : > { %v13561_v32 = vadd.f32 %v4048_v52, %v13427_v0  ;;  %v4050_v19 = vpop.f32.mrb[113].mxu1 }
 0xfbd   : > { %4582 = vmatprep.mubr.bf16.mxu0 %v4414_v40  ;;  %v13564_v13 = vadd.f32 %v4050_v19, %v13430_v5  ;;  %v4052_v43 = vpop.f32.mrb[114].mxu1 }
 0xfbe   : > { %v4103_v41 = vmul.f32 %v13561_v32, %v13561_v32  ;;  %v13569_v36 = vadd.f32 %v4052_v43, %v13427_v0  ;;  %v4054_v24 = vpop.f32.mrb[115].mxu1 }
 0xfbf   : > { %v4104_v63 = vmul.f32 %v13564_v13, %v13564_v13  ;;  %v13574_v55 = vadd.f32 %v4054_v24, %v13430_v5 }
 0xfc0   : > { %v4135_v15 = vmul.f32 %v4103_v41, %v13561_v32  ;;  %4583 = vmatmul.mubr.bf16.gmra.mrb[124].mxu0 %v4413_v16  ;;  %v4105_v42 = vmul.f32 %v13569_v36, %v13569_v36 }
 0xfc1   : > { %v4136_v59 = vmul.f32 %v4104_v63, %v13564_v13  ;;  %v4106_v30 = vmul.f32 %v13574_v55, %v13574_v55 }
 0xfc2   : > { %v4167_v27 = vmul.f32 0.044715, %v4135_v15  ;;  %v4137_v9 = vmul.f32 %v4105_v42, %v13569_v36 }
 0xfc3   : > { %v4168_v21 = vmul.f32 0.044715, %v4136_v59  ;;  %v4138_v12 = vmul.f32 %v4106_v30, %v13574_v55  ;;  %v4058_v14 = vpop.f32.mrb[116].mxu1 }
 0xfc4   : > { %v4199_v47 = vadd.f32 %v4167_v27, %v13561_v32  ;;  %v4169_v28 = vmul.f32 0.044715, %v4137_v9  ;;  %v13586_v45 = vadd.f32 %v4058_v14, %v13427_v0  ;;  %v4060_v58 = vpop.f32.mrb[117].mxu1 }
 0xfc5   : > { %v4200_v22 = vadd.f32 %v4168_v21, %v13564_v13  ;;  %v4170_v57 = vmul.f32 0.044715, %v4138_v12  ;;  %v13590_v33 = vadd.f32 %v4060_v58, %v13430_v5  ;;  %v4062_v56 = vpop.f32.mrb[118].mxu1 }
 0xfc6   : > { %v4231_v25 = vmul.f32 0.7978846, %v4199_v47  ;;  %v4201_v34 = vadd.f32 %v4169_v28, %v13569_v36  ;;  %v4107_v39 = vmul.f32 %v13586_v45, %v13586_v45  ;;  %v13596_v46 = vadd.f32 %v4062_v56, %v13427_v0  ;;  %v4064_v48 = vpop.f32.mrb[119].mxu1 }
 0xfc7   : > { %v4232_v35 = vmul.f32 0.7978846, %v4200_v22  ;;  %v4202_v54 = vadd.f32 %v4170_v57, %v13574_v55  ;;  %v4108_v49 = vmul.f32 %v13590_v33, %v13590_v33  ;;  %v13602_v18 = vadd.f32 %v4064_v48, %v13430_v5 }
 0xfc8   : > { %10552 = vtanh.f32 %v4231_v25  ;;  %v4233_v31 = vmul.f32 0.7978846, %v4201_v34  ;;  %v4139_v60 = vmul.f32 %v4107_v39, %v13586_v45  ;;  %v4109_v20 = vmul.f32 %v13596_v46, %v13596_v46 }
 0xfc9   : > { %10554 = vtanh.f32 %v4232_v35  ;;  %v4234_v4 = vmul.f32 0.7978846, %v4202_v54  ;;  %v4140_v11 = vmul.f32 %v4108_v49, %v13590_v33  ;;  %v4110_v16 = vmul.f32 %v13602_v18, %v13602_v18 }
 0xfca   : > { %10556 = vtanh.f32 %v4233_v31  ;;  %v4171_v40 = vmul.f32 0.044715, %v4139_v60  ;;  %v4141_v52 = vmul.f32 %v4109_v20, %v13596_v46 }
 0xfcb   : > { %v4172_v19 = vmul.f32 0.044715, %v4140_v11  ;;  %v4142_v43 = vmul.f32 %v4110_v16, %v13602_v18  ;;  %v4068_v41 = vpop.f32.mrb[120].mxu1  ;;  %10558 = vtanh.f32 %v4234_v4 }
 0xfcc   : > { %v4203_v24 = vadd.f32 %v4171_v40, %v13586_v45  ;;  %v4173_v63 = vmul.f32 0.044715, %v4141_v52  ;;  %v13614_v15 = vadd.f32 %v4068_v41, %v13427_v0  ;;  %v4070_v42 = vpop.f32.mrb[121].mxu1 }
 0xfcd   : > { %v4204_v59 = vadd.f32 %v4172_v19, %v13590_v33  ;;  %v4174_v30 = vmul.f32 0.044715, %v4142_v43  ;;  %v13618_v27 = vadd.f32 %v4070_v42, %v13430_v5  ;;  %v4072_v9 = vpop.f32.mrb[122].mxu1 }
 0xfce   : > { %v4235_v21 = vmul.f32 0.7978846, %v4203_v24  ;;  %v4205_v12 = vadd.f32 %v4173_v63, %v13596_v46  ;;  %v4111_v14 = vmul.f32 %v13614_v15, %v13614_v15  ;;  %v13624_v47 = vadd.f32 %v4072_v9, %v13427_v0  ;;  %v4074_v28 = vpop.f32.mrb[123].mxu1 }
 0xfcf   : > { %v4236_v58 = vmul.f32 0.7978846, %v4204_v59  ;;  %v4206_v22 = vadd.f32 %v4174_v30, %v13602_v18  ;;  %v4112_v57 = vmul.f32 %v13618_v27, %v13618_v27  ;;  %v13630_v56 = vadd.f32 %v4074_v28, %v13430_v5 }
 0xfd0   : > { %10560 = vtanh.f32 %v4235_v21  ;;  %v4237_v25 = vmul.f32 0.7978846, %v4205_v12  ;;  %v4143_v34 = vmul.f32 %v4111_v14, %v13614_v15  ;;  %v4113_v39 = vmul.f32 %v13624_v47, %v13624_v47 }
 0xfd1   : > { %10562 = vtanh.f32 %v4236_v58  ;;  %v4238_v48 = vmul.f32 0.7978846, %v4206_v22  ;;  %v4144_v35 = vmul.f32 %v4112_v57, %v13618_v27  ;;  %v4114_v54 = vmul.f32 %v13630_v56, %v13630_v56 }
 0xfd2   : > { %v10553_v49 = vpop.eup %10552  ;;  %10564 = vtanh.f32 %v4237_v25  ;;  %v4175_v31 = vmul.f32 0.044715, %v4143_v34  ;;  %v4145_v60 = vmul.f32 %v4113_v39, %v13624_v47 }
 0xfd3   : > { %v10555_v20 = vpop.eup %10554  ;;  %10566 = vtanh.f32 %v4238_v48  ;;  %v4176_v4 = vmul.f32 0.044715, %v4144_v35  ;;  %v4146_v11 = vmul.f32 %v4114_v54, %v13630_v56  ;;  %v4078_v16 = vpop.f32.mrb[124].mxu1  ;;  %v4295_v40 = vadd.f32 1.0, %v10553_v49 }
 0xfd4   : > { %v10557_v52 = vpop.eup %10556  ;;  %v4207_v19 = vadd.f32 %v4175_v31, %v13614_v15  ;;  %v4177_v43 = vmul.f32 0.044715, %v4145_v60  ;;  %v13642_v41 = vadd.f32 %v4078_v16, %v13427_v0  ;;  %v4080_v24 = vpop.f32.mrb[125].mxu1  ;;  %v4296_v63 = vadd.f32 1.0, %v10555_v20 }
 0xfd5   : > { %v4208_v42 = vadd.f32 %v4176_v4, %v13618_v27  ;;  %v4178_v59 = vmul.f32 0.044715, %v4146_v11  ;;  %v13646_v30 = vadd.f32 %v4080_v24, %v13430_v5  ;;  %v4082_v9 = vpop.f32.mrb[126].mxu1  ;;  %v4297_v21 = vadd.f32 1.0, %v10557_v52  ;;  %v10559_v57 = vpop.eup %10558 }
 0xfd6   : > { %v4239_v12 = vmul.f32 0.7978846, %v4207_v19  ;;  %v4209_v14 = vadd.f32 %v4177_v43, %v13624_v47  ;;  %v4115_v28 = vmul.f32 %v13642_v41, %v13642_v41  ;;  %v13652_v58 = vadd.f32 %v4082_v9, %v13427_v0  ;;  %v4084_v22 = vpop.f32.mrb[127].mxu1 }
 0xfd7   : > { %v4240_v25 = vmul.f32 0.7978846, %v4208_v42  ;;  %v4210_v34 = vadd.f32 %v4178_v59, %v13630_v56  ;;  %v4116_v39 = vmul.f32 %v13646_v30, %v13646_v30  ;;  %v13658_v48 = vadd.f32 %v4084_v22, %v13430_v5 }
 0xfd8   : > { %10568 = vtanh.f32 %v4239_v12  ;;  %v4241_v35 = vmul.f32 0.7978846, %v4209_v14  ;;  %v4147_v54 = vmul.f32 %v4115_v28, %v13642_v41  ;;  %v4117_v49 = vmul.f32 %v13652_v58, %v13652_v58 }
 0xfd9   : > { %10570 = vtanh.f32 %v4240_v25  ;;  %v4242_v0 = vmul.f32 0.7978846, %v4210_v34  ;;  %v4148_v31 = vmul.f32 %v4116_v39, %v13646_v30  ;;  %v4118_v60 = vmul.f32 %v13658_v48, %v13658_v48 }
 0xfda   : > { %v10561_v20 = vpop.eup %10560  ;;  %10572 = vtanh.f32 %v4241_v35  ;;  %v4179_v4 = vmul.f32 0.044715, %v4147_v54  ;;  %v4149_v5 = vmul.f32 %v4117_v49, %v13652_v58  ;;  %v4298_v11 = vadd.f32 1.0, %v10559_v57 }
 0xfdb   : > { %v10563_v16 = vpop.eup %10562  ;;  %10574 = vtanh.f32 %v4242_v0  ;;  %v4180_v52 = vmul.f32 0.044715, %v4148_v31  ;;  %v4150_v19 = vmul.f32 %v4118_v60, %v13658_v48  ;;  %v4328_v43 = vmul.f32 0.5, %v4296_v63 }
 0xfdc   : > { %v10565_v24 = vpop.eup %10564  ;;  %v4211_v42 = vadd.f32 %v4179_v4, %v13642_v41  ;;  %v4181_v59 = vmul.f32 0.044715, %v4149_v5  ;;  %v4330_v9 = vmul.f32 0.5, %v4298_v11  ;;  %v4327_v12 = vmul.f32 0.5, %v4295_v40 }
 0xfdd   : > { %v10567_v14 = vpop.eup %10566  ;;  %v4212_v28 = vadd.f32 %v4180_v52, %v13646_v30  ;;  %v4182_v22 = vmul.f32 0.044715, %v4150_v19  ;;  %v4360_v25 = vmul.f32 %v4328_v43, %v13564_v13  ;;  %v4329_v34 = vmul.f32 0.5, %v4297_v21 }
 0xfde   : > { %v4243_v57 = vmul.f32 0.7978846, %v4211_v42  ;;  %v4213_v39 = vadd.f32 %v4181_v59, %v13652_v58  ;;  %v4362_v35 = vmul.f32 %v4330_v9, %v13574_v55  ;;  %v4359_v63 = vmul.f32 %v4327_v12, %v13561_v32 }
 0xfdf   : > { %v4244_v54 = vmul.f32 0.7978846, %v4212_v28  ;;  %v4214_v49 = vadd.f32 %v4182_v22, %v13658_v48  ;;  %v4361_v0 = vmul.f32 %v4329_v34, %v13569_v36  ;;  %v4300_v40 = vadd.f32 1.0, %v10563_v16 }
 0xfe0   : > { %10576 = vtanh.f32 %v4243_v57  ;;  %v4245_v31 = vmul.f32 0.7978846, %v4213_v39  ;;  %v4416_v60 = vpack.c.bf16 %v4362_v35, %v4360_v25  ;;  %v4302_v4 = vadd.f32 1.0, %v10567_v14 }
 0xfe1   : > { %10578 = vtanh.f32 %v4244_v54  ;;  %v4246_v13 = vmul.f32 0.7978846, %v4214_v49  ;;  %v4415_v21 = vpack.c.bf16 %v4361_v0, %v4359_v63  ;;  %v4332_v5 = vmul.f32 0.5, %v4300_v40 }
 0xfe2   : > { %v10569_v11 = vpop.eup %10568  ;;  %10580 = vtanh.f32 %v4245_v31  ;;  %4590 = vmatprep.mubr.bf16.mxu0 %v4416_v60  ;;  %v4334_v55 = vmul.f32 0.5, %v4302_v4  ;;  %v4299_v52 = vadd.f32 1.0, %v10561_v20  ;;  %v4301_v32 = vadd.f32 1.0, %v10565_v24 }
 0xfe3   : > { %v10571_v19 = vpop.eup %10570  ;;  %10582 = vtanh.f32 %v4246_v13  ;;  %4591 = vmatmul.mubr.bf16.gmra.mrb[128].mxu0 %v4415_v21  ;;  %v4364_v36 = vmul.f32 %v4332_v5, %v13590_v33  ;;  %v4303_v16 = vadd.f32 1.0, %v10569_v11 }
 0xfe4   : > { %v10573_v43 = vpop.eup %10572  ;;  %v4366_v42 = vmul.f32 %v4334_v55, %v13602_v18  ;;  %v4331_v59 = vmul.f32 0.5, %v4299_v52  ;;  %v4333_v9 = vmul.f32 0.5, %v4301_v32  ;;  %v4304_v12 = vadd.f32 1.0, %v10571_v19 }
 0xfe5   : > { %v10575_v14 = vpop.eup %10574  ;;  %v4305_v28 = vadd.f32 1.0, %v10573_v43  ;;  %v4335_v22 = vmul.f32 0.5, %v4303_v16  ;;  %v13691_v43 = vld [vmem:[%s16208_s16] ss:$0 sm:$0xff] }
 0xfe6   : > { %v4418_v25 = vpack.c.bf16 %v4366_v42, %v4364_v36  ;;  %v4363_v34 = vmul.f32 %v4331_v59, %v13586_v45  ;;  %v4365_v20 = vmul.f32 %v4333_v9, %v13596_v46  ;;  %v4306_v24 = vadd.f32 1.0, %v10575_v14 }
 0xfe7   : > { %v4336_v57 = vmul.f32 0.5, %v4304_v12  ;;  %v4337_v39 = vmul.f32 0.5, %v4305_v28  ;;  %v4367_v63 = vmul.f32 %v4335_v22, %v13614_v15 }
 0xfe8   : > { %4598 = vmatprep.mubr.bf16.mxu0 %v4418_v25  ;;  %v4417_v33 = vpack.c.bf16 %v4365_v20, %v4363_v34  ;;  %v4338_v35 = vmul.f32 0.5, %v4306_v24 }
 0xfe9   : > { %v4369_v18 = vmul.f32 %v4337_v39, %v13624_v47  ;;  %v4368_v49 = vmul.f32 %v4336_v57, %v13618_v27 }
 0xfea   : > { %v10577_v54 = vpop.eup %10576  ;;  %v4370_v0 = vmul.f32 %v4338_v35, %v13630_v56 }
 0xfeb   : > { %v10579_v40 = vpop.eup %10578  ;;  %4599 = vmatmul.mubr.bf16.gmra.mrb[132].mxu0 %v4417_v33  ;;  %v4419_v45 = vpack.c.bf16 %v4369_v18, %v4367_v63  ;;  %v4307_v31 = vadd.f32 1.0, %v10577_v54 }
 0xfec   : > { %v10581_v46 = vpop.eup %10580  ;;  %v4420_v60 = vpack.c.bf16 %v4370_v0, %v4368_v49  ;;  %v4308_v4 = vadd.f32 1.0, %v10579_v40 }
 0xfed   : > { %v10583_v13 = vpop.eup %10582  ;;  %v4309_v21 = vadd.f32 1.0, %v10581_v46  ;;  %v4339_v5 = vmul.f32 0.5, %v4307_v31 }
 0xfee   : > { %4606 = vmatprep.mubr.bf16.mxu0 %v4420_v60  ;;  %v4310_v11 = vadd.f32 1.0, %v10583_v13  ;;  %v4340_v15 = vmul.f32 0.5, %v4308_v4 }
 0xfef   : > { %v4341_v55 = vmul.f32 0.5, %v4309_v21  ;;  %v4371_v52 = vmul.f32 %v4339_v5, %v13642_v41 }
 0xff0   : > { %v4342_v47 = vmul.f32 0.5, %v4310_v11  ;;  %v4372_v56 = vmul.f32 %v4340_v15, %v13646_v30  ;;  %v13696_v30 = vld [vmem:[%s16209_s17] ss:$0 sm:$0xff] }
 0xff1   : > { %v4373_v27 = vmul.f32 %v4341_v55, %v13652_v58 }
 0xff2   : > { %v4374_v32 = vmul.f32 %v4342_v47, %v13658_v48 }
 0xff3   : > { %4607 = vmatmul.mubr.bf16.gmra.mrb[136].mxu0 %v4419_v45  ;;  %v4421_v19 = vpack.c.bf16 %v4373_v27, %v4371_v52 }
 0xff4   : > { %v4422_v36 = vpack.c.bf16 %v4374_v32, %v4372_v56 }
 0xff6   : > { %4614 = vmatprep.mubr.bf16.mxu0 %v4422_v36 }
 0xffb   : > { %4615 = vmatmul.mubr.bf16.gmra.mrb[140].mxu0 %v4421_v19 }
0x107b   : > { %v9065_v16 = vpop.f32.mrb[112].mxu0 }
0x107c   : > { %v9066_v42 = vpop.f32.mrb[113].mxu0 }
0x107d   : > { %v9067_v59 = vadd.f32 %v9066_v42, %v9065_v16  ;;  %v9068_v41 = vpop.f32.mrb[114].mxu0 }
0x107e   : > { %v9069_v58 = vpop.f32.mrb[115].mxu0 }
0x107f   : > { %v4561_v48 = vadd.f32 %v9067_v59, %v13691_v43  ;;  %v9070_v9 = vadd.f32 %v9069_v58, %v9068_v41 }
0x1081   : > { %v4630_v12 = vmul.f32 %v13696_v30, %v4561_v48  ;;  %v4564_v14 = vadd.f32 %v9070_v9, %v13691_v43 }
0x1083   : > { %v4631_v28 = vmul.f32 %v13696_v30, %v4564_v14  ;;  %v9071_v22 = vpop.f32.mrb[116].mxu0  ;;  %v13703_v25 = vadd.f32 %v4630_v12, %v13076_v7 }
0x1084   : > { %v9072_v34 = vpop.f32.mrb[117].mxu0 }
0x1085   : > { %16561 = vst [vmem:[#allocation36_spill] sm:$0xff] %v13703_v25  ;;  %v9073_v20 = vadd.f32 %v9072_v34, %v9071_v22  ;;  %v9074_v24 = vpop.f32.mrb[118].mxu0  ;;  %v4666_v57 = vsel %vm836_vm0, %v13703_v25, 0.0  ;;  %v13708_v39 = vadd.f32 %v4631_v28, %v13084_v53 }
0x1086   : > { %4667 = vadd.xlane.f32.xlu0 %v4666_v57  ;;  %v9075_v33 = vpop.f32.mrb[119].mxu0 }
0x1087   : > { %16562 = vst [vmem:[#allocation37_spill] sm:$0xff] %v13708_v39  ;;  %v4569_v35 = vadd.f32 %v9073_v20, %v13691_v43  ;;  %v9076_v63 = vadd.f32 %v9075_v33, %v9074_v24  ;;  %v4669_v18 = vsel %vm836_vm0, %v13708_v39, 0.0 }
0x1088   : > { %4670 = vadd.xlane.f32.xlu1 %v4669_v18 }
0x1089   : > { %v4632_v7 = vmul.f32 %v13696_v30, %v4569_v35  ;;  %v4572_v54 = vadd.f32 %v9076_v63, %v13691_v43 }
0x108b   : > { %v4633_v49 = vmul.f32 %v13696_v30, %v4572_v54  ;;  %v9077_v0 = vpop.f32.mrb[120].mxu0  ;;  %v13717_v40 = vadd.f32 %v4632_v7, %v13080_v26 }
0x108c   : > { %v9078_v53 = vpop.f32.mrb[121].mxu0 }
0x108d   : > { %16563 = vst [vmem:[#allocation35_spill] sm:$0xff] %v13717_v40  ;;  %v9079_v45 = vadd.f32 %v9078_v53, %v9077_v0  ;;  %v9080_v31 = vpop.f32.mrb[122].mxu0  ;;  %v4672_v46 = vsel %vm836_vm0, %v13717_v40, 0.0  ;;  %v13722_v60 = vadd.f32 %v4633_v49, %v13091_v61 }
0x108e   : > { %4673 = vadd.xlane.f32.xlu0 %v4672_v46  ;;  %v9081_v4 = vpop.f32.mrb[123].mxu0 }
0x108f   : > { %16564 = vst [vmem:[#allocation34_spill] sm:$0xff] %v13722_v60  ;;  %v4577_v13 = vadd.f32 %v9079_v45, %v13691_v43  ;;  %v9082_v21 = vadd.f32 %v9081_v4, %v9080_v31  ;;  %v4675_v5 = vsel %vm836_vm0, %v13722_v60, 0.0 }
0x1090   : > { %4676 = vadd.xlane.f32.xlu1 %v4675_v5 }
0x1091   : > { %v4634_v26 = vmul.f32 %v13696_v30, %v4577_v13  ;;  %v4580_v11 = vadd.f32 %v9082_v21, %v13691_v43 }
0x1093   : > { %v4635_v15 = vmul.f32 %v13696_v30, %v4580_v11  ;;  %v9083_v55 = vpop.f32.mrb[124].mxu0  ;;  %v13731_v47 = vadd.f32 %v4634_v26, %v13104_v8 }
0x1094   : > { %v9084_v61 = vpop.f32.mrb[125].mxu0 }
0x1095   : > { %16565 = vst [vmem:[#allocation54_spill] sm:$0xff] %v13731_v47  ;;  %v9085_v52 = vadd.f32 %v9084_v61, %v9083_v55  ;;  %v9086_v27 = vpop.f32.mrb[126].mxu0  ;;  %v4678_v56 = vsel %vm836_vm0, %v13731_v47, 0.0  ;;  %v13736_v32 = vadd.f32 %v4635_v15, %v13112_v1 }
0x1096   : > { %4679 = vadd.xlane.f32.xlu0 %v4678_v56  ;;  %v9087_v19 = vpop.f32.mrb[127].mxu0 }
0x1097   : > { %16566 = vst [vmem:[#allocation52_spill] sm:$0xff] %v13736_v32  ;;  %v4585_v36 = vadd.f32 %v9085_v52, %v13691_v43  ;;  %v9088_v16 = vadd.f32 %v9087_v19, %v9086_v27  ;;  %v4681_v42 = vsel %vm836_vm0, %v13736_v32, 0.0 }
0x1098   : > { %4682 = vadd.xlane.f32.xlu1 %v4681_v42 }
0x1099   : > { %v4636_v8 = vmul.f32 %v13696_v30, %v4585_v36  ;;  %v4588_v59 = vadd.f32 %v9088_v16, %v13691_v43 }
0x109b   : > { %v4637_v41 = vmul.f32 %v13696_v30, %v4588_v59  ;;  %v13745_v58 = vadd.f32 %v4636_v8, %v13109_v44 }
0x109d   : > { %16567 = vst [vmem:[#allocation55_spill] sm:$0xff] %v13745_v58  ;;  %v4684_v1 = vsel %vm836_vm0, %v13745_v58, 0.0  ;;  %v13750_v48 = vadd.f32 %v4637_v41, %v13117_v50 }
0x109e   : > { %4685 = vadd.xlane.f32.xlu0 %v4684_v1 }
0x109f   : > { %16568 = vst [vmem:[#allocation53_spill] sm:$0xff] %v13750_v48  ;;  %v4687_v9 = vsel %vm836_vm0, %v13750_v48, 0.0 }
0x10a0   : > { %4688 = vadd.xlane.f32.xlu1 %v4687_v9 }
0x10b6   : > { %v9089_v12 = vpop.f32.mrb[128].mxu0 }
0x10b7   : > { %v9090_v14 = vpop.f32.mrb[129].mxu0 }
0x10b8   : > { %v9091_v28 = vadd.f32 %v9090_v14, %v9089_v12  ;;  %v9092_v22 = vpop.f32.mrb[130].mxu0 }
0x10b9   : > { %v9093_v34 = vpop.f32.mrb[131].mxu0 }
0x10ba   : > { %v4593_v20 = vadd.f32 %v9091_v28, %v13691_v43  ;;  %v9094_v44 = vadd.f32 %v9093_v34, %v9092_v22 }
0x10bc   : > { %v4638_v24 = vmul.f32 %v13696_v30, %v4593_v20  ;;  %v4596_v57 = vadd.f32 %v9094_v44, %v13691_v43 }
0x10be   : > { %v4639_v50 = vmul.f32 %v13696_v30, %v4596_v57  ;;  %v9095_v33 = vpop.f32.mrb[132].mxu0  ;;  %v13759_v35 = vadd.f32 %v4638_v24, %v13132_v6 }
0x10bf   : > { %v9096_v63 = vpop.f32.mrb[133].mxu0 }
0x10c0   : > { %16569 = vst [vmem:[#allocation58_spill] sm:$0xff] %v13759_v35  ;;  %v9097_v18 = vadd.f32 %v9096_v63, %v9095_v33  ;;  %v9098_v7 = vpop.f32.mrb[134].mxu0  ;;  %v4690_v54 = vsel %vm836_vm0, %v13759_v35, 0.0  ;;  %v13764_v49 = vadd.f32 %v4639_v50, %v13140_v2 }
0x10c1   : > { %4691 = vadd.xlane.f32.xlu0 %v4690_v54  ;;  %v9099_v0 = vpop.f32.mrb[135].mxu0 }
0x10c2   : > { %16570 = vst [vmem:[#allocation56_spill] sm:$0xff] %v13764_v49  ;;  %v4601_v53 = vadd.f32 %v9097_v18, %v13691_v43  ;;  %v9100_v45 = vadd.f32 %v9099_v0, %v9098_v7  ;;  %v4693_v31 = vsel %vm836_vm0, %v13764_v49, 0.0 }
0x10c3   : > { %4694 = vadd.xlane.f32.xlu1 %v4693_v31 }
0x10c4   : > { %v4640_v6 = vmul.f32 %v13696_v30, %v4601_v53  ;;  %v4604_v46 = vadd.f32 %v9100_v45, %v13691_v43 }
0x10c6   : > { %v4641_v4 = vmul.f32 %v13696_v30, %v4604_v46  ;;  %v9101_v13 = vpop.f32.mrb[136].mxu0  ;;  %v13773_v21 = vadd.f32 %v4640_v6, %v13137_v29 }
0x10c7   : > { %v9102_v2 = vpop.f32.mrb[137].mxu0 }
0x10c8   : > { %16571 = vst [vmem:[#allocation59_spill] sm:$0xff] %v13773_v21  ;;  %v9103_v5 = vadd.f32 %v9102_v2, %v9101_v13  ;;  %v9104_v26 = vpop.f32.mrb[138].mxu0  ;;  %v4696_v11 = vsel %vm836_vm0, %v13773_v21, 0.0  ;;  %v13778_v15 = vadd.f32 %v4641_v4, %v13145_v17 }
0x10c9   : > { %4697 = vadd.xlane.f32.xlu0 %v4696_v11  ;;  %v9105_v55 = vpop.f32.mrb[139].mxu0 }
0x10ca   : > { %16572 = vst [vmem:[#allocation57_spill] sm:$0xff] %v13778_v15  ;;  %v4609_v61 = vadd.f32 %v9103_v5, %v13691_v43  ;;  %v9106_v52 = vadd.f32 %v9105_v55, %v9104_v26  ;;  %v4699_v27 = vsel %vm836_vm0, %v13778_v15, 0.0 }
0x10cb   : > { %4700 = vadd.xlane.f32.xlu1 %v4699_v27 }
0x10cc   : > { %v4642_v29 = vmul.f32 %v13696_v30, %v4609_v61  ;;  %v4612_v56 = vadd.f32 %v9106_v52, %v13691_v43 }
0x10ce   : > { %v4643_v19 = vmul.f32 %v13696_v30, %v4612_v56  ;;  %v9107_v36 = vpop.f32.mrb[140].mxu0  ;;  %v13787_v16 = vadd.f32 %v4642_v29, %v13160_v23 }
0x10cf   : > { %v9108_v17 = vpop.f32.mrb[141].mxu0 }
0x10d0   : > { %16573 = vst [vmem:[#allocation62_spill] sm:$0xff] %v13787_v16  ;;  %v9109_v42 = vadd.f32 %v9108_v17, %v9107_v36  ;;  %v9110_v8 = vpop.f32.mrb[142].mxu0  ;;  %v4702_v59 = vsel %vm836_vm0, %v13787_v16, 0.0  ;;  %v13792_v41 = vadd.f32 %v4643_v19, %v13168_v38 }
0x10d1   : > { %4703 = vadd.xlane.f32.xlu0 %v4702_v59  ;;  %v9111_v1 = vpop.f32.mrb[143].mxu0 }
0x10d2   : > { %16574 = vst [vmem:[#allocation60_spill] sm:$0xff] %v13792_v41  ;;  %v4617_v9 = vadd.f32 %v9109_v42, %v13691_v43  ;;  %v9112_v12 = vadd.f32 %v9111_v1, %v9110_v8  ;;  %v4705_v14 = vsel %vm836_vm0, %v13792_v41, 0.0 }
0x10d3   : > { %4706 = vadd.xlane.f32.xlu1 %v4705_v14 }
0x10d4   : > { %v4644_v23 = vmul.f32 %v13696_v30, %v4617_v9  ;;  %v4620_v28 = vadd.f32 %v9112_v12, %v13691_v43  ;;  %v10156_v43 = vld [vmem:[%s16198_s6 + $0x40] ss:$8 sps:$4 sm:$0xff]  }
0x10d6   : > { %v4645_v22 = vmul.f32 %v13696_v30, %v4620_v28  ;;  %v13801_v34 = vadd.f32 %v4644_v23, %v13165_v62  ;;  %v10158_v62 = vld [vmem:[%s16198_s6 + $0x44] ss:$8 sps:$4 sm:$0xff]  }
0x10d7   : > { %5012 = vmatprep.subr.bf16.mxu1 %v10158_v62  ;;  %v10167_v62 = vld [vmem:[%s16198_s6 + $0x74] ss:$8 sps:$4 sm:$0xff]  }
0x10d8   : > { %16575 = vst [vmem:[#allocation63_spill] sm:$0xff] %v13801_v34  ;;  %v4708_v38 = vsel %vm836_vm0, %v13801_v34, 0.0  ;;  %v13806_v20 = vadd.f32 %v4645_v22, %v13173_v37  ;;  %5013 = vmatpush1.bf16.msra.mxu1 %v10156_v43  ;;  %v10161_v22 = vld [vmem:[%s16198_s6 + $0x54] ss:$8 sps:$4 sm:$0xff]   ;;  %v10162_v43 = vld [vmem:[%s16198_s6 + $0x60] ss:$8 sps:$4 sm:$0xff]  }
0x10d9   : > { %4709 = vadd.xlane.f32.xlu0 %v4708_v38  ;;  %v10159_v38 = vld [vmem:[%s16198_s6 + $0x50] ss:$8 sps:$4 sm:$0xff]   ;;  %5014 = vmatprep.subr.bf16.mxu1 %v10161_v22 }
0x10da   : > { %16576 = vst [vmem:[#allocation61_spill] sm:$0xff] %v13806_v20  ;;  %v4711_v44 = vsel %vm836_vm0, %v13806_v20, 0.0 }
0x10db   : > { %4712 = vadd.xlane.f32.xlu1 %v4711_v44  ;;  %v10164_v44 = vld [vmem:[%s16198_s6 + $0x64] ss:$8 sps:$4 sm:$0xff]  }
0x10dc   : > { %5015 = vmatpush1.bf16.msra.mxu1 %v10159_v38 }
0x10dd   : > { %5016 = vmatprep.subr.bf16.mxu1 %v10164_v44 }
0x10e0   : > { %5017 = vmatpush1.bf16.msra.mxu1 %v10162_v43 }
0x10e1   : > { %5018 = vmatprep.subr.bf16.mxu1 %v10167_v62 }
0x1113   : > { %v4668_v30 = vpop.xlane.xlu0 %4667 }
0x1114   : > { %v4714_v24 = vmul.f32 0.015625, %v4668_v30  ;;  %v10165_v30 = vld [vmem:[%s16198_s6 + $0x70] ss:$8 sps:$4 sm:$0xff]  }
0x1115   : > { %v4671_v57 = vpop.xlane.xlu1 %4670  ;;  %5019 = vmatpush1.bf16.msra.mxu1 %v10165_v30 }
0x1116   : > { %v13817_v37 = vsub.f32 %v13703_v25, %v4714_v24  ;;  %v4715_v50 = vmul.f32 0.015625, %v4671_v57 }
0x1118   : > { %v13820_v33 = vsub.f32 %v13708_v39, %v4715_v50  ;;  %v4746_v63 = vmul.f32 %v13817_v37, %v13817_v37 }
0x111a   : > { %v4762_v18 = vsel %vm836_vm0, %v4746_v63, 0.0  ;;  %v4747_v7 = vmul.f32 %v13820_v33, %v13820_v33 }
0x111b   : > { %4763 = vadd.xlane.f32.xlu0 %v4762_v18  ;;  %v4674_v54 = vpop.xlane.xlu0 %4673 }
0x111c   : > { %v4716_v0 = vmul.f32 0.015625, %v4674_v54  ;;  %v4765_v53 = vsel %vm836_vm0, %v4747_v7, 0.0 }
0x111d   : > { %v4677_v45 = vpop.xlane.xlu1 %4676  ;;  %4766 = vadd.xlane.f32.xlu1 %v4765_v53 }
0x111e   : > { %v13829_v31 = vsub.f32 %v13717_v40, %v4716_v0  ;;  %v4717_v6 = vmul.f32 0.015625, %v4677_v45 }
0x1120   : > { %v13832_v46 = vsub.f32 %v13722_v60, %v4717_v6  ;;  %v4748_v4 = vmul.f32 %v13829_v31, %v13829_v31 }
0x1122   : > { %v4768_v13 = vsel %vm836_vm0, %v4748_v4, 0.0  ;;  %v4749_v2 = vmul.f32 %v13832_v46, %v13832_v46 }
0x1123   : > { %4769 = vadd.xlane.f32.xlu0 %v4768_v13  ;;  %v4680_v5 = vpop.xlane.xlu0 %4679 }
0x1124   : > { %v4718_v26 = vmul.f32 0.015625, %v4680_v5  ;;  %v4771_v11 = vsel %vm836_vm0, %v4749_v2, 0.0 }
0x1125   : > { %v4683_v55 = vpop.xlane.xlu1 %4682  ;;  %4772 = vadd.xlane.f32.xlu1 %v4771_v11 }
0x1126   : > { %v13841_v61 = vsub.f32 %v13731_v47, %v4718_v26  ;;  %v4719_v52 = vmul.f32 0.015625, %v4683_v55 }
0x1128   : > { %v13844_v27 = vsub.f32 %v13736_v32, %v4719_v52  ;;  %v4750_v29 = vmul.f32 %v13841_v61, %v13841_v61 }
0x112a   : > { %v4774_v56 = vsel %vm836_vm0, %v4750_v29, 0.0  ;;  %v4751_v19 = vmul.f32 %v13844_v27, %v13844_v27 }
0x112b   : > { %4775 = vadd.xlane.f32.xlu0 %v4774_v56  ;;  %v4686_v36 = vpop.xlane.xlu0 %4685 }
0x112c   : > { %v4720_v17 = vmul.f32 0.015625, %v4686_v36  ;;  %v4777_v42 = vsel %vm836_vm0, %v4751_v19, 0.0 }
0x112d   : > { %v4689_v8 = vpop.xlane.xlu1 %4688  ;;  %4778 = vadd.xlane.f32.xlu1 %v4777_v42 }
0x112e   : > { %v13853_v59 = vsub.f32 %v13745_v58, %v4720_v17  ;;  %v4721_v1 = vmul.f32 0.015625, %v4689_v8 }
0x1130   : > { %v13856_v9 = vsub.f32 %v13750_v48, %v4721_v1  ;;  %v4752_v12 = vmul.f32 %v13853_v59, %v13853_v59  ;;  %v5189_v48 = vld [vmem:[%s16437_s0 + $0x40] sm:$0xff] }
0x1132   : > { %v4780_v14 = vsel %vm836_vm0, %v4752_v12, 0.0  ;;  %v4753_v23 = vmul.f32 %v13856_v9, %v13856_v9 }
0x1133   : > { %4781 = vadd.xlane.f32.xlu0 %v4780_v14 }
0x1134   : > { %v4783_v28 = vsel %vm836_vm0, %v4753_v23, 0.0 }
0x1135   : > { %4784 = vadd.xlane.f32.xlu1 %v4783_v28 }
0x114e   : > { %v4692_v24 = vpop.xlane.xlu0 %4691 }
0x114f   : > { %v4722_v57 = vmul.f32 0.015625, %v4692_v24 }
0x1150   : > { %v4695_v50 = vpop.xlane.xlu1 %4694 }
0x1151   : > { %v13883_v63 = vsub.f32 %v13759_v35, %v4722_v57  ;;  %v4723_v18 = vmul.f32 0.015625, %v4695_v50 }
0x1153   : > { %v13886_v7 = vsub.f32 %v13764_v49, %v4723_v18  ;;  %v4754_v54 = vmul.f32 %v13883_v63, %v13883_v63 }
0x1155   : > { %v4786_v0 = vsel %vm836_vm0, %v4754_v54, 0.0  ;;  %v4755_v53 = vmul.f32 %v13886_v7, %v13886_v7 }
0x1156   : > { %4787 = vadd.xlane.f32.xlu0 %v4786_v0  ;;  %v4698_v45 = vpop.xlane.xlu0 %4697 }
0x1157   : > { %v4724_v6 = vmul.f32 0.015625, %v4698_v45  ;;  %v4789_v4 = vsel %vm836_vm0, %v4755_v53, 0.0 }
0x1158   : > { %v4701_v13 = vpop.xlane.xlu1 %4700  ;;  %4790 = vadd.xlane.f32.xlu1 %v4789_v4 }
0x1159   : > { %v13895_v2 = vsub.f32 %v13773_v21, %v4724_v6  ;;  %v4725_v5 = vmul.f32 0.015625, %v4701_v13 }
0x115b   : > { %v13898_v26 = vsub.f32 %v13778_v15, %v4725_v5  ;;  %v4756_v11 = vmul.f32 %v13895_v2, %v13895_v2 }
0x115d   : > { %v4792_v55 = vsel %vm836_vm0, %v4756_v11, 0.0  ;;  %v4757_v52 = vmul.f32 %v13898_v26, %v13898_v26 }
0x115e   : > { %4793 = vadd.xlane.f32.xlu0 %v4792_v55  ;;  %v4704_v29 = vpop.xlane.xlu0 %4703 }
0x115f   : > { %v4726_v56 = vmul.f32 0.015625, %v4704_v29  ;;  %v4795_v19 = vsel %vm836_vm0, %v4757_v52, 0.0 }
0x1160   : > { %v4707_v36 = vpop.xlane.xlu1 %4706  ;;  %4796 = vadd.xlane.f32.xlu1 %v4795_v19 }
0x1161   : > { %v13907_v17 = vsub.f32 %v13787_v16, %v4726_v56  ;;  %v4727_v42 = vmul.f32 0.015625, %v4707_v36  ;;  %v13933_v56 = vld [vmem:[%s16426_s3 + $0x1] ss:$0 sm:$0xff] }
0x1163   : > { %v13910_v8 = vsub.f32 %v13792_v41, %v4727_v42  ;;  %v4758_v1 = vmul.f32 %v13907_v17, %v13907_v17 }
0x1165   : > { %v4798_v12 = vsel %vm836_vm0, %v4758_v1, 0.0  ;;  %v4759_v14 = vmul.f32 %v13910_v8, %v13910_v8 }
0x1166   : > { %4799 = vadd.xlane.f32.xlu0 %v4798_v12  ;;  %v4710_v23 = vpop.xlane.xlu0 %4709 }
0x1167   : > { %v4728_v28 = vmul.f32 0.015625, %v4710_v23  ;;  %v4801_v22 = vsel %vm836_vm0, %v4759_v14, 0.0 }
0x1168   : > { %4802 = vadd.xlane.f32.xlu1 %v4801_v22  ;;  %v4713_v38 = vpop.xlane.xlu1 %4712 }
0x1169   : > { %v13919_v44 = vsub.f32 %v13801_v34, %v4728_v28  ;;  %v4729_v43 = vmul.f32 0.015625, %v4713_v38  ;;  %v13941_v28 = vld [vmem:[%s16197_s5 + $0x1] ss:$0 sm:$0xff] }
0x116b   : > { %v13922_v62 = vsub.f32 %v13806_v20, %v4729_v43  ;;  %v4760_v30 = vmul.f32 %v13919_v44, %v13919_v44 }
0x116d   : > { %v4804_v24 = vsel %vm836_vm0, %v4760_v30, 0.0  ;;  %v4761_v57 = vmul.f32 %v13922_v62, %v13922_v62 }
0x116e   : > { %4805 = vadd.xlane.f32.xlu0 %v4804_v24 }
0x116f   : > { %v4807_v50 = vsel %vm836_vm0, %v4761_v57, 0.0 }
0x1170   : > { %4808 = vadd.xlane.f32.xlu1 %v4807_v50 }
0x11a8   : > { %v4764_v18 = vpop.xlane.xlu0 %4763 }
0x11a9   : > { %v4810_v54 = vmul.f32 0.015625, %v4764_v18 }
0x11aa   : > { %v4767_v0 = vpop.xlane.xlu1 %4766 }
0x11ab   : > { %v4826_v53 = vadd.f32 1e-06, %v4810_v54  ;;  %v4811_v45 = vmul.f32 0.015625, %v4767_v0 }
0x11ad   : > { %10584 = vrsqrt.f32 %v4826_v53  ;;  %v4827_v6 = vadd.f32 1e-06, %v4811_v45 }
0x11af   : > { %10586 = vrsqrt.f32 %v4827_v6 }
0x11b0   : > { %v4770_v4 = vpop.xlane.xlu0 %4769 }
0x11b1   : > { %v4812_v13 = vmul.f32 0.015625, %v4770_v4 }
0x11b2   : > { %v4773_v5 = vpop.xlane.xlu1 %4772 }
0x11b3   : > { %v4828_v11 = vadd.f32 1e-06, %v4812_v13  ;;  %v4813_v55 = vmul.f32 0.015625, %v4773_v5 }
0x11b5   : > { %10588 = vrsqrt.f32 %v4828_v11  ;;  %v4829_v52 = vadd.f32 1e-06, %v4813_v55 }
0x11b7   : > { %v10585_v29 = vpop.eup %10584  ;;  %10590 = vrsqrt.f32 %v4829_v52 }
0x11b8   : > { %v4858_v19 = vmul.f32 %v10585_v29, %v13817_v37  ;;  %v4776_v36 = vpop.xlane.xlu0 %4775 }
0x11b9   : > { %v10587_v42 = vpop.eup %10586  ;;  %v4814_v1 = vmul.f32 0.015625, %v4776_v36 }
0x11ba   : > { %v4880_v12 = vmul.f32 %v13933_v56, %v4858_v19  ;;  %v4859_v14 = vmul.f32 %v10587_v42, %v13820_v33  ;;  %v4779_v23 = vpop.xlane.xlu1 %4778 }
0x11bb   : > { %v4830_v22 = vadd.f32 1e-06, %v4814_v1  ;;  %v4815_v38 = vmul.f32 0.015625, %v4779_v23 }
0x11bc   : > { %v4881_v43 = vmul.f32 %v13933_v56, %v4859_v14  ;;  %v4902_v37 = vadd.f32 %v13941_v28, %v4880_v12 }
0x11bd   : > { %10592 = vrsqrt.f32 %v4830_v22  ;;  %v4831_v30 = vadd.f32 1e-06, %v4815_v38 }
0x11be   : > { %v4903_v24 = vadd.f32 %v13941_v28, %v4881_v43 }
0x11bf   : > { %v10589_v57 = vpop.eup %10588  ;;  %10594 = vrsqrt.f32 %v4831_v30 }
0x11c0   : > { %v4782_v50 = vpop.xlane.xlu0 %4781  ;;  %v4927_v33 = vpack.c.bf16 %v4903_v24, %v4902_v37  ;;  %v4860_v18 = vmul.f32 %v10589_v57, %v13829_v31 }
0x11c1   : > { %v10591_v54 = vpop.eup %10590  ;;  %v4816_v0 = vmul.f32 0.015625, %v4782_v50 }
0x11c2   : > { %v4785_v53 = vpop.xlane.xlu1 %4784  ;;  %8751 = vmatmul.mubr.msk.bf16.vlgmr.msra.gmra.mrb[128].mxu1 %vm836_vm0, %v4927_v33  ;;  %v4861_v45 = vmul.f32 %v10591_v54, %v13832_v46  ;;  %v4882_v6 = vmul.f32 %v13933_v56, %v4860_v18 }
0x11c3   : > { %v4832_v4 = vadd.f32 1e-06, %v4816_v0  ;;  %v4817_v13 = vmul.f32 0.015625, %v4785_v53  ;;  %5054 = vmatprep.mubr.bf16.mxu1 %v16489_v3 }
0x11c4   : > { %v4883_v5 = vmul.f32 %v13933_v56, %v4861_v45  ;;  %v4904_v55 = vadd.f32 %v13941_v28, %v4882_v6 }
0x11c5   : > { %10596 = vrsqrt.f32 %v4832_v4  ;;  %v4833_v11 = vadd.f32 1e-06, %v4817_v13 }
0x11c6   : > { %v4905_v31 = vadd.f32 %v13941_v28, %v4883_v5 }
0x11c7   : > { %v10593_v52 = vpop.eup %10592  ;;  %10598 = vrsqrt.f32 %v4833_v11 }
0x11c8   : > { %v4928_v29 = vpack.c.bf16 %v4905_v31, %v4904_v55  ;;  %v4862_v19 = vmul.f32 %v10593_v52, %v13841_v61 }
0x11c9   : > { %v10595_v46 = vpop.eup %10594 }
0x11ca   : > { %8752 = vmatmul.mubr.msk.bf16.gmra.mrb[132].mxu1 %vm836_vm0, %v4928_v29  ;;  %v4863_v36 = vmul.f32 %v10595_v46, %v13844_v27  ;;  %v4884_v42 = vmul.f32 %v13933_v56, %v4862_v19 }
0x11cb   : > { %5064 = vmatprep.mubr.bf16.mxu1 %v16489_v3 }
0x11cc   : > { %v4885_v1 = vmul.f32 %v13933_v56, %v4863_v36  ;;  %v4906_v12 = vadd.f32 %v13941_v28, %v4884_v42 }
0x11ce   : > { %v4907_v14 = vadd.f32 %v13941_v28, %v4885_v1 }
0x11cf   : > { %v10597_v23 = vpop.eup %10596 }
0x11d0   : > { %v4929_v22 = vpack.c.bf16 %v4907_v14, %v4906_v12  ;;  %v4864_v38 = vmul.f32 %v10597_v23, %v13853_v59 }
0x11d1   : > { %v10599_v61 = vpop.eup %10598 }
0x11d2   : > { %8753 = vmatmul.mubr.msk.bf16.gmra.mrb[136].mxu1 %vm836_vm0, %v4929_v22  ;;  %v4865_v43 = vmul.f32 %v10599_v61, %v13856_v9  ;;  %v4886_v27 = vmul.f32 %v13933_v56, %v4864_v38 }
0x11d3   : > { %5074 = vmatprep.mubr.bf16.mxu1 %v16489_v3 }
0x11d4   : > { %v4887_v30 = vmul.f32 %v13933_v56, %v4865_v43  ;;  %v4908_v37 = vadd.f32 %v13941_v28, %v4886_v27 }
0x11d6   : > { %v4909_v24 = vadd.f32 %v13941_v28, %v4887_v30 }
0x11d8   : > { %v4930_v57 = vpack.c.bf16 %v4909_v24, %v4908_v37 }
0x11da   : > { %8754 = vmatmul.mubr.msk.bf16.gmra.mrb[140].mxu1 %vm836_vm0, %v4930_v57 }
0x11db   : > { %5084 = vmatprep.mubr.bf16.mxu1 %v16489_v3 }
0x11e3   : > { %v4788_v59 = vpop.xlane.xlu0 %4787 }
0x11e4   : > { %v4818_v50 = vmul.f32 0.015625, %v4788_v59 }
0x11e5   : > { %v4791_v33 = vpop.xlane.xlu1 %4790 }
0x11e6   : > { %v4834_v18 = vadd.f32 1e-06, %v4818_v50  ;;  %v4819_v9 = vmul.f32 0.015625, %v4791_v33 }
0x11e8   : > { %10600 = vrsqrt.f32 %v4834_v18  ;;  %v4835_v54 = vadd.f32 1e-06, %v4819_v9 }
0x11ea   : > { %10602 = vrsqrt.f32 %v4835_v54 }
0x11eb   : > { %v4794_v0 = vpop.xlane.xlu0 %4793 }
0x11ec   : > { %v4820_v53 = vmul.f32 0.015625, %v4794_v0 }
0x11ed   : > { %v4797_v45 = vpop.xlane.xlu1 %4796 }
0x11ee   : > { %v4836_v6 = vadd.f32 1e-06, %v4820_v53  ;;  %v4821_v4 = vmul.f32 0.015625, %v4797_v45 }
0x11f0   : > { %10604 = vrsqrt.f32 %v4836_v6  ;;  %v4837_v13 = vadd.f32 1e-06, %v4821_v4 }
0x11f2   : > { %v10601_v5 = vpop.eup %10600  ;;  %10606 = vrsqrt.f32 %v4837_v13 }
0x11f3   : > { %v4800_v11 = vpop.xlane.xlu0 %4799  ;;  %v4866_v55 = vmul.f32 %v10601_v5, %v13883_v63 }
0x11f4   : > { %v10603_v31 = vpop.eup %10602  ;;  %v4822_v52 = vmul.f32 0.015625, %v4800_v11 }
0x11f5   : > { %v4803_v29 = vpop.xlane.xlu1 %4802  ;;  %v4867_v19 = vmul.f32 %v10603_v31, %v13886_v7  ;;  %v4888_v46 = vmul.f32 %v13933_v56, %v4866_v55 }
0x11f6   : > { %v4838_v36 = vadd.f32 1e-06, %v4822_v52  ;;  %v4823_v42 = vmul.f32 0.015625, %v4803_v29 }
0x11f7   : > { %v4889_v1 = vmul.f32 %v13933_v56, %v4867_v19  ;;  %v4910_v14 = vadd.f32 %v13941_v28, %v4888_v46 }
0x11f8   : > { %10608 = vrsqrt.f32 %v4838_v36  ;;  %v4839_v12 = vadd.f32 1e-06, %v4823_v42 }
0x11f9   : > { %v4911_v23 = vadd.f32 %v13941_v28, %v4889_v1 }
0x11fa   : > { %v10605_v22 = vpop.eup %10604  ;;  %10610 = vrsqrt.f32 %v4839_v12 }
0x11fb   : > { %v4806_v63 = vpop.xlane.xlu0 %4805  ;;  %v4931_v38 = vpack.c.bf16 %v4911_v23, %v4910_v14  ;;  %v4868_v61 = vmul.f32 %v10605_v22, %v13895_v2 }
0x11fc   : > { %v10607_v43 = vpop.eup %10606  ;;  %v4824_v7 = vmul.f32 0.015625, %v4806_v63 }
0x11fd   : > { %v4809_v27 = vpop.xlane.xlu1 %4808  ;;  %8755 = vmatmul.mubr.msk.bf16.gmra.mrb[144].mxu1 %vm836_vm0, %v4931_v38  ;;  %v4869_v30 = vmul.f32 %v10607_v43, %v13898_v26  ;;  %v4890_v37 = vmul.f32 %v13933_v56, %v4868_v61 }
0x11fe   : > { %v4840_v24 = vadd.f32 1e-06, %v4824_v7  ;;  %v4825_v57 = vmul.f32 0.015625, %v4809_v27  ;;  %5094 = vmatprep.mubr.bf16.mxu1 %v16489_v3 }
0x11ff   : > { %v4891_v59 = vmul.f32 %v13933_v56, %v4869_v30  ;;  %v4912_v33 = vadd.f32 %v13941_v28, %v4890_v37 }
0x1200   : > { %10612 = vrsqrt.f32 %v4840_v24  ;;  %v4841_v50 = vadd.f32 1e-06, %v4825_v57 }
0x1201   : > { %v4913_v2 = vadd.f32 %v13941_v28, %v4891_v59 }
0x1202   : > { %v10609_v18 = vpop.eup %10608  ;;  %10614 = vrsqrt.f32 %v4841_v50 }
0x1203   : > { %v4932_v9 = vpack.c.bf16 %v4913_v2, %v4912_v33  ;;  %v4870_v54 = vmul.f32 %v10609_v18, %v13907_v17 }
0x1204   : > { %v10611_v26 = vpop.eup %10610 }
0x1205   : > { %8756 = vmatmul.mubr.msk.bf16.gmra.mrb[148].mxu1 %vm836_vm0, %v4932_v9  ;;  %v4871_v0 = vmul.f32 %v10611_v26, %v13910_v8  ;;  %v4892_v53 = vmul.f32 %v13933_v56, %v4870_v54 }
0x1206   : > { %5104 = vmatprep.mubr.bf16.mxu1 %v16489_v3 }
0x1207   : > { %v4893_v45 = vmul.f32 %v13933_v56, %v4871_v0  ;;  %v4914_v6 = vadd.f32 %v13941_v28, %v4892_v53 }
0x1209   : > { %v4915_v4 = vadd.f32 %v13941_v28, %v4893_v45 }
0x120a   : > { %v10613_v13 = vpop.eup %10612 }
0x120b   : > { %v4933_v5 = vpack.c.bf16 %v4915_v4, %v4914_v6  ;;  %v4872_v11 = vmul.f32 %v10613_v13, %v13919_v44  ;;  %v8742_v44 = vld [vmem:[%s16199_s7 + $0x2] sm:$0x3] }
0x120c   : > { %v10615_v17 = vpop.eup %10614  ;;  %v14007_v46 = vrot.slane %v8742_v44, %v16559_v10  ;;  %v14010_v36 = vrot.slane %v8742_v44, %v16560_v51 }
0x120d   : > { %8757 = vmatmul.mubr.msk.bf16.gmra.mrb[152].mxu1 %vm836_vm0, %v4933_v5  ;;  %v4873_v55 = vmul.f32 %v10615_v17, %v13922_v62  ;;  %v4894_v8 = vmul.f32 %v13933_v56, %v4872_v11 }
0x120e   : > { %5114 = vmatprep.mubr.bf16.mxu1 %v16489_v3 }
0x120f   : > { %v4895_v31 = vmul.f32 %v13933_v56, %v4873_v55  ;;  %v4916_v52 = vadd.f32 %v13941_v28, %v4894_v8 }
0x1211   : > { %v4917_v29 = vadd.f32 %v13941_v28, %v4895_v31 }
0x1213   : > { %v4934_v19 = vpack.c.bf16 %v4917_v29, %v4916_v52 }
0x1215   : > { %8758 = vmatmul.mubr.msk.bf16.gmra.mrb[156].mxu1 %vm836_vm0, %v4934_v19 }
0x1295   : > { %v5046_v62 = vpop.f32.mrb[128].mxu1 }
0x1296   : > { %v5048_v42 = vpop.f32.mrb[129].mxu1  ;;  %v5047_v1 = vadd.f32 %v5046_v62, %v14007_v46 }
0x1297   : > { %v5050_v56 = vpop.f32.mrb[130].mxu1  ;;  %v5049_v14 = vadd.f32 %v5048_v42, %v14010_v36 }
0x1298   : > { %v5051_v28 = vadd.f32 %v5050_v56, %v14007_v46  ;;  %v5052_v12 = vpop.f32.mrb[131].mxu1 }
0x1299   : > { %v5053_v23 = vadd.f32 %v5052_v12, %v14010_v36 }
0x129a   : > { %v14016_v22 = vpack.c.bf16 %v5051_v28, %v5047_v1 }
0x129b   : > { %v5126_v63 = vpack.c.bf16 %v5053_v23, %v5049_v14 }
0x129c   : > { %5647 = vrot.lane.b32.xlu1 %v14016_v22, %s16498_s27  ;;  %5205 = vrot.lane.b32.xlu0 %v14016_v22, %s16577_s26  ;;  %v14023_v38 = vmul.bf16 1048592000, %v14016_v22 }
0x129d   : > { %5142 = vst.msk [vmem:[#allocation2 + $0x8] sm:$0xff] %vm836_vm0, %v5126_v63  ;;  %v5056_v61 = vpop.f32.mrb[132].mxu1 }
0x129e   : > { %16578 = vst [vmem:[#allocation66_spill] sm:$0xff] %v14023_v38  ;;  %v5058_v43 = vpop.f32.mrb[133].mxu1  ;;  %9631 = vmatprep.mubr.msk.bf16.mxu0 %vm1514_vm1, %v14023_v38  ;;  %v5057_v27 = vadd.f32 %v5056_v61, %v14007_v46 }
0x129f   : > { %v5060_v7 = vpop.f32.mrb[134].mxu1  ;;  %v5059_v24 = vadd.f32 %v5058_v43, %v14010_v36 }
0x12a0   : > { %v5061_v30 = vadd.f32 %v5060_v7, %v14007_v46  ;;  %v5062_v37 = vpop.f32.mrb[135].mxu1 }
0x12a1   : > { %v5063_v57 = vadd.f32 %v5062_v37, %v14010_v36 }
0x12a2   : > { %v14032_v59 = vpack.c.bf16 %v5061_v30, %v5057_v27 }
0x12a3   : > { %v5128_v50 = vpack.c.bf16 %v5063_v57, %v5059_v24 }
0x12a4   : > { %5207 = vrot.lane.b32.xlu1 %v14032_v59, %s16577_s26 }
0x12a5   : > { %5144 = vst.msk [vmem:[#allocation2 + $0x18] sm:$0xff] %vm836_vm0, %v5128_v50  ;;  %v5066_v33 = vpop.f32.mrb[136].mxu1 }
0x12a6   : > { %v5068_v2 = vpop.f32.mrb[137].mxu1  ;;  %v5067_v9 = vadd.f32 %v5066_v33, %v14007_v46 }
0x12a7   : > { %v5070_v18 = vpop.f32.mrb[138].mxu1  ;;  %v5069_v0 = vadd.f32 %v5068_v2, %v14010_v36 }
0x12a8   : > { %v5071_v54 = vadd.f32 %v5070_v18, %v14007_v46  ;;  %v5072_v26 = vpop.f32.mrb[139].mxu1  ;;  %5649 = vrot.lane.b32.xlu1 %v14032_v59, %s16498_s27 }
0x12a9   : > { %v5073_v53 = vadd.f32 %v5072_v26, %v14010_v36 }
0x12aa   : > { %v14043_v45 = vpack.c.bf16 %v5071_v54, %v5067_v9 }
0x12ab   : > { %v5130_v6 = vpack.c.bf16 %v5073_v53, %v5069_v0 }
0x12ac   : > { %5145 = vst [vmem:[#allocation2 + $0x20] sm:$0xff] %v14043_v45  ;;  %5651 = vrot.lane.b32.xlu1 %v14043_v45, %s16498_s27  ;;  %5209 = vrot.lane.b32.xlu0 %v14043_v45, %s16577_s26 }
0x12ad   : > { %5146 = vst.msk [vmem:[#allocation2 + $0x28] sm:$0xff] %vm836_vm0, %v5130_v6  ;;  %v5076_v4 = vpop.f32.mrb[140].mxu1 }
0x12ae   : > { %v5078_v13 = vpop.f32.mrb[141].mxu1  ;;  %v5077_v11 = vadd.f32 %v5076_v4, %v14007_v46 }
0x12af   : > { %v5080_v5 = vpop.f32.mrb[142].mxu1  ;;  %v5079_v8 = vadd.f32 %v5078_v13, %v14010_v36 }
0x12b0   : > { %v5081_v17 = vadd.f32 %v5080_v5, %v14007_v46  ;;  %v5082_v55 = vpop.f32.mrb[143].mxu1 }
0x12b1   : > { %v5083_v31 = vadd.f32 %v5082_v55, %v14010_v36 }
0x12b2   : > { %v14055_v52 = vpack.c.bf16 %v5081_v17, %v5077_v11 }
0x12b3   : > { %v5132_v29 = vpack.c.bf16 %v5083_v31, %v5079_v8 }
0x12b4   : > { %5147 = vst [vmem:[#allocation2 + $0x30] sm:$0xff] %v14055_v52  ;;  %5653 = vrot.lane.b32.xlu1 %v14055_v52, %s16498_s27  ;;  %5211 = vrot.lane.b32.xlu0 %v14055_v52, %s16577_s26 }
0x12b5   : > { %5148 = vst.msk [vmem:[#allocation2 + $0x38] sm:$0xff] %vm836_vm0, %v5132_v29 }
0x12d0   : > { %v5086_v19 = vpop.f32.mrb[144].mxu1 }
0x12d1   : > { %v5088_v44 = vpop.f32.mrb[145].mxu1  ;;  %v5087_v42 = vadd.f32 %v5086_v19, %v14007_v46 }
0x12d2   : > { %v5090_v62 = vpop.f32.mrb[146].mxu1  ;;  %v5089_v28 = vadd.f32 %v5088_v44, %v14010_v36 }
0x12d3   : > { %v5091_v56 = vadd.f32 %v5090_v62, %v14007_v46  ;;  %v5092_v1 = vpop.f32.mrb[147].mxu1  ;;  %v14113_v62 = vmul.bf16 1048592000, %v14055_v52 }
0x12d4   : > { %v5093_v12 = vadd.f32 %v5092_v1, %v14010_v36 }
0x12d5   : > { %v5133_v14 = vpack.c.bf16 %v5091_v56, %v5087_v42  ;;  %16582 = vst [vmem:[#allocation65_spill] sm:$0xff] %v14113_v62 }
0x12d6   : > { %v5134_v23 = vpack.c.bf16 %v5093_v12, %v5089_v28 }
0x12d7   : > { %5149 = vst [vmem:[#allocation2 + $0x40] sm:$0xff] %v5133_v14  ;;  %5655 = vrot.lane.b32.xlu1 %v5133_v14, %s16498_s27  ;;  %5213 = vrot.lane.b32.xlu0 %v5133_v14, %s16577_s26  ;;  %v14120_v56 = vmul.bf16 1048592000, %v5133_v14 }
0x12d8   : > { %5150 = vst.msk [vmem:[#allocation2 + $0x48] sm:$0xff] %vm836_vm0, %v5134_v23  ;;  %v5096_v63 = vpop.f32.mrb[148].mxu1 }
0x12d9   : > { %v5098_v61 = vpop.f32.mrb[149].mxu1  ;;  %v5097_v7 = vadd.f32 %v5096_v63, %v14007_v46  ;;  %16584 = vst [vmem:[#allocation38_spill] sm:$0xff] %v14120_v56 }
0x12da   : > { %v5100_v43 = vpop.f32.mrb[150].mxu1  ;;  %v5099_v37 = vadd.f32 %v5098_v61, %v14010_v36 }
0x12db   : > { %v5101_v27 = vadd.f32 %v5100_v43, %v14007_v46  ;;  %v5102_v30 = vpop.f32.mrb[151].mxu1 }
0x12dc   : > { %v5103_v24 = vadd.f32 %v5102_v30, %v14010_v36 }
0x12dd   : > { %v5135_v57 = vpack.c.bf16 %v5101_v27, %v5097_v7 }
0x12de   : > { %v5136_v50 = vpack.c.bf16 %v5103_v24, %v5099_v37  ;;  %v14164_v24 = vld [vmem:[#allocation2 + $0x18] sm:$0xff] }
0x12df   : > { %5151 = vst [vmem:[#allocation2 + $0x50] sm:$0xff] %v5135_v57  ;;  %5657 = vrot.lane.b32.xlu1 %v5135_v57, %s16498_s27  ;;  %5215 = vrot.lane.b32.xlu0 %v5135_v57, %s16577_s26  ;;  %v14118_v42 = vmul.bf16 1048592000, %v5135_v57 }
0x12e0   : > { %5152 = vst.msk [vmem:[#allocation2 + $0x58] sm:$0xff] %vm836_vm0, %v5136_v50  ;;  %v5106_v33 = vpop.f32.mrb[152].mxu1 }
0x12e1   : > { %v5108_v2 = vpop.f32.mrb[153].mxu1  ;;  %v5107_v9 = vadd.f32 %v5106_v33, %v14007_v46  ;;  %16583 = vst [vmem:[#allocation41_spill] sm:$0xff] %v14118_v42 }
0x12e2   : > { %v5110_v18 = vpop.f32.mrb[154].mxu1  ;;  %v5109_v0 = vadd.f32 %v5108_v2, %v14010_v36  ;;  %v14174_v2 = vld [vmem:[#allocation2 + $0x28] sm:$0xff] }
0x12e3   : > { %v5111_v54 = vadd.f32 %v5110_v18, %v14007_v46  ;;  %v5112_v26 = vpop.f32.mrb[155].mxu1 }
0x12e4   : > { %v5113_v53 = vadd.f32 %v5112_v26, %v14010_v36  ;;  %v14184_v26 = vld [vmem:[#allocation2 + $0x48] sm:$0xff] }
0x12e5   : > { %v5137_v6 = vpack.c.bf16 %v5111_v54, %v5107_v9  ;;  %v14179_v9 = vld [vmem:[#allocation2 + $0x38] sm:$0xff] }
0x12e6   : > { %v5138_v4 = vpack.c.bf16 %v5113_v53, %v5109_v0 }
0x12e7   : > { %5153 = vst [vmem:[#allocation2 + $0x60] sm:$0xff] %v5137_v6  ;;  %5659 = vrot.lane.b32.xlu1 %v5137_v6, %s16498_s27  ;;  %5217 = vrot.lane.b32.xlu0 %v5137_v6, %s16577_s26  ;;  %v14188_v0 = vld [vmem:[#allocation2 + $0x58] sm:$0xff] }
0x12e8   : > { %5154 = vst.msk [vmem:[#allocation2 + $0x68] sm:$0xff] %vm836_vm0, %v5138_v4  ;;  %v5116_v13 = vpop.f32.mrb[156].mxu1 }
0x12e9   : > { %v5118_v5 = vpop.f32.mrb[157].mxu1  ;;  %v5117_v17 = vadd.f32 %v5116_v13, %v14007_v46 }
0x12ea   : > { %v5120_v11 = vpop.f32.mrb[158].mxu1  ;;  %v5119_v31 = vadd.f32 %v5118_v5, %v14010_v36 }
0x12eb   : > { %v5121_v55 = vadd.f32 %v5120_v11, %v14007_v46  ;;  %v5122_v8 = vpop.f32.mrb[159].mxu1  ;;  %v14096_v46 = vmul.bf16 1048592000, %v14032_v59 }
0x12ec   : > { %v5123_v29 = vadd.f32 %v5122_v8, %v14010_v36  ;;  %v14107_v36 = vmul.bf16 1048592000, %v14043_v45 }
0x12ed   : > { %v5139_v19 = vpack.c.bf16 %v5121_v55, %v5117_v17  ;;  %16580 = vst [vmem:[#allocation64_spill] sm:$0xff] %v14096_v46 }
0x12ee   : > { %v5140_v44 = vpack.c.bf16 %v5123_v29, %v5119_v31  ;;  %16581 = vst [vmem:[#allocation67_spill] sm:$0xff] %v14107_v36 }
0x12ef   : > { %5155 = vst [vmem:[#allocation2 + $0x70] sm:$0xff] %v5139_v19  ;;  %5661 = vrot.lane.b32.xlu1 %v5139_v19, %s16498_s27  ;;  %5219 = vrot.lane.b32.xlu0 %v5139_v19, %s16577_s26  ;;  %v14134_v12 = vmul.bf16 1048592000, %v5139_v19  ;;  %v14192_v53 = vld [vmem:[#allocation2 + $0x68] sm:$0xff] }
0x12f0   : > { %5156 = vst.msk [vmem:[#allocation2 + $0x78] sm:$0xff] %vm836_vm0, %v5140_v44 }
0x12f1   : > { %16586 = vst [vmem:[#allocation39_spill] sm:$0xff] %v14134_v12 }
0x12f3   : > { %6113 = vrot.lane.b32.xlu1 %v14016_v22, %s16506_s21  ;;  %5631 = vrot.lane.b32.xlu0 %v14023_v38, %s16579_s30 }
0x12f7   : > { %6115 = vrot.lane.b32.xlu1 %v14032_v59, %s16506_s21  ;;  %5633 = vrot.lane.b32.xlu0 %v14096_v46, %s16579_s30 }
0x12fb   : > { %6119 = vrot.lane.b32.xlu1 %v14055_v52, %s16506_s21  ;;  %6117 = vrot.lane.b32.xlu0 %v14043_v45, %s16506_s21  ;;  %v14126_v45 = vmul.bf16 1048592000, %v5137_v6 }
0x12fd   : > { %16585 = vst [vmem:[#allocation40_spill] sm:$0xff] %v14126_v45 }
0x12ff   : > { %5635 = vrot.lane.b32.xlu1 %v14107_v36, %s16579_s30  ;;  %6121 = vrot.lane.b32.xlu0 %v5133_v14, %s16506_s21 }
0x1303   : > { %6123 = vrot.lane.b32.xlu1 %v5135_v57, %s16506_s21  ;;  %5637 = vrot.lane.b32.xlu0 %v14113_v62, %s16579_s30  ;;  %v14168_v57 = vld [vmem:[#allocation2 + $0x8] sm:$0xff] }
0x1307   : > { %5641 = vrot.lane.b32.xlu1 %v14118_v42, %s16579_s30  ;;  %5639 = vrot.lane.b32.xlu0 %v14120_v56, %s16579_s30 }
0x130b   : > { %5643 = vrot.lane.b32.xlu1 %v14126_v45, %s16579_s30  ;;  %6125 = vrot.lane.b32.xlu0 %v5137_v6, %s16506_s21  ;;  %v14196_v6 = vld [vmem:[#allocation2 + $0x78] sm:$0xff] }
0x130e   : > { %v5648_v52 = vpop.permute.xlu1 %5647  ;;  %v5206_v1 = vpop.permute.xlu0 %5205 }
0x130f   : > { %9994 = vmatprep.subr.msk.bf16.mxu0 %vm1514_vm1, %v5206_v1  ;;  %10002 = vmatprep.subr.msk.bf16.mxu1 %vm1514_vm1, %v5648_v52  ;;  %v5688_v28 = vsel %vm1514_vm1, %v5648_v52, 0  ;;  %v5246_v14 = vsel %vm1514_vm1, %v5206_v1, 0 }
0x1310   : > { %9680 = vmatpush3.bf16.xpose.msra.mxu1 %v5688_v28  ;;  %6127 = vrot.lane.b32.xlu1 %v5139_v19, %s16506_s21 }
0x1311   : > { %5645 = vrot.lane.b32.xlu0 %v14134_v12, %s16579_s30  ;;  %9616 = vmatpush3.bf16.xpose.msra.mxu0 %v5246_v14 }
0x1314   : > { %6099 = vrot.lane.b32.xlu1 %v14096_v46, %s16587_s29 }
0x1315   : > { %6097 = vrot.lane.b32.xlu0 %v14023_v38, %s16587_s29 }
0x1316   : > { %v5208_v23 = vpop.permute.xlu1 %5207 }
0x1317   : > { %9995 = vmatprep.subr.msk.bf16.mxu0 %vm1514_vm1, %v5208_v23  ;;  %v5249_v63 = vsel %vm1514_vm1, %v5208_v23, 0 }
0x1318   : > { %6103 = vrot.lane.b32.xlu1 %v14113_v62, %s16587_s29 }
0x1319   : > { %6101 = vrot.lane.b32.xlu0 %v14107_v36, %s16587_s29  ;;  %9618 = vmatpush3.bf16.xpose.msra.mxu0 %v5249_v63 }
0x131a   : > { %v5650_v61 = vpop.permute.xlu1 %5649 }
0x131b   : > { %10003 = vmatprep.subr.msk.bf16.mxu1 %vm1514_vm1, %v5650_v61  ;;  %v5691_v43 = vsel %vm1514_vm1, %v5650_v61, 0 }
0x131c   : > { %9682 = vmatpush3.bf16.xpose.msra.mxu1 %v5691_v43  ;;  %6107 = vrot.lane.b32.xlu1 %v14118_v42, %s16587_s29 }
0x131d   : > { %6105 = vrot.lane.b32.xlu0 %v14120_v56, %s16587_s29 }
0x131e   : > { %v5652_v7 = vpop.permute.xlu1 %5651  ;;  %v5210_v27 = vpop.permute.xlu0 %5209 }
0x131f   : > { %9996 = vmatprep.subr.msk.bf16.mxu0 %vm1514_vm1, %v5210_v27  ;;  %10004 = vmatprep.subr.msk.bf16.mxu1 %vm1514_vm1, %v5652_v7  ;;  %v5252_v30 = vsel %vm1514_vm1, %v5210_v27, 0  ;;  %v5694_v37 = vsel %vm1514_vm1, %v5652_v7, 0 }
0x1320   : > { %6111 = vrot.lane.b32.xlu1 %v14134_v12, %s16587_s29 }
0x1321   : > { %6109 = vrot.lane.b32.xlu0 %v14126_v45, %s16587_s29  ;;  %9620 = vmatpush3.bf16.xpose.msra.mxu0 %v5252_v30 }
0x1324   : > { %9684 = vmatpush3.bf16.xpose.msra.mxu1 %v5694_v37  ;;  %5970 = vrot.lane.b32.xlu1 %v14164_v24, %s16579_s30 }
0x1325   : > { %5968 = vrot.lane.b32.xlu0 %v14168_v57, %s16579_s30 }
0x1326   : > { %v5654_v50 = vpop.permute.xlu1 %5653  ;;  %v5212_v33 = vpop.permute.xlu0 %5211 }
0x1327   : > { %9997 = vmatprep.subr.msk.bf16.mxu0 %vm1514_vm1, %v5212_v33  ;;  %10005 = vmatprep.subr.msk.bf16.mxu1 %vm1514_vm1, %v5654_v50  ;;  %v5255_v18 = vsel %vm1514_vm1, %v5212_v33, 0  ;;  %v5697_v54 = vsel %vm1514_vm1, %v5654_v50, 0 }
0x1328   : > { %5972 = vrot.lane.b32.xlu1 %v14174_v2, %s16579_s30 }
0x1329   : > { %5974 = vrot.lane.b32.xlu0 %v14179_v9, %s16579_s30  ;;  %9622 = vmatpush3.bf16.xpose.msra.mxu0 %v5255_v18 }
0x132c   : > { %9686 = vmatpush3.bf16.xpose.msra.mxu1 %v5697_v54  ;;  %5976 = vrot.lane.b32.xlu1 %v14184_v26, %s16579_s30 }
0x132d   : > { %5978 = vrot.lane.b32.xlu0 %v14188_v0, %s16579_s30 }
0x1330   : > { %5980 = vrot.lane.b32.xlu1 %v14192_v53, %s16579_s30 }
0x1331   : > { %5982 = vrot.lane.b32.xlu0 %v14196_v6, %s16579_s30  ;;  %s625_s30 = scalar_lea.vmem [#allocation3], %s8590_s20 }
0x1334   : > { %6426 = vrot.lane.b32.xlu1 %v14168_v57, %s16587_s29 }
0x1335   : > { %6428 = vrot.lane.b32.xlu0 %v14164_v24, %s16587_s29 }
0x1338   : > { %6430 = vrot.lane.b32.xlu1 %v14174_v2, %s16587_s29 }
0x1339   : > { %6432 = vrot.lane.b32.xlu0 %v14179_v9, %s16587_s29 }
0x133c   : > { %6434 = vrot.lane.b32.xlu1 %v14184_v26, %s16587_s29 }
0x133d   : > { %6436 = vrot.lane.b32.xlu0 %v14188_v0, %s16587_s29 }
0x1340   : > { %6573 = vrot.lane.b32.xlu1 %v14032_v59, %s16499_s1 }
0x1341   : > { %6438 = vrot.lane.b32.xlu0 %v14192_v53, %s16587_s29 }
0x1345   : > { %6440 = vrot.lane.b32.xlu0 %v14196_v6, %s16587_s29  ;;  %s8524_s29 = sshll.u32 %s625_s30, 4  ;;  %s16147_s29 = int_to_ptr.vmem [resolvable:$true] %s8524_s29 }
0x1346   : > { %s11030_s20 = scalar_lea.vmem %s16147_s29, 256 }
0x1347   : > { %p11031_p11 = scmp.ne.s32.totalorder %s16147_s29, %s11030_s20 }
0x1349   : > { %6571 = vrot.lane.b32.xlu0 %v14016_v22, %s16499_s1  ;;  %v5656_v4 = vpop.permute.xlu1 %5655  ;;  %v5214_v13 = vpop.permute.xlu0 %5213  ;;  %p11032_p12 = pnand %p11031_p11, %p11249_p5 }
0x134a   : > { %9998 = vmatprep.subr.msk.bf16.mxu0 %vm1514_vm1, %v5214_v13  ;;  %10006 = vmatprep.subr.msk.bf16.mxu1 %vm1514_vm1, %v5656_v4  ;;  %v5258_v5 = vsel %vm1514_vm1, %v5214_v13, 0  ;;  %v5700_v11 = vsel %vm1514_vm1, %v5656_v4, 0 }
0x134b   : > { %9624 = vmatpush3.bf16.xpose.msra.mxu0 %v5258_v5  ;;  %9688 = vmatpush3.bf16.xpose.msra.mxu1 %v5700_v11  ;;  %p11033_p13 = pneg %p11032_p12 }
0x1351   : > { %v5658_v59 = vpop.permute.xlu1 %5657  ;;  %v5216_v17 = vpop.permute.xlu0 %5215 }
0x1352   : > { %9999 = vmatprep.subr.msk.bf16.mxu0 %vm1514_vm1, %v5216_v17  ;;  %10007 = vmatprep.subr.msk.bf16.mxu1 %vm1514_vm1, %v5658_v59  ;;  %v5261_v22 = vsel %vm1514_vm1, %v5216_v17, 0  ;;  %v5703_v55 = vsel %vm1514_vm1, %v5658_v59, 0 }
0x1353   : > { %9626 = vmatpush3.bf16.xpose.msra.mxu0 %v5261_v22  ;;  %9690 = vmatpush3.bf16.xpose.msra.mxu1 %v5703_v55 }
0x1359   : > { %v5660_v8 = vpop.permute.xlu1 %5659  ;;  %v5218_v31 = vpop.permute.xlu0 %5217 }
0x135a   : > { %10000 = vmatprep.subr.msk.bf16.mxu0 %vm1514_vm1, %v5218_v31  ;;  %10008 = vmatprep.subr.msk.bf16.mxu1 %vm1514_vm1, %v5660_v8  ;;  %v5264_v29 = vsel %vm1514_vm1, %v5218_v31, 0  ;;  %v5706_v19 = vsel %vm1514_vm1, %v5660_v8, 0 }
0x135b   : > { %9628 = vmatpush3.bf16.xpose.msra.mxu0 %v5264_v29  ;;  %9692 = vmatpush3.bf16.xpose.msra.mxu1 %v5706_v19 }
0x1361   : > { %v5662_v44 = vpop.permute.xlu1 %5661  ;;  %v5220_v52 = vpop.permute.xlu0 %5219 }
0x1362   : > { %10001 = vmatprep.subr.msk.bf16.mxu0 %vm1514_vm1, %v5220_v52  ;;  %10009 = vmatprep.subr.msk.bf16.mxu1 %vm1514_vm1, %v5662_v44  ;;  %v5267_v1 = vsel %vm1514_vm1, %v5220_v52, 0  ;;  %v5709_v28 = vsel %vm1514_vm1, %v5662_v44, 0  ;;  %v14304_v44 = vld [vmem:[%s16437_s0 + $0x10] sm:$0xff] }
0x1363   : > { %9630 = vmatpush3.bf16.xpose.msra.mxu0 %v5267_v1  ;;  %9694 = vmatpush3.bf16.xpose.msra.mxu1 %v5709_v28  ;;  %v14309_v28 = vld [vmem:[%s16437_s0 + $0x18] sm:$0xff] }
0x1364   : > { %9647 = vmatprep.subr.bf16.mxu0 %v14168_v57 }
0x1365   : > { %v6114_v14 = vpop.permute.xlu1 %6113  ;;  %v5632_v23 = vpop.permute.xlu0 %5631 }
0x1366   : > { %9695 = vmatprep.mubr.msk.bf16.mxu1 %vm1514_vm1, %v5632_v23  ;;  %10010 = vmatprep.subr.msk.bf16.mxu1 %vm1514_vm1, %v6114_v14  ;;  %v6154_v43 = vsel %vm1514_vm1, %v6114_v14, 0 }
0x1369   : > { %v6116_v63 = vpop.permute.xlu1 %6115  ;;  %v5634_v61 = vpop.permute.xlu0 %5633 }
0x136a   : > { %9632 = vmatmul.mubr.msk.bf16.vlgmr.msra.gmra.mrb[144].mxu0 %vm1514_vm1, %v14096_v46  ;;  %9696 = vmatmul.mubr.msk.bf16.vlgmr.msra.gmra.mrb[160].mxu1 %vm1514_vm1, %v5634_v61 }
0x136b   : > { %9635 = vmatprep.mubr.msk.bf16.mxu0 %vm1514_vm1, %v14107_v36  ;;  %9648 = vmatpush3.bf16.msra.mxu0 %v14168_v57  ;;  %v6157_v57 = vsel %vm1514_vm1, %v6116_v63, 0 }
0x136c   : > { %9744 = vmatpush3.bf16.xpose.msra.mxu1 %v6154_v43  ;;  %9649 = vmatprep.subr.bf16.mxu0 %v14164_v24 }
0x136d   : > { %10011 = vmatprep.subr.msk.bf16.mxu1 %vm1514_vm1, %v6116_v63  ;;  %v6120_v7 = vpop.permute.xlu1 %6119  ;;  %v6118_v27 = vpop.permute.xlu0 %6117 }
0x136e   : > { %v6163_v4 = vsel %vm1514_vm1, %v6120_v7, 0 }
0x136f   : > { %9650 = vmatpush3.bf16.msra.mxu0 %v14164_v24 }
0x1370   : > { %9651 = vmatprep.subr.bf16.mxu0 %v14174_v2 }
0x1371   : > { %v5636_v30 = vpop.permute.xlu1 %5635  ;;  %v6122_v37 = vpop.permute.xlu0 %6121 }
0x1372   : > { %9636 = vmatmul.mubr.msk.bf16.gmra.mrb[148].mxu0 %vm1514_vm1, %v14113_v62  ;;  %9699 = vmatprep.mubr.msk.bf16.mxu1 %vm1514_vm1, %v5636_v30  ;;  %v6166_v5 = vsel %vm1514_vm1, %v6122_v37, 0 }
0x1373   : > { %9639 = vmatprep.mubr.msk.bf16.mxu0 %vm1514_vm1, %v14120_v56  ;;  %9652 = vmatpush3.bf16.msra.mxu0 %v14174_v2  ;;  %v6160_v2 = vsel %vm1514_vm1, %v6118_v27, 0 }
0x1374   : > { %9746 = vmatpush3.bf16.xpose.msra.mxu1 %v6157_v57  ;;  %9653 = vmatprep.subr.bf16.mxu0 %v14179_v9 }
0x1375   : > { %10012 = vmatprep.subr.msk.bf16.mxu1 %vm1514_vm1, %v6118_v27  ;;  %v6124_v24 = vpop.permute.xlu1 %6123  ;;  %v5638_v50 = vpop.permute.xlu0 %5637 }
0x1376   : > { %9700 = vmatmul.mubr.msk.bf16.gmra.mrb[164].mxu1 %vm1514_vm1, %v5638_v50  ;;  %v6169_v59 = vsel %vm1514_vm1, %v6124_v24, 0 }
0x1377   : > { %9654 = vmatpush3.bf16.msra.mxu0 %v14179_v9 }
0x1378   : > { %9655 = vmatprep.subr.bf16.mxu0 %v14184_v26 }
0x1379   : > { %v5642_v33 = vpop.permute.xlu1 %5641  ;;  %v5640_v18 = vpop.permute.xlu0 %5639 }
0x137a   : > { %9640 = vmatmul.mubr.msk.bf16.gmra.mrb[152].mxu0 %vm1514_vm1, %v14118_v42  ;;  %9703 = vmatprep.mubr.msk.bf16.mxu1 %vm1514_vm1, %v5640_v18 }
0x137b   : > { %9643 = vmatprep.mubr.msk.bf16.mxu0 %vm1514_vm1, %v14126_v45  ;;  %9656 = vmatpush3.bf16.msra.mxu0 %v14184_v26 }
0x137c   : > { %9748 = vmatpush3.bf16.xpose.msra.mxu1 %v6160_v2  ;;  %9657 = vmatprep.subr.bf16.mxu0 %v14188_v0 }
0x137d   : > { %10013 = vmatprep.subr.msk.bf16.mxu1 %vm1514_vm1, %v6120_v7  ;;  %v5644_v9 = vpop.permute.xlu1 %5643  ;;  %v6126_v54 = vpop.permute.xlu0 %6125 }
0x137e   : > { %9704 = vmatmul.mubr.msk.bf16.gmra.mrb[168].mxu1 %vm1514_vm1, %v5642_v33 }
0x137f   : > { %9658 = vmatpush3.bf16.msra.mxu0 %v14188_v0  ;;  %9707 = vmatprep.mubr.msk.bf16.mxu1 %vm1514_vm1, %v5644_v9 }
0x1380   : > { %9659 = vmatprep.subr.bf16.mxu0 %v14192_v53 }
0x1382   : > { %9644 = vmatmul.mubr.msk.bf16.gmra.mrb[156].mxu0 %vm1514_vm1, %v14134_v12  ;;  %v6128_v22 = vpop.permute.xlu1 %6127 }
0x1383   : > { %v5646_v26 = vpop.permute.xlu0 %5645  ;;  %9660 = vmatpush3.bf16.msra.mxu0 %v14192_v53  ;;  %v6175_v55 = vsel %vm1514_vm1, %v6128_v22, 0 }
0x1384   : > { %9750 = vmatpush3.bf16.xpose.msra.mxu1 %v6163_v4  ;;  %9661 = vmatprep.subr.bf16.mxu0 %v14196_v6  ;;  %v14347_v4 = vld [vmem:[%s16437_s0 + $0x38] sm:$0xff] }
0x1385   : > { %10014 = vmatprep.subr.msk.bf16.mxu1 %vm1514_vm1, %v6122_v37  ;;  %v14321_v37 = vld [vmem:[%s16437_s0 + $0x8] sm:$0xff] }
0x1386   : > { %9708 = vmatmul.mubr.msk.bf16.gmra.mrb[172].mxu1 %vm1514_vm1, %v5646_v26  ;;  %v6100_v8 = vpop.permute.xlu1 %6099 }
0x1387   : > { %v6098_v0 = vpop.permute.xlu0 %6097  ;;  %9662 = vmatpush3.bf16.msra.mxu0 %v14196_v6  ;;  %v6172_v6 = vsel %vm1514_vm1, %v6126_v54, 0 }
0x1388   : > { %9759 = vmatprep.mubr.msk.bf16.mxu1 %vm1514_vm1, %v6098_v0 }
0x138a   : > { %v6104_v31 = vpop.permute.xlu1 %6103 }
0x138b   : > { %v6102_v13 = vpop.permute.xlu0 %6101 }
0x138c   : > { %9752 = vmatpush3.bf16.xpose.msra.mxu1 %v6166_v5 }
0x138d   : > { %10015 = vmatprep.subr.msk.bf16.mxu1 %vm1514_vm1, %v6124_v24  ;;  %v14330_v24 = vld [vmem:[%s16437_s0] sm:$0xff] }
0x138e   : > { %v6108_v29 = vpop.permute.xlu1 %6107 }
0x138f   : > { %v6106_v53 = vpop.permute.xlu0 %6105 }
0x1392   : > { %v6112_v19 = vpop.permute.xlu1 %6111 }
0x1393   : > { %v6110_v11 = vpop.permute.xlu0 %6109 }
0x1394   : > { %9754 = vmatpush3.bf16.xpose.msra.mxu1 %v6169_v59 }
0x1395   : > { %10016 = vmatprep.subr.msk.bf16.mxu1 %vm1514_vm1, %v6126_v54 }
0x1397   : > { %v14288_v17 = vpop.permute.xlu0 %5968 }
0x1398   : > { %9711 = vmatprep.subr.bf16.mxu0 %v14288_v17 }
0x139b   : > { %v14534_v56 = vpop.permute.xlu0 %5974 }
0x139c   : > { %9756 = vmatpush3.bf16.xpose.msra.mxu1 %v6172_v6  ;;  %16588 = vst [vmem:[#allocation43_spill] sm:$0xff] %v14534_v56 }
0x139d   : > { %10017 = vmatprep.subr.msk.bf16.mxu1 %vm1514_vm1, %v6128_v22 }
0x13a4   : > { %9758 = vmatpush3.bf16.xpose.msra.mxu1 %v6175_v55 }
0x13ab   : > { %9760 = vmatmul.mubr.msk.bf16.vlgmr.msra.gmra.mrb[176].mxu1 %vm1514_vm1, %v6100_v8  ;;  %v14364_v8 = vld [vmem:[%s16437_s0 + $0x30] sm:$0xff] }
0x13ac   : > { %9763 = vmatprep.mubr.msk.bf16.mxu1 %vm1514_vm1, %v6102_v13 }
0x13b3   : > { %9764 = vmatmul.mubr.msk.bf16.gmra.mrb[180].mxu1 %vm1514_vm1, %v6104_v31 }
0x13b4   : > { %9767 = vmatprep.mubr.msk.bf16.mxu1 %vm1514_vm1, %v6106_v53 }
0x13bb   : > { %9768 = vmatmul.mubr.msk.bf16.gmra.mrb[184].mxu1 %vm1514_vm1, %v6108_v29 }
0x13bc   : > { %9771 = vmatprep.mubr.msk.bf16.mxu1 %vm1514_vm1, %v6110_v11 }
0x13c3   : > { %9772 = vmatmul.mubr.msk.bf16.gmra.mrb[188].mxu1 %vm1514_vm1, %v6112_v19 }
0x143d   : > { %v9633_v52 = vpop.f32.mrb[144].mxu0  ;;  %v9697_v1 = vpop.f32.mrb[160].mxu1 }
0x143e   : > { %v14312_v14 = vadd.f32 %v9633_v52, %v14304_v44  ;;  %v5303_v23 = vpop.f32.mrb[145].mxu0  ;;  %v5745_v63 = vpop.f32.mrb[161].mxu1  ;;  %v14324_v57 = vadd.f32 %v9697_v1, %v14304_v44  ;;  %v14373_v52 = vld [vmem:[%s16437_s0 + $0x28] sm:$0xff] }
0x143f   : > { %v9634_v61 = vpop.f32.mrb[146].mxu0  ;;  %v9698_v43 = vpop.f32.mrb[162].mxu1  ;;  %v14337_v18 = vadd.f32 %v5303_v23, %v14330_v24  ;;  %v14350_v13 = vadd.f32 %v5745_v63, %v14330_v24 }
0x1440   : > { %v14315_v7 = vadd.f32 %v9698_v43, %v14309_v28  ;;  %5370 = vmax.xlane.f32.xlu0 %v14312_v14  ;;  %v5306_v27 = vpop.f32.mrb[147].mxu0  ;;  %v5748_v30 = vpop.f32.mrb[163].mxu1  ;;  %v14358_v22 = vadd.f32 %v9634_v61, %v14309_v28 }
0x1441   : > { %v14333_v50 = vadd.f32 %v5306_v27, %v14321_v37  ;;  %v14341_v54 = vadd.f32 %v5748_v30, %v14321_v37 }
0x1442   : > { %5814 = vmax.xlane.f32.xlu1 %v14315_v7 }
0x1444   : > { %5812 = vmax.xlane.f32.xlu0 %v14324_v57 }
0x1445   : > { %v9637_v33 = vpop.f32.mrb[148].mxu0 }
0x1446   : > { %v5319_v2 = vpop.f32.mrb[149].mxu0  ;;  %5368 = vmax.xlane.f32.xlu1 %v14333_v50  ;;  %v14376_v23 = vadd.f32 %v9637_v33, %v14364_v8  ;;  %v14390_v33 = vld [vmem:[%s16437_s0 + $0x20] sm:$0xff] }
0x1447   : > { %v9638_v9 = vpop.f32.mrb[150].mxu0  ;;  %v14402_v41 = vadd.f32 %v5319_v2, %v14390_v33  ;;  %v14416_v2 = vld [vmem:[%s16437_s0 + $0x50] sm:$0xff] }
0x1448   : > { %v5322_v26 = vpop.f32.mrb[151].mxu0  ;;  %5366 = vmax.xlane.f32.xlu0 %v14337_v18  ;;  %v14354_v11 = vadd.f32 %v9638_v9, %v14347_v4 }
0x1449   : > { %v9701_v0 = vpop.f32.mrb[164].mxu1  ;;  %v14380_v43 = vadd.f32 %v5322_v26, %v14373_v52 }
0x144a   : > { %5810 = vmax.xlane.f32.xlu1 %v14341_v54  ;;  %v5761_v5 = vpop.f32.mrb[165].mxu1  ;;  %v14384_v9 = vadd.f32 %v9701_v0, %v14364_v8  ;;  %v14399_v0 = vld [vmem:[%s16437_s0 + $0x58] sm:$0xff] }
0x144b   : > { %v9702_v53 = vpop.f32.mrb[166].mxu1  ;;  %v14410_v49 = vadd.f32 %v5761_v5, %v14390_v33 }
0x144c   : > { %5808 = vmax.xlane.f32.xlu0 %v14350_v13  ;;  %v5764_v59 = vpop.f32.mrb[167].mxu1  ;;  %v14367_v29 = vadd.f32 %v9702_v53, %v14347_v4 }
0x144d   : > { %v9641_v6 = vpop.f32.mrb[152].mxu0  ;;  %v14393_v10 = vadd.f32 %v5764_v59, %v14373_v52 }
0x144e   : > { %v5335_v55 = vpop.f32.mrb[153].mxu0  ;;  %5380 = vmax.xlane.f32.xlu1 %v14354_v11  ;;  %v14428_v5 = vadd.f32 %v9641_v6, %v14416_v2  ;;  %v14449_v6 = vld [vmem:[%s16437_s0 + $0x78] sm:$0xff] }
0x144f   : > { %v9642_v31 = vpop.f32.mrb[154].mxu0 }
0x1450   : > { %v5338_v19 = vpop.f32.mrb[155].mxu0  ;;  %5372 = vmax.xlane.f32.xlu0 %v14358_v22  ;;  %v14406_v15 = vadd.f32 %v9642_v31, %v14399_v0  ;;  %v14425_v31 = vld [vmem:[%s16437_s0 + $0x48] sm:$0xff] }
0x1451   : > { %v9705_v1 = vpop.f32.mrb[168].mxu1  ;;  %v14432_v35 = vadd.f32 %v5338_v19, %v14425_v31  ;;  %v14451_v19 = vadd.f32 %v5335_v55, %v5189_v48 }
0x1452   : > { %5822 = vmax.xlane.f32.xlu1 %v14367_v29  ;;  %v5777_v63 = vpop.f32.mrb[169].mxu1 }
0x1453   : > { %v9706_v61 = vpop.f32.mrb[170].mxu1  ;;  %v14458_v58 = vadd.f32 %v5777_v63, %v5189_v48 }
0x1454   : > { %5378 = vmax.xlane.f32.xlu0 %v14376_v23  ;;  %v5780_v27 = vpop.f32.mrb[171].mxu1  ;;  %v14419_v21 = vadd.f32 %v9706_v61, %v14399_v0  ;;  %v14436_v61 = vadd.f32 %v9705_v1, %v14416_v2 }
0x1455   : > { %v9645_v30 = vpop.f32.mrb[156].mxu0  ;;  %v14443_v32 = vadd.f32 %v5780_v27, %v14425_v31  ;;  %v5195_v27 = vld [vmem:[%s16437_s0 + $0x70] sm:$0xff] }
0x1456   : > { %v5351_v53 = vpop.f32.mrb[157].mxu0  ;;  %5376 = vmax.xlane.f32.xlu1 %v14380_v43  ;;  %v14471_v55 = vadd.f32 %v9645_v30, %v5195_v27 }
0x1457   : > { %v9646_v51 = vpop.f32.mrb[158].mxu0 }
0x1458   : > { %v5354_v26 = vpop.f32.mrb[159].mxu0  ;;  %5820 = vmax.xlane.f32.xlu0 %v14384_v9  ;;  %v14455_v1 = vadd.f32 %v9646_v51, %v14449_v6  ;;  %v5194_v51 = vld [vmem:[%s16437_s0 + $0x68] sm:$0xff] }
0x1459   : > { %v9709_v20 = vpop.f32.mrb[172].mxu1  ;;  %v14474_v63 = vadd.f32 %v5354_v26, %v5194_v51 }
0x145a   : > { %5818 = vmax.xlane.f32.xlu1 %v14393_v10  ;;  %v5793_v34 = vpop.f32.mrb[173].mxu1  ;;  %v14477_v60 = vadd.f32 %v9709_v20, %v5195_v27 }
0x145b   : > { %v9710_v16 = vpop.f32.mrb[174].mxu1 }
0x145c   : > { %5374 = vmax.xlane.f32.xlu0 %v14402_v41  ;;  %v5796_v59 = vpop.f32.mrb[175].mxu1  ;;  %v14465_v47 = vadd.f32 %v9710_v16, %v14449_v6  ;;  %v5193_v16 = vld [vmem:[%s16437_s0 + $0x60] sm:$0xff] }
0x145d   : > { %v14483_v39 = vadd.f32 %v5796_v59, %v5194_v51  ;;  %v14486_v30 = vadd.f32 %v5351_v53, %v5193_v16  ;;  %v14490_v26 = vadd.f32 %v5793_v34, %v5193_v16 }
0x145e   : > { %5388 = vmax.xlane.f32.xlu1 %v14406_v15 }
0x1460   : > { %5816 = vmax.xlane.f32.xlu0 %v14410_v49 }
0x1462   : > { %5830 = vmax.xlane.f32.xlu1 %v14419_v21 }
0x1464   : > { %5386 = vmax.xlane.f32.xlu0 %v14428_v5 }
0x1466   : > { %5384 = vmax.xlane.f32.xlu1 %v14432_v35 }
0x1468   : > { %5828 = vmax.xlane.f32.xlu0 %v14436_v61 }
0x146a   : > { %5826 = vmax.xlane.f32.xlu1 %v14443_v32 }
0x146c   : > { %5382 = vmax.xlane.f32.xlu0 %v14451_v19 }
0x146e   : > { %5396 = vmax.xlane.f32.xlu1 %v14455_v1 }
0x1470   : > { %5824 = vmax.xlane.f32.xlu0 %v14458_v58 }
0x1472   : > { %5838 = vmax.xlane.f32.xlu1 %v14465_v47 }
0x1474   : > { %5394 = vmax.xlane.f32.xlu0 %v14471_v55 }
0x1476   : > { %5392 = vmax.xlane.f32.xlu1 %v14474_v63 }
0x1478   : > { %5836 = vmax.xlane.f32.xlu0 %v14477_v60 }
0x147a   : > { %5834 = vmax.xlane.f32.xlu1 %v14483_v39 }
0x147c   : > { %5390 = vmax.xlane.f32.xlu0 %v14486_v30 }
0x147e   : > { %v9761_v20 = vpop.f32.mrb[176].mxu1 }
0x147f   : > { %v6211_v40 = vpop.f32.mrb[177].mxu1  ;;  %v14497_v12 = vadd.f32 %v9761_v20, %v14304_v44 }
0x1480   : > { %v9762_v25 = vpop.f32.mrb[178].mxu1  ;;  %5832 = vmax.xlane.f32.xlu0 %v14490_v26  ;;  %v14505_v34 = vadd.f32 %v6211_v40, %v14330_v24 }
0x1481   : > { %v14494_v3 = vadd.f32 %v9762_v25, %v14309_v28  ;;  %v6214_v59 = vpop.f32.mrb[179].mxu1 }
0x1482   : > { %v14502_v53 = vadd.f32 %v6214_v59, %v14321_v37 }
0x1483   : > { %6280 = vmax.xlane.f32.xlu1 %v14494_v3 }
0x1484   : > { %6278 = vmax.xlane.f32.xlu0 %v14497_v12 }
0x1486   : > { %v9765_v45 = vpop.f32.mrb[180].mxu1 }
0x1487   : > { %6276 = vmax.xlane.f32.xlu1 %v14502_v53  ;;  %v6227_v42 = vpop.f32.mrb[181].mxu1  ;;  %v14513_v20 = vadd.f32 %v9765_v45, %v14364_v8 }
0x1488   : > { %v9766_v25 = vpop.f32.mrb[182].mxu1  ;;  %6274 = vmax.xlane.f32.xlu0 %v14505_v34  ;;  %v14521_v37 = vadd.f32 %v6227_v42, %v14390_v33 }
0x1489   : > { %v14510_v44 = vadd.f32 %v9766_v25, %v14347_v4  ;;  %v6230_v28 = vpop.f32.mrb[183].mxu1 }
0x148a   : > { %v14518_v40 = vadd.f32 %v6230_v28, %v14373_v52 }
0x148b   : > { %6288 = vmax.xlane.f32.xlu1 %v14510_v44 }
0x148c   : > { %6286 = vmax.xlane.f32.xlu0 %v14513_v20 }
0x148e   : > { %v9769_v24 = vpop.f32.mrb[184].mxu1 }
0x148f   : > { %6284 = vmax.xlane.f32.xlu1 %v14518_v40  ;;  %v6243_v59 = vpop.f32.mrb[185].mxu1  ;;  %v14526_v45 = vadd.f32 %v9769_v24, %v14416_v2 }
0x1490   : > { %v9770_v4 = vpop.f32.mrb[186].mxu1  ;;  %6282 = vmax.xlane.f32.xlu0 %v14521_v37  ;;  %v14529_v25 = vadd.f32 %v6243_v59, %v5189_v48 }
0x1491   : > { %v6246_v8 = vpop.f32.mrb[187].mxu1  ;;  %v14537_v62 = vadd.f32 %v9770_v4, %v14399_v0  ;;  %v14553_v0 = vpop.permute.xlu1 %5970 }
0x1492   : > { %v14545_v48 = vadd.f32 %v6246_v8, %v14425_v31 }
0x1493   : > { %6294 = vmax.xlane.f32.xlu1 %v14526_v45 }
0x1495   : > { %v14561_v31 = vpop.permute.xlu1 %5972 }
0x1496   : > { %v9773_v52 = vpop.f32.mrb[188].mxu1  ;;  %16592 = vst [vmem:[#allocation47_spill] sm:$0xff] %v14561_v31 }
0x1497   : > { %v14531_v28 = vadd.f32 %v9773_v52, %v5195_v27  ;;  %6290 = vmax.xlane.f32.xlu1 %v14529_v25  ;;  %v6259_v42 = vpop.f32.mrb[189].mxu1  ;;  %v14548_v27 = vpop.permute.xlu0 %5978 }
0x1498   : > { %v9774_v33 = vpop.f32.mrb[190].mxu1  ;;  %16589 = vst [vmem:[#allocation33_spill] sm:$0xff] %v14548_v27  ;;  %v14555_v4 = vadd.f32 %v6259_v42, %v5193_v16 }
0x1499   : > { %6302 = vmax.xlane.f32.xlu0 %v14531_v28  ;;  %v6262_v2 = vpop.f32.mrb[191].mxu1  ;;  %v14541_v24 = vadd.f32 %v9774_v33, %v14449_v6  ;;  %v14565_v52 = vpop.permute.xlu1 %5976 }
0x149a   : > { %v14550_v59 = vadd.f32 %v6262_v2, %v5194_v51  ;;  %16594 = vst [vmem:[#allocation46_spill] sm:$0xff] %v14565_v52 }
0x149b   : > { %6296 = vmax.xlane.f32.xlu1 %v14537_v62  ;;  %v14559_v6 = vpop.permute.xlu0 %5982 }
0x149c   : > { %16590 = vst [vmem:[#allocation42_spill] sm:$0xff] %v14550_v59  ;;  %16591 = vst [vmem:[#allocation32_spill] sm:$0xff] %v14559_v6 }
0x149d   : > { %6304 = vmax.xlane.f32.xlu0 %v14541_v24  ;;  %v14569_v33 = vpop.permute.xlu1 %5980 }
0x149e   : > { %16596 = vst [vmem:[#allocation51_spill] sm:$0xff] %v14569_v33 }
0x149f   : > { %6292 = vmax.xlane.f32.xlu1 %v14545_v48  ;;  %v14563_v8 = vpop.permute.xlu0 %6428 }
0x14a0   : > { %16593 = vst [vmem:[#allocation45_spill] sm:$0xff] %v14563_v8 }
0x14a1   : > { %6300 = vmax.xlane.f32.xlu0 %v14550_v59  ;;  %v14573_v16 = vpop.permute.xlu1 %6426 }
0x14a2   : > { %16598 = vst [vmem:[#allocation50_spill] sm:$0xff] %v14573_v16 }
0x14a3   : > { %6298 = vmax.xlane.f32.xlu1 %v14555_v4  ;;  %v14567_v51 = vpop.permute.xlu0 %6432 }
0x14a4   : > { %16595 = vst [vmem:[#allocation44_spill] sm:$0xff] %v14567_v51 }
0x14a5   : > { %v14577_v36 = vpop.permute.xlu1 %6430 }
0x14a6   : > { %16600 = vst [vmem:[#allocation13_spill] sm:$0xff] %v14577_v36 }
0x14a7   : > { %v14571_v2 = vpop.permute.xlu0 %6436 }
0x14a8   : > { %16597 = vst [vmem:[#allocation49_spill] sm:$0xff] %v14571_v2 }
0x14a9   : > { %v14581_v38 = vpop.permute.xlu1 %6434 }
0x14aa   : > { %16602 = vst [vmem:[#allocation14_spill] sm:$0xff] %v14581_v38 }
0x14ab   : > { %v14575_v42 = vpop.permute.xlu0 %6438 }
0x14ac   : > { %16599 = vst [vmem:[#allocation48_spill] sm:$0xff] %v14575_v42 }
0x14ad   : > { %v14585_v8 = vpop.permute.xlu1 %6573 }
0x14ae   : > { %16604 = vst [vmem:[#allocation17_spill] sm:$0xff] %v14585_v8 }
0x14af   : > { %v14579_v46 = vpop.permute.xlu0 %6440 }
0x14b0   : > { %16601 = vst [vmem:[#allocation15_spill] sm:$0xff] %v14579_v46 }
0x14b3   : > { %v14583_v6 = vpop.permute.xlu0 %6571 }
0x14b4   : > { %16603 = vst [vmem:[#allocation16_spill] sm:$0xff] %v14583_v6 }
0x14cd   : > { %v5371_v27 = vpop.xlane.xlu0 %5370 }
0x14ce   : > { %v5400_v51 = vsub.f32 %v14312_v14, %v5371_v27 }
0x14cf   : > { %v5815_v33 = vpop.xlane.xlu1 %5814 }
0x14d0   : > { %v5418_v52 = vmul.f32 1.442695, %v5400_v51 }
0x14d1   : > { %v5813_v2 = vpop.xlane.xlu0 %5812 }
0x14d2   : > { %10616 = vpow2.f32 %v5418_v52  ;;  %v5842_v16 = vsub.f32 %v14324_v57, %v5813_v2  ;;  %v5843_v52 = vsub.f32 %v14315_v7, %v5815_v33 }
0x14d3   : > { %v5369_v42 = vpop.xlane.xlu1 %5368 }
0x14d4   : > { %v5860_v56 = vmul.f32 1.442695, %v5842_v16 }
0x14d5   : > { %v5367_v36 = vpop.xlane.xlu0 %5366 }
0x14d6   : > { %10618 = vpow2.f32 %v5860_v56  ;;  %v5398_v46 = vsub.f32 %v14337_v18, %v5367_v36  ;;  %v5862_v18 = vmul.f32 1.442695, %v5843_v52 }
0x14d7   : > { %v5811_v38 = vpop.xlane.xlu1 %5810 }
0x14d8   : > { %v5414_v31 = vmul.f32 1.442695, %v5398_v46 }
0x14d9   : > { %v5809_v6 = vpop.xlane.xlu0 %5808 }
0x14da   : > { %10620 = vpow2.f32 %v5414_v31  ;;  %v5840_v8 = vsub.f32 %v14350_v13, %v5809_v6  ;;  %v5399_v6 = vsub.f32 %v14333_v50, %v5369_v42 }
0x14db   : > { %v5381_v59 = vpop.xlane.xlu1 %5380 }
0x14dc   : > { %v14591_v14 = vpop.eup %10616  ;;  %v5856_v27 = vmul.f32 1.442695, %v5840_v8  ;;  %v5416_v16 = vmul.f32 1.442695, %v5399_v6 }
0x14dd   : > { %5450 = vadd.xlane.f32.xlu0 %v14591_v14  ;;  %v5373_v57 = vpop.xlane.xlu0 %5372 }
0x14de   : > { %10622 = vpow2.f32 %v5856_v27  ;;  %v5401_v56 = vsub.f32 %v14358_v22, %v5373_v57  ;;  %v5841_v22 = vsub.f32 %v14341_v54, %v5811_v38 }
0x14df   : > { %v5823_v51 = vpop.xlane.xlu1 %5822 }
0x14e0   : > { %v14596_v36 = vpop.eup %10618  ;;  %v5420_v46 = vmul.f32 1.442695, %v5401_v56  ;;  %v5858_v57 = vmul.f32 1.442695, %v5841_v22  ;;  %v5847_v50 = vsub.f32 %v14367_v29, %v5823_v51 }
0x14e1   : > { %5892 = vadd.xlane.f32.xlu0 %v14596_v36  ;;  %v5379_v13 = vpop.xlane.xlu0 %5378 }
0x14e2   : > { %10624 = vpow2.f32 %v5420_v46  ;;  %v5404_v31 = vsub.f32 %v14376_v23, %v5379_v13 }
0x14e3   : > { %v5377_v7 = vpop.xlane.xlu1 %5376  ;;  %10626 = vpow2.f32 %v5862_v18  ;;  %v5870_v18 = vmul.f32 1.442695, %v5847_v50 }
0x14e4   : > { %v14601_v8 = vpop.eup %10620  ;;  %v5426_v33 = vmul.f32 1.442695, %v5404_v31  ;;  %v5403_v50 = vsub.f32 %v14380_v43, %v5377_v7 }
0x14e5   : > { %5446 = vadd.xlane.f32.xlu0 %v14601_v8  ;;  %v5821_v2 = vpop.xlane.xlu0 %5820 }
0x14e6   : > { %10628 = vpow2.f32 %v5426_v33  ;;  %v5846_v42 = vsub.f32 %v14384_v9, %v5821_v2  ;;  %v5405_v33 = vsub.f32 %v14354_v11, %v5381_v59 }
0x14e7   : > { %v5819_v27 = vpop.xlane.xlu1 %5818  ;;  %10630 = vpow2.f32 %v5416_v16 }
0x14e8   : > { %v14605_v52 = vpop.eup %10622  ;;  %10632 = vpow2.f32 %v5858_v57  ;;  %v5845_v13 = vsub.f32 %v14393_v10, %v5819_v27  ;;  %v5868_v51 = vmul.f32 1.442695, %v5846_v42  ;;  %v5428_v57 = vmul.f32 1.442695, %v5405_v33 }
0x14e9   : > { %5888 = vadd.xlane.f32.xlu1 %v14605_v52  ;;  %v5375_v23 = vpop.xlane.xlu0 %5374 }
0x14ea   : > { %v5402_v56 = vsub.f32 %v14402_v41, %v5375_v23  ;;  %v5866_v22 = vmul.f32 1.442695, %v5845_v13 }
0x14eb   : > { %v14611_v38 = vpop.xlane.xlu1 %5388 }
0x14ec   : > { %v14613_v54 = vpop.eup %10624  ;;  %v5422_v46 = vmul.f32 1.442695, %v5402_v56  ;;  %v5424_v56 = vmul.f32 1.442695, %v5403_v50 }
0x14ed   : > { %5452 = vadd.xlane.f32.xlu1 %v14613_v54  ;;  %v5817_v29 = vpop.xlane.xlu0 %5816  ;;  %v14618_v31 = vpop.eup %10626 }
0x14ee   : > { %10634 = vpow2.f32 %v5422_v46  ;;  %v5844_v6 = vsub.f32 %v14410_v49, %v5817_v29 }
0x14ef   : > { %v5831_v9 = vpop.xlane.xlu1 %5830  ;;  %10636 = vpow2.f32 %v5870_v18 }
0x14f0   : > { %v14620_v41 = vpop.eup %10628  ;;  %10638 = vpow2.f32 %v5868_v51  ;;  %v5864_v2 = vmul.f32 1.442695, %v5844_v6 }
0x14f1   : > { %5894 = vadd.xlane.f32.xlu1 %v14618_v31  ;;  %5458 = vadd.xlane.f32.xlu0 %v14620_v41  ;;  %v5387_v10 = vpop.xlane.xlu0 %5386  ;;  %v14626_v27 = vpop.eup %10630  ;;  %10640 = vpow2.f32 %v5866_v22 }
0x14f2   : > { %v5408_v16 = vsub.f32 %v14428_v5, %v5387_v10  ;;  %10642 = vpow2.f32 %v5864_v2  ;;  %v14630_v23 = vpop.eup %10632  ;;  %v5851_v5 = vsub.f32 %v14419_v21, %v5831_v9  ;;  %v5409_v10 = vsub.f32 %v14406_v15, %v14611_v38 }
0x14f3   : > { %v5385_v49 = vpop.xlane.xlu1 %5384  ;;  %10644 = vpow2.f32 %v5428_v57 }
0x14f4   : > { %v5434_v59 = vmul.f32 1.442695, %v5408_v16  ;;  %v5878_v6 = vmul.f32 1.442695, %v5851_v5 }
0x14f5   : > { %5448 = vadd.xlane.f32.xlu1 %v14626_v27  ;;  %v5829_v11 = vpop.xlane.xlu0 %5828 }
0x14f6   : > { %10646 = vpow2.f32 %v5434_v59  ;;  %v5850_v43 = vsub.f32 %v14436_v61, %v5829_v11  ;;  %v5436_v11 = vmul.f32 1.442695, %v5409_v10  ;;  %v5407_v59 = vsub.f32 %v14432_v35, %v5385_v49 }
0x14f7   : > { %v5827_v7 = vpop.xlane.xlu1 %5826  ;;  %10648 = vpow2.f32 %v5424_v56 }
0x14f8   : > { %v14632_v42 = vpop.eup %10634  ;;  %v5849_v21 = vsub.f32 %v14443_v32, %v5827_v7  ;;  %v5876_v33 = vmul.f32 1.442695, %v5850_v43 }
0x14f9   : > { %5890 = vadd.xlane.f32.xlu1 %v14630_v23  ;;  %5454 = vadd.xlane.f32.xlu0 %v14632_v42  ;;  %v5383_v46 = vpop.xlane.xlu0 %5382  ;;  %v14639_v13 = vpop.eup %10636 }
0x14fa   : > { %v5406_v18 = vsub.f32 %v14451_v19, %v5383_v46  ;;  %16605 = vst [vmem:[#allocation19_spill] sm:$0xff] %v14639_v13  ;;  %v14641_v29 = vpop.eup %10638  ;;  %v5874_v2 = vmul.f32 1.442695, %v5849_v21 }
0x14fb   : > { %v14647_v22 = vpop.eup %10640  ;;  %v5397_v5 = vpop.xlane.xlu1 %5396 }
0x14fc   : > { %v5430_v51 = vmul.f32 1.442695, %v5406_v18  ;;  %v14649_v19 = vpop.eup %10642 }
0x14fd   : > { %5900 = vadd.xlane.f32.xlu1 %v14641_v29  ;;  %5902 = vadd.xlane.f32.xlu0 %v14639_v13  ;;  %v5825_v9 = vpop.xlane.xlu0 %5824  ;;  %v14656_v50 = vpop.eup %10644 }
0x14fe   : > { %10650 = vpow2.f32 %v5430_v51  ;;  %v5848_v61 = vsub.f32 %v14458_v58, %v5825_v9 }
0x14ff   : > { %10652 = vpow2.f32 %v5878_v6  ;;  %v5839_v6 = vpop.xlane.xlu1 %5838 }
0x1500   : > { %10654 = vpow2.f32 %v5876_v33  ;;  %v5872_v16 = vmul.f32 1.442695, %v5848_v61  ;;  %v14658_v58 = vpop.eup %10646 }
0x1501   : > { %5898 = vadd.xlane.f32.xlu0 %v14647_v22  ;;  %5896 = vadd.xlane.f32.xlu1 %v14649_v19  ;;  %v5395_v32 = vpop.xlane.xlu0 %5394  ;;  %10656 = vpow2.f32 %v5874_v2  ;;  %v14663_v56 = vpop.eup %10648 }
0x1502   : > { %v5412_v57 = vsub.f32 %v14471_v55, %v5395_v32  ;;  %10658 = vpow2.f32 %v5872_v16  ;;  %v5432_v55 = vmul.f32 1.442695, %v5407_v59 }
0x1503   : > { %10660 = vpow2.f32 %v5436_v11  ;;  %v5393_v32 = vpop.xlane.xlu1 %5392 }
0x1504   : > { %v5442_v38 = vmul.f32 1.442695, %v5412_v57  ;;  %v5411_v57 = vsub.f32 %v14474_v63, %v5393_v32 }
0x1505   : > { %5460 = vadd.xlane.f32.xlu1 %v14656_v50  ;;  %5466 = vadd.xlane.f32.xlu0 %v14658_v58  ;;  %v5837_v15 = vpop.xlane.xlu0 %5836 }
0x1506   : > { %10662 = vpow2.f32 %v5442_v38  ;;  %v5854_v49 = vsub.f32 %v14477_v60, %v5837_v15 }
0x1507   : > { %10664 = vpow2.f32 %v5432_v55  ;;  %v11000_v55 = vld [vmem:[#allocation2 + $0x20] sm:$0xff] }
0x1508   : > { %v14665_v46 = vpop.eup %10650  ;;  %v5884_v9 = vmul.f32 1.442695, %v5854_v49  ;;  %v11001_v49 = vld [vmem:[#allocation2 + $0x30] sm:$0xff] }
0x1509   : > { %5456 = vadd.xlane.f32.xlu1 %v14663_v56  ;;  %5462 = vadd.xlane.f32.xlu0 %v14665_v46  ;;  %v5391_v35 = vpop.xlane.xlu0 %5390  ;;  %v14671_v7 = vpop.eup %10652 }
0x150a   : > { %v5410_v43 = vsub.f32 %v14486_v30, %v5391_v35  ;;  %16606 = vst [vmem:[#allocation18_spill] sm:$0xff] %v14671_v7  ;;  %v14673_v18 = vpop.eup %10654  ;;  %v5413_v30 = vsub.f32 %v14455_v1, %v5397_v5  ;;  %v5440_v1 = vmul.f32 1.442695, %v5411_v57  ;;  %v5835_v35 = vpop.xlane.xlu1 %5834 }
0x150b   : > { %16607 = vst [vmem:[#allocation20_spill] sm:$0xff] %v14673_v18  ;;  %v14678_v61 = vpop.eup %10656 }
0x150c   : > { %v5438_v51 = vmul.f32 1.442695, %v5410_v43  ;;  %16608 = vst [vmem:[#allocation21_spill] sm:$0xff] %v14678_v61  ;;  %v14680_v60 = vpop.eup %10658  ;;  %v5855_v43 = vsub.f32 %v14465_v47, %v5839_v6 }
0x150d   : > { %5908 = vadd.xlane.f32.xlu1 %v14673_v18  ;;  %5910 = vadd.xlane.f32.xlu0 %v14671_v7  ;;  %v5833_v21 = vpop.xlane.xlu0 %5832  ;;  %16609 = vst [vmem:[#allocation23_spill] sm:$0xff] %v14680_v60  ;;  %v14685_v2 = vpop.eup %10660 }
0x150e   : > { %10666 = vpow2.f32 %v5438_v51  ;;  %v5852_v33 = vsub.f32 %v14490_v26, %v5833_v21  ;;  %v5444_v26 = vmul.f32 1.442695, %v5413_v30  ;;  %v5886_v21 = vmul.f32 1.442695, %v5855_v43 }
0x150f   : > { %10668 = vpow2.f32 %v5884_v9  ;;  %v5853_v9 = vsub.f32 %v14483_v39, %v5835_v35 }
0x1510   : > { %v5880_v10 = vmul.f32 1.442695, %v5852_v33  ;;  %v14687_v16 = vpop.eup %10662  ;;  %v6281_v51 = vpop.xlane.xlu1 %6280 }
0x1511   : > { %5906 = vadd.xlane.f32.xlu0 %v14678_v61  ;;  %5904 = vadd.xlane.f32.xlu1 %v14680_v60  ;;  %v14692_v11 = vpop.eup %10664  ;;  %v5882_v33 = vmul.f32 1.442695, %v5853_v9  ;;  %v6309_v30 = vsub.f32 %v14494_v3, %v6281_v51  ;;  %v6279_v32 = vpop.xlane.xlu0 %6278 }
0x1512   : > { %10670 = vpow2.f32 %v5880_v10 }
0x1513   : > { %10672 = vpow2.f32 %v5444_v26  ;;  %v6328_v26 = vmul.f32 1.442695, %v6309_v30 }
0x1514   : > { %10674 = vpow2.f32 %v5440_v1  ;;  %v6277_v10 = vpop.xlane.xlu1 %6276  ;;  %v6308_v1 = vsub.f32 %v14497_v12, %v6279_v32 }
0x1515   : > { %5468 = vadd.xlane.f32.xlu1 %v14685_v2  ;;  %5474 = vadd.xlane.f32.xlu0 %v14687_v16  ;;  %10676 = vpow2.f32 %v5886_v21  ;;  %v6307_v57 = vsub.f32 %v14502_v53, %v6277_v10 }
0x1516   : > { %10678 = vpow2.f32 %v5882_v33  ;;  %v6326_v39 = vmul.f32 1.442695, %v6308_v1 }
0x1517   : > { %10680 = vpow2.f32 %v6328_v26 }
0x1518   : > { %v14694_v59 = vpop.eup %10666  ;;  %v6289_v6 = vpop.xlane.xlu1 %6288 }
0x1519   : > { %5464 = vadd.xlane.f32.xlu1 %v14692_v11  ;;  %5470 = vadd.xlane.f32.xlu0 %v14694_v59  ;;  %v14698_v15 = vpop.eup %10668 }
0x151a   : > { %16610 = vst [vmem:[#allocation22_spill] sm:$0xff] %v14698_v15 }
0x151c   : > { %v14701_v38 = vpop.eup %10670  ;;  %v6285_v43 = vpop.xlane.xlu1 %6284 }
0x151d   : > { %5916 = vadd.xlane.f32.xlu1 %v14698_v15  ;;  %16611 = vst [vmem:[#allocation24_spill] sm:$0xff] %v14701_v38  ;;  %v14704_v63 = vpop.eup %10672  ;;  %v6311_v18 = vsub.f32 %v14518_v40, %v6285_v43 }
0x151e   : > { %v14707_v5 = vpop.eup %10674 }
0x151f   : > { %v14717_v47 = vpop.eup %10676  ;;  %v6332_v13 = vmul.f32 1.442695, %v6311_v18 }
0x1520   : > { %16612 = vst [vmem:[#allocation25_spill] sm:$0xff] %v14717_v47  ;;  %v14721_v35 = vpop.eup %10678  ;;  %v6295_v9 = vpop.xlane.xlu1 %6294 }
0x1521   : > { %5912 = vadd.xlane.f32.xlu1 %v14701_v38  ;;  %16613 = vst [vmem:[#allocation27_spill] sm:$0xff] %v14721_v35  ;;  %v14724_v51 = vpop.eup %10680 }
0x1522   : > { %16614 = vst [vmem:[#allocation26_spill] sm:$0xff] %v14724_v51 }
0x1524   : > { %v6291_v30 = vpop.xlane.xlu1 %6290 }
0x1525   : > { %5476 = vadd.xlane.f32.xlu1 %v14704_v63 }
0x1528   : > { %v6297_v26 = vpop.xlane.xlu1 %6296 }
0x1529   : > { %5472 = vadd.xlane.f32.xlu1 %v14707_v5 }
0x152c   : > { %v14738_v1 = vpop.xlane.xlu1 %6292 }
0x152f   : > { %6575 = vrot.lane.b32.xlu0 %v11000_v55, %s16499_s1  ;;  %v6324_v55 = vmul.f32 1.442695, %v6307_v57 }
0x1531   : > { %10682 = vpow2.f32 %v6324_v55 }
0x1532   : > { %10684 = vpow2.f32 %v6326_v39  ;;  %v6299_v39 = vpop.xlane.xlu1 %6298 }
0x153a   : > { %6577 = vrot.lane.b32.xlu1 %v11001_v49, %s16499_s1  ;;  %v6275_v49 = vpop.xlane.xlu0 %6274 }
0x153b   : > { %v6306_v3 = vsub.f32 %v14505_v34, %v6275_v49  ;;  %v14727_v21 = vpop.eup %10682  ;;  %v11002_v49 = vld [vmem:[#allocation2 + $0x40] sm:$0xff] }
0x153c   : > { %16615 = vst [vmem:[#allocation28_spill] sm:$0xff] %v14727_v21  ;;  %v14730_v33 = vpop.eup %10684 }
0x153d   : > { %v6322_v53 = vmul.f32 1.442695, %v6306_v3  ;;  %16616 = vst [vmem:[#allocation68_spill] sm:$0xff] %v14730_v33 }
0x153e   : > { %v6287_v12 = vpop.xlane.xlu0 %6286 }
0x153f   : > { %10686 = vpow2.f32 %v6322_v53  ;;  %v11003_v53 = vld [vmem:[#allocation2 + $0x50] sm:$0xff] }
0x1542   : > { %v6283_v34 = vpop.xlane.xlu0 %6282 }
0x1546   : > { %v6303_v32 = vpop.xlane.xlu0 %6302 }
0x1549   : > { %v14733_v10 = vpop.eup %10686 }
0x154a   : > { %16617 = vst [vmem:[#allocation69_spill] sm:$0xff] %v14733_v10  ;;  %v14736_v57 = vpop.xlane.xlu0 %6304 }
0x154e   : > { %5918 = vadd.xlane.f32.xlu0 %v14717_v47  ;;  %v14740_v55 = vpop.xlane.xlu0 %6300  ;;  %v6310_v47 = vsub.f32 %v14521_v37, %v6283_v34  ;;  %v6320_v37 = vsub.f32 %v14531_v28, %v6303_v32 }
0x1550   : > { %v6330_v61 = vmul.f32 1.442695, %v6310_v47 }
0x1552   : > { %5914 = vadd.xlane.f32.xlu0 %v14721_v35 }
0x1556   : > { %6360 = vadd.xlane.f32.xlu0 %v14724_v51 }
0x155a   : > { %6356 = vadd.xlane.f32.xlu0 %v14727_v21 }
0x155e   : > { %6358 = vadd.xlane.f32.xlu1 %v14730_v33  ;;  %v6312_v33 = vsub.f32 %v14513_v20, %v6287_v12 }
0x1560   : > { %v6334_v38 = vmul.f32 1.442695, %v6312_v33  ;;  %v6316_v33 = vsub.f32 %v14526_v45, %v6295_v9  ;;  %v6350_v45 = vmul.f32 1.442695, %v6320_v37 }
0x1562   : > { %6354 = vadd.xlane.f32.xlu1 %v14733_v10  ;;  %v6342_v47 = vmul.f32 1.442695, %v6316_v33 }
0x156a   : > { %v5451_v3 = vpop.xlane.xlu0 %5450 }
0x156e   : > { %v14746_v21 = vpop.xlane.xlu0 %5892 }
0x1570   : > { %6579 = vrot.lane.b32.xlu0 %v11002_v49, %s16499_s1 }
0x1572   : > { %v5447_v15 = vpop.xlane.xlu0 %5446 }
0x1573   : > { %6581 = vrot.lane.b32.xlu1 %v11003_v53, %s16499_s1  ;;  %v6313_v53 = vsub.f32 %v14510_v44, %v6289_v6  ;;  %v6317_v44 = vsub.f32 %v14537_v62, %v6297_v26  ;;  %v6318_v6 = vsub.f32 %v14555_v4, %v6299_v39 }
0x1575   : > { %v6336_v12 = vmul.f32 1.442695, %v6313_v53  ;;  %v6344_v9 = vmul.f32 1.442695, %v6317_v44  ;;  %v6346_v4 = vmul.f32 1.442695, %v6318_v6 }
0x1576   : > { %v14744_v51 = vpop.xlane.xlu1 %5888 }
0x157a   : > { %v5453_v10 = vpop.xlane.xlu1 %5452 }
0x157b   : > { %10688 = vrcp.f32 %v5453_v10 }
0x157c   : > { %10690 = vrcp.f32 %v5447_v15  ;;  %v6314_v15 = vsub.f32 %v14529_v25, %v6291_v30 }
0x157d   : > { %10692 = vrcp.f32 %v5451_v3 }
0x157e   : > { %v14749_v35 = vpop.xlane.xlu1 %5894  ;;  %v5459_v49 = vpop.xlane.xlu0 %5458 }
0x1582   : > { %v5449_v7 = vpop.xlane.xlu1 %5448 }
0x1583   : > { %10694 = vrcp.f32 %v5449_v7 }
0x1584   : > { %10696 = vpow2.f32 %v6334_v38 }
0x1585   : > { %10698 = vpow2.f32 %v6330_v61  ;;  %v10689_v34 = vpop.eup %10688  ;;  %v6338_v61 = vmul.f32 1.442695, %v6314_v15 }
0x1586   : > { %v14754_v60 = vpop.xlane.xlu1 %5890  ;;  %v5455_v20 = vpop.xlane.xlu0 %5454  ;;  %10700 = vpow2.f32 %v6336_v12  ;;  %v5497_v28 = vmul.f32 %v10689_v34, %v14613_v54  ;;  %v6321_v54 = vsub.f32 %v14541_v24, %v14736_v57 }
0x1587   : > { %v10691_v40 = vpop.eup %10690  ;;  %10702 = vpow2.f32 %v6332_v13 }
0x1588   : > { %v10693_v43 = vpop.eup %10692  ;;  %v5494_v10 = vmul.f32 %v10691_v40, %v14601_v8  ;;  %10704 = vpow2.f32 %v6342_v47  ;;  %v6352_v8 = vmul.f32 1.442695, %v6321_v54  ;;  %v16620_v40 = vld [vmem:[#allocation43_spill] sm:$0xff] }
0x1589   : > { %v5496_v13 = vmul.f32 %v10693_v43, %v14591_v14  ;;  %10706 = vpow2.f32 %v6350_v45  ;;  %v6315_v14 = vsub.f32 %v14545_v48, %v14738_v1  ;;  %v16618_v1 = vld [vmem:[#allocation42_spill] sm:$0xff] }
0x158a   : > { %v14760_v7 = vpop.xlane.xlu1 %5900  ;;  %v14762_v38 = vpop.xlane.xlu0 %5902  ;;  %10708 = vpow2.f32 %v6338_v61  ;;  %v6319_v33 = vsub.f32 %v16618_v1, %v14740_v55 }
0x158b   : > { %v5511_v39 = vpack.c.bf16 %v5497_v28, %v5496_v13  ;;  %10710 = vpow2.f32 %v6344_v9  ;;  %v6340_v48 = vmul.f32 1.442695, %v6315_v14  ;;  %v16621_v28 = vld [vmem:[#allocation46_spill] sm:$0xff] }
0x158c   : > { %10712 = vpow2.f32 %v6346_v4  ;;  %v6348_v55 = vmul.f32 1.442695, %v6319_v33 }
0x158d   : > { %v10695_v18 = vpop.eup %10694 }
0x158e   : > { %v14766_v25 = vpop.eup %10696  ;;  %v14768_v62 = vpop.xlane.xlu1 %5896  ;;  %v5495_v32 = vmul.f32 %v10695_v18, %v14626_v27 }
0x158f   : > { %v14770_v30 = vpop.xlane.xlu0 %5898  ;;  %6366 = vadd.xlane.f32.xlu0 %v14766_v25  ;;  %v14778_v3 = vpop.eup %10698 }
0x1590   : > { %v5510_v26 = vpack.c.bf16 %v5495_v32, %v5494_v10  ;;  %v14784_v24 = vpop.eup %10700 }
0x1591   : > { %v14787_v57 = vpop.eup %10702 }
0x1592   : > { %v5461_v53 = vpop.xlane.xlu1 %5460  ;;  %9663 = vmatprep.mubr.bf16.mxu0 %v5510_v26 }
0x1593   : > { %6362 = vadd.xlane.f32.xlu0 %v14778_v3  ;;  %9664 = vmatmul.mubr.bf16.vlgmr.msra.gmra.mrb[160].mxu0 %v5511_v39  ;;  %10714 = vrcp.f32 %v5461_v53  ;;  %v5467_v27 = vpop.xlane.xlu0 %5466  ;;  %v16622_v39 = vld [vmem:[#allocation33_spill] sm:$0xff] }
0x1594   : > { %9712 = vmatpush3.bf16.msra.mxu0 %v14288_v17  ;;  %10716 = vrcp.f32 %v5455_v20  ;;  %v14794_v17 = vpop.eup %10704  ;;  %v16619_v20 = vld [vmem:[#allocation47_spill] sm:$0xff] }
0x1595   : > { %9713 = vmatprep.subr.bf16.mxu0 %v14553_v0  ;;  %10718 = vrcp.f32 %v5459_v49  ;;  %v14797_v37 = vpop.eup %10706 }
0x1596   : > { %v5457_v12 = vpop.xlane.xlu1 %5456  ;;  %v14801_v34 = vpop.eup %10708 }
0x1597   : > { %10720 = vrcp.f32 %v5457_v12  ;;  %6364 = vadd.xlane.f32.xlu1 %v14787_v57  ;;  %6368 = vadd.xlane.f32.xlu0 %v14784_v24  ;;  %v5463_v49 = vpop.xlane.xlu0 %5462  ;;  %v14805_v44 = vpop.eup %10710 }
0x1598   : > { %10722 = vpow2.f32 %v6352_v8  ;;  %9714 = vmatpush3.bf16.msra.mxu0 %v14553_v0  ;;  %v14808_v0 = vpop.eup %10712 }
0x1599   : > { %9715 = vmatprep.subr.bf16.mxu0 %v16619_v20  ;;  %10724 = vpow2.f32 %v6340_v48 }
0x159a   : > { %v14799_v15 = vpop.xlane.xlu1 %5908  ;;  %10726 = vpow2.f32 %v6348_v55  ;;  %v16625_v55 = vld [vmem:[#allocation50_spill] sm:$0xff] }
0x159b   : > { %6374 = vadd.xlane.f32.xlu1 %v14794_v17  ;;  %6382 = vadd.xlane.f32.xlu0 %v14797_v37  ;;  %v14815_v18 = vpop.xlane.xlu0 %5910 }
0x159c   : > { %9716 = vmatpush3.bf16.msra.mxu0 %v16619_v20 }
0x159d   : > { %9717 = vmatprep.subr.bf16.mxu0 %v16620_v40  ;;  %v10715_v47 = vpop.eup %10714 }
0x159e   : > { %v14811_v6 = vpop.xlane.xlu1 %5904  ;;  %v10717_v43 = vpop.eup %10716  ;;  %v5501_v9 = vmul.f32 %v10715_v47, %v14656_v50 }
0x159f   : > { %6370 = vadd.xlane.f32.xlu1 %v14801_v34  ;;  %6378 = vadd.xlane.f32.xlu0 %v14808_v0  ;;  %v10719_v45 = vpop.eup %10718  ;;  %v5498_v4 = vmul.f32 %v10717_v43, %v14632_v42  ;;  %v14831_v42 = vpop.xlane.xlu0 %5906 }
0x15a0   : > { %9718 = vmatpush3.bf16.msra.mxu0 %v16620_v40  ;;  %v5500_v54 = vmul.f32 %v10719_v45, %v14620_v41  ;;  %v16623_v41 = vld [vmem:[#allocation51_spill] sm:$0xff] }
0x15a1   : > { %v10721_v61 = vpop.eup %10720  ;;  %9719 = vmatprep.subr.bf16.mxu0 %v16621_v28 }
0x15a2   : > { %v14820_v10 = vpop.eup %10722  ;;  %v5469_v32 = vpop.xlane.xlu1 %5468  ;;  %v5499_v13 = vmul.f32 %v10721_v61, %v14663_v56  ;;  %v5513_v50 = vpack.c.bf16 %v5501_v9, %v5500_v54 }
0x15a3   : > { %6376 = vadd.xlane.f32.xlu1 %v14805_v44  ;;  %6384 = vadd.xlane.f32.xlu0 %v14820_v10  ;;  %10728 = vrcp.f32 %v5469_v32  ;;  %v14829_v53 = vpop.eup %10724  ;;  %v5475_v12 = vpop.xlane.xlu0 %5474 }
0x15a4   : > { %9720 = vmatpush3.bf16.msra.mxu0 %v16621_v28  ;;  %v5512_v26 = vpack.c.bf16 %v5499_v13, %v5498_v4  ;;  %10730 = vrcp.f32 %v5463_v49  ;;  %v14836_v8 = vpop.eup %10726 }
0x15a5   : > { %9721 = vmatprep.subr.bf16.mxu0 %v16622_v39  ;;  %10732 = vrcp.f32 %v5467_v27  ;;  %v16624_v27 = vld [vmem:[#allocation32_spill] sm:$0xff] }
0x15a6   : > { %v5465_v56 = vpop.xlane.xlu1 %5464  ;;  %9667 = vmatprep.mubr.bf16.mxu0 %v5512_v26  ;;  %v16628_v26 = vld [vmem:[#allocation64_spill] sm:$0xff] }
0x15a7   : > { %10734 = vrcp.f32 %v5465_v56  ;;  %6372 = vadd.xlane.f32.xlu1 %v14829_v53  ;;  %9668 = vmatmul.mubr.bf16.gmra.mrb[164].mxu0 %v5513_v50  ;;  %v5471_v47 = vpop.xlane.xlu0 %5470 }
0x15a8   : > { %9722 = vmatpush3.bf16.msra.mxu0 %v16622_v39  ;;  %10736 = vrcp.f32 %v14744_v51 }
0x15a9   : > { %9723 = vmatprep.subr.bf16.mxu0 %v16623_v41  ;;  %10738 = vrcp.f32 %v14754_v60  ;;  %v11005_v60 = vld [vmem:[#allocation2 + $0x70] sm:$0xff] }
0x15aa   : > { %v14838_v14 = vpop.xlane.xlu1 %5916 }
0x15ab   : > { %6380 = vadd.xlane.f32.xlu1 %v14836_v8 }
0x15ac   : > { %9724 = vmatpush3.bf16.msra.mxu0 %v16623_v41  ;;  %v16630_v41 = vld [vmem:[#allocation65_spill] sm:$0xff] }
0x15ad   : > { %9725 = vmatprep.subr.bf16.mxu0 %v16624_v27  ;;  %v10729_v48 = vpop.eup %10728 }
0x15ae   : > { %v14843_v1 = vpop.xlane.xlu1 %5912  ;;  %v10731_v33 = vpop.eup %10730  ;;  %v5505_v40 = vmul.f32 %v10729_v48, %v14685_v2  ;;  %v11004_v2 = vld [vmem:[#allocation2 + $0x60] sm:$0xff] }
0x15af   : > { %v10733_v20 = vpop.eup %10732  ;;  %v5502_v45 = vmul.f32 %v10731_v33, %v14665_v46 }
0x15b0   : > { %9726 = vmatpush3.bf16.msra.mxu0 %v16624_v27  ;;  %v5504_v28 = vmul.f32 %v10733_v20, %v14658_v58 }
0x15b1   : > { %v10735_v49 = vpop.eup %10734  ;;  %9775 = vmatprep.subr.bf16.mxu0 %v16625_v55 }
0x15b2   : > { %v5477_v43 = vpop.xlane.xlu1 %5476  ;;  %v5503_v61 = vmul.f32 %v10735_v49, %v14692_v11  ;;  %v5515_v32 = vpack.c.bf16 %v5505_v40, %v5504_v28  ;;  %v10737_v46 = vpop.eup %10736  ;;  %v16627_v11 = vld [vmem:[#allocation66_spill] sm:$0xff]  ;;  %v16634_v40 = vld [vmem:[#allocation39_spill] sm:$0xff] }
0x15b3   : > { %10740 = vrcp.f32 %v5477_v43  ;;  %v10739_v58 = vpop.eup %10738  ;;  %v11006_v43 = vld [vmem:[#allocation2 + $0x8] sm:$0xff] }
0x15b4   : > { %v5514_v9 = vpack.c.bf16 %v5503_v61, %v5502_v45  ;;  %10742 = vrcp.f32 %v5471_v47  ;;  %v5937_v56 = vmul.f32 %v10739_v58, %v14630_v23 }
0x15b5   : > { %10744 = vrcp.f32 %v5475_v12 }
0x15b6   : > { %v5473_v4 = vpop.xlane.xlu1 %5472  ;;  %9671 = vmatprep.mubr.bf16.mxu0 %v5514_v9  ;;  %v11008_v9 = vld [vmem:[#allocation2 + $0x28] sm:$0xff] }
0x15b7   : > { %10746 = vrcp.f32 %v5473_v4  ;;  %9672 = vmatmul.mubr.bf16.gmra.mrb[168].mxu0 %v5515_v32  ;;  %v16637_v32 = vld [vmem:[#allocation23_spill] sm:$0xff] }
0x15b8   : > { %10748 = vrcp.f32 %v14746_v21 }
0x15b9   : > { %6583 = vrot.lane.b32.xlu0 %v11004_v2, %s16499_s1  ;;  %10750 = vrcp.f32 %v14749_v35  ;;  %v16629_v35 = vld [vmem:[#allocation67_spill] sm:$0xff]  ;;  %v16638_v2 = vld [vmem:[#allocation21_spill] sm:$0xff] }
0x15ba   : > { %10752 = vrcp.f32 %v14768_v62 }
0x15bb   : > { %10754 = vrcp.f32 %v14770_v30 }
0x15bc   : > { %6585 = vrot.lane.b32.xlu1 %v11005_v60, %s16499_s1  ;;  %10756 = vrcp.f32 %v14760_v7  ;;  %v16639_v60 = vld [vmem:[#allocation13_spill] sm:$0xff] }
0x15bd   : > { %6555 = vrot.lane.b32.xlu0 %v16627_v11, %s16626_s23  ;;  %v10741_v51 = vpop.eup %10740  ;;  %10758 = vrcp.f32 %v14762_v38 }
0x15be   : > { %v10743_v13 = vpop.eup %10742  ;;  %v5509_v39 = vmul.f32 %v10741_v51, %v14704_v63  ;;  %10760 = vrcp.f32 %v14811_v6  ;;  %v5936_v63 = vmul.f32 %v10737_v46, %v14605_v52  ;;  %v16632_v6 = vld [vmem:[#allocation41_spill] sm:$0xff]  ;;  %v16633_v52 = vld [vmem:[#allocation40_spill] sm:$0xff] }
0x15bf   : > { %v10745_v54 = vpop.eup %10744  ;;  %v5506_v62 = vmul.f32 %v10743_v13, %v14694_v59  ;;  %10762 = vrcp.f32 %v14831_v42  ;;  %v16631_v59 = vld [vmem:[#allocation38_spill] sm:$0xff]  ;;  %v11009_v51 = vld [vmem:[#allocation2 + $0x38] sm:$0xff]  ;;  %v14903_v13 = vpop.permute.xlu0 %6575 }
0x15c0   : > { %6557 = vrot.lane.b32.xlu1 %v16628_v26, %s16626_s23  ;;  %v5508_v30 = vmul.f32 %v10745_v54, %v14687_v16  ;;  %v5952_v7 = vpack.c.bf16 %v5937_v56, %v5936_v63  ;;  %10764 = vrcp.f32 %v14799_v15  ;;  %v16640_v54 = vld [vmem:[#allocation44_spill] sm:$0xff] }
0x15c1   : > { %v10747_v21 = vpop.eup %10746  ;;  %6559 = vrot.lane.b32.xlu0 %v16629_v35, %s16626_s23  ;;  %10766 = vrcp.f32 %v14815_v18  ;;  %v16636_v18 = vld [vmem:[#allocation19_spill] sm:$0xff]  ;;  %v16641_v26 = vld [vmem:[#allocation20_spill] sm:$0xff]  ;;  %v16642_v35 = vld [vmem:[#allocation18_spill] sm:$0xff] }
0x15c2   : > { %v5507_v50 = vmul.f32 %v10747_v21, %v14707_v5  ;;  %v10749_v27 = vpop.eup %10748  ;;  %v5517_v5 = vpack.c.bf16 %v5509_v39, %v5508_v30  ;;  %v16645_v63 = vld [vmem:[#allocation48_spill] sm:$0xff] }
0x15c3   : > { %v10751_v23 = vpop.eup %10750  ;;  %v5938_v42 = vmul.f32 %v10749_v27, %v14596_v36 }
0x15c4   : > { %6561 = vrot.lane.b32.xlu1 %v16630_v41, %s16626_s23  ;;  %v5516_v12 = vpack.c.bf16 %v5507_v50, %v5506_v62  ;;  %v10753_v38 = vpop.eup %10752  ;;  %v5939_v48 = vmul.f32 %v10751_v23, %v14618_v31  ;;  %v16643_v50 = vld [vmem:[#allocation14_spill] sm:$0xff]  ;;  %v16644_v41 = vld [vmem:[#allocation49_spill] sm:$0xff]  ;;  %v16646_v23 = vld [vmem:[#allocation15_spill] sm:$0xff] }
0x15c5   : > { %6563 = vrot.lane.b32.xlu0 %v16631_v59, %s16626_s23  ;;  %v10755_v16 = vpop.eup %10754  ;;  %v5940_v33 = vmul.f32 %v10753_v38, %v14649_v19  ;;  %v11007_v19 = vld [vmem:[#allocation2 + $0x18] sm:$0xff]  ;;  %v6578_v59 = vpop.permute.xlu1 %6577 }
0x15c6   : > { %9675 = vmatprep.mubr.bf16.mxu0 %v5516_v12  ;;  %v5941_v20 = vmul.f32 %v10755_v16, %v14647_v22  ;;  %v10757_v49 = vpop.eup %10756  ;;  %v5953_v31 = vpack.c.bf16 %v5939_v48, %v5938_v42  ;;  %v16635_v22 = vld [vmem:[#allocation45_spill] sm:$0xff]  ;;  %v16648_v48 = vld [vmem:[#allocation24_spill] sm:$0xff]  ;;  %v16649_v42 = vld [vmem:[#allocation27_spill] sm:$0xff] }
0x15c7   : > { %9676 = vmatmul.mubr.bf16.gmra.mrb[172].mxu0 %v5517_v5  ;;  %v10759_v47 = vpop.eup %10758  ;;  %v5942_v15 = vmul.f32 %v10757_v49, %v14641_v29 }
0x15c8   : > { %6565 = vrot.lane.b32.xlu1 %v16632_v6, %s16626_s23  ;;  %9727 = vmatprep.mubr.bf16.mxu0 %v5952_v7  ;;  %v10761_v45 = vpop.eup %10760  ;;  %v5954_v36 = vpack.c.bf16 %v5941_v20, %v5940_v33  ;;  %v5943_v28 = vmul.f32 %v10759_v47, %v16636_v18  ;;  %v16647_v7 = vld [vmem:[#allocation25_spill] sm:$0xff]  ;;  %v16650_v20 = vld [vmem:[#allocation22_spill] sm:$0xff] }
0x15c9   : > { %6567 = vrot.lane.b32.xlu0 %v16633_v52, %s16626_s23  ;;  %v10763_v61 = vpop.eup %10762  ;;  %v5944_v4 = vmul.f32 %v10761_v45, %v16637_v32  ;;  %v16653_v18 = vld [vmem:[#allocation69_spill] sm:$0xff] }
0x15ca   : > { %v5945_v46 = vmul.f32 %v10763_v61, %v16638_v2  ;;  %v5955_v58 = vpack.c.bf16 %v5943_v28, %v5942_v15 }
0x15cc   : > { %6569 = vrot.lane.b32.xlu1 %v16634_v40, %s16626_s23  ;;  %v5956_v29 = vpack.c.bf16 %v5945_v46, %v5944_v4  ;;  %v16651_v40 = vld [vmem:[#allocation16_spill] sm:$0xff]  ;;  %v16655_v4 = vld [vmem:[#allocation26_spill] sm:$0xff] }
0x15cd   : > { %6884 = vrot.lane.b32.xlu0 %v11006_v43, %s16626_s23 }
0x15cf   : > { %9728 = vmatmul.mubr.bf16.vlgmr.msra.gmra.mrb[176].mxu0 %v5953_v31 }
0x15d0   : > { %9776 = vmatpush3.bf16.msra.mxu0 %v16625_v55  ;;  %6886 = vrot.lane.b32.xlu1 %v11007_v19, %s16626_s23  ;;  %v10765_v55 = vpop.eup %10764 }
0x15d1   : > { %9731 = vmatprep.mubr.bf16.mxu0 %v5954_v36  ;;  %9777 = vmatprep.subr.bf16.mxu0 %v16635_v22  ;;  %v10767_v11 = vpop.eup %10766  ;;  %v5946_v21 = vmul.f32 %v10765_v55, %v16641_v26 }
0x15d2   : > { %6888 = vrot.lane.b32.xlu0 %v11008_v9, %s16626_s23  ;;  %v5947_v39 = vmul.f32 %v10767_v11, %v16642_v35  ;;  %v16654_v9 = vld [vmem:[#allocation28_spill] sm:$0xff] }
0x15d4   : > { %9778 = vmatpush3.bf16.msra.mxu0 %v16635_v22  ;;  %v5957_v56 = vpack.c.bf16 %v5947_v39, %v5946_v21  ;;  %v16652_v22 = vld [vmem:[#allocation68_spill] sm:$0xff] }
0x15d5   : > { %9779 = vmatprep.subr.bf16.mxu0 %v16639_v60 }
0x15d6   : > { %6890 = vrot.lane.b32.xlu0 %v11009_v51, %s16626_s23  ;;  %v6618_v51 = vsel %vm1514_vm1, %v14903_v13, 0 }
0x15d7   : > { %9732 = vmatmul.mubr.bf16.gmra.mrb[180].mxu0 %v5955_v58  ;;  %v16656_v58 = vld [vmem:[#allocation17_spill] sm:$0xff] }
0x15d8   : > { %9780 = vmatpush3.bf16.msra.mxu0 %v16639_v60  ;;  %9735 = vmatprep.mubr.bf16.mxu0 %v5956_v29  ;;  %v6612_v60 = vsel %vm1514_vm1, %v16651_v40, 0  ;;  %v6615_v11 = vsel %vm1514_vm1, %v16656_v58, 0 }
0x15d9   : > { %9781 = vmatprep.subr.bf16.mxu0 %v16640_v54 }
0x15db   : > { %v5919_v62 = vpop.xlane.xlu0 %5918 }
0x15dc   : > { %9782 = vmatpush3.bf16.msra.mxu0 %v16640_v54  ;;  %10768 = vrcp.f32 %v5919_v62  ;;  %v6621_v54 = vsel %vm1514_vm1, %v6578_v59, 0 }
0x15dd   : > { %9783 = vmatprep.subr.bf16.mxu0 %v16643_v50  ;;  %10770 = vrcp.f32 %v14843_v1 }
0x15de   : > { %10772 = vrcp.f32 %v14838_v14 }
0x15df   : > { %9736 = vmatmul.mubr.bf16.gmra.mrb[184].mxu0 %v5957_v56  ;;  %v5915_v30 = vpop.xlane.xlu0 %5914 }
0x15e0   : > { %9784 = vmatpush3.bf16.msra.mxu0 %v16643_v50  ;;  %10774 = vrcp.f32 %v5915_v30 }
0x15e1   : > { %9785 = vmatprep.subr.bf16.mxu0 %v16644_v41 }
0x15e3   : > { %v6361_v12 = vpop.xlane.xlu0 %6360 }
0x15e4   : > { %9786 = vmatpush3.bf16.msra.mxu0 %v16644_v41 }
0x15e5   : > { %9787 = vmatprep.subr.bf16.mxu0 %v16645_v63 }
0x15e6   : > { %v10769_v27 = vpop.eup %10768 }
0x15e7   : > { %v10771_v5 = vpop.eup %10770  ;;  %v5951_v38 = vmul.f32 %v10769_v27, %v16647_v7  ;;  %v6357_v16 = vpop.xlane.xlu0 %6356 }
0x15e8   : > { %9788 = vmatpush3.bf16.msra.mxu0 %v16645_v63  ;;  %v10773_v1 = vpop.eup %10772  ;;  %v5948_v52 = vmul.f32 %v10771_v5, %v16648_v48 }
0x15e9   : > { %9789 = vmatprep.subr.bf16.mxu0 %v16646_v23  ;;  %v5950_v49 = vmul.f32 %v10773_v1, %v16650_v20 }
0x15ea   : > { %v10775_v14 = vpop.eup %10774 }
0x15eb   : > { %v6359_v6 = vpop.xlane.xlu1 %6358  ;;  %v5949_v33 = vmul.f32 %v10775_v14, %v16649_v42  ;;  %v5959_v43 = vpack.c.bf16 %v5951_v38, %v5950_v49  ;;  %v6580_v29 = vpop.permute.xlu0 %6579 }
0x15ec   : > { %9790 = vmatpush3.bf16.msra.mxu0 %v16646_v23  ;;  %10776 = vrcp.f32 %v6359_v6  ;;  %v6624_v35 = vsel %vm1514_vm1, %v6580_v29, 0 }
0x15ed   : > { %10018 = vmatprep.subr.msk.bf16.mxu0 %vm1514_vm1, %v16651_v40  ;;  %v5958_v47 = vpack.c.bf16 %v5949_v33, %v5948_v52  ;;  %10778 = vrcp.f32 %v6357_v16 }
0x15ee   : > { %10780 = vrcp.f32 %v6361_v12 }
0x15ef   : > { %v6355_v31 = vpop.xlane.xlu1 %6354  ;;  %9739 = vmatprep.mubr.bf16.mxu0 %v5958_v47 }
0x15f0   : > { %10782 = vrcp.f32 %v6355_v31  ;;  %9740 = vmatmul.mubr.bf16.gmra.mrb[188].mxu0 %v5959_v43 }
0x15f3   : > { %v6582_v21 = vpop.permute.xlu1 %6581 }
0x15f4   : > { %v6627_v56 = vsel %vm1514_vm1, %v6582_v21, 0 }
0x15f6   : > { %v10777_v45 = vpop.eup %10776 }
0x15f7   : > { %v10779_v61 = vpop.eup %10778  ;;  %v6404_v15 = vmul.f32 %v10777_v45, %v16652_v22 }
0x15f8   : > { %v10781_v36 = vpop.eup %10780  ;;  %v6403_v32 = vmul.f32 %v10779_v61, %v16654_v9 }
0x15f9   : > { %v6405_v2 = vmul.f32 %v10781_v36, %v16655_v4 }
0x15fa   : > { %v10783_v19 = vpop.eup %10782 }
0x15fb   : > { %v6402_v28 = vmul.f32 %v10783_v19, %v16653_v18  ;;  %v6419_v55 = vpack.c.bf16 %v6405_v2, %v6404_v15 }
0x15fd   : > { %v6418_v46 = vpack.c.bf16 %v6403_v32, %v6402_v28 }
0x15ff   : > { %9791 = vmatprep.mubr.bf16.mxu0 %v6418_v46 }
0x1600   : > { %9792 = vmatmul.mubr.bf16.vlgmr.msra.gmra.mrb[192].mxu0 %v6419_v55 }
0x1601   : > { %9808 = vmatpush3.bf16.xpose.msra.mxu0 %v6612_v60 }
0x1602   : > { %10019 = vmatprep.subr.msk.bf16.mxu0 %vm1514_vm1, %v16656_v58 }
0x1609   : > { %9810 = vmatpush3.bf16.xpose.msra.mxu0 %v6615_v11 }
0x160a   : > { %10020 = vmatprep.subr.msk.bf16.mxu0 %vm1514_vm1, %v14903_v13 }
0x1611   : > { %9812 = vmatpush3.bf16.xpose.msra.mxu0 %v6618_v51 }
0x1612   : > { %10021 = vmatprep.subr.msk.bf16.mxu0 %vm1514_vm1, %v6578_v59 }
0x1619   : > { %9814 = vmatpush3.bf16.xpose.msra.mxu0 %v6621_v54 }
0x161a   : > { %10022 = vmatprep.subr.msk.bf16.mxu0 %vm1514_vm1, %v6580_v29 }
0x161c   : > { %v6367_v26 = vpop.xlane.xlu0 %6366 }
0x1620   : > { %v6363_v39 = vpop.xlane.xlu0 %6362 }
0x1621   : > { %9816 = vmatpush3.bf16.xpose.msra.mxu0 %v6624_v35  ;;  %10784 = vrcp.f32 %v6363_v39  ;;  %v16661_v39 = vmov 0  }
0x1622   : > { %10023 = vmatprep.subr.msk.bf16.mxu0 %vm1514_vm1, %v6582_v21  ;;  %10786 = vrcp.f32 %v6367_v26  ;;  %v11011_v26 = vld [vmem:[%s16437_s0 + $0x8] sm:$0xff] }
0x1624   : > { %v6365_v13 = vpop.xlane.xlu1 %6364  ;;  %v6369_v62 = vpop.xlane.xlu0 %6368 }
0x1625   : > { %10788 = vrcp.f32 %v6365_v13 }
0x1626   : > { %10790 = vrcp.f32 %v6369_v62 }
0x1628   : > { %v6375_v50 = vpop.xlane.xlu1 %6374  ;;  %v6383_v30 = vpop.xlane.xlu0 %6382 }
0x1629   : > { %9818 = vmatpush3.bf16.xpose.msra.mxu0 %v6627_v56 }
0x162b   : > { %v10785_v63 = vpop.eup %10784 }
0x162c   : > { %v6371_v41 = vpop.xlane.xlu1 %6370  ;;  %v6379_v12 = vpop.xlane.xlu0 %6378  ;;  %v6406_v14 = vmul.f32 %v10785_v63, %v14778_v3 }
0x162d   : > { %v10787_v27 = vpop.eup %10786 }
0x162e   : > { %v6408_v38 = vmul.f32 %v10787_v27, %v14766_v25 }
0x162f   : > { %v10789_v59 = vpop.eup %10788 }
0x1630   : > { %v10791_v5 = vpop.eup %10790  ;;  %v6377_v1 = vpop.xlane.xlu1 %6376  ;;  %v6407_v7 = vmul.f32 %v10789_v59, %v14787_v57 }
0x1631   : > { %v6385_v23 = vpop.xlane.xlu0 %6384  ;;  %v6409_v16 = vmul.f32 %v10791_v5, %v14784_v24  ;;  %10792 = vrcp.f32 %v6377_v1 }
0x1632   : > { %v6420_v6 = vpack.c.bf16 %v6407_v7, %v6406_v14  ;;  %10794 = vrcp.f32 %v6371_v41 }
0x1633   : > { %v6421_v48 = vpack.c.bf16 %v6409_v16, %v6408_v38  ;;  %10796 = vrcp.f32 %v6375_v50  ;;  %v11010_v38 = vld [vmem:[%s16437_s0 + $0x10] sm:$0xff] }
0x1634   : > { %v6373_v52 = vpop.xlane.xlu1 %6372  ;;  %9795 = vmatprep.mubr.bf16.mxu0 %v6420_v6 }
0x1635   : > { %v6584_v42 = vpop.permute.xlu0 %6583  ;;  %10798 = vrcp.f32 %v6373_v52  ;;  %9796 = vmatmul.mubr.bf16.gmra.mrb[196].mxu0 %v6421_v48 }
0x1636   : > { %10024 = vmatprep.subr.msk.bf16.mxu0 %vm1514_vm1, %v6584_v42  ;;  %v6630_v3 = vsel %vm1514_vm1, %v6584_v42, 0  ;;  %10800 = vrcp.f32 %v6379_v12 }
0x1637   : > { %9820 = vmatpush3.bf16.xpose.msra.mxu0 %v6630_v3 }
0x1638   : > { %v6381_v57 = vpop.xlane.xlu1 %6380 }
0x1639   : > { %v6556_v25 = vpop.permute.xlu0 %6555  ;;  %10802 = vrcp.f32 %v6381_v57 }
0x163a   : > { %10804 = vrcp.f32 %v6385_v23 }
0x163b   : > { %v10793_v24 = vpop.eup %10792  ;;  %10806 = vrcp.f32 %v6383_v30 }
0x163c   : > { %v6586_v33 = vpop.permute.xlu1 %6585  ;;  %v10795_v49 = vpop.eup %10794  ;;  %v6413_v31 = vmul.f32 %v10793_v24, %v14805_v44 }
0x163d   : > { %v6560_v20 = vpop.permute.xlu0 %6559  ;;  %10025 = vmatprep.subr.msk.bf16.mxu0 %vm1514_vm1, %v6586_v33  ;;  %v6633_v40 = vsel %vm1514_vm1, %v6586_v33, 0  ;;  %v10797_v47 = vpop.eup %10796  ;;  %v6410_v36 = vmul.f32 %v10795_v49, %v14801_v34 }
0x163e   : > { %v6412_v15 = vmul.f32 %v10797_v47, %v14794_v17 }
0x163f   : > { %9822 = vmatpush3.bf16.xpose.msra.mxu0 %v6633_v40  ;;  %v10799_v43 = vpop.eup %10798 }
0x1640   : > { %v6558_v45 = vpop.permute.xlu1 %6557  ;;  %v6411_v19 = vmul.f32 %v10799_v43, %v14829_v53  ;;  %v10801_v22 = vpop.eup %10800  ;;  %v6423_v9 = vpack.c.bf16 %v6413_v31, %v6412_v15 }
0x1641   : > { %v6564_v61 = vpop.permute.xlu0 %6563  ;;  %v6414_v46 = vmul.f32 %v10801_v22, %v14808_v0 }
0x1642   : > { %v6422_v18 = vpack.c.bf16 %v6411_v19, %v6410_v36 }
0x1643   : > { %v10803_v28 = vpop.eup %10802 }
0x1644   : > { %v10805_v32 = vpop.eup %10804  ;;  %v6562_v4 = vpop.permute.xlu1 %6561  ;;  %9799 = vmatprep.mubr.bf16.mxu0 %v6422_v18  ;;  %v6415_v44 = vmul.f32 %v10803_v28, %v14836_v8 }
0x1645   : > { %v6568_v2 = vpop.permute.xlu0 %6567  ;;  %9800 = vmatmul.mubr.bf16.gmra.mrb[200].mxu0 %v6423_v9  ;;  %v10807_v55 = vpop.eup %10806  ;;  %v6417_v34 = vmul.f32 %v10805_v32, %v14820_v10  ;;  %v11012_v32 = vld [vmem:[%s16437_s0] sm:$0xff] }
0x1646   : > { %v6424_v60 = vpack.c.bf16 %v6415_v44, %v6414_v46  ;;  %v6416_v17 = vmul.f32 %v10807_v55, %v14797_v37 }
0x1648   : > { %v6566_v53 = vpop.permute.xlu1 %6565  ;;  %9803 = vmatprep.mubr.bf16.mxu0 %v6424_v60  ;;  %v6425_v11 = vpack.c.bf16 %v6417_v34, %v6416_v17 }
0x1649   : > { %v6885_v58 = vpop.permute.xlu0 %6884 }
0x164a   : > { %9839 = vmatprep.subr.bf16.mxu1 %v6885_v58 }
0x164b   : > { %9840 = vmatpush3.bf16.msra.mxu1 %v6885_v58 }
0x164c   : > { %v6570_v51 = vpop.permute.xlu1 %6569 }
0x164d   : > { %9804 = vmatmul.mubr.bf16.gmra.mrb[204].mxu0 %v6425_v11  ;;  %v6889_v0 = vpop.permute.xlu0 %6888 }
0x164e   : > { %9823 = vmatprep.mubr.msk.bf16.mxu0 %vm1514_vm1, %v6556_v25 }
0x1650   : > { %v6887_v29 = vpop.permute.xlu1 %6886 }
0x1651   : > { %9841 = vmatprep.subr.bf16.mxu1 %v6887_v29  ;;  %v6891_v10 = vpop.permute.xlu0 %6890 }
0x1652   : > { %9842 = vmatpush3.bf16.msra.mxu1 %v6887_v29 }
0x1653   : > { %9843 = vmatprep.subr.bf16.mxu1 %v6889_v0 }
0x1655   : > { %9824 = vmatmul.mubr.msk.bf16.vlgmr.msra.gmra.mrb[208].mxu0 %vm1514_vm1, %v6558_v45 }
0x1656   : > { %9827 = vmatprep.mubr.msk.bf16.mxu0 %vm1514_vm1, %v6560_v20  ;;  %9844 = vmatpush3.bf16.msra.mxu1 %v6889_v0 }
0x1657   : > { %9845 = vmatprep.subr.bf16.mxu1 %v6891_v10 }
0x165a   : > { %9846 = vmatpush3.bf16.msra.mxu1 %v6891_v10 }
0x165d   : > { %9828 = vmatmul.mubr.msk.bf16.gmra.mrb[212].mxu0 %vm1514_vm1, %v6562_v4 }
0x165e   : > { %9831 = vmatprep.mubr.msk.bf16.mxu0 %vm1514_vm1, %v6564_v61 }
0x1665   : > { %9832 = vmatmul.mubr.msk.bf16.gmra.mrb[216].mxu0 %vm1514_vm1, %v6566_v53 }
0x1666   : > { %v14968_v37 = vpop.f32.mrb[160].mxu0  ;;  %9835 = vmatprep.mubr.msk.bf16.mxu0 %vm1514_vm1, %v6568_v2 }
0x1667   : > { %16657 = vst [vmem:[#allocation42_spill] sm:$0xff] %v14968_v37  ;;  %v14971_v8 = vpop.f32.mrb[161].mxu0 }
0x1668   : > { %16658 = vst [vmem:[#allocation47_spill] sm:$0xff] %v14971_v8  ;;  %v14973_v54 = vpop.f32.mrb[162].mxu0 }
0x1669   : > { %16659 = vst [vmem:[#allocation43_spill] sm:$0xff] %v14973_v54  ;;  %v14977_v21 = vpop.f32.mrb[163].mxu0 }
0x166a   : > { %16660 = vst [vmem:[#allocation46_spill] sm:$0xff] %v14977_v21 }
0x166d   : > { %9836 = vmatmul.mubr.msk.bf16.gmra.mrb[220].mxu0 %vm1514_vm1, %v6570_v51 }
0x166e   : > { %7717 = vmatprep.mubr.bf16.mxu0 %v16661_v39  ;;  %v11018_v39 = vld [vmem:[%s16437_s0 + $0x58] sm:$0xff] }
0x167a   : > { %v14983_v13 = vpop.f32.mrb[164].mxu0 }
0x167b   : > { %16662 = vst [vmem:[#allocation33_spill] sm:$0xff] %v14983_v13  ;;  %v14985_v62 = vpop.f32.mrb[165].mxu0 }
0x167c   : > { %16663 = vst [vmem:[#allocation51_spill] sm:$0xff] %v14985_v62  ;;  %v14987_v50 = vpop.f32.mrb[166].mxu0 }
0x167d   : > { %16664 = vst [vmem:[#allocation32_spill] sm:$0xff] %v14987_v50  ;;  %v14991_v30 = vpop.f32.mrb[167].mxu0 }
0x167e   : > { %16665 = vst [vmem:[#allocation50_spill] sm:$0xff] %v14991_v30 }
0x168a   : > { %v14995_v12 = vpop.f32.mrb[168].mxu0 }
0x168b   : > { %16666 = vst [vmem:[#allocation66_spill] sm:$0xff] %v14995_v12  ;;  %v14997_v63 = vpop.f32.mrb[169].mxu0  ;;  %v11024_v12 = vld [vmem:[#allocation2 + $0x58] sm:$0xff] }
0x168c   : > { %16667 = vst [vmem:[#allocation64_spill] sm:$0xff] %v14997_v63  ;;  %v14999_v27 = vpop.f32.mrb[170].mxu0 }
0x168d   : > { %16668 = vst [vmem:[#allocation67_spill] sm:$0xff] %v14999_v27  ;;  %v15003_v5 = vpop.f32.mrb[171].mxu0  ;;  %v11025_v27 = vld [vmem:[#allocation2 + $0x48] sm:$0xff] }
0x168e   : > { %16669 = vst [vmem:[#allocation65_spill] sm:$0xff] %v15003_v5 }
0x169a   : > { %v15007_v23 = vpop.f32.mrb[172].mxu0 }
0x169b   : > { %16670 = vst [vmem:[#allocation38_spill] sm:$0xff] %v15007_v23  ;;  %v15009_v14 = vpop.f32.mrb[173].mxu0 }
0x169c   : > { %16671 = vst [vmem:[#allocation41_spill] sm:$0xff] %v15009_v14  ;;  %v15011_v7 = vpop.f32.mrb[174].mxu0 }
0x169d   : > { %16672 = vst [vmem:[#allocation40_spill] sm:$0xff] %v15011_v7  ;;  %v15015_v16 = vpop.f32.mrb[175].mxu0 }
0x169e   : > { %16673 = vst [vmem:[#allocation39_spill] sm:$0xff] %v15015_v16 }
0x16a2   : > { %v15019_v48 = vpop.f32.mrb[176].mxu0 }
0x16a3   : > { %v15021_v52 = vpop.f32.mrb[177].mxu0 }
0x16a4   : > { %v15023_v42 = vpop.f32.mrb[178].mxu0 }
0x16a5   : > { %v15027_v57 = vpop.f32.mrb[179].mxu0 }
0x16aa   : > { %v15031_v24 = vpop.f32.mrb[180].mxu0 }
0x16ab   : > { %v15033_v33 = vpop.f32.mrb[181].mxu0 }
0x16ac   : > { %v15035_v20 = vpop.f32.mrb[182].mxu0 }
0x16ad   : > { %v15039_v40 = vpop.f32.mrb[183].mxu0 }
0x16b2   : > { %v15043_v43 = vpop.f32.mrb[184].mxu0 }
0x16b3   : > { %v15045_v31 = vpop.f32.mrb[185].mxu0 }
0x16b4   : > { %v15047_v45 = vpop.f32.mrb[186].mxu0 }
0x16b5   : > { %v15051_v36 = vpop.f32.mrb[187].mxu0 }
0x16c3   : > { %v15055_v22 = vpop.f32.mrb[188].mxu0 }
0x16c4   : > { %v15057_v15 = vpop.f32.mrb[189].mxu0 }
0x16c5   : > { %v15059_v18 = vpop.f32.mrb[190].mxu0 }
0x16c6   : > { %v15063_v9 = vpop.f32.mrb[191].mxu0 }
0x16d3   : > { %v15067_v4 = vpop.f32.mrb[192].mxu0 }
0x16d4   : > { %v15069_v2 = vpop.f32.mrb[193].mxu0 }
0x16d5   : > { %v15071_v46 = vpop.f32.mrb[194].mxu0 }
0x16d6   : > { %v15075_v55 = vpop.f32.mrb[195].mxu0 }
0x1708   : > { %v15079_v34 = vpop.f32.mrb[196].mxu0 }
0x1709   : > { %v15081_v53 = vpop.f32.mrb[197].mxu0 }
0x170a   : > { %v15083_v58 = vpop.f32.mrb[198].mxu0 }
0x170b   : > { %v15087_v11 = vpop.f32.mrb[199].mxu0 }
0x1718   : > { %v15091_v0 = vpop.f32.mrb[200].mxu0 }
0x1719   : > { %v15093_v29 = vpop.f32.mrb[201].mxu0 }
0x171a   : > { %v15095_v10 = vpop.f32.mrb[202].mxu0 }
0x171b   : > { %v15099_v6 = vpop.f32.mrb[203].mxu0 }
0x1720   : > { %v15103_v1 = vpop.f32.mrb[204].mxu0 }
0x1721   : > { %v15105_v56 = vpop.f32.mrb[205].mxu0 }
0x1722   : > { %16674 = vst [vmem:[#allocation45_spill] sm:$0xff] %v15105_v56  ;;  %v15107_v41 = vpop.f32.mrb[206].mxu0 }
0x1723   : > { %v15111_v35 = vpop.f32.mrb[207].mxu0 }
0x1724   : > { %16675 = vst [vmem:[#allocation19_spill] sm:$0xff] %v15111_v35 }
0x1728   : > { %v9825_v28 = vpop.f32.mrb[208].mxu0 }
0x1729   : > { %v15118_v59 = vadd.f32 %v11010_v38, %v9825_v28  ;;  %v6669_v19 = vpop.f32.mrb[209].mxu0  ;;  %v11013_v28 = vld [vmem:[%s16437_s0 + $0x18] sm:$0xff] }
0x172a   : > { %v9826_v61 = vpop.f32.mrb[210].mxu0  ;;  %v15129_v47 = vadd.f32 %v11012_v32, %v6669_v19  ;;  %v11015_v32 = vld [vmem:[%s16437_s0 + $0x30] sm:$0xff] }
0x172b   : > { %6736 = vmax.xlane.f32.xlu0 %v15118_v59  ;;  %v6672_v51 = vpop.f32.mrb[211].mxu0  ;;  %v15136_v49 = vadd.f32 %v11013_v28, %v9826_v61  ;;  %v11016_v61 = vld [vmem:[%s16437_s0 + $0x28] sm:$0xff] }
0x172c   : > { %v15124_v17 = vadd.f32 %v11011_v26, %v6672_v51  ;;  %v11014_v51 = vld [vmem:[%s16437_s0 + $0x38] sm:$0xff] }
0x172e   : > { %6734 = vmax.xlane.f32.xlu1 %v15124_v17 }
0x172f   : > { %6732 = vmax.xlane.f32.xlu0 %v15129_v47 }
0x1730   : > { %v9829_v38 = vpop.f32.mrb[212].mxu0 }
0x1731   : > { %v6685_v44 = vpop.f32.mrb[213].mxu0  ;;  %v15147_v60 = vadd.f32 %v11015_v32, %v9829_v38 }
0x1732   : > { %v9830_v26 = vpop.f32.mrb[214].mxu0 }
0x1733   : > { %v15141_v25 = vadd.f32 %v11014_v51, %v9830_v26  ;;  %6738 = vmax.xlane.f32.xlu0 %v15136_v49  ;;  %v6688_v19 = vpop.f32.mrb[215].mxu0  ;;  %v11017_v51 = vld [vmem:[%s16437_s0 + $0x20] sm:$0xff] }
0x1734   : > { %v15153_v28 = vadd.f32 %v11016_v61, %v6688_v19  ;;  %v15159_v3 = vadd.f32 %v11017_v51, %v6685_v44  ;;  %v11019_v61 = vld [vmem:[%s16437_s0 + $0x50] sm:$0xff]  ;;  %v11020_v44 = vld [vmem:[%s16437_s0 + $0x48] sm:$0xff] }
0x1735   : > { %6746 = vmax.xlane.f32.xlu1 %v15141_v25 }
0x1737   : > { %6744 = vmax.xlane.f32.xlu0 %v15147_v60 }
0x1738   : > { %v9833_v26 = vpop.f32.mrb[216].mxu0 }
0x1739   : > { %6742 = vmax.xlane.f32.xlu1 %v15153_v28  ;;  %v6701_v38 = vpop.f32.mrb[217].mxu0  ;;  %v15171_v7 = vadd.f32 %v11019_v61, %v9833_v26 }
0x173a   : > { %v9834_v32 = vpop.f32.mrb[218].mxu0 }
0x173b   : > { %v15165_v23 = vadd.f32 %v11018_v39, %v9834_v32  ;;  %6740 = vmax.xlane.f32.xlu0 %v15159_v3  ;;  %v6704_v19 = vpop.f32.mrb[219].mxu0  ;;  %v11021_v32 = vld [vmem:[%s16437_s0 + $0x40] sm:$0xff] }
0x173c   : > { %v15177_v51 = vadd.f32 %v11020_v44, %v6704_v19  ;;  %v15183_v14 = vadd.f32 %v11021_v32, %v6701_v38  ;;  %v11022_v19 = vld [vmem:[%s16437_s0 + $0x70] sm:$0xff]  ;;  %v11023_v38 = vld [vmem:[%s16437_s0 + $0x60] sm:$0xff] }
0x173d   : > { %6754 = vmax.xlane.f32.xlu1 %v15165_v23 }
0x173f   : > { %6752 = vmax.xlane.f32.xlu0 %v15171_v7 }
0x1740   : > { %v9837_v39 = vpop.f32.mrb[220].mxu0 }
0x1741   : > { %6750 = vmax.xlane.f32.xlu1 %v15177_v51  ;;  %v6717_v26 = vpop.f32.mrb[221].mxu0  ;;  %v15190_v44 = vadd.f32 %v11022_v19, %v9837_v39  ;;  %v11026_v39 = vld [vmem:[%s16437_s0 + $0x78] sm:$0xff] }
0x1742   : > { %v9838_v61 = vpop.f32.mrb[222].mxu0  ;;  %v15196_v32 = vadd.f32 %v11023_v38, %v6717_v26  ;;  %v11027_v26 = vld [vmem:[%s16437_s0 + $0x68] sm:$0xff]  ;;  %s16741_s0 = sld [smem:[#allocation76_spill]] }
0x1743   : > { %6748 = vmax.xlane.f32.xlu0 %v15183_v14  ;;  %v6720_v16 = vpop.f32.mrb[223].mxu0  ;;  %v15204_v19 = vadd.f32 %v11026_v39, %v9838_v61 }
0x1744   : > { %v15210_v38 = vadd.f32 %v11027_v26, %v6720_v16 }
0x1747   : > { %6760 = vmax.xlane.f32.xlu0 %v15190_v44 }
0x174b   : > { %6756 = vmax.xlane.f32.xlu0 %v15196_v32 }
0x1752   : > { %6894 = vrot.lane.b32.xlu1 %v11024_v12, %s16626_s23 }
0x1761   : > { %6892 = vrot.lane.b32.xlu0 %v11025_v27, %s16626_s23 }
0x1776   : > { %6762 = vmax.xlane.f32.xlu1 %v15204_v19 }
0x177a   : > { %6758 = vmax.xlane.f32.xlu1 %v15210_v38 }
0x17b8   : > { %v6737_v12 = vpop.xlane.xlu0 %6736 }
0x17b9   : > { %v6766_v63 = vsub.f32 %v15118_v59, %v6737_v12 }
0x17bb   : > { %v6784_v27 = vmul.f32 1.442695, %v6766_v63  ;;  %v6735_v13 = vpop.xlane.xlu1 %6734 }
0x17bc   : > { %v6733_v5 = vpop.xlane.xlu0 %6732  ;;  %v6765_v50 = vsub.f32 %v15124_v17, %v6735_v13 }
0x17bd   : > { %10808 = vpow2.f32 %v6784_v27  ;;  %v6764_v61 = vsub.f32 %v15129_v47, %v6733_v5 }
0x17be   : > { %v6782_v37 = vmul.f32 1.442695, %v6765_v50 }
0x17bf   : > { %v6780_v39 = vmul.f32 1.442695, %v6764_v61 }
0x17c0   : > { %v6739_v62 = vpop.xlane.xlu0 %6738 }
0x17c1   : > { %10810 = vpow2.f32 %v6780_v39  ;;  %v6767_v30 = vsub.f32 %v15136_v49, %v6739_v62 }
0x17c2   : > { %v6747_v16 = vpop.xlane.xlu1 %6746 }
0x17c3   : > { %v6786_v26 = vmul.f32 1.442695, %v6767_v30  ;;  %v6771_v54 = vsub.f32 %v15141_v25, %v6747_v16 }
0x17c4   : > { %v6745_v8 = vpop.xlane.xlu0 %6744 }
0x17c5   : > { %10812 = vpow2.f32 %v6786_v26  ;;  %v6770_v63 = vsub.f32 %v15147_v60, %v6745_v8  ;;  %v6794_v47 = vmul.f32 1.442695, %v6771_v54 }
0x17c6   : > { %v6743_v59 = vpop.xlane.xlu1 %6742  ;;  %10814 = vpow2.f32 %v6782_v37 }
0x17c7   : > { %v15219_v12 = vpop.eup %10808  ;;  %v6792_v5 = vmul.f32 1.442695, %v6770_v63  ;;  %v6769_v62 = vsub.f32 %v15153_v28, %v6743_v59 }
0x17c8   : > { %6816 = vadd.xlane.f32.xlu1 %v15219_v12  ;;  %v6741_v13 = vpop.xlane.xlu0 %6740 }
0x17c9   : > { %10816 = vpow2.f32 %v6792_v5  ;;  %v6768_v50 = vsub.f32 %v15159_v3, %v6741_v13  ;;  %v6790_v49 = vmul.f32 1.442695, %v6769_v62  ;;  %v11028_v5 = vld [vmem:[#allocation2 + $0x78] sm:$0xff] }
0x17ca   : > { %10818 = vpow2.f32 %v6794_v47  ;;  %v6755_v17 = vpop.xlane.xlu1 %6754  ;;  %v11029_v47 = vld [vmem:[#allocation2 + $0x68] sm:$0xff] }
0x17cb   : > { %v15224_v30 = vpop.eup %10810  ;;  %v6788_v25 = vmul.f32 1.442695, %v6768_v50  ;;  %v6775_v62 = vsub.f32 %v15165_v23, %v6755_v17 }
0x17cc   : > { %6812 = vadd.xlane.f32.xlu1 %v15224_v30  ;;  %v6753_v8 = vpop.xlane.xlu0 %6752 }
0x17cd   : > { %10820 = vpow2.f32 %v6788_v25  ;;  %v6774_v21 = vsub.f32 %v15171_v7, %v6753_v8 }
0x17ce   : > { %10822 = vpow2.f32 %v6790_v49  ;;  %v6751_v39 = vpop.xlane.xlu1 %6750  ;;  %v6802_v49 = vmul.f32 1.442695, %v6775_v62 }
0x17cf   : > { %v15227_v60 = vpop.eup %10812  ;;  %v6773_v50 = vsub.f32 %v15177_v51, %v6751_v39  ;;  %v16677_v39 = vpack.c.bf16 %v15075_v55, %v15069_v2 }
0x17d0   : > { %6818 = vadd.xlane.f32.xlu1 %v15227_v60  ;;  %v6749_v37 = vpop.xlane.xlu0 %6748  ;;  %v15230_v54 = vpop.eup %10814 }
0x17d1   : > { %v6772_v13 = vsub.f32 %v15183_v14, %v6749_v37  ;;  %v6798_v56 = vmul.f32 1.442695, %v6773_v50 }
0x17d2   : > { %v6895_v59 = vpop.permute.xlu1 %6894 }
0x17d3   : > { %v15232_v28 = vpop.eup %10816  ;;  %v6796_v25 = vmul.f32 1.442695, %v6772_v13  ;;  %v16679_v13 = vpack.c.bf16 %v15071_v46, %v15067_v4 }
0x17d4   : > { %6814 = vadd.xlane.f32.xlu1 %v15230_v54  ;;  %6824 = vadd.xlane.f32.xlu0 %v15232_v28  ;;  %v6761_v3 = vpop.xlane.xlu0 %6760  ;;  %v15236_v27 = vpop.eup %10818 }
0x17d5   : > { %10824 = vpow2.f32 %v6796_v25  ;;  %v6778_v23 = vsub.f32 %v15190_v44, %v6761_v3  ;;  %v16676_v3 = vpack.c.bf16 %v15023_v42, %v15019_v48 }
0x17d6   : > { %10826 = vpow2.f32 %v6802_v49 }
0x17d7   : > { %v15238_v61 = vpop.eup %10820  ;;  %10828 = vpow2.f32 %v6798_v56 }
0x17d8   : > { %6826 = vadd.xlane.f32.xlu0 %v15236_v27  ;;  %6820 = vadd.xlane.f32.xlu1 %v15238_v61  ;;  %v6757_v16 = vpop.xlane.xlu0 %6756  ;;  %v15242_v26 = vpop.eup %10822 }
0x17dc   : > { %6822 = vadd.xlane.f32.xlu0 %v15242_v26  ;;  %v6893_v63 = vpop.permute.xlu0 %6892 }
0x17dd   : > { %9847 = vmatprep.subr.bf16.mxu1 %v6893_v63 }
0x17de   : > { %9848 = vmatpush3.bf16.msra.mxu1 %v6893_v63 }
0x17df   : > { %9849 = vmatprep.subr.bf16.mxu1 %v6895_v59  ;;  %v15255_v17 = vpop.eup %10824 }
0x17e0   : > { %v15258_v56 = vpop.eup %10826 }
0x17e2   : > { %9850 = vmatpush3.bf16.msra.mxu1 %v6895_v59  ;;  %v6800_v59 = vmul.f32 1.442695, %v6774_v21  ;;  %v6808_v21 = vmul.f32 1.442695, %v6778_v23 }
0x17e4   : > { %10830 = vpow2.f32 %v6800_v59 }
0x17e9   : > { %6898 = vrot.lane.b32.xlu1 %v11028_v5, %s16626_s23  ;;  %v6776_v5 = vsub.f32 %v15196_v32, %v6757_v16  ;;  %v15260_v32 = vpop.eup %10828  ;;  %v16678_v16 = vpack.c.bf16 %v15027_v57, %v15021_v52 }
0x17eb   : > { %v6804_v51 = vmul.f32 1.442695, %v6776_v5 }
0x17f2   : > { %6896 = vrot.lane.b32.xlu0 %v11029_v47, %s16626_s23  ;;  %s8908_s23 = sshll.u32 %s11232_s2, 8  ;;  %s16151_s2 = scalar_lea.sflag [#allocation4], %s623_s19 }
0x17f3   : > { %s16145_s3 = scalar_lea.hbm %s16741_s0, %s8908_s23 }
0x1803   : > { %v6763_v63 = vpop.xlane.xlu1 %6762 }
0x1804   : > { %v6779_v47 = vsub.f32 %v15204_v19, %v6763_v63 }
0x1806   : > { %v6810_v7 = vmul.f32 1.442695, %v6779_v47 }
0x1807   : > { %v6759_v35 = vpop.xlane.xlu1 %6758 }
0x1808   : > { %v6777_v14 = vsub.f32 %v15210_v38, %v6759_v35  ;;  %v15264_v35 = vpop.eup %10830 }
0x180a   : > { %v6806_v37 = vmul.f32 1.442695, %v6777_v14 }
0x180c   : > { %10832 = vpow2.f32 %v6806_v37 }
0x180d   : > { %6828 = vadd.xlane.f32.xlu1 %v15255_v17  ;;  %10834 = vpow2.f32 %v6804_v51 }
0x180e   : > { %10836 = vpow2.f32 %v6810_v7 }
0x180f   : > { %10838 = vpow2.f32 %v6808_v21 }
0x1811   : > { %6830 = vadd.xlane.f32.xlu0 %v15260_v32  ;;  %6834 = vadd.xlane.f32.xlu1 %v15258_v56 }
0x1815   : > { %6832 = vadd.xlane.f32.xlu0 %v15264_v35 }
0x1816   : > { %v15267_v44 = vpop.eup %10832 }
0x1817   : > { %6838 = vadd.xlane.f32.xlu1 %v15267_v44  ;;  %v15270_v19 = vpop.eup %10834 }
0x1818   : > { %v15273_v38 = vpop.eup %10836 }
0x1819   : > { %6836 = vadd.xlane.f32.xlu0 %v15270_v19  ;;  %v15276_v8 = vpop.eup %10838 }
0x181b   : > { %6842 = vadd.xlane.f32.xlu1 %v15273_v38 }
0x181d   : > { %6840 = vadd.xlane.f32.xlu0 %v15276_v8 }
0x182c   : > { %7023 = vrot.lane.b32.xlu1 %v16676_v3, %s16499_s1 }
0x1830   : > { %7045 = vrot.lane.b32.xlu1 %v16677_v39, %s16506_s21 }
0x1833   : > { %7021 = vrot.lane.b32.xlu0 %v16678_v16, %s16499_s1 }
0x1834   : > { %7047 = vrot.lane.b32.xlu1 %v16679_v13, %s16506_s21 }
0x1855   : > { %v6817_v62 = vpop.xlane.xlu1 %6816 }
0x1859   : > { %v6813_v50 = vpop.xlane.xlu1 %6812 }
0x185a   : > { %10840 = vrcp.f32 %v6813_v50 }
0x185d   : > { %v6819_v25 = vpop.xlane.xlu1 %6818 }
0x1861   : > { %v6815_v48 = vpop.xlane.xlu1 %6814  ;;  %v6825_v42 = vpop.xlane.xlu0 %6824 }
0x1862   : > { %10842 = vrcp.f32 %v6815_v48 }
0x1863   : > { %10844 = vrcp.f32 %v6819_v25 }
0x1864   : > { %10846 = vrcp.f32 %v6817_v62  ;;  %v10841_v52 = vpop.eup %10840 }
0x1865   : > { %v6821_v2 = vpop.xlane.xlu1 %6820  ;;  %v6827_v55 = vpop.xlane.xlu0 %6826  ;;  %v6860_v46 = vmul.f32 %v10841_v52, %v15224_v30 }
0x1866   : > { %10848 = vrcp.f32 %v6821_v2 }
0x1869   : > { %v6823_v49 = vpop.xlane.xlu0 %6822  ;;  %v6899_v47 = vpop.permute.xlu1 %6898 }
0x186a   : > { %10850 = vrcp.f32 %v6823_v49 }
0x186b   : > { %10852 = vrcp.f32 %v6827_v55 }
0x186c   : > { %v10843_v57 = vpop.eup %10842  ;;  %10854 = vrcp.f32 %v6825_v42 }
0x186d   : > { %v10845_v63 = vpop.eup %10844  ;;  %v6897_v4 = vpop.permute.xlu0 %6896  ;;  %v6861_v59 = vmul.f32 %v10843_v57, %v15230_v54 }
0x186e   : > { %9851 = vmatprep.subr.bf16.mxu1 %v6897_v4  ;;  %v10847_v5 = vpop.eup %10846  ;;  %v6863_v23 = vmul.f32 %v10845_v63, %v15227_v60 }
0x186f   : > { %9852 = vmatpush3.bf16.msra.mxu1 %v6897_v4  ;;  %v6876_v14 = vpack.c.bf16 %v6861_v59, %v6860_v46  ;;  %v6862_v37 = vmul.f32 %v10847_v5, %v15219_v12 }
0x1870   : > { %9853 = vmatprep.subr.bf16.mxu1 %v6899_v47  ;;  %v10849_v51 = vpop.eup %10848 }
0x1871   : > { %9855 = vmatprep.mubr.bf16.mxu1 %v6876_v14  ;;  %v6877_v21 = vpack.c.bf16 %v6863_v23, %v6862_v37  ;;  %v6864_v30 = vmul.f32 %v10849_v51, %v15238_v61 }
0x1873   : > { %9854 = vmatpush3.bf16.msra.mxu1 %v6899_v47 }
0x1874   : > { %v10851_v7 = vpop.eup %10850 }
0x1875   : > { %v10853_v3 = vpop.eup %10852  ;;  %v6865_v54 = vmul.f32 %v10851_v7, %v15242_v26 }
0x1876   : > { %9856 = vmatmul.mubr.bf16.vlgmr.msra.gmra.mrb[192].mxu1 %v6877_v21  ;;  %v10855_v39 = vpop.eup %10854  ;;  %v6867_v13 = vmul.f32 %v10853_v3, %v15236_v27 }
0x1877   : > { %v6878_v16 = vpack.c.bf16 %v6865_v54, %v6864_v30  ;;  %v6866_v60 = vmul.f32 %v10855_v39, %v15232_v28 }
0x1879   : > { %9859 = vmatprep.mubr.bf16.mxu1 %v6878_v16  ;;  %v6879_v62 = vpack.c.bf16 %v6867_v13, %v6866_v60  ;;  %v16680_v13 = vpack.c.bf16 %v15035_v20, %v15031_v24  ;;  %v16683_v24 = vpack.c.bf16 %v15087_v11, %v15081_v53  ;;  %v16685_v20 = vpack.c.bf16 %v15051_v36, %v15045_v31 }
0x187a   : > { %v16688_v36 = vpack.c.bf16 %v15059_v18, %v15055_v22 }
0x187e   : > { %9860 = vmatmul.mubr.bf16.gmra.mrb[196].mxu1 %v6879_v62  ;;  %v16681_v62 = vpack.c.bf16 %v15039_v40, %v15033_v33  ;;  %v16684_v33 = vpack.c.bf16 %v15047_v45, %v15043_v43  ;;  %v16686_v40 = vpack.c.bf16 %v15095_v10, %v15091_v0 }
0x189a   : > { %v6829_v50 = vpop.xlane.xlu1 %6828 }
0x189b   : > { %10856 = vrcp.f32 %v6829_v50 }
0x189e   : > { %v6835_v12 = vpop.xlane.xlu1 %6834  ;;  %v6831_v25 = vpop.xlane.xlu0 %6830 }
0x189f   : > { %10858 = vrcp.f32 %v6831_v25 }
0x18a0   : > { %10860 = vrcp.f32 %v6835_v12 }
0x18a2   : > { %v6833_v48 = vpop.xlane.xlu0 %6832 }
0x18a3   : > { %10862 = vrcp.f32 %v6833_v48 }
0x18a4   : > { %v6839_v61 = vpop.xlane.xlu1 %6838 }
0x18a5   : > { %10864 = vrcp.f32 %v6839_v61  ;;  %v10857_v42 = vpop.eup %10856  ;;  %v16682_v61 = vpack.c.bf16 %v15083_v58, %v15079_v34  ;;  %v16687_v34 = vpack.c.bf16 %v15099_v6, %v15093_v29  ;;  %v16689_v6 = vpack.c.bf16 %v15063_v9, %v15057_v15 }
0x18a6   : > { %v6837_v26 = vpop.xlane.xlu0 %6836  ;;  %v6868_v49 = vmul.f32 %v10857_v42, %v15255_v17 }
0x18a7   : > { %10866 = vrcp.f32 %v6837_v26 }
0x18a8   : > { %v6843_v2 = vpop.xlane.xlu1 %6842 }
0x18a9   : > { %10868 = vrcp.f32 %v6843_v2  ;;  %v10859_v27 = vpop.eup %10858 }
0x18aa   : > { %v6841_v55 = vpop.xlane.xlu0 %6840  ;;  %v10861_v28 = vpop.eup %10860  ;;  %v6869_v52 = vmul.f32 %v10859_v27, %v15260_v32  ;;  %v16690_v27 = vpack.c.bf16 %v15107_v41, %v15103_v1  ;;  %v16697_v1 = vld [vmem:[#allocation43_spill] sm:$0xff] }
0x18ab   : > { %10870 = vrcp.f32 %v6841_v55  ;;  %v6871_v46 = vmul.f32 %v10861_v28, %v15258_v56  ;;  %v10168_v56 = vld [vmem:[%s16200_s8 + $0x20] sm:$0xff]   ;;  %v16691_v55 = vld [vmem:[#allocation19_spill] sm:$0xff] }
0x18ac   : > { %v6880_v63 = vpack.c.bf16 %v6869_v52, %v6868_v49  ;;  %9871 = vmatprep.subr.bf16.mxu1 %v10168_v56  ;;  %v16692_v28 = vld [vmem:[#allocation45_spill] sm:$0xff]  ;;  %v7024_v15 = vpop.permute.xlu1 %7023  ;;  %v16694_v52 = vld [vmem:[#allocation46_spill] sm:$0xff] }
0x18ad   : > { %v10863_v57 = vpop.eup %10862  ;;  %9872 = vmatpush3.bf16.msra.mxu1 %v10168_v56  ;;  %v16693_v22 = vpack.c.bf16 %v16691_v55, %v16692_v28  ;;  %v16700_v56 = vld [vmem:[#allocation50_spill] sm:$0xff] }
0x18ae   : > { %v6870_v4 = vmul.f32 %v10863_v57, %v15264_v35  ;;  %9863 = vmatprep.mubr.bf16.mxu1 %v6880_v63  ;;  %v7022_v9 = vpop.permute.xlu0 %7021  ;;  %v16695_v57 = vld [vmem:[#allocation47_spill] sm:$0xff] }
0x18af   : > { %v10865_v59 = vpop.eup %10864  ;;  %v16696_v63 = vpack.c.bf16 %v16694_v52, %v16695_v57 }
0x18b0   : > { %v6881_v5 = vpack.c.bf16 %v6871_v46, %v6870_v4  ;;  %v6873_v23 = vmul.f32 %v10865_v59, %v15267_v44  ;;  %v10170_v44 = vld [vmem:[%s16200_s8 + $0x30] sm:$0xff]   ;;  %v7046_v18 = vpop.permute.xlu1 %7045  ;;  %v16698_v46 = vld [vmem:[#allocation42_spill] sm:$0xff] }
0x18b1   : > { %v10867_v47 = vpop.eup %10866  ;;  %v7087_v4 = vsel %vm1514_vm1, %v16696_v63, %v7022_v9  ;;  %v16699_v59 = vpack.c.bf16 %v16697_v1, %v16698_v46 }
0x18b2   : > { %9864 = vmatmul.mubr.bf16.gmra.mrb[200].mxu1 %v6881_v5  ;;  %v6872_v14 = vmul.f32 %v10867_v47, %v15270_v19  ;;  %v10169_v19 = vld [vmem:[%s16200_s8 + $0x28] sm:$0xff]   ;;  %v7110_v47 = vsel %vm3403_vm2, %v7087_v4, %v7046_v18 }
0x18b3   : > { %v10869_v51 = vpop.eup %10868  ;;  %9873 = vmatprep.subr.bf16.mxu1 %v10169_v19  ;;  %v7090_v5 = vsel %vm1514_vm1, %v16699_v59, %v7024_v15  ;;  %v16716_v15 = vld [vmem:[#allocation38_spill] sm:$0xff]  ;;  %v15444_v59 = vld [vmem:[%s16202_s10 + $0x1] ss:$0 sm:$0xff] }
0x18b4   : > { %v6882_v37 = vpack.c.bf16 %v6873_v23, %v6872_v14  ;;  %v6875_v7 = vmul.f32 %v10869_v51, %v15273_v38  ;;  %9874 = vmatpush3.bf16.msra.mxu1 %v10169_v19  ;;  %v10171_v38 = vld [vmem:[%s16200_s8 + $0x38] sm:$0xff]   ;;  %v7048_v49 = vpop.permute.xlu1 %7047  ;;  %v16701_v19 = vld [vmem:[#allocation51_spill] sm:$0xff] }
0x18b5   : > { %v10871_v17 = vpop.eup %10870  ;;  %9875 = vmatprep.subr.bf16.mxu1 %v10170_v44  ;;  %v7112_v23 = vsel %vm3403_vm2, %v7090_v5, %v7048_v49 }
0x18b6   : > { %9867 = vmatprep.mubr.bf16.mxu1 %v6882_v37  ;;  %v6874_v32 = vmul.f32 %v10871_v17, %v15276_v8 }
0x18b8   : > { %v6883_v35 = vpack.c.bf16 %v6875_v7, %v6874_v32  ;;  %9876 = vmatpush3.bf16.msra.mxu1 %v10170_v44  ;;  %v16702_v44 = vpack.c.bf16 %v16700_v56, %v16701_v19  ;;  %v16719_v19 = vld [vmem:[#allocation35_spill] sm:$0xff] }
0x18b9   : > { %9877 = vmatprep.subr.bf16.mxu1 %v10171_v38 }
0x18ba   : > { %9868 = vmatmul.mubr.bf16.gmra.mrb[204].mxu1 %v6883_v35 }
0x18bc   : > { %9878 = vmatpush3.bf16.msra.mxu1 %v10171_v38 }
0x1949   : > { %v9857_v8 = vpop.f32.mrb[192].mxu1 }
0x194a   : > { %v6942_v21 = vpop.f32.mrb[193].mxu1 }
0x194b   : > { %v9858_v3 = vpop.f32.mrb[194].mxu1 }
0x194c   : > { %v7006_v30 = vpack.c.bf16 %v9858_v3, %v9857_v8  ;;  %v6945_v54 = vpop.f32.mrb[195].mxu1  ;;  %v16704_v3 = vld [vmem:[#allocation33_spill] sm:$0xff] }
0x194d   : > { %v7005_v39 = vpack.c.bf16 %v6945_v54, %v6942_v21  ;;  %v16703_v21 = vld [vmem:[#allocation32_spill] sm:$0xff] }
0x194e   : > { %7071 = vrot.lane.b32.xlu1 %v7006_v30, %s16498_s27  ;;  %v16705_v30 = vpack.c.bf16 %v16703_v21, %v16704_v3 }
0x194f   : > { %7069 = vrot.lane.b32.xlu0 %v7005_v39, %s16498_s27 }
0x1951   : > { %v9861_v16 = vpop.f32.mrb[196].mxu1 }
0x1952   : > { %7027 = vrot.lane.b32.xlu1 %v16680_v13, %s16499_s1  ;;  %v6958_v60 = vpop.f32.mrb[197].mxu1 }
0x1953   : > { %7025 = vrot.lane.b32.xlu0 %v16681_v62, %s16499_s1  ;;  %v9862_v50 = vpop.f32.mrb[198].mxu1 }
0x1954   : > { %v7008_v12 = vpack.c.bf16 %v9862_v50, %v9861_v16  ;;  %v6961_v25 = vpop.f32.mrb[199].mxu1 }
0x1955   : > { %v7007_v48 = vpack.c.bf16 %v6961_v25, %v6958_v60 }
0x1956   : > { %7051 = vrot.lane.b32.xlu1 %v16682_v61, %s16506_s21  ;;  %v16706_v61 = vld [vmem:[#allocation65_spill] sm:$0xff] }
0x1957   : > { %7049 = vrot.lane.b32.xlu0 %v16683_v24, %s16506_s21  ;;  %v16707_v24 = vld [vmem:[#allocation64_spill] sm:$0xff] }
0x195a   : > { %7075 = vrot.lane.b32.xlu1 %v7008_v12, %s16498_s27 }
0x195b   : > { %7073 = vrot.lane.b32.xlu0 %v7007_v48, %s16498_s27 }
0x195e   : > { %7031 = vrot.lane.b32.xlu1 %v16684_v33, %s16499_s1  ;;  %v16708_v33 = vpack.c.bf16 %v16706_v61, %v16707_v24 }
0x195f   : > { %7029 = vrot.lane.b32.xlu0 %v16685_v20, %s16499_s1 }
0x1962   : > { %7055 = vrot.lane.b32.xlu1 %v16686_v40, %s16506_s21 }
0x1963   : > { %7053 = vrot.lane.b32.xlu0 %v16687_v34, %s16506_s21  ;;  %v16709_v34 = vld [vmem:[#allocation67_spill] sm:$0xff] }
0x1985   : > { %v9865_v53 = vpop.f32.mrb[200].mxu1 }
0x1986   : > { %v6974_v58 = vpop.f32.mrb[201].mxu1 }
0x1987   : > { %v9866_v11 = vpop.f32.mrb[202].mxu1 }
0x1988   : > { %v7010_v43 = vpack.c.bf16 %v9866_v11, %v9865_v53  ;;  %v6977_v45 = vpop.f32.mrb[203].mxu1  ;;  %v16710_v53 = vld [vmem:[#allocation66_spill] sm:$0xff] }
0x1989   : > { %v7009_v26 = vpack.c.bf16 %v6977_v45, %v6974_v58  ;;  %v16711_v58 = vpack.c.bf16 %v16709_v34, %v16710_v53 }
0x198a   : > { %7079 = vrot.lane.b32.xlu1 %v7010_v43, %s16498_s27 }
0x198b   : > { %7077 = vrot.lane.b32.xlu0 %v7009_v26, %s16498_s27 }
0x198d   : > { %v9869_v31 = vpop.f32.mrb[204].mxu1 }
0x198e   : > { %7035 = vrot.lane.b32.xlu1 %v16688_v36, %s16499_s1  ;;  %v6990_v0 = vpop.f32.mrb[205].mxu1 }
0x198f   : > { %7033 = vrot.lane.b32.xlu0 %v16689_v6, %s16499_s1  ;;  %v9870_v29 = vpop.f32.mrb[206].mxu1 }
0x1990   : > { %v7012_v10 = vpack.c.bf16 %v9870_v29, %v9869_v31  ;;  %v6993_v42 = vpop.f32.mrb[207].mxu1 }
0x1991   : > { %v7011_v2 = vpack.c.bf16 %v6993_v42, %v6990_v0  ;;  %v16712_v42 = vld [vmem:[#allocation39_spill] sm:$0xff] }
0x1992   : > { %7059 = vrot.lane.b32.xlu1 %v16690_v27, %s16506_s21 }
0x1993   : > { %7057 = vrot.lane.b32.xlu0 %v16693_v22, %s16506_s21  ;;  %v16715_v22 = vld [vmem:[#allocation40_spill] sm:$0xff] }
0x1994   : > { %v16717_v18 = vpack.c.bf16 %v16715_v22, %v16716_v15 }
0x1996   : > { %7083 = vrot.lane.b32.xlu1 %v7012_v10, %s16498_s27 }
0x1997   : > { %7081 = vrot.lane.b32.xlu0 %v7011_v2, %s16498_s27  ;;  %v16713_v2 = vld [vmem:[#allocation41_spill] sm:$0xff]  ;;  %s11034_s27 = sshll.u32 %s11103_s24, 4  ;;  %s11035_s27 = int_to_ptr.vmem [resolvable:$false] %s11034_s27 }
0x1998   : > { %v16714_v27 = vpack.c.bf16 %v16712_v42, %v16713_v2  ;;  %s11036_s1 = scalar_lea.vmem %s11035_s27, 512  ;;  %p11037_p0 = scmp.lt.s32.totalorder %s16147_s29, %s11035_s27 }
0x1999   : > { %p11038_p1 = scmp.lt.s32.totalorder %s11036_s1, %s11030_s20 }
0x199b   : > { %p11039_p2 = por %p11038_p1, %p11037_p0 }
0x199d   : > { %p11040_p3 = pnand %p11039_p2, %p11033_p13 }
0x19c0   : > { %v7072_v41 = vpop.permute.xlu1 %7071 }
0x19c1   : > { %v7070_v14 = vpop.permute.xlu0 %7069  ;;  %v7128_v37 = vsel %vm3420_vm3, %v7112_v23, %v7072_v41  ;;  %v15438_v41 = vld [vmem:[%s16201_s9 + $0x1] ss:$0 sm:$0xff] }
0x19c2   : > { %v7126_v51 = vsel %vm3420_vm3, %v7110_v47, %v7070_v14 }
0x19c3   : > { %9879 = vmatprep.mubr.msk.bf16.mxu1 %vm836_vm0, %v7126_v51 }
0x19c4   : > { %v7028_v17 = vpop.permute.xlu1 %7027  ;;  %9880 = vmatmul.mubr.msk.bf16.vlgmr.msra.gmra.mrb[208].mxu1 %vm836_vm0, %v7128_v37 }
0x19c5   : > { %v7026_v32 = vpop.permute.xlu0 %7025  ;;  %v7096_v54 = vsel %vm1514_vm1, %v16705_v30, %v7028_v17 }
0x19c6   : > { %v7093_v38 = vsel %vm1514_vm1, %v16702_v44, %v7026_v32 }
0x19c8   : > { %v7052_v7 = vpop.permute.xlu1 %7051 }
0x19c9   : > { %v7050_v35 = vpop.permute.xlu0 %7049  ;;  %v7116_v13 = vsel %vm3403_vm2, %v7096_v54, %v7052_v7  ;;  %v16718_v7 = vld [vmem:[#allocation36_spill] sm:$0xff]  ;;  %v16721_v54 = vld [vmem:[#allocation34_spill] sm:$0xff] }
0x19ca   : > { %v7114_v39 = vsel %vm3403_vm2, %v7093_v38, %v7050_v35 }
0x19cc   : > { %v7076_v8 = vpop.permute.xlu1 %7075 }
0x19cd   : > { %v7074_v16 = vpop.permute.xlu0 %7073  ;;  %v7132_v62 = vsel %vm3420_vm3, %v7116_v13, %v7076_v8  ;;  %v16720_v8 = vld [vmem:[#allocation37_spill] sm:$0xff] }
0x19ce   : > { %v7130_v60 = vsel %vm3420_vm3, %v7114_v39, %v7074_v16 }
0x19cf   : > { %9883 = vmatprep.mubr.msk.bf16.mxu1 %vm836_vm0, %v7130_v60 }
0x19d0   : > { %9884 = vmatmul.mubr.msk.bf16.gmra.mrb[212].mxu1 %vm836_vm0, %v7132_v62  ;;  %v7032_v50 = vpop.permute.xlu1 %7031 }
0x19d1   : > { %v7030_v12 = vpop.permute.xlu0 %7029  ;;  %v7102_v11 = vsel %vm1514_vm1, %v16711_v58, %v7032_v50 }
0x19d2   : > { %v7099_v20 = vsel %vm1514_vm1, %v16708_v33, %v7030_v12 }
0x19d4   : > { %v7056_v25 = vpop.permute.xlu1 %7055 }
0x19d5   : > { %v7054_v48 = vpop.permute.xlu0 %7053  ;;  %v7120_v26 = vsel %vm3403_vm2, %v7102_v11, %v7056_v25  ;;  %v16723_v11 = vld [vmem:[#allocation55_spill] sm:$0xff] }
0x19d6   : > { %v7118_v43 = vsel %vm3403_vm2, %v7099_v20, %v7054_v48 }
0x19fc   : > { %v7080_v40 = vpop.permute.xlu1 %7079 }
0x19fd   : > { %v7078_v45 = vpop.permute.xlu0 %7077  ;;  %v7136_v36 = vsel %vm3420_vm3, %v7120_v26, %v7080_v40  ;;  %v16722_v40 = vld [vmem:[#allocation54_spill] sm:$0xff] }
0x19fe   : > { %v7134_v31 = vsel %vm3420_vm3, %v7118_v43, %v7078_v45  ;;  %v16724_v45 = vld [vmem:[#allocation52_spill] sm:$0xff] }
0x19ff   : > { %9887 = vmatprep.mubr.msk.bf16.mxu1 %vm836_vm0, %v7134_v31 }
0x1a00   : > { %v7036_v0 = vpop.permute.xlu1 %7035  ;;  %9888 = vmatmul.mubr.msk.bf16.gmra.mrb[216].mxu1 %vm836_vm0, %v7136_v36  ;;  %v16725_v36 = vld [vmem:[#allocation53_spill] sm:$0xff] }
0x1a01   : > { %v7034_v6 = vpop.permute.xlu0 %7033  ;;  %v7108_v9 = vsel %vm1514_vm1, %v16717_v18, %v7036_v0 }
0x1a02   : > { %v7105_v55 = vsel %vm1514_vm1, %v16714_v27, %v7034_v6 }
0x1a04   : > { %v7060_v29 = vpop.permute.xlu1 %7059 }
0x1a05   : > { %v7058_v10 = vpop.permute.xlu0 %7057  ;;  %v7124_v57 = vsel %vm3403_vm2, %v7108_v9, %v7060_v29 }
0x1a06   : > { %v7122_v49 = vsel %vm3403_vm2, %v7105_v55, %v7058_v10 }
0x1a08   : > { %v7084_v28 = vpop.permute.xlu1 %7083 }
0x1a09   : > { %v7082_v52 = vpop.permute.xlu0 %7081  ;;  %v7140_v4 = vsel %vm3420_vm3, %v7124_v57, %v7084_v28 }
0x1a0a   : > { %v7138_v63 = vsel %vm3420_vm3, %v7122_v49, %v7082_v52  ;;  %v16726_v52 = vld [vmem:[#allocation58_spill] sm:$0xff] }
0x1a0b   : > { %9891 = vmatprep.mubr.msk.bf16.mxu1 %vm836_vm0, %v7138_v63 }
0x1a0c   : > { %9892 = vmatmul.mubr.msk.bf16.gmra.mrb[220].mxu1 %vm836_vm0, %v7140_v4 }
0x1a97   : > { %v9881_v1 = vpop.f32.mrb[208].mxu1 }
0x1a98   : > { %v7241_v46 = vadd.f32 %v9881_v1, %v15438_v41  ;;  %v7232_v5 = vpop.f32.mrb[209].mxu1  ;;  %v16727_v1 = vld [vmem:[#allocation59_spill] sm:$0xff] }
0x1a99   : > { %v7233_v47 = vadd.f32 %v15438_v41, %v7232_v5  ;;  %v9882_v14 = vpop.f32.mrb[210].mxu1  ;;  %v16728_v5 = vld [vmem:[#allocation56_spill] sm:$0xff] }
0x1a9a   : > { %v7235_v23 = vpop.f32.mrb[211].mxu1  ;;  %v7305_v51 = vmul.f32 %v15444_v59, %v7241_v46  ;;  %v7244_v17 = vadd.f32 %v9882_v14, %v15438_v41 }
0x1a9b   : > { %v7303_v37 = vmul.f32 %v15444_v59, %v7233_v47  ;;  %v7236_v32 = vadd.f32 %v15438_v41, %v7235_v23  ;;  %v16729_v23 = vld [vmem:[#allocation57_spill] sm:$0xff] }
0x1a9c   : > { %v15456_v44 = vadd.f32 %v7305_v51, %v16719_v19  ;;  %v7306_v38 = vmul.f32 %v15444_v59, %v7244_v17 }
0x1a9d   : > { %v15452_v35 = vadd.f32 %v7303_v37, %v16718_v7  ;;  %v7304_v56 = vmul.f32 %v15444_v59, %v7236_v32 }
0x1a9e   : > { %v15467_v39 = vadd.f32 %v7306_v38, %v16721_v54  ;;  %v7345_v13 = vsel %vm836_vm0, %v15456_v44, 0.0 }
0x1a9f   : > { %v15460_v21 = vadd.f32 %v7304_v56, %v16720_v8  ;;  %v7339_v3 = vsel %vm836_vm0, %v15452_v35, 0.0 }
0x1aa0   : > { %7340 = vadd.xlane.f32.xlu0 %v7339_v3  ;;  %v7348_v20 = vsel %vm836_vm0, %v15467_v39, 0.0 }
0x1aa1   : > { %v7342_v30 = vsel %vm836_vm0, %v15460_v21, 0.0 }
0x1aa2   : > { %7343 = vadd.xlane.f32.xlu1 %v7342_v30 }
0x1aa3   : > { %v9885_v16 = vpop.f32.mrb[212].mxu1 }
0x1aa4   : > { %v7257_v60 = vadd.f32 %v9885_v16, %v15438_v41  ;;  %7346 = vadd.xlane.f32.xlu0 %v7345_v13  ;;  %v7248_v62 = vpop.f32.mrb[213].mxu1 }
0x1aa5   : > { %v7249_v50 = vadd.f32 %v15438_v41, %v7248_v62  ;;  %v9886_v12 = vpop.f32.mrb[214].mxu1 }
0x1aa6   : > { %v7260_v25 = vadd.f32 %v9886_v12, %v15438_v41  ;;  %v7251_v48 = vpop.f32.mrb[215].mxu1  ;;  %v7309_v61 = vmul.f32 %v15444_v59, %v7257_v60  ;;  %v16730_v60 = vld [vmem:[#allocation62_spill] sm:$0xff] }
0x1aa7   : > { %v7307_v24 = vmul.f32 %v15444_v59, %v7249_v50  ;;  %v7252_v33 = vadd.f32 %v15438_v41, %v7251_v48 }
0x1aa8   : > { %7349 = vadd.xlane.f32.xlu0 %v7348_v20  ;;  %v7310_v53 = vmul.f32 %v15444_v59, %v7260_v25  ;;  %v15485_v43 = vadd.f32 %v7309_v61, %v16723_v11  ;;  %v16731_v25 = vld [vmem:[#allocation63_spill] sm:$0xff]  ;;  %v16732_v61 = vld [vmem:[#allocation60_spill] sm:$0xff]  ;;  %v16733_v20 = vld [vmem:[#allocation61_spill] sm:$0xff] }
0x1aa9   : > { %v15480_v34 = vadd.f32 %v7307_v24, %v16722_v40  ;;  %v7308_v58 = vmul.f32 %v15444_v59, %v7252_v33 }
0x1aaa   : > { %v15493_v0 = vadd.f32 %v7310_v53, %v16725_v36  ;;  %v7357_v29 = vsel %vm836_vm0, %v15485_v43, 0.0 }
0x1aab   : > { %v15488_v26 = vadd.f32 %v7308_v58, %v16724_v45  ;;  %v7351_v31 = vsel %vm836_vm0, %v15480_v34, 0.0 }
0x1aac   : > { %7352 = vadd.xlane.f32.xlu0 %v7351_v31  ;;  %v7360_v10 = vsel %vm836_vm0, %v15493_v0, 0.0 }
0x1aad   : > { %v7354_v6 = vsel %vm836_vm0, %v15488_v26, 0.0 }
0x1aae   : > { %7355 = vadd.xlane.f32.xlu1 %v7354_v6 }
0x1ab0   : > { %7358 = vadd.xlane.f32.xlu0 %v7357_v29 }
0x1ab2   : > { %7361 = vadd.xlane.f32.xlu1 %v7360_v10 }
0x1ad3   : > { %v9889_v42 = vpop.f32.mrb[216].mxu1 }
0x1ad4   : > { %v7273_v2 = vadd.f32 %v9889_v42, %v15438_v41  ;;  %v7264_v27 = vpop.f32.mrb[217].mxu1 }
0x1ad5   : > { %v7265_v55 = vadd.f32 %v15438_v41, %v7264_v27  ;;  %v9890_v28 = vpop.f32.mrb[218].mxu1 }
0x1ad6   : > { %v7276_v22 = vadd.f32 %v9890_v28, %v15438_v41  ;;  %v7267_v15 = vpop.f32.mrb[219].mxu1  ;;  %v7313_v18 = vmul.f32 %v15444_v59, %v7273_v2 }
0x1ad7   : > { %v7311_v9 = vmul.f32 %v15444_v59, %v7265_v55  ;;  %v7268_v49 = vadd.f32 %v15438_v41, %v7267_v15 }
0x1ad8   : > { %v7314_v63 = vmul.f32 %v15444_v59, %v7276_v22  ;;  %v15513_v46 = vadd.f32 %v7313_v18, %v16727_v1 }
0x1ad9   : > { %v15508_v57 = vadd.f32 %v7311_v9, %v16726_v52  ;;  %v7312_v4 = vmul.f32 %v15444_v59, %v7268_v49 }
0x1ada   : > { %v15521_v51 = vadd.f32 %v7314_v63, %v16729_v23  ;;  %v7369_v32 = vsel %vm836_vm0, %v15513_v46, 0.0 }
0x1adb   : > { %v15516_v47 = vadd.f32 %v7312_v4, %v16728_v5  ;;  %v7363_v14 = vsel %vm836_vm0, %v15508_v57, 0.0 }
0x1adc   : > { %7364 = vadd.xlane.f32.xlu0 %v7363_v14  ;;  %v7372_v8 = vsel %vm836_vm0, %v15521_v51, 0.0 }
0x1add   : > { %v7366_v37 = vsel %vm836_vm0, %v15516_v47, 0.0 }
0x1ade   : > { %7367 = vadd.xlane.f32.xlu1 %v7366_v37 }
0x1adf   : > { %v9893_v17 = vpop.f32.mrb[220].mxu1 }
0x1ae0   : > { %v7289_v7 = vadd.f32 %v9893_v17, %v15438_v41  ;;  %7370 = vadd.xlane.f32.xlu0 %v7369_v32  ;;  %v7280_v56 = vpop.f32.mrb[221].mxu1 }
0x1ae1   : > { %v7281_v19 = vadd.f32 %v15438_v41, %v7280_v56  ;;  %v9894_v38 = vpop.f32.mrb[222].mxu1 }
0x1ae2   : > { %v7292_v3 = vadd.f32 %v9894_v38, %v15438_v41  ;;  %7373 = vadd.xlane.f32.xlu1 %v7372_v8  ;;  %v7283_v30 = vpop.f32.mrb[223].mxu1  ;;  %v7317_v54 = vmul.f32 %v15444_v59, %v7289_v7 }
0x1ae3   : > { %v7315_v16 = vmul.f32 %v15444_v59, %v7281_v19  ;;  %v7284_v13 = vadd.f32 %v15438_v41, %v7283_v30 }
0x1ae4   : > { %v7318_v50 = vmul.f32 %v15444_v59, %v7292_v3  ;;  %v15541_v48 = vadd.f32 %v7317_v54, %v16731_v25  ;;  %v10172_v25 = vld [vmem:[%s16205_s13 + $0x40] ss:$8 sps:$4 sm:$0xff]  }
0x1ae5   : > { %v15536_v62 = vadd.f32 %v7315_v16, %v16730_v60  ;;  %v7316_v12 = vmul.f32 %v15444_v59, %v7284_v13 }
0x1ae6   : > { %v15549_v40 = vadd.f32 %v7318_v50, %v16733_v20  ;;  %v7381_v59 = vsel %vm836_vm0, %v15541_v48, 0.0  ;;  %v10180_v20 = vld [vmem:[%s16205_s13 + $0x64] ss:$8 sps:$4 sm:$0xff]  }
0x1ae7   : > { %v15544_v24 = vadd.f32 %v7316_v12, %v16732_v61  ;;  %v7375_v33 = vsel %vm836_vm0, %v15536_v62, 0.0  ;;  %v10174_v12 = vld [vmem:[%s16205_s13 + $0x44] ss:$8 sps:$4 sm:$0xff]   ;;  %v10177_v61 = vld [vmem:[%s16205_s13 + $0x54] ss:$8 sps:$4 sm:$0xff]  }
0x1ae8   : > { %7376 = vadd.xlane.f32.xlu0 %v7375_v33  ;;  %v7384_v53 = vsel %vm836_vm0, %v15549_v40, 0.0  ;;  %7685 = vmatprep.subr.bf16.mxu0 %v10174_v12  ;;  %v10175_v33 = vld [vmem:[%s16205_s13 + $0x50] ss:$8 sps:$4 sm:$0xff]  }
0x1ae9   : > { %v7378_v41 = vsel %vm836_vm0, %v15544_v24, 0.0  ;;  %7686 = vmatpush1.bf16.msra.mxu0 %v10172_v25 }
0x1aea   : > { %7379 = vadd.xlane.f32.xlu1 %v7378_v41  ;;  %7687 = vmatprep.subr.bf16.mxu0 %v10177_v61  ;;  %v10178_v41 = vld [vmem:[%s16205_s13 + $0x60] ss:$8 sps:$4 sm:$0xff]  }
0x1aec   : > { %7382 = vadd.xlane.f32.xlu0 %v7381_v59  ;;  %v10183_v59 = vld [vmem:[%s16205_s13 + $0x74] ss:$8 sps:$4 sm:$0xff]  }
0x1aed   : > { %7688 = vmatpush1.bf16.msra.mxu0 %v10175_v33 }
0x1aee   : > { %7385 = vadd.xlane.f32.xlu1 %v7384_v53  ;;  %7689 = vmatprep.subr.bf16.mxu0 %v10180_v20  ;;  %v10181_v53 = vld [vmem:[%s16205_s13 + $0x70] ss:$8 sps:$4 sm:$0xff]  }
0x1af1   : > { %7690 = vmatpush1.bf16.msra.mxu0 %v10178_v41 }
0x1af2   : > { %7691 = vmatprep.subr.bf16.mxu0 %v10183_v59 }
0x1af5   : > { %7692 = vmatpush1.bf16.msra.mxu0 %v10181_v53 }
0x1b2d   : > { %v7341_v58 = vpop.xlane.xlu0 %7340 }
0x1b2e   : > { %v7387_v11 = vmul.f32 0.015625, %v7341_v58 }
0x1b2f   : > { %v7344_v45 = vpop.xlane.xlu1 %7343 }
0x1b30   : > { %v15558_v31 = vsub.f32 %v15452_v35, %v7387_v11  ;;  %v7388_v36 = vmul.f32 0.015625, %v7344_v45 }
0x1b31   : > { %v7347_v6 = vpop.xlane.xlu0 %7346 }
0x1b32   : > { %v15561_v29 = vsub.f32 %v15460_v21, %v7388_v36  ;;  %v7389_v10 = vmul.f32 0.015625, %v7347_v6  ;;  %v7419_v42 = vmul.f32 %v15558_v31, %v15558_v31 }
0x1b34   : > { %v15566_v2 = vsub.f32 %v15456_v44, %v7389_v10  ;;  %v7435_v27 = vsel %vm836_vm0, %v7419_v42, 0.0  ;;  %v7420_v55 = vmul.f32 %v15561_v29, %v15561_v29 }
0x1b35   : > { %7436 = vadd.xlane.f32.xlu0 %v7435_v27  ;;  %v7350_v28 = vpop.xlane.xlu0 %7349 }
0x1b36   : > { %v7390_v22 = vmul.f32 0.015625, %v7350_v28  ;;  %v7438_v15 = vsel %vm836_vm0, %v7420_v55, 0.0  ;;  %v7421_v18 = vmul.f32 %v15566_v2, %v15566_v2 }
0x1b37   : > { %7439 = vadd.xlane.f32.xlu1 %v7438_v15 }
0x1b38   : > { %v15575_v9 = vsub.f32 %v15467_v39, %v7390_v22  ;;  %v7441_v49 = vsel %vm836_vm0, %v7421_v18, 0.0 }
0x1b39   : > { %7442 = vadd.xlane.f32.xlu0 %v7441_v49  ;;  %v7353_v52 = vpop.xlane.xlu0 %7352 }
0x1b3a   : > { %v7391_v63 = vmul.f32 0.015625, %v7353_v52  ;;  %v7422_v4 = vmul.f32 %v15575_v9, %v15575_v9 }
0x1b3b   : > { %v7356_v1 = vpop.xlane.xlu1 %7355 }
0x1b3c   : > { %v15581_v5 = vsub.f32 %v15480_v34, %v7391_v63  ;;  %v7392_v14 = vmul.f32 0.015625, %v7356_v1  ;;  %v7444_v23 = vsel %vm836_vm0, %v7422_v4, 0.0 }
0x1b3d   : > { %7445 = vadd.xlane.f32.xlu1 %v7444_v23  ;;  %v7359_v37 = vpop.xlane.xlu0 %7358 }
0x1b3e   : > { %v15585_v17 = vsub.f32 %v15488_v26, %v7392_v14  ;;  %v7393_v32 = vmul.f32 0.015625, %v7359_v37  ;;  %v7423_v7 = vmul.f32 %v15581_v5, %v15581_v5 }
0x1b3f   : > { %v7362_v56 = vpop.xlane.xlu1 %7361 }
0x1b40   : > { %v15590_v19 = vsub.f32 %v15485_v43, %v7393_v32  ;;  %v7394_v38 = vmul.f32 0.015625, %v7362_v56  ;;  %v7447_v8 = vsel %vm836_vm0, %v7423_v7, 0.0  ;;  %v7424_v3 = vmul.f32 %v15585_v17, %v15585_v17 }
0x1b41   : > { %7448 = vadd.xlane.f32.xlu0 %v7447_v8 }
0x1b42   : > { %v15596_v30 = vsub.f32 %v15493_v0, %v7394_v38  ;;  %v7450_v54 = vsel %vm836_vm0, %v7424_v3, 0.0  ;;  %v7425_v16 = vmul.f32 %v15590_v19, %v15590_v19 }
0x1b43   : > { %7451 = vadd.xlane.f32.xlu1 %v7450_v54 }
0x1b44   : > { %v7453_v13 = vsel %vm836_vm0, %v7425_v16, 0.0  ;;  %v7426_v60 = vmul.f32 %v15596_v30, %v15596_v30 }
0x1b45   : > { %7454 = vadd.xlane.f32.xlu0 %v7453_v13 }
0x1b46   : > { %v7456_v50 = vsel %vm836_vm0, %v7426_v60, 0.0 }
0x1b47   : > { %7457 = vadd.xlane.f32.xlu1 %v7456_v50 }
0x1b69   : > { %v7365_v58 = vpop.xlane.xlu0 %7364 }
0x1b6a   : > { %v7395_v11 = vmul.f32 0.015625, %v7365_v58 }
0x1b6b   : > { %v7368_v45 = vpop.xlane.xlu1 %7367 }
0x1b6c   : > { %v15630_v36 = vsub.f32 %v15508_v57, %v7395_v11  ;;  %v7396_v6 = vmul.f32 0.015625, %v7368_v45 }
0x1b6d   : > { %v7371_v10 = vpop.xlane.xlu0 %7370 }
0x1b6e   : > { %v15633_v42 = vsub.f32 %v15516_v47, %v7396_v6  ;;  %v7397_v27 = vmul.f32 0.015625, %v7371_v10  ;;  %v7427_v55 = vmul.f32 %v15630_v36, %v15630_v36 }
0x1b6f   : > { %v7374_v28 = vpop.xlane.xlu1 %7373 }
0x1b70   : > { %v15638_v22 = vsub.f32 %v15513_v46, %v7397_v27  ;;  %v7398_v15 = vmul.f32 0.015625, %v7374_v28  ;;  %v7459_v18 = vsel %vm836_vm0, %v7427_v55, 0.0  ;;  %v7428_v49 = vmul.f32 %v15633_v42, %v15633_v42 }
0x1b71   : > { %7460 = vadd.xlane.f32.xlu0 %v7459_v18 }
0x1b72   : > { %v15644_v52 = vsub.f32 %v15521_v51, %v7398_v15  ;;  %v7462_v63 = vsel %vm836_vm0, %v7428_v49, 0.0  ;;  %v7429_v4 = vmul.f32 %v15638_v22, %v15638_v22 }
0x1b73   : > { %7463 = vadd.xlane.f32.xlu1 %v7462_v63 }
0x1b74   : > { %v7465_v1 = vsel %vm836_vm0, %v7429_v4, 0.0  ;;  %v7430_v14 = vmul.f32 %v15644_v52, %v15644_v52 }
0x1b75   : > { %7466 = vadd.xlane.f32.xlu0 %v7465_v1  ;;  %v7377_v23 = vpop.xlane.xlu0 %7376 }
0x1b76   : > { %v7399_v37 = vmul.f32 0.015625, %v7377_v23  ;;  %v7468_v32 = vsel %vm836_vm0, %v7430_v14, 0.0 }
0x1b77   : > { %v7380_v7 = vpop.xlane.xlu1 %7379  ;;  %7469 = vadd.xlane.f32.xlu1 %v7468_v32 }
0x1b78   : > { %v15654_v56 = vsub.f32 %v15536_v62, %v7399_v37  ;;  %v7400_v38 = vmul.f32 0.015625, %v7380_v7  ;;  %v15680_v37 = vld [vmem:[%s16203_s11 + $0x1] ss:$0 sm:$0xff] }
0x1b79   : > { %v7383_v8 = vpop.xlane.xlu0 %7382 }
0x1b7a   : > { %v15657_v3 = vsub.f32 %v15544_v24, %v7400_v38  ;;  %v7401_v54 = vmul.f32 0.015625, %v7383_v8  ;;  %v7431_v16 = vmul.f32 %v15654_v56, %v15654_v56 }
0x1b7b   : > { %v7386_v13 = vpop.xlane.xlu1 %7385 }
0x1b7c   : > { %v15662_v60 = vsub.f32 %v15541_v48, %v7401_v54  ;;  %v7402_v50 = vmul.f32 0.015625, %v7386_v13  ;;  %v7471_v12 = vsel %vm836_vm0, %v7431_v16, 0.0  ;;  %v7432_v25 = vmul.f32 %v15657_v3, %v15657_v3 }
0x1b7d   : > { %7472 = vadd.xlane.f32.xlu0 %v7471_v12 }
0x1b7e   : > { %v15668_v61 = vsub.f32 %v15549_v40, %v7402_v50  ;;  %v7474_v33 = vsel %vm836_vm0, %v7432_v25, 0.0  ;;  %v7433_v20 = vmul.f32 %v15662_v60, %v15662_v60 }
0x1b7f   : > { %7475 = vadd.xlane.f32.xlu1 %v7474_v33 }
0x1b80   : > { %v7477_v41 = vsel %vm836_vm0, %v7433_v20, 0.0  ;;  %v7434_v59 = vmul.f32 %v15668_v61, %v15668_v61  ;;  %v15688_v20 = vld [vmem:[%s16204_s12 + $0x1] ss:$0 sm:$0xff] }
0x1b81   : > { %7478 = vadd.xlane.f32.xlu0 %v7477_v41 }
0x1b82   : > { %v7480_v53 = vsel %vm836_vm0, %v7434_v59, 0.0 }
0x1b83   : > { %7481 = vadd.xlane.f32.xlu1 %v7480_v53 }
0x1bc2   : > { %v7437_v58 = vpop.xlane.xlu0 %7436 }
0x1bc3   : > { %v7483_v11 = vmul.f32 0.015625, %v7437_v58 }
0x1bc4   : > { %v7440_v45 = vpop.xlane.xlu1 %7439 }
0x1bc5   : > { %v7499_v6 = vadd.f32 1e-06, %v7483_v11  ;;  %v7484_v10 = vmul.f32 0.015625, %v7440_v45 }
0x1bc6   : > { %v7443_v27 = vpop.xlane.xlu0 %7442 }
0x1bc7   : > { %10872 = vrsqrt.f32 %v7499_v6  ;;  %v7500_v55 = vadd.f32 1e-06, %v7484_v10  ;;  %v7485_v28 = vmul.f32 0.015625, %v7443_v27 }
0x1bc9   : > { %10874 = vrsqrt.f32 %v7500_v55  ;;  %v7501_v15 = vadd.f32 1e-06, %v7485_v28 }
0x1bca   : > { %v7446_v18 = vpop.xlane.xlu1 %7445 }
0x1bcb   : > { %10876 = vrsqrt.f32 %v7501_v15  ;;  %v7486_v49 = vmul.f32 0.015625, %v7446_v18  ;;  %v16734_v15 = vmov 0  }
0x1bcd   : > { %v7502_v63 = vadd.f32 1e-06, %v7486_v49 }
0x1bce   : > { %v7449_v4 = vpop.xlane.xlu0 %7448 }
0x1bcf   : > { %10878 = vrsqrt.f32 %v7502_v63  ;;  %v7487_v1 = vmul.f32 0.015625, %v7449_v4 }
0x1bd0   : > { %v7452_v14 = vpop.xlane.xlu1 %7451 }
0x1bd1   : > { %v10873_v23 = vpop.eup %10872  ;;  %v7503_v32 = vadd.f32 1e-06, %v7487_v1  ;;  %v7488_v7 = vmul.f32 0.015625, %v7452_v14 }
0x1bd2   : > { %v7531_v38 = vmul.f32 %v10873_v23, %v15558_v31  ;;  %v7455_v8 = vpop.xlane.xlu0 %7454 }
0x1bd3   : > { %v10875_v54 = vpop.eup %10874  ;;  %10880 = vrsqrt.f32 %v7503_v32  ;;  %v7504_v16 = vadd.f32 1e-06, %v7488_v7  ;;  %v7489_v13 = vmul.f32 0.015625, %v7455_v8 }
0x1bd4   : > { %v7553_v50 = vmul.f32 %v15680_v37, %v7531_v38  ;;  %v7532_v12 = vmul.f32 %v10875_v54, %v15561_v29  ;;  %v7458_v25 = vpop.xlane.xlu1 %7457 }
0x1bd5   : > { %v10877_v33 = vpop.eup %10876  ;;  %10882 = vrsqrt.f32 %v7504_v16  ;;  %v7490_v41 = vmul.f32 0.015625, %v7458_v25  ;;  %v7505_v59 = vadd.f32 1e-06, %v7489_v13 }
0x1bd6   : > { %v7554_v31 = vmul.f32 %v15680_v37, %v7532_v12  ;;  %v7575_v58 = vadd.f32 %v15688_v20, %v7553_v50  ;;  %v7533_v45 = vmul.f32 %v10877_v33, %v15566_v2 }
0x1bd7   : > { %v7506_v53 = vadd.f32 1e-06, %v7490_v41 }
0x1bd8   : > { %v7576_v11 = vadd.f32 %v15688_v20, %v7554_v31  ;;  %v7555_v27 = vmul.f32 %v15680_v37, %v7533_v45 }
0x1bd9   : > { %v10879_v29 = vpop.eup %10878  ;;  %10884 = vrsqrt.f32 %v7506_v53 }
0x1bda   : > { %v7534_v6 = vmul.f32 %v10879_v29, %v15575_v9  ;;  %v7600_v10 = vpack.c.bf16 %v7576_v11, %v7575_v58  ;;  %10886 = vrsqrt.f32 %v7505_v59  ;;  %v7577_v9 = vadd.f32 %v15688_v20, %v7555_v27 }
0x1bdc   : > { %8836 = vmatmul.mubr.msk.bf16.vlgmr.msra.gmra.mrb[224].mxu0 %vm836_vm0, %v7600_v10  ;;  %v7556_v55 = vmul.f32 %v15680_v37, %v7534_v6 }
0x1bdd   : > { %v10881_v28 = vpop.eup %10880  ;;  %7727 = vmatprep.mubr.bf16.mxu0 %v16734_v15 }
0x1bde   : > { %v7578_v18 = vadd.f32 %v15688_v20, %v7556_v55  ;;  %v7535_v2 = vmul.f32 %v10881_v28, %v15581_v5 }
0x1bdf   : > { %v10883_v49 = vpop.eup %10882 }
0x1be0   : > { %v7536_v63 = vmul.f32 %v10883_v49, %v15585_v17  ;;  %v7601_v4 = vpack.c.bf16 %v7578_v18, %v7577_v9  ;;  %v7557_v23 = vmul.f32 %v15680_v37, %v7535_v2 }
0x1be2   : > { %v7558_v1 = vmul.f32 %v15680_v37, %v7536_v63  ;;  %v7579_v17 = vadd.f32 %v15688_v20, %v7557_v23 }
0x1be3   : > { %v10885_v14 = vpop.eup %10884 }
0x1be4   : > { %8837 = vmatmul.mubr.msk.bf16.gmra.mrb[228].mxu0 %vm836_vm0, %v7601_v4  ;;  %v10887_v32 = vpop.eup %10886  ;;  %v7538_v7 = vmul.f32 %v10885_v14, %v15596_v30  ;;  %v7580_v38 = vadd.f32 %v15688_v20, %v7558_v1 }
0x1be5   : > { %7737 = vmatprep.mubr.bf16.mxu0 %v16734_v15  ;;  %v7537_v5 = vmul.f32 %v10887_v32, %v15590_v19 }
0x1be6   : > { %v7602_v8 = vpack.c.bf16 %v7580_v38, %v7579_v17  ;;  %v7560_v54 = vmul.f32 %v15680_v37, %v7538_v7 }
0x1be7   : > { %v7559_v16 = vmul.f32 %v15680_v37, %v7537_v5 }
0x1be8   : > { %v7582_v13 = vadd.f32 %v15688_v20, %v7560_v54 }
0x1be9   : > { %v7581_v50 = vadd.f32 %v15688_v20, %v7559_v16 }
0x1beb   : > { %v7603_v30 = vpack.c.bf16 %v7582_v13, %v7581_v50 }
0x1bec   : > { %8838 = vmatmul.mubr.msk.bf16.gmra.mrb[232].mxu0 %vm836_vm0, %v7602_v8 }
0x1bed   : > { %7747 = vmatprep.mubr.bf16.mxu0 %v16734_v15 }
0x1bf4   : > { %8839 = vmatmul.mubr.msk.bf16.gmra.mrb[236].mxu0 %vm836_vm0, %v7603_v30 }
0x1bf5   : > { %7757 = vmatprep.mubr.bf16.mxu0 %v16734_v15 }
0x1bfe   : > { %v7461_v19 = vpop.xlane.xlu0 %7460 }
0x1bff   : > { %v7491_v12 = vmul.f32 0.015625, %v7461_v19 }
0x1c00   : > { %v7464_v25 = vpop.xlane.xlu1 %7463 }
0x1c01   : > { %v7507_v33 = vadd.f32 1e-06, %v7491_v12  ;;  %v7492_v41 = vmul.f32 0.015625, %v7464_v25 }
0x1c02   : > { %v7467_v31 = vpop.xlane.xlu0 %7466 }
0x1c03   : > { %10888 = vrsqrt.f32 %v7507_v33  ;;  %v7508_v59 = vadd.f32 1e-06, %v7492_v41  ;;  %v7493_v53 = vmul.f32 0.015625, %v7467_v31 }
0x1c04   : > { %v7470_v58 = vpop.xlane.xlu1 %7469 }
0x1c05   : > { %10890 = vrsqrt.f32 %v7508_v59  ;;  %v7509_v11 = vadd.f32 1e-06, %v7493_v53  ;;  %v7494_v45 = vmul.f32 0.015625, %v7470_v58 }
0x1c07   : > { %10892 = vrsqrt.f32 %v7509_v11  ;;  %v7510_v29 = vadd.f32 1e-06, %v7494_v45 }
0x1c09   : > { %10894 = vrsqrt.f32 %v7510_v29 }
0x1c0a   : > { %v7473_v6 = vpop.xlane.xlu0 %7472 }
0x1c0b   : > { %v7495_v10 = vmul.f32 0.015625, %v7473_v6 }
0x1c0c   : > { %v7476_v27 = vpop.xlane.xlu1 %7475 }
0x1c0d   : > { %v10889_v55 = vpop.eup %10888  ;;  %v7511_v28 = vadd.f32 1e-06, %v7495_v10  ;;  %v7496_v18 = vmul.f32 0.015625, %v7476_v27 }
0x1c0e   : > { %v7539_v49 = vmul.f32 %v10889_v55, %v15630_v36  ;;  %v7479_v2 = vpop.xlane.xlu0 %7478 }
0x1c0f   : > { %v10891_v63 = vpop.eup %10890  ;;  %10896 = vrsqrt.f32 %v7511_v28  ;;  %v7512_v9 = vadd.f32 1e-06, %v7496_v18  ;;  %v7497_v4 = vmul.f32 0.015625, %v7479_v2  ;;  %v10185_v28 = vld [vmem:[%s16207_s15 + $0x80] sm:$0xff]   ;;  %v10189_v18 = vld [vmem:[%s16207_s15 + $0x90] sm:$0xff]   ;;  %v10191_v2 = vld [vmem:[%s16207_s15 + $0x98] sm:$0xff]  }
0x1c10   : > { %v7540_v1 = vmul.f32 %v10891_v63, %v15633_v42  ;;  %v7482_v14 = vpop.xlane.xlu1 %7481  ;;  %v7561_v23 = vmul.f32 %v15680_v37, %v7539_v49  ;;  %v10190_v49 = vld [vmem:[%s16207_s15 + $0xd8] sm:$0xff]   ;;  %v10192_v63 = vld [vmem:[%s16207_s15 + $0xe0] sm:$0xff]  }
0x1c11   : > { %v10893_v32 = vpop.eup %10892  ;;  %10898 = vrsqrt.f32 %v7512_v9  ;;  %v7498_v7 = vmul.f32 0.015625, %v7482_v14  ;;  %v7513_v17 = vadd.f32 1e-06, %v7497_v4  ;;  %v10193_v9 = vld [vmem:[%s16207_s15 + $0xa0] sm:$0xff]   ;;  %v10194_v4 = vld [vmem:[%s16207_s15 + $0xe8] sm:$0xff]   ;;  %v10196_v14 = vld [vmem:[%s16207_s15 + $0xf0] sm:$0xff]  }
0x1c12   : > { %v7562_v38 = vmul.f32 %v15680_v37, %v7540_v1  ;;  %v7541_v36 = vmul.f32 %v10893_v32, %v15638_v22  ;;  %v7583_v16 = vadd.f32 %v15688_v20, %v7561_v23  ;;  %v10195_v1 = vld [vmem:[%s16207_s15 + $0xa8] sm:$0xff]   ;;  %v10197_v23 = vld [vmem:[%s16207_s15 + $0xb0] sm:$0xff]   ;;  %v10198_v32 = vld [vmem:[%s16207_s15 + $0xf8] sm:$0xff]  }
0x1c13   : > { %v10895_v5 = vpop.eup %10894  ;;  %v7514_v8 = vadd.f32 1e-06, %v7498_v7  ;;  %v10199_v7 = vld [vmem:[%s16207_s15 + $0xb8] sm:$0xff]  }
0x1c14   : > { %v7542_v54 = vmul.f32 %v10895_v5, %v15644_v52  ;;  %v7584_v13 = vadd.f32 %v15688_v20, %v7562_v38  ;;  %v7563_v30 = vmul.f32 %v15680_v37, %v7541_v36  ;;  %v8827_v38 = vld [vmem:[%s16206_s14 + $0x2] sm:$0x3]  ;;  %v16735_v5 = vld [vmem:[#allocation30_spill] sm:$0xff] }
0x1c15   : > { %10900 = vrsqrt.f32 %v7514_v8  ;;  %v16736_v8 = vld [vmem:[#allocation31_spill] sm:$0xff] }
0x1c16   : > { %v7604_v42 = vpack.c.bf16 %v7584_v13, %v7583_v16  ;;  %v7564_v50 = vmul.f32 %v15680_v37, %v7542_v54  ;;  %10902 = vrsqrt.f32 %v7513_v17  ;;  %v7585_v33 = vadd.f32 %v15688_v20, %v7563_v30 }
0x1c17   : > { %v15802_v17 = vrot.slane %v8827_v38, %v16735_v5  ;;  %v15805_v36 = vrot.slane %v8827_v38, %v16736_v8 }
0x1c18   : > { %8840 = vmatmul.mubr.msk.bf16.gmra.mrb[240].mxu0 %vm836_vm0, %v7604_v42  ;;  %v7586_v22 = vadd.f32 %v15688_v20, %v7564_v50 }
0x1c19   : > { %v10897_v19 = vpop.eup %10896  ;;  %7767 = vmatprep.mubr.bf16.mxu0 %v16734_v15 }
0x1c1a   : > { %v7543_v52 = vmul.f32 %v10897_v19, %v15654_v56  ;;  %v7605_v41 = vpack.c.bf16 %v7586_v22, %v7585_v33 }
0x1c1b   : > { %v10899_v12 = vpop.eup %10898 }
0x1c1c   : > { %v7544_v25 = vmul.f32 %v10899_v12, %v15657_v3  ;;  %v7565_v53 = vmul.f32 %v15680_v37, %v7543_v52 }
0x1c1e   : > { %v7566_v31 = vmul.f32 %v15680_v37, %v7544_v25  ;;  %v7587_v3 = vadd.f32 %v15688_v20, %v7565_v53 }
0x1c1f   : > { %v10901_v59 = vpop.eup %10900 }
0x1c20   : > { %8841 = vmatmul.mubr.msk.bf16.gmra.mrb[244].mxu0 %vm836_vm0, %v7605_v41  ;;  %v10903_v58 = vpop.eup %10902  ;;  %v7546_v11 = vmul.f32 %v10901_v59, %v15668_v61  ;;  %v7588_v45 = vadd.f32 %v15688_v20, %v7566_v31 }
0x1c21   : > { %7777 = vmatprep.mubr.bf16.mxu0 %v16734_v15  ;;  %v7545_v56 = vmul.f32 %v10903_v58, %v15662_v60  ;;  %v10184_v60 = vld [vmem:[%s16207_s15 + $0xc0] sm:$0xff]  }
0x1c22   : > { %v7606_v29 = vpack.c.bf16 %v7588_v45, %v7587_v3  ;;  %v7568_v6 = vmul.f32 %v15680_v37, %v7546_v11  ;;  %9253 = vmatprep.subr.bf16.mxu1 %v10184_v60 }
0x1c23   : > { %v7567_v10 = vmul.f32 %v15680_v37, %v7545_v56  ;;  %9254 = vmatpush3.bf16.msra.mxu1 %v10185_v28  ;;  %v10186_v37 = vld [vmem:[%s16207_s15 + $0xc8] sm:$0xff]  }
0x1c24   : > { %v7590_v27 = vadd.f32 %v15688_v20, %v7568_v6  ;;  %9255 = vmatprep.subr.bf16.mxu1 %v10186_v37 }
0x1c25   : > { %v7589_v55 = vadd.f32 %v15688_v20, %v7567_v10  ;;  %v10187_v20 = vld [vmem:[%s16207_s15 + $0x88] sm:$0xff]  }
0x1c27   : > { %v7607_v61 = vpack.c.bf16 %v7590_v27, %v7589_v55  ;;  %9256 = vmatpush3.bf16.msra.mxu1 %v10187_v20 }
0x1c28   : > { %8842 = vmatmul.mubr.msk.bf16.gmra.mrb[248].mxu0 %vm836_vm0, %v7606_v29 }
0x1c29   : > { %7787 = vmatprep.mubr.bf16.mxu0 %v16734_v15  ;;  %v10188_v15 = vld [vmem:[%s16207_s15 + $0xd0] sm:$0xff]  }
0x1c2a   : > { %9257 = vmatprep.subr.bf16.mxu1 %v10188_v15 }
0x1c2b   : > { %9258 = vmatpush3.bf16.msra.mxu1 %v10189_v18 }
0x1c2c   : > { %9259 = vmatprep.subr.bf16.mxu1 %v10190_v49 }
0x1c2f   : > { %9260 = vmatpush3.bf16.msra.mxu1 %v10191_v2 }
0x1c30   : > { %8843 = vmatmul.mubr.msk.bf16.gmra.mrb[252].mxu0 %vm836_vm0, %v7607_v61  ;;  %9261 = vmatprep.subr.bf16.mxu1 %v10192_v63 }
0x1c33   : > { %9262 = vmatpush3.bf16.msra.mxu1 %v10193_v9 }
0x1c34   : > { %9263 = vmatprep.subr.bf16.mxu1 %v10194_v4 }
0x1c37   : > { %9264 = vmatpush3.bf16.msra.mxu1 %v10195_v1 }
0x1c38   : > { %9265 = vmatprep.subr.bf16.mxu1 %v10196_v14 }
0x1c3b   : > { %9266 = vmatpush3.bf16.msra.mxu1 %v10197_v23 }
0x1c3c   : > { %9267 = vmatprep.subr.bf16.mxu1 %v10198_v32 }
0x1c3f   : > { %9268 = vmatpush3.bf16.msra.mxu1 %v10199_v7 }
0x1caf   : > { %v7719_v54 = vpop.f32.mrb[224].mxu0 }
0x1cb0   : > { %v15808_v16 = vadd.f32 %v7719_v54, %v15802_v17  ;;  %v7721_v13 = vpop.f32.mrb[225].mxu0 }
0x1cb1   : > { %v15811_v42 = vadd.f32 %v7721_v13, %v15805_v36  ;;  %v7723_v50 = vpop.f32.mrb[226].mxu0 }
0x1cb2   : > { %v7798_v30 = vmul.f32 %v15808_v16, %v15808_v16  ;;  %v15816_v19 = vadd.f32 %v7723_v50, %v15802_v17  ;;  %v7725_v22 = vpop.f32.mrb[227].mxu0 }
0x1cb3   : > { %v7799_v12 = vmul.f32 %v15811_v42, %v15811_v42  ;;  %v15821_v52 = vadd.f32 %v7725_v22, %v15805_v36 }
0x1cb4   : > { %v7830_v25 = vmul.f32 %v7798_v30, %v15808_v16  ;;  %v7800_v33 = vmul.f32 %v15816_v19, %v15816_v19 }
0x1cb5   : > { %v7831_v41 = vmul.f32 %v7799_v12, %v15811_v42  ;;  %v7801_v31 = vmul.f32 %v15821_v52, %v15821_v52 }
0x1cb6   : > { %v7862_v59 = vmul.f32 0.044715, %v7830_v25  ;;  %v7832_v53 = vmul.f32 %v7800_v33, %v15816_v19 }
0x1cb7   : > { %v7863_v58 = vmul.f32 0.044715, %v7831_v41  ;;  %v7833_v11 = vmul.f32 %v7801_v31, %v15821_v52  ;;  %v7729_v45 = vpop.f32.mrb[228].mxu0 }
0x1cb8   : > { %v7894_v56 = vadd.f32 %v7862_v59, %v15808_v16  ;;  %v7864_v3 = vmul.f32 0.044715, %v7832_v53  ;;  %v15833_v29 = vadd.f32 %v7729_v45, %v15802_v17  ;;  %v7731_v6 = vpop.f32.mrb[229].mxu0 }
0x1cb9   : > { %v7895_v10 = vadd.f32 %v7863_v58, %v15811_v42  ;;  %v7865_v27 = vmul.f32 0.044715, %v7833_v11  ;;  %v15837_v55 = vadd.f32 %v7731_v6, %v15805_v36  ;;  %v7733_v61 = vpop.f32.mrb[230].mxu0 }
0x1cba   : > { %v7926_v60 = vmul.f32 0.7978846, %v7894_v56  ;;  %v7896_v28 = vadd.f32 %v7864_v3, %v15816_v19  ;;  %v7802_v37 = vmul.f32 %v15833_v29, %v15833_v29  ;;  %v15843_v20 = vadd.f32 %v7733_v61, %v15802_v17  ;;  %v7735_v15 = vpop.f32.mrb[231].mxu0 }
0x1cbb   : > { %v7927_v18 = vmul.f32 0.7978846, %v7895_v10  ;;  %v7897_v49 = vadd.f32 %v7865_v27, %v15821_v52  ;;  %v7803_v2 = vmul.f32 %v15837_v55, %v15837_v55  ;;  %v15849_v63 = vadd.f32 %v7735_v15, %v15805_v36 }
0x1cbc   : > { %10904 = vtanh.f32 %v7926_v60  ;;  %v7928_v9 = vmul.f32 0.7978846, %v7896_v28  ;;  %v7834_v4 = vmul.f32 %v7802_v37, %v15833_v29  ;;  %v7804_v1 = vmul.f32 %v15843_v20, %v15843_v20 }
0x1cbd   : > { %10906 = vtanh.f32 %v7927_v18  ;;  %v7929_v14 = vmul.f32 0.7978846, %v7897_v49  ;;  %v7835_v23 = vmul.f32 %v7803_v2, %v15837_v55  ;;  %v7805_v32 = vmul.f32 %v15849_v63, %v15849_v63 }
0x1cbe   : > { %10908 = vtanh.f32 %v7928_v9  ;;  %v7866_v7 = vmul.f32 0.044715, %v7834_v4  ;;  %v7836_v38 = vmul.f32 %v7804_v1, %v15843_v20 }
0x1cbf   : > { %v7867_v5 = vmul.f32 0.044715, %v7835_v23  ;;  %v7837_v8 = vmul.f32 %v7805_v32, %v15849_v63  ;;  %v7739_v54 = vpop.f32.mrb[232].mxu0  ;;  %10910 = vtanh.f32 %v7929_v14 }
0x1cc0   : > { %v7898_v13 = vadd.f32 %v7866_v7, %v15833_v29  ;;  %v7868_v50 = vmul.f32 0.044715, %v7836_v38  ;;  %v15861_v30 = vadd.f32 %v7739_v54, %v15802_v17  ;;  %v7741_v22 = vpop.f32.mrb[233].mxu0 }
0x1cc1   : > { %v7899_v12 = vadd.f32 %v7867_v5, %v15837_v55  ;;  %v7869_v25 = vmul.f32 0.044715, %v7837_v8  ;;  %v15865_v33 = vadd.f32 %v7741_v22, %v15805_v36  ;;  %v7743_v41 = vpop.f32.mrb[234].mxu0 }
0x1cc2   : > { %v7930_v31 = vmul.f32 0.7978846, %v7898_v13  ;;  %v7900_v59 = vadd.f32 %v7868_v50, %v15843_v20  ;;  %v7806_v53 = vmul.f32 %v15861_v30, %v15861_v30  ;;  %v15871_v58 = vadd.f32 %v7743_v41, %v15802_v17  ;;  %v7745_v11 = vpop.f32.mrb[235].mxu0 }
0x1cc3   : > { %v7931_v45 = vmul.f32 0.7978846, %v7899_v12  ;;  %v7901_v56 = vadd.f32 %v7869_v25, %v15849_v63  ;;  %v7807_v3 = vmul.f32 %v15865_v33, %v15865_v33  ;;  %v15877_v6 = vadd.f32 %v7745_v11, %v15805_v36 }
0x1cc4   : > { %10912 = vtanh.f32 %v7930_v31  ;;  %v7932_v10 = vmul.f32 0.7978846, %v7900_v59  ;;  %v7838_v27 = vmul.f32 %v7806_v53, %v15861_v30  ;;  %v7808_v61 = vmul.f32 %v15871_v58, %v15871_v58 }
0x1cc5   : > { %10914 = vtanh.f32 %v7931_v45  ;;  %v7933_v60 = vmul.f32 0.7978846, %v7901_v56  ;;  %v7839_v28 = vmul.f32 %v7807_v3, %v15865_v33  ;;  %v7809_v37 = vmul.f32 %v15877_v6, %v15877_v6 }
0x1cc6   : > { %v10905_v15 = vpop.eup %10904  ;;  %10916 = vtanh.f32 %v7932_v10  ;;  %v7870_v18 = vmul.f32 0.044715, %v7838_v27  ;;  %v7840_v49 = vmul.f32 %v7808_v61, %v15871_v58 }
0x1cc7   : > { %v10907_v2 = vpop.eup %10906  ;;  %v7990_v9 = vadd.f32 1.0, %v10905_v15  ;;  %10918 = vtanh.f32 %v7933_v60  ;;  %v7871_v4 = vmul.f32 0.044715, %v7839_v28  ;;  %v7841_v1 = vmul.f32 %v7809_v37, %v15877_v6  ;;  %v7749_v14 = vpop.f32.mrb[236].mxu0 }
0x1cc8   : > { %v10909_v23 = vpop.eup %10908  ;;  %v7902_v32 = vadd.f32 %v7870_v18, %v15861_v30  ;;  %v7872_v7 = vmul.f32 0.044715, %v7840_v49  ;;  %v15889_v38 = vadd.f32 %v7749_v14, %v15802_v17  ;;  %v7751_v5 = vpop.f32.mrb[237].mxu0  ;;  %v7991_v8 = vadd.f32 1.0, %v10907_v2 }
0x1cc9   : > { %v8022_v54 = vmul.f32 0.5, %v7990_v9  ;;  %v7992_v13 = vadd.f32 1.0, %v10909_v23  ;;  %v7903_v50 = vadd.f32 %v7871_v4, %v15865_v33  ;;  %v7873_v22 = vmul.f32 0.044715, %v7841_v1  ;;  %v7753_v12 = vpop.f32.mrb[238].mxu0  ;;  %v10911_v11 = vpop.eup %10910 }
0x1cca   : > { %v7934_v25 = vmul.f32 0.7978846, %v7902_v32  ;;  %v7904_v41 = vadd.f32 %v7872_v7, %v15871_v58  ;;  %v7810_v31 = vmul.f32 %v15889_v38, %v15889_v38  ;;  %v15896_v59 = vadd.f32 %v7751_v5, %v15805_v36  ;;  %v7755_v53 = vpop.f32.mrb[239].mxu0 }
0x1ccb   : > { %v8054_v45 = vmul.f32 %v8022_v54, %v15808_v16  ;;  %v8024_v56 = vmul.f32 0.5, %v7992_v13  ;;  %v7935_v3 = vmul.f32 0.7978846, %v7903_v50  ;;  %v7905_v10 = vadd.f32 %v7873_v22, %v15877_v6 }
0x1ccc   : > { %10920 = vtanh.f32 %v7934_v25  ;;  %v7936_v27 = vmul.f32 0.7978846, %v7904_v41  ;;  %v7842_v61 = vmul.f32 %v7810_v31, %v15889_v38  ;;  %v7811_v60 = vmul.f32 %v15896_v59, %v15896_v59 }
0x1ccd   : > { %v8056_v28 = vmul.f32 %v8024_v56, %v15816_v19  ;;  %10922 = vtanh.f32 %v7935_v3  ;;  %v7937_v37 = vmul.f32 0.7978846, %v7905_v10  ;;  %v15905_v15 = vadd.f32 %v7753_v12, %v15802_v17 }
0x1cce   : > { %v10913_v18 = vpop.eup %10912  ;;  %10924 = vtanh.f32 %v7936_v27  ;;  %v7874_v16 = vmul.f32 0.044715, %v7842_v61  ;;  %v7843_v49 = vmul.f32 %v7811_v60, %v15896_v59  ;;  %v15909_v2 = vadd.f32 %v7755_v53, %v15805_v36 }
0x1ccf   : > { %v10915_v9 = vpop.eup %10914  ;;  %v8119_v4 = vpack.c.bf16 %v8056_v28, %v8054_v45  ;;  %10926 = vtanh.f32 %v7937_v37  ;;  %v7812_v1 = vmul.f32 %v15905_v15, %v15905_v15  ;;  %v7993_v19 = vadd.f32 1.0, %v10911_v11 }
0x1cd0   : > { %v10917_v14 = vpop.eup %10916  ;;  %v7906_v23 = vadd.f32 %v7874_v16, %v15889_v38  ;;  %v7875_v32 = vmul.f32 0.044715, %v7843_v49  ;;  %v7813_v7 = vmul.f32 %v15909_v2, %v15909_v2  ;;  %v8023_v5 = vmul.f32 0.5, %v7991_v8 }
0x1cd1   : > { %v10919_v54 = vpop.eup %10918  ;;  %v7844_v13 = vmul.f32 %v7812_v1, %v15905_v15  ;;  %v8025_v50 = vmul.f32 0.5, %v7993_v19  ;;  %v7995_v22 = vadd.f32 1.0, %v10915_v9  ;;  %v7994_v12 = vadd.f32 1.0, %v10913_v18 }
0x1cd2   : > { %v7938_v25 = vmul.f32 0.7978846, %v7906_v23  ;;  %v7907_v41 = vadd.f32 %v7875_v32, %v15896_v59  ;;  %v7845_v31 = vmul.f32 %v7813_v7, %v15909_v2  ;;  %v8055_v53 = vmul.f32 %v8023_v5, %v15811_v42 }
0x1cd3   : > { %v7876_v11 = vmul.f32 0.044715, %v7844_v13  ;;  %v8057_v45 = vmul.f32 %v8025_v50, %v15821_v52  ;;  %v7997_v56 = vadd.f32 1.0, %v10919_v54  ;;  %v8027_v3 = vmul.f32 0.5, %v7995_v22 }
0x1cd4   : > { %10928 = vtanh.f32 %v7938_v25  ;;  %v7939_v8 = vmul.f32 0.7978846, %v7907_v41  ;;  %v7877_v10 = vmul.f32 0.044715, %v7845_v31  ;;  %v7996_v27 = vadd.f32 1.0, %v10917_v14 }
0x1cd5   : > { %v7908_v61 = vadd.f32 %v7876_v11, %v15905_v15  ;;  %v8120_v60 = vpack.c.bf16 %v8057_v45, %v8055_v53  ;;  %v8029_v28 = vmul.f32 0.5, %v7997_v56  ;;  %v8026_v16 = vmul.f32 0.5, %v7994_v12 }
0x1cd6   : > { %v10921_v37 = vpop.eup %10920  ;;  %10930 = vtanh.f32 %v7939_v8  ;;  %v7909_v18 = vadd.f32 %v7877_v10, %v15909_v2  ;;  %v8028_v49 = vmul.f32 0.5, %v7996_v27  ;;  %v8059_v52 = vmul.f32 %v8027_v3, %v15837_v55 }
0x1cd7   : > { %v10923_v42 = vpop.eup %10922  ;;  %v7940_v9 = vmul.f32 0.7978846, %v7908_v61  ;;  %8271 = vmatprep.mubr.bf16.mxu1 %v8120_v60  ;;  %v8061_v1 = vmul.f32 %v8029_v28, %v15849_v63  ;;  %v7998_v19 = vadd.f32 1.0, %v10921_v37  ;;  %v8058_v32 = vmul.f32 %v8026_v16, %v15833_v29 }
0x1cd8   : > { %v10925_v23 = vpop.eup %10924  ;;  %v7941_v14 = vmul.f32 0.7978846, %v7909_v18  ;;  %8272 = vmatmul.mubr.bf16.vlgmr.msra.gmra.mrb[224].mxu1 %v8119_v4  ;;  %v8060_v7 = vmul.f32 %v8028_v49, %v15843_v20  ;;  %v7999_v5 = vadd.f32 1.0, %v10923_v42 }
0x1cd9   : > { %v10927_v54 = vpop.eup %10926  ;;  %10932 = vtanh.f32 %v7940_v9  ;;  %v8122_v13 = vpack.c.bf16 %v8061_v1, %v8059_v52  ;;  %v8000_v50 = vadd.f32 1.0, %v10925_v23  ;;  %v8030_v22 = vmul.f32 0.5, %v7998_v19 }
0x1cda   : > { %10934 = vtanh.f32 %v7941_v14  ;;  %v8121_v12 = vpack.c.bf16 %v8060_v7, %v8058_v32  ;;  %v8001_v25 = vadd.f32 1.0, %v10927_v54  ;;  %v8031_v55 = vmul.f32 0.5, %v7999_v5 }
0x1cdb   : > { %8279 = vmatprep.mubr.bf16.mxu1 %v8122_v13  ;;  %v8032_v63 = vmul.f32 0.5, %v8000_v50  ;;  %v8062_v31 = vmul.f32 %v8030_v22, %v15861_v30 }
0x1cdc   : > { %v8033_v41 = vmul.f32 0.5, %v8001_v25  ;;  %v8063_v20 = vmul.f32 %v8031_v55, %v15865_v33 }
0x1cdd   : > { %v8064_v4 = vmul.f32 %v8032_v63, %v15871_v58 }
0x1cde   : > { %v10929_v29 = vpop.eup %10928  ;;  %v8065_v53 = vmul.f32 %v8033_v41, %v15877_v6 }
0x1cdf   : > { %v8123_v11 = vpack.c.bf16 %v8064_v4, %v8062_v31  ;;  %v8002_v3 = vadd.f32 1.0, %v10929_v29 }
0x1ce0   : > { %v10931_v45 = vpop.eup %10930  ;;  %8280 = vmatmul.mubr.bf16.gmra.mrb[228].mxu1 %v8121_v12  ;;  %v8124_v56 = vpack.c.bf16 %v8065_v53, %v8063_v20 }
0x1ce1   : > { %v8003_v8 = vadd.f32 1.0, %v10931_v45  ;;  %v8034_v60 = vmul.f32 0.5, %v8002_v3 }
0x1ce2   : > { %8287 = vmatprep.mubr.bf16.mxu1 %v8124_v56 }
0x1ce3   : > { %v10933_v10 = vpop.eup %10932  ;;  %v8035_v30 = vmul.f32 0.5, %v8003_v8  ;;  %v8066_v33 = vmul.f32 %v8034_v60, %v15889_v38 }
0x1ce4   : > { %v10935_v27 = vpop.eup %10934  ;;  %v8004_v61 = vadd.f32 1.0, %v10933_v10 }
0x1ce5   : > { %v8005_v28 = vadd.f32 1.0, %v10935_v27  ;;  %v8067_v18 = vmul.f32 %v8035_v30, %v15896_v59 }
0x1ce6   : > { %v8036_v37 = vmul.f32 0.5, %v8004_v61 }
0x1ce7   : > { %v8037_v58 = vmul.f32 0.5, %v8005_v28 }
0x1ce8   : > { %8288 = vmatmul.mubr.bf16.gmra.mrb[232].mxu1 %v8123_v11  ;;  %v8068_v6 = vmul.f32 %v8036_v37, %v15905_v15 }
0x1ce9   : > { %v8069_v16 = vmul.f32 %v8037_v58, %v15909_v2 }
0x1cea   : > { %v8125_v49 = vpack.c.bf16 %v8068_v6, %v8066_v33 }
0x1ceb   : > { %v8126_v42 = vpack.c.bf16 %v8069_v16, %v8067_v18  ;;  %v7759_v9 = vpop.f32.mrb[240].mxu0 }
0x1cec   : > { %v15936_v52 = vadd.f32 %v7759_v9, %v15802_v17  ;;  %v7761_v1 = vpop.f32.mrb[241].mxu0 }
0x1ced   : > { %8295 = vmatprep.mubr.bf16.mxu1 %v8126_v42  ;;  %v15939_v19 = vadd.f32 %v7761_v1, %v15805_v36  ;;  %v7763_v23 = vpop.f32.mrb[242].mxu0 }
0x1cee   : > { %v7814_v38 = vmul.f32 %v15936_v52, %v15936_v52  ;;  %v15944_v15 = vadd.f32 %v7763_v23, %v15802_v17  ;;  %v7765_v59 = vpop.f32.mrb[243].mxu0 }
0x1cef   : > { %v7815_v2 = vmul.f32 %v15939_v19, %v15939_v19  ;;  %v15949_v14 = vadd.f32 %v7765_v59, %v15805_v36 }
0x1cf0   : > { %v7846_v32 = vmul.f32 %v7814_v38, %v15936_v52  ;;  %8296 = vmatmul.mubr.bf16.gmra.mrb[236].mxu1 %v8125_v49  ;;  %v7816_v7 = vmul.f32 %v15944_v15, %v15944_v15 }
0x1cf1   : > { %v7847_v5 = vmul.f32 %v7815_v2, %v15939_v19  ;;  %v7817_v54 = vmul.f32 %v15949_v14, %v15949_v14 }
0x1cf2   : > { %v7878_v13 = vmul.f32 0.044715, %v7846_v32  ;;  %v7848_v50 = vmul.f32 %v7816_v7, %v15944_v15 }
0x1cf3   : > { %v7879_v22 = vmul.f32 0.044715, %v7847_v5  ;;  %v7849_v12 = vmul.f32 %v7817_v54, %v15949_v14  ;;  %v7769_v25 = vpop.f32.mrb[244].mxu0 }
0x1cf4   : > { %v7910_v55 = vadd.f32 %v7878_v13, %v15936_v52  ;;  %v7880_v63 = vmul.f32 0.044715, %v7848_v50  ;;  %v15961_v41 = vadd.f32 %v7769_v25, %v15802_v17  ;;  %v7771_v31 = vpop.f32.mrb[245].mxu0 }
0x1cf5   : > { %v7911_v4 = vadd.f32 %v7879_v22, %v15939_v19  ;;  %v7881_v29 = vmul.f32 0.044715, %v7849_v12  ;;  %v15965_v20 = vadd.f32 %v7771_v31, %v15805_v36  ;;  %v7773_v53 = vpop.f32.mrb[246].mxu0 }
0x1cf6   : > { %v7942_v11 = vmul.f32 0.7978846, %v7910_v55  ;;  %v7912_v45 = vadd.f32 %v7880_v63, %v15944_v15  ;;  %v7818_v56 = vmul.f32 %v15961_v41, %v15961_v41  ;;  %v15971_v3 = vadd.f32 %v7773_v53, %v15802_v17  ;;  %v7775_v8 = vpop.f32.mrb[247].mxu0 }
0x1cf7   : > { %v7943_v10 = vmul.f32 0.7978846, %v7911_v4  ;;  %v7913_v27 = vadd.f32 %v7881_v29, %v15949_v14  ;;  %v7819_v61 = vmul.f32 %v15965_v20, %v15965_v20  ;;  %v15977_v60 = vadd.f32 %v7775_v8, %v15805_v36 }
0x1cf8   : > { %10936 = vtanh.f32 %v7942_v11  ;;  %v7944_v28 = vmul.f32 0.7978846, %v7912_v45  ;;  %v7850_v30 = vmul.f32 %v7818_v56, %v15961_v41  ;;  %v7820_v37 = vmul.f32 %v15971_v3, %v15971_v3 }
0x1cf9   : > { %10938 = vtanh.f32 %v7943_v10  ;;  %v7945_v58 = vmul.f32 0.7978846, %v7913_v27  ;;  %v7851_v33 = vmul.f32 %v7819_v61, %v15965_v20  ;;  %v7821_v6 = vmul.f32 %v15977_v60, %v15977_v60 }
0x1cfa   : > { %10940 = vtanh.f32 %v7944_v28  ;;  %v7882_v18 = vmul.f32 0.044715, %v7850_v30  ;;  %v7852_v16 = vmul.f32 %v7820_v37, %v15971_v3 }
0x1cfb   : > { %v7883_v49 = vmul.f32 0.044715, %v7851_v33  ;;  %v7853_v42 = vmul.f32 %v7821_v6, %v15977_v60  ;;  %v7779_v9 = vpop.f32.mrb[248].mxu0  ;;  %10942 = vtanh.f32 %v7945_v58 }
0x1cfc   : > { %v7914_v1 = vadd.f32 %v7882_v18, %v15961_v41  ;;  %v7884_v23 = vmul.f32 0.044715, %v7852_v16  ;;  %v15989_v38 = vadd.f32 %v7779_v9, %v15802_v17  ;;  %v7781_v59 = vpop.f32.mrb[249].mxu0 }
0x1cfd   : > { %v7915_v2 = vadd.f32 %v7883_v49, %v15965_v20  ;;  %v7885_v32 = vmul.f32 0.044715, %v7853_v42  ;;  %v15993_v7 = vadd.f32 %v7781_v59, %v15805_v36  ;;  %v7783_v5 = vpop.f32.mrb[250].mxu0 }
0x1cfe   : > { %v7946_v54 = vmul.f32 0.7978846, %v7914_v1  ;;  %v7916_v13 = vadd.f32 %v7884_v23, %v15971_v3  ;;  %v7822_v50 = vmul.f32 %v15989_v38, %v15989_v38  ;;  %v15999_v22 = vadd.f32 %v7783_v5, %v15802_v17  ;;  %v7785_v12 = vpop.f32.mrb[251].mxu0 }
0x1cff   : > { %v7947_v25 = vmul.f32 0.7978846, %v7915_v2  ;;  %v7917_v55 = vadd.f32 %v7885_v32, %v15977_v60  ;;  %v7823_v63 = vmul.f32 %v15993_v7, %v15993_v7  ;;  %v16005_v31 = vadd.f32 %v7785_v12, %v15805_v36 }
0x1d00   : > { %10944 = vtanh.f32 %v7946_v54  ;;  %v7948_v4 = vmul.f32 0.7978846, %v7916_v13  ;;  %v7854_v29 = vmul.f32 %v7822_v50, %v15989_v38  ;;  %v7824_v53 = vmul.f32 %v15999_v22, %v15999_v22 }
0x1d01   : > { %10946 = vtanh.f32 %v7947_v25  ;;  %v7949_v11 = vmul.f32 0.7978846, %v7917_v55  ;;  %v7855_v45 = vmul.f32 %v7823_v63, %v15993_v7  ;;  %v7825_v56 = vmul.f32 %v16005_v31, %v16005_v31 }
0x1d02   : > { %v10937_v8 = vpop.eup %10936  ;;  %10948 = vtanh.f32 %v7948_v4  ;;  %v7886_v10 = vmul.f32 0.044715, %v7854_v29  ;;  %v7856_v27 = vmul.f32 %v7824_v53, %v15999_v22 }
0x1d03   : > { %v10939_v61 = vpop.eup %10938  ;;  %10950 = vtanh.f32 %v7949_v11  ;;  %v7887_v28 = vmul.f32 0.044715, %v7855_v45  ;;  %v7857_v30 = vmul.f32 %v7825_v56, %v16005_v31  ;;  %v7789_v37 = vpop.f32.mrb[252].mxu0  ;;  %v8006_v58 = vadd.f32 1.0, %v10937_v8 }
0x1d04   : > { %v10941_v33 = vpop.eup %10940  ;;  %v7918_v6 = vadd.f32 %v7886_v10, %v15989_v38  ;;  %v7888_v18 = vmul.f32 0.044715, %v7856_v27  ;;  %v16017_v16 = vadd.f32 %v7789_v37, %v15802_v17  ;;  %v7791_v49 = vpop.f32.mrb[253].mxu0  ;;  %v8007_v42 = vadd.f32 1.0, %v10939_v61 }
0x1d05   : > { %v7919_v9 = vadd.f32 %v7887_v28, %v15993_v7  ;;  %v7889_v1 = vmul.f32 0.044715, %v7857_v30  ;;  %v16021_v23 = vadd.f32 %v7791_v49, %v15805_v36  ;;  %v7793_v59 = vpop.f32.mrb[254].mxu0  ;;  %v8008_v2 = vadd.f32 1.0, %v10941_v33  ;;  %v10943_v12 = vpop.eup %10942 }
0x1d06   : > { %v7950_v32 = vmul.f32 0.7978846, %v7918_v6  ;;  %v7920_v5 = vadd.f32 %v7888_v18, %v15999_v22  ;;  %v7826_v54 = vmul.f32 %v16017_v16, %v16017_v16  ;;  %v16027_v13 = vadd.f32 %v7793_v59, %v15802_v17  ;;  %v7795_v50 = vpop.f32.mrb[255].mxu0 }
0x1d07   : > { %v7951_v25 = vmul.f32 0.7978846, %v7919_v9  ;;  %v7921_v55 = vadd.f32 %v7889_v1, %v16005_v31  ;;  %v7827_v63 = vmul.f32 %v16021_v23, %v16021_v23  ;;  %v16033_v4 = vadd.f32 %v7795_v50, %v15805_v36 }
0x1d08   : > { %10952 = vtanh.f32 %v7950_v32  ;;  %v7952_v29 = vmul.f32 0.7978846, %v7920_v5  ;;  %v7858_v53 = vmul.f32 %v7826_v54, %v16017_v16  ;;  %v7828_v11 = vmul.f32 %v16027_v13, %v16027_v13 }
0x1d09   : > { %10954 = vtanh.f32 %v7951_v25  ;;  %v7953_v17 = vmul.f32 0.7978846, %v7921_v55  ;;  %v7859_v45 = vmul.f32 %v7827_v63, %v16021_v23  ;;  %v7829_v56 = vmul.f32 %v16033_v4, %v16033_v4 }
0x1d0a   : > { %v10945_v8 = vpop.eup %10944  ;;  %10956 = vtanh.f32 %v7952_v29  ;;  %v7890_v10 = vmul.f32 0.044715, %v7858_v53  ;;  %v7860_v36 = vmul.f32 %v7828_v11, %v16027_v13  ;;  %v8009_v27 = vadd.f32 1.0, %v10943_v12 }
0x1d0b   : > { %v10947_v61 = vpop.eup %10946  ;;  %10958 = vtanh.f32 %v7953_v17  ;;  %v7891_v28 = vmul.f32 0.044715, %v7859_v45  ;;  %v7861_v30 = vmul.f32 %v7829_v56, %v16033_v4  ;;  %v8039_v37 = vmul.f32 0.5, %v8007_v42 }
0x1d0c   : > { %v10949_v33 = vpop.eup %10948  ;;  %v7922_v6 = vadd.f32 %v7890_v10, %v16017_v16  ;;  %v7892_v18 = vmul.f32 0.044715, %v7860_v36  ;;  %v8041_v49 = vmul.f32 0.5, %v8009_v27  ;;  %v8038_v9 = vmul.f32 0.5, %v8006_v58 }
0x1d0d   : > { %v10951_v1 = vpop.eup %10950  ;;  %v7923_v59 = vadd.f32 %v7891_v28, %v16021_v23  ;;  %v7893_v32 = vmul.f32 0.044715, %v7861_v30  ;;  %v8071_v5 = vmul.f32 %v8039_v37, %v15939_v19  ;;  %v8040_v54 = vmul.f32 0.5, %v8008_v2 }
0x1d0e   : > { %v7954_v50 = vmul.f32 0.7978846, %v7922_v6  ;;  %v7924_v12 = vadd.f32 %v7892_v18, %v16027_v13  ;;  %v8073_v25 = vmul.f32 %v8041_v49, %v15949_v14  ;;  %v8070_v42 = vmul.f32 %v8038_v9, %v15936_v52 }
0x1d0f   : > { %v7955_v55 = vmul.f32 0.7978846, %v7923_v59  ;;  %v7925_v63 = vadd.f32 %v7893_v32, %v16033_v4  ;;  %v8072_v29 = vmul.f32 %v8040_v54, %v15944_v15  ;;  %v8011_v58 = vadd.f32 1.0, %v10947_v61 }
0x1d10   : > { %10960 = vtanh.f32 %v7954_v50  ;;  %v7956_v53 = vmul.f32 0.7978846, %v7924_v12  ;;  %v8128_v11 = vpack.c.bf16 %v8073_v25, %v8071_v5  ;;  %v8013_v17 = vadd.f32 1.0, %v10951_v1 }
0x1d11   : > { %10962 = vtanh.f32 %v7955_v55  ;;  %v7957_v19 = vmul.f32 0.7978846, %v7925_v63  ;;  %v8127_v2 = vpack.c.bf16 %v8072_v29, %v8070_v42  ;;  %v8043_v45 = vmul.f32 0.5, %v8011_v58 }
0x1d12   : > { %v10953_v56 = vpop.eup %10952  ;;  %10964 = vtanh.f32 %v7956_v53  ;;  %8303 = vmatprep.mubr.bf16.mxu1 %v8128_v11  ;;  %v8045_v14 = vmul.f32 0.5, %v8013_v17  ;;  %v8010_v10 = vadd.f32 1.0, %v10945_v8  ;;  %v8012_v52 = vadd.f32 1.0, %v10949_v33 }
0x1d13   : > { %v10955_v36 = vpop.eup %10954  ;;  %10966 = vtanh.f32 %v7957_v19  ;;  %8304 = vmatmul.mubr.bf16.gmra.mrb[240].mxu1 %v8127_v2  ;;  %v8075_v15 = vmul.f32 %v8043_v45, %v15965_v20  ;;  %v8014_v27 = vadd.f32 1.0, %v10953_v56 }
0x1d14   : > { %v10957_v61 = vpop.eup %10956  ;;  %v8077_v28 = vmul.f32 %v8045_v14, %v15977_v60  ;;  %v8042_v30 = vmul.f32 0.5, %v8010_v10  ;;  %v8044_v37 = vmul.f32 0.5, %v8012_v52  ;;  %v8015_v6 = vadd.f32 1.0, %v10955_v36 }
0x1d15   : > { %v10959_v18 = vpop.eup %10958  ;;  %v8016_v49 = vadd.f32 1.0, %v10957_v61  ;;  %v8046_v9 = vmul.f32 0.5, %v8014_v27  ;;  %v16737_v52 = vlaneseq  ;;  %v11102_v61 = vmov 1.0  }
0x1d16   : > { %v8130_v1 = vpack.c.bf16 %v8077_v28, %v8075_v15  ;;  %v8074_v59 = vmul.f32 %v8042_v30, %v15961_v41  ;;  %v8076_v8 = vmul.f32 %v8044_v37, %v15971_v3  ;;  %v8017_v33 = vadd.f32 1.0, %v10959_v18  ;;  %v16738_v15 = vld [vmem:[#allocation29_spill] sm:$0xff] }
0x1d17   : > { %v8047_v32 = vmul.f32 0.5, %v8015_v6  ;;  %v8048_v5 = vmul.f32 0.5, %v8016_v49  ;;  %v8078_v50 = vmul.f32 %v8046_v9, %v15989_v38  ;;  %v16064_v36 = vand.u32 127, %v16737_v52  ;;  %v16077_v30 = vld [vmem:[%s16209_s17 + $0x1] ss:$0 sm:$0xff] }
0x1d18   : > { %8311 = vmatprep.mubr.bf16.mxu1 %v8130_v1  ;;  %v8129_v20 = vpack.c.bf16 %v8076_v8, %v8074_v59  ;;  %v8049_v54 = vmul.f32 0.5, %v8017_v33  ;;  %v8381_v27 = vmul.u32 8, %v16738_v15 }
0x1d19   : > { %v8080_v60 = vmul.f32 %v8048_v5, %v15999_v22  ;;  %v8079_v25 = vmul.f32 %v8047_v32, %v15993_v7 }
0x1d1a   : > { %v10961_v12 = vpop.eup %10960  ;;  %v8081_v42 = vmul.f32 %v8049_v54, %v16005_v31  ;;  %vm8383_vm4 = vcmp.eq.s32.totalorder %v16064_v36, %v8381_v27 }
0x1d1b   : > { %v10963_v55 = vpop.eup %10962  ;;  %8312 = vmatmul.mubr.bf16.gmra.mrb[244].mxu1 %v8129_v20  ;;  %v8131_v41 = vpack.c.bf16 %v8080_v60, %v8078_v50  ;;  %v8018_v63 = vadd.f32 1.0, %v10961_v12  ;;  %9927 = vmatprep.mubr.msk.f32.mxu0 %vm8383_vm4, %v11102_v61 }
0x1d1c   : > { %v10965_v3 = vpop.eup %10964  ;;  %v8132_v29 = vpack.c.bf16 %v8081_v42, %v8079_v25  ;;  %v8019_v58 = vadd.f32 1.0, %v10963_v55 }
0x1d1d   : > { %v10967_v53 = vpop.eup %10966  ;;  %v8020_v11 = vadd.f32 1.0, %v10965_v3  ;;  %v8050_v17 = vmul.f32 0.5, %v8018_v63 }
0x1d1e   : > { %8319 = vmatprep.mubr.bf16.mxu1 %v8132_v29  ;;  %v8021_v19 = vadd.f32 1.0, %v10967_v53  ;;  %v8051_v38 = vmul.f32 0.5, %v8019_v58 }
0x1d1f   : > { %v8052_v2 = vmul.f32 0.5, %v8020_v11  ;;  %v8082_v45 = vmul.f32 %v8050_v17, %v16017_v16 }
0x1d20   : > { %v8053_v22 = vmul.f32 0.5, %v8021_v19  ;;  %v8083_v31 = vmul.f32 %v8051_v38, %v16021_v23  ;;  %v16072_v23 = vld [vmem:[%s16208_s16 + $0x1] ss:$0 sm:$0xff] }
0x1d21   : > { %v8084_v7 = vmul.f32 %v8052_v2, %v16027_v13 }
0x1d22   : > { %v8085_v56 = vmul.f32 %v8053_v22, %v16033_v4 }
0x1d23   : > { %8320 = vmatmul.mubr.bf16.gmra.mrb[248].mxu1 %v8131_v41  ;;  %v8133_v14 = vpack.c.bf16 %v8084_v7, %v8082_v45 }
0x1d24   : > { %v8134_v10 = vpack.c.bf16 %v8085_v56, %v8083_v31 }
0x1d26   : > { %8327 = vmatprep.mubr.bf16.mxu1 %v8134_v10 }
0x1d2b   : > { %8328 = vmatmul.mubr.bf16.gmra.mrb[252].mxu1 %v8133_v14 }
0x1dab   : > { %v9269_v16 = vpop.f32.mrb[224].mxu1 }
0x1dac   : > { %v9270_v13 = vpop.f32.mrb[225].mxu1 }
0x1dad   : > { %v9271_v4 = vadd.f32 %v9270_v13, %v9269_v16  ;;  %v9272_v28 = vpop.f32.mrb[226].mxu1 }
0x1dae   : > { %v9273_v37 = vpop.f32.mrb[227].mxu1 }
0x1daf   : > { %v8274_v6 = vadd.f32 %v9271_v4, %v16072_v23  ;;  %v9274_v18 = vadd.f32 %v9273_v37, %v9272_v28 }
0x1db1   : > { %v8344_v49 = vmul.f32 %v16077_v30, %v8274_v6  ;;  %v8277_v9 = vadd.f32 %v9274_v18, %v16072_v23 }
0x1db3   : > { %v8345_v1 = vmul.f32 %v16077_v30, %v8277_v9  ;;  %v9275_v59 = vpop.f32.mrb[228].mxu1  ;;  %v8360_v5 = vadd.f32 %v8344_v49, %v15452_v35 }
0x1db4   : > { %v9276_v8 = vpop.f32.mrb[229].mxu1 }
0x1db5   : > { %v9277_v33 = vadd.f32 %v9276_v8, %v9275_v59  ;;  %v9278_v32 = vpop.f32.mrb[230].mxu1  ;;  %v8361_v20 = vadd.f32 %v8345_v1, %v15460_v21 }
0x1db6   : > { %v9279_v54 = vpop.f32.mrb[231].mxu1 }
0x1db7   : > { %v8282_v50 = vadd.f32 %v9277_v33, %v16072_v23  ;;  %v9280_v60 = vadd.f32 %v9279_v54, %v9278_v32  ;;  %v9930_v12 = vpack.c.bf16 %v8361_v20, %v8360_v5 }
0x1db9   : > { %v8346_v25 = vmul.f32 %v16077_v30, %v8282_v50  ;;  %v8285_v42 = vadd.f32 %v9280_v60, %v16072_v23  ;;  %9931 = vmatprep.subr.bf16.mxu0 %v9930_v12 }
0x1dba   : > { %9933 = vmatpush3.bf16.msra.mxu0 %v9930_v12 }
0x1dbb   : > { %v8347_v55 = vmul.f32 %v16077_v30, %v8285_v42  ;;  %v9281_v41 = vpop.f32.mrb[232].mxu1  ;;  %v8362_v35 = vadd.f32 %v8346_v25, %v15456_v44 }
0x1dbc   : > { %v9282_v63 = vpop.f32.mrb[233].mxu1 }
0x1dbd   : > { %v9283_v3 = vadd.f32 %v9282_v63, %v9281_v41  ;;  %v9284_v29 = vpop.f32.mrb[234].mxu1  ;;  %v8363_v21 = vadd.f32 %v8347_v55, %v15467_v39 }
0x1dbe   : > { %v9285_v58 = vpop.f32.mrb[235].mxu1 }
0x1dbf   : > { %v8290_v53 = vadd.f32 %v9283_v3, %v16072_v23  ;;  %v9286_v11 = vadd.f32 %v9285_v58, %v9284_v29  ;;  %v9934_v17 = vpack.c.bf16 %v8363_v21, %v8362_v35 }
0x1dc1   : > { %v8348_v19 = vmul.f32 %v16077_v30, %v8290_v53  ;;  %v8293_v38 = vadd.f32 %v9286_v11, %v16072_v23  ;;  %9935 = vmatprep.subr.bf16.mxu0 %v9934_v17 }
0x1dc2   : > { %9937 = vmatpush3.bf16.msra.mxu0 %v9934_v17 }
0x1dc3   : > { %v8349_v2 = vmul.f32 %v16077_v30, %v8293_v38  ;;  %v9287_v22 = vpop.f32.mrb[236].mxu1  ;;  %v8364_v44 = vadd.f32 %v8348_v19, %v15480_v34 }
0x1dc4   : > { %v9288_v45 = vpop.f32.mrb[237].mxu1 }
0x1dc5   : > { %v9289_v7 = vadd.f32 %v9288_v45, %v9287_v22  ;;  %v9290_v31 = vpop.f32.mrb[238].mxu1  ;;  %v8365_v39 = vadd.f32 %v8349_v2, %v15488_v26 }
0x1dc6   : > { %v9291_v56 = vpop.f32.mrb[239].mxu1 }
0x1dc7   : > { %v8298_v14 = vadd.f32 %v9289_v7, %v16072_v23  ;;  %v9292_v10 = vadd.f32 %v9291_v56, %v9290_v31  ;;  %v9938_v52 = vpack.c.bf16 %v8365_v39, %v8364_v44 }
0x1dc9   : > { %v8350_v27 = vmul.f32 %v16077_v30, %v8298_v14  ;;  %v8301_v16 = vadd.f32 %v9292_v10, %v16072_v23  ;;  %9939 = vmatprep.subr.bf16.mxu0 %v9938_v52 }
0x1dca   : > { %9941 = vmatpush3.bf16.msra.mxu0 %v9938_v52  ;;  %v8378_v52 = vadd.s32 8, %v16738_v15 }
0x1dcb   : > { %v8351_v13 = vmul.f32 %v16077_v30, %v8301_v16  ;;  %v8366_v4 = vadd.f32 %v8350_v27, %v15485_v43 }
0x1dcd   : > { %v8367_v28 = vadd.f32 %v8351_v13, %v15493_v0 }
0x1dcf   : > { %v9942_v34 = vpack.c.bf16 %v8367_v28, %v8366_v4 }
0x1dd1   : > { %9943 = vmatprep.subr.bf16.mxu0 %v9942_v34 }
0x1dd2   : > { %9945 = vmatpush3.bf16.msra.mxu0 %v9942_v34 }
0x1de6   : > { %v9293_v26 = vpop.f32.mrb[240].mxu1 }
0x1de7   : > { %v9294_v37 = vpop.f32.mrb[241].mxu1 }
0x1de8   : > { %v9295_v6 = vadd.f32 %v9294_v37, %v9293_v26  ;;  %v9296_v18 = vpop.f32.mrb[242].mxu1 }
0x1de9   : > { %v9297_v49 = vpop.f32.mrb[243].mxu1 }
0x1dea   : > { %v8306_v9 = vadd.f32 %v9295_v6, %v16072_v23  ;;  %v9298_v1 = vadd.f32 %v9297_v49, %v9296_v18 }
0x1dec   : > { %v8352_v59 = vmul.f32 %v16077_v30, %v8306_v9  ;;  %v8309_v8 = vadd.f32 %v9298_v1, %v16072_v23 }
0x1dee   : > { %v8353_v33 = vmul.f32 %v16077_v30, %v8309_v8  ;;  %v9299_v43 = vpop.f32.mrb[244].mxu1  ;;  %v8368_v20 = vadd.f32 %v8352_v59, %v15508_v57 }
0x1def   : > { %v9300_v32 = vpop.f32.mrb[245].mxu1 }
0x1df0   : > { %v9301_v0 = vadd.f32 %v9300_v32, %v9299_v43  ;;  %v9302_v5 = vpop.f32.mrb[246].mxu1  ;;  %v8369_v54 = vadd.f32 %v8353_v33, %v15516_v47  ;;  %v8900_v32 = vld [vmem:[%s16210_s18] ss:$0 sm:$0xff] }
0x1df1   : > { %v9303_v50 = vpop.f32.mrb[247].mxu1 }
0x1df2   : > { %v8314_v60 = vadd.f32 %v9301_v0, %v16072_v23  ;;  %v9304_v12 = vadd.f32 %v9303_v50, %v9302_v5  ;;  %v9946_v25 = vpack.c.bf16 %v8369_v54, %v8368_v20  ;;  %v8901_v20 = vld [vmem:[%s16739_s4] ss:$0 sm:$0xff] }
0x1df4   : > { %v8354_v42 = vmul.f32 %v16077_v30, %v8314_v60  ;;  %v8317_v55 = vadd.f32 %v9304_v12, %v16072_v23  ;;  %9947 = vmatprep.subr.bf16.mxu0 %v9946_v25 }
0x1df5   : > { %9949 = vmatpush3.bf16.msra.mxu0 %v9946_v25 }
0x1df6   : > { %v8355_v41 = vmul.f32 %v16077_v30, %v8317_v55  ;;  %v9305_v63 = vpop.f32.mrb[248].mxu1  ;;  %v8370_v57 = vadd.f32 %v8354_v42, %v15513_v46 }
0x1df7   : > { %v9306_v3 = vpop.f32.mrb[249].mxu1 }
0x1df8   : > { %v9307_v29 = vadd.f32 %v9306_v3, %v9305_v63  ;;  %v9308_v35 = vpop.f32.mrb[250].mxu1  ;;  %v8371_v47 = vadd.f32 %v8355_v41, %v15521_v51 }
0x1df9   : > { %v9309_v21 = vpop.f32.mrb[251].mxu1 }
0x1dfa   : > { %v8322_v58 = vadd.f32 %v9307_v29, %v16072_v23  ;;  %v9310_v53 = vadd.f32 %v9309_v21, %v9308_v35  ;;  %v9950_v11 = vpack.c.bf16 %v8371_v47, %v8370_v57 }
0x1dfc   : > { %v8356_v17 = vmul.f32 %v16077_v30, %v8322_v58  ;;  %v8325_v19 = vadd.f32 %v9310_v53, %v16072_v23  ;;  %9951 = vmatprep.subr.bf16.mxu0 %v9950_v11 }
0x1dfd   : > { %9953 = vmatpush3.bf16.msra.mxu0 %v9950_v11 }
0x1dfe   : > { %v8357_v38 = vmul.f32 %v16077_v30, %v8325_v19  ;;  %v9311_v2 = vpop.f32.mrb[252].mxu1  ;;  %v8372_v46 = vadd.f32 %v8356_v17, %v15536_v62 }
0x1dff   : > { %v9312_v22 = vpop.f32.mrb[253].mxu1 }
0x1e00   : > { %v9313_v45 = vadd.f32 %v9312_v22, %v9311_v2  ;;  %v9314_v7 = vpop.f32.mrb[254].mxu1  ;;  %v8373_v51 = vadd.f32 %v8357_v38, %v15544_v24  ;;  %v8382_v24 = vmul.u32 8, %v8378_v52 }
0x1e01   : > { %v9315_v31 = vpop.f32.mrb[255].mxu1 }
0x1e02   : > { %v8330_v44 = vadd.f32 %v9313_v45, %v16072_v23  ;;  %v9316_v39 = vadd.f32 %v9315_v31, %v9314_v7  ;;  %v9954_v56 = vpack.c.bf16 %v8373_v51, %v8372_v46  ;;  %vm8384_vm5 = vcmp.eq.s32.totalorder %v16064_v36, %v8382_v24 }
0x1e04   : > { %v8358_v14 = vmul.f32 %v16077_v30, %v8330_v44  ;;  %v8333_v10 = vadd.f32 %v9316_v39, %v16072_v23  ;;  %9955 = vmatprep.subr.bf16.mxu0 %v9954_v56 }
0x1e05   : > { %9957 = vmatpush3.bf16.msra.mxu0 %v9954_v56 }
0x1e06   : > { %v8359_v27 = vmul.f32 %v16077_v30, %v8333_v10  ;;  %v8374_v16 = vadd.f32 %v8358_v14, %v15541_v48 }
0x1e08   : > { %v8375_v62 = vadd.f32 %v8359_v27, %v15549_v40 }
0x1e0a   : > { %v9958_v13 = vpack.c.bf16 %v8375_v62, %v8374_v16 }
0x1e0c   : > { %9959 = vmatprep.subr.bf16.mxu0 %v9958_v13 }
0x1e0d   : > { %9961 = vmatpush3.bf16.msra.mxu0 %v9958_v13 }
0x1e10   : > { %9928 = vmatmul.mubr.msk.f32.vlgmr.msra.gmra.mrb[0].mxu0 %vm8384_vm5, %v11102_v61 }
0x1ee3   : > { %v9929_v4 = vpop.f32.mrb[0].mxu0 }
0x1ee4   : > { %v8455_v23 = vpop.f32.mrb[1].mxu0  ;;  %v8469_v28 = vsel %vm836_vm0, %v9929_v4, 0.0 }
0x1ee5   : > { %v8466_v15 = vsel %vm836_vm0, %v8455_v23, 0.0  ;;  %8470 = vadd.xlane.f32.xlu1 %v8469_v28 }
0x1ee6   : > { %8467 = vadd.xlane.f32.xlu0 %v8466_v15 }
0x1f72   : > { %v8471_v30 = vpop.xlane.xlu1 %8470 }
0x1f73   : > { %v8473_v48 = vmul.f32 0.015625, %v8471_v30  ;;  %v8468_v34 = vpop.xlane.xlu0 %8467 }
0x1f74   : > { %v8472_v40 = vmul.f32 0.015625, %v8468_v34 }
0x1f75   : > { %v8475_v26 = vsub.f32 %v9929_v4, %v8473_v48 }
0x1f76   : > { %v8474_v37 = vsub.f32 %v8455_v23, %v8472_v40 }
0x1f77   : > { %v8477_v6 = vmul.f32 %v8475_v26, %v8475_v26 }
0x1f78   : > { %v8476_v18 = vmul.f32 %v8474_v37, %v8474_v37 }
0x1f79   : > { %v8481_v36 = vsel %vm836_vm0, %v8477_v6, 0.0 }
0x1f7a   : > { %8482 = vadd.xlane.f32.xlu1 %v8481_v36  ;;  %v8478_v61 = vsel %vm836_vm0, %v8476_v18, 0.0 }
0x1f7b   : > { %8479 = vadd.xlane.f32.xlu0 %v8478_v61 }
0x2007   : > { %v8483_v49 = vpop.xlane.xlu1 %8482 }
0x2008   : > { %v8485_v9 = vmul.f32 0.015625, %v8483_v49  ;;  %v8480_v1 = vpop.xlane.xlu0 %8479 }
0x2009   : > { %v8484_v59 = vmul.f32 0.015625, %v8480_v1 }
0x200a   : > { %v8487_v8 = vadd.f32 1e-06, %v8485_v9 }
0x200b   : > { %v8486_v33 = vadd.f32 1e-06, %v8484_v59 }
0x200c   : > { %10968 = vrsqrt.f32 %v8487_v8 }
0x200d   : > { %10970 = vrsqrt.f32 %v8486_v33 }
0x2016   : > { %v10969_v43 = vpop.eup %10968 }
0x2017   : > { %v10971_v0 = vpop.eup %10970  ;;  %v8491_v5 = vmul.f32 %v10969_v43, %v8475_v26 }
0x2018   : > { %v8490_v54 = vmul.f32 %v10971_v0, %v8474_v37 }
0x2019   : > { %v8499_v50 = vmul.f32 %v8900_v32, %v8491_v5 }
0x201a   : > { %v8498_v60 = vmul.f32 %v8900_v32, %v8490_v54 }
0x201b   : > { %v8507_v12 = vadd.f32 %v8901_v20, %v8499_v50 }
0x201c   : > { %v8506_v25 = vadd.f32 %v8901_v20, %v8498_v60 }
0x201d   : > { %8509 = vst.msk [vmem:[%s625_s30 + $0x8] sm:$0xff] %vm836_vm0, %v8507_v12 }
0x201e   : > { %8508 = vst.msk [vmem:[%s625_s30] sm:$0xff] %vm836_vm0, %v8506_v25 }
0x201f   : > { %11043 = shalt.err (!%p11040_p3)
}
0x2020   : > { %s11044_s19 = scalar_lea.hbm %s16145_s3, 256  ;;  %s11048_s23 = scalar_lea.hbm %s16741_s0, 512 }
0x2021   : > { %p11045_p4 = scmp.ne.s32.totalorder %s16145_s3, %s11044_s19  ;;  %p11049_p9 = scmp.lt.u32.totalorder %s16145_s3, %s16741_s0 }
0x2022   : > { %p11050_p10 = scmp.lt.u32.totalorder %s11048_s23, %s11044_s19  ;;  %p11052_p12 = scmp.lt.u32.totalorder %s11044_s19, %s16145_s3 }
0x2023   : > { %p11046_p7 = pnand %p11045_p4, %p11249_p5 }
0x2024   : > { %p11051_p11 = por %p11050_p10, %p11049_p9 }
0x2025   : > { %p11047_p8 = pneg %p11046_p7 }
0x2026   : > { %p11053_p13 = por %p11052_p12, %p11051_p11 }
0x2028   : > { %p11054_p0 = pnand %p11053_p13, %p11047_p8 }
0x202a   : > { %11057 = shalt.err (!%p11054_p0)
}
0x202b   : > { %s11104_s28 = smov 128   ;;  %s11105_s20 = smov 8  }
0x202c   : > { %10026 = dma.vmem_to_hbm [thread:$0]  (%p11249_p5), %s16147_s29, 256, %s16145_s3, %s16151_s2, %s11104_s28, %s11104_s28, %s11105_s20  }
0x202d PF: > { %s16742_s24 = sld [smem:[#allocation8_spill]]  ;;  %s16743_s27 = sld [smem:[#allocation6_spill]] }
0x2033   : > { %p10032_p1 = scmp.ge.s32.totalorder %s16742_s24, 2  ;;  %s8539_s21 = sand.u32 1, %s16743_s27  }
0x2034   : > { %s8540_s19 = scalar_lea.sflag [#allocation4], %s8539_s21 }
0x2035   : > { %p10029_p2 = pnand %p10032_p1, %p11253_p6 }
0x2037   : > { %11075 = dma.done.wait (!%p10029_p2), %s8540_s19, 256  }
0x2038   : > { %11077 = vsyncadd (!%p10029_p2), %s8540_s19, 4294967040  ;;  %s16745_s24 = sld [smem:[#allocation9_spill]]  ;;  %s16746_s4 = sld [smem:[#allocation7_spill]] }
0x2039   : > { %s16747_s23 = sld [smem:[#allocation10_spill]]  ;;  %s16748_s1 = smov %s11084_s22 }
0x203e   : > { %p30_p3 = scmp.ge.s32.totalorder %s16745_s24, 4   ;;  %s16749_s22 = smov %s16746_s4 }
0x2040   :  { %32 = sbr.rel (!%p30_p3) target bundleno = 11 (0xb), region = 149 }
0x2047   :  { %8545 = vsyncpa [#allocation4], 1 }
0x2048   :  { %8547 = vsyncpa [#allocation4 + $0x1], 1 }

</bundles_post_ra>
